<compile_context>
chip_gen: v7x
topology: tpu7x:2x2x1
jax: 0.10.0
libtpu: 0.0.40
codegen_flags: <defaults>
</compile_context>

<pallas_src>
import functools
import math
from collections import namedtuple

import jax
import jax.numpy as jnp
import numpy as np
from jax import lax
from jax.experimental import pallas as pl
from jax.experimental.pallas import tpu as pltpu

BN_EPS = 1e-5
NUM_CLASSES = 10
BASE = 8                      # conv1 output channels (small synthetic widths)
LAYERS = (2, 2, 2, 2)         # ResNet-18 block counts
ROW_ALIGN = 16                # sublane alignment of row-flattened layouts (bf16 tile)


def _round_up(x, m):
    return ((x + m - 1) // m) * m


Geo = namedtuple("Geo", "kh kw s wlane cin Ho Wo Hh Wh Whp lph mout L rows")


# ---------------------------------------------------------------------------
# Pallas kernels
# ---------------------------------------------------------------------------

def _conv_kernel(*refs, taps, mout, relu, has_res):
    """Sum of lane-packed shifted matmuls + f32 BN scale/bias (+res) (+ReLU).

    refs:
      ph_ref : (1, rows, L)  bf16  phase-decomposed, lane-window-packed slab
      w_ref  : (G, L, cout)  bf16  one lane-packed weight block per tap
      sc_ref : (1, cout)     f32   BN scale
      b_ref  : (1, cout)     f32   BN bias
      res_ref: (1, mout, cout) bf16  (only when has_res)
      o_ref  : (1, mout, cout) bf16
    """
    if has_res:
        ph_ref, w_ref, sc_ref, b_ref, res_ref, o_ref = refs
    else:
        ph_ref, w_ref, sc_ref, b_ref, o_ref = refs
    cout = o_ref.shape[-1]
    acc = jnp.zeros((mout, cout), jnp.float32)
    for t, off in enumerate(taps):
        acc = acc + jnp.dot(ph_ref[0, off:off + mout, :], w_ref[t],
                            preferred_element_type=jnp.float32)
    out = acc * sc_ref[...] + b_ref[...]
    if has_res:
        out = out + res_ref[0].astype(jnp.float32)
    if relu:
        out = jnp.maximum(out, 0.0)
    o_ref[0] = out.astype(o_ref.dtype)


def _maxpool_kernel(ph_ref, o_ref, *, taps, mout):
    out = ph_ref[0, taps[0]:taps[0] + mout, :]
    for off in taps[1:]:
        out = jnp.maximum(out, ph_ref[0, off:off + mout, :])
    o_ref[0] = out


def _head_kernel(x_ref, w_ref, b_ref, o_ref, *, inv_hw):
    # fused global average pool + fully-connected (classes padded to 128 lanes)
    feat = jnp.sum(x_ref[0].astype(jnp.float32), axis=0, keepdims=True) * inv_hw
    o_ref[0] = jnp.dot(feat.astype(jnp.bfloat16), w_ref[...],
                       preferred_element_type=jnp.float32) + b_ref[...]


# ---------------------------------------------------------------------------
# Layout glue (plain JAX) around the kernels
# ---------------------------------------------------------------------------

def _build_slab(x, kh, kw, stride, pad, wlane, pad_value=0.0):
    """Phase-decomposed, row-flattened, lane-window-packed bf16 slab.

    slab[n, (ir*s+jr)*lph + hh*Whp + wh, jq*cin + c]
        == x_pad[n, hh*s + ir, (wh + jq)*s + jr, c]
    so output (ho, wo) and kernel tap (i, j) with i = s*iq + ir,
    j = s*(g0 + t) + jr read the contiguous slice starting at
    (ir*s+jr)*lph + iq*Whp + g0 offset by o = ho*Whp + wo, lane block t.
    """
    N, H, W, C = x.shape
    s = stride
    Hp, Wp = H + 2 * pad, W + 2 * pad
    Ho = (Hp - kh) // s + 1
    Wo = (Wp - kw) // s + 1
    hq_max, wq_max = (kh - 1) // s, (kw - 1) // s
    Hh, Wh = Ho + hq_max, Wo + wq_max
    Whp = _round_up(Wh, ROW_ALIGN)                 # aligned coarse-row stride
    lph = _round_up(Hh * Whp + wq_max, ROW_ALIGN)  # aligned per-phase rows (+safety)
    L = wlane * C
    pad_bot = Hh * s - H - pad
    pad_rgt = (Whp + wlane - 1) * s - W - pad
    assert pad_bot >= 0 and pad_rgt >= 0
    xp = jnp.pad(x.astype(jnp.bfloat16),
                 ((0, 0), (pad, pad_bot), (pad, pad_rgt), (0, 0)),
                 constant_values=pad_value)
    # pack a window of `wlane` coarse column steps (stride s apart) into lanes
    xw = jnp.concatenate(
        [xp[:, :, jq * s:jq * s + Whp * s, :] for jq in range(wlane)], axis=-1)
    ph = xw.reshape(N, Hh, s, Whp, s, L).transpose(0, 2, 4, 1, 3, 5)
    ph = ph.reshape(N, s * s, Hh * Whp, L)
    ph = jnp.pad(ph, ((0, 0), (0, 0), (0, lph - Hh * Whp), (0, 0)),
                 constant_values=pad_value)
    ph = ph.reshape(N, s * s * lph, L)
    geo = Geo(kh, kw, s, wlane, C, Ho, Wo, Hh, Wh, Whp, lph,
              Ho * Whp, L, s * s * lph)
    return ph, geo


def _pick_wlane(kw, stride, cin):
    # number of coarse column steps that fit into the 128-lane contraction
    return max(1, min((kw - 1) // stride + 1, 128 // max(cin, 1)))


def _plan_taps(geo, active):
    """Group kernel positions into lane-window matmul taps.

    active: iterable of (i, j) kernel positions carrying nonzero weights.
    Returns [(row_offset, [(lane_block, i, j), ...]), ...].
    """
    active = set(active)
    plan = []
    for i in range(geo.kh):
        ir, iq = i % geo.s, i // geo.s
        for jr in range(min(geo.s, geo.kw)):
            wq_jr = -(-(geo.kw - jr) // geo.s)          # ceil((kw - jr)/s)
            for g0 in range(0, wq_jr, geo.wlane):
                entries = []
                for t in range(geo.wlane):
                    jq = g0 + t
                    j = jq * geo.s + jr
                    if jq < wq_jr and (i, j) in active:
                        entries.append((t, i, j))
                if not entries:
                    continue
                off = (ir * geo.s + jr) * geo.lph + iq * geo.Whp + g0
                # every row the tap slice touches stays inside this phase
                assert off % geo.lph + geo.mout <= geo.lph
                plan.append((off, entries))
    return plan


def _pack_weights(w_oihw, geo, plan):
    """-> (G, L, cout) bf16: one lane-packed (wlane*cin, cout) block per tap."""
    cout, cin = w_oihw.shape[0], w_oihw.shape[1]
    blocks = []
    for _, entries in plan:
        blk = jnp.zeros((geo.L, cout), jnp.float32)
        for t, i, j in entries:
            blk = blk.at[t * cin:(t + 1) * cin, :].set(w_oihw[:, :, i, j].T)
        blocks.append(blk)
    return jnp.stack(blocks).astype(jnp.bfloat16)


def _conv_call(slab, geo, w, bn, relu, residual, active):
    """One fused Pallas conv: lane-packed matmuls + BN scale/bias (+res)(+ReLU)."""
    N = slab.shape[0]
    cout = w.shape[0]
    plan = _plan_taps(geo, active)
    taps = tuple(off for off, _ in plan)
    wm = _pack_weights(w, geo, plan)                               # (G, L, cout)
    scale = (bn["gamma"] * lax.rsqrt(bn["var"] + BN_EPS)).astype(jnp.float32)
    bias = (bn["beta"] - bn["mean"] * scale).astype(jnp.float32)
    scale, bias = scale.reshape(1, cout), bias.reshape(1, cout)
    mout = geo.mout

    args = [slab, wm, scale, bias]
    in_specs = [
        pl.BlockSpec((1, geo.rows, geo.L), lambda n: (n, 0, 0)),
        pl.BlockSpec(wm.shape, lambda n: (0, 0, 0)),
        pl.BlockSpec((1, cout), lambda n: (0, 0)),
        pl.BlockSpec((1, cout), lambda n: (0, 0)),
    ]
    has_res = residual is not None
    if has_res:
        # present the residual in the same aligned row-flattened layout
        r = jnp.pad(residual.astype(jnp.bfloat16),
                    ((0, 0), (0, 0), (0, geo.Whp - geo.Wo), (0, 0)))
        args.append(r.reshape(N, mout, cout))
        in_specs.append(pl.BlockSpec((1, mout, cout), lambda n: (n, 0, 0)))

    out = pl.pallas_call(
        functools.partial(_conv_kernel, taps=taps, mout=mout, relu=relu,
                          has_res=has_res),
        out_shape=jax.ShapeDtypeStruct((N, mout, cout), jnp.bfloat16),
        grid=(N,),
        in_specs=in_specs,
        out_specs=pl.BlockSpec((1, mout, cout), lambda n: (n, 0, 0)),
        compiler_params=pltpu.CompilerParams(dimension_semantics=("parallel",)),
    )(*args)
    # drop the (Whp - Wo) alignment/junk columns of the row-flattened layout
    return out.reshape(N, geo.Ho, geo.Whp, cout)[:, :, :geo.Wo, :]


def conv_bn_act(x, w, bn, stride, pad, relu, residual=None):
    """Conv2d (no bias) + BatchNorm (+ residual) (+ ReLU), one Pallas kernel."""
    cout, cin, kh, kw = w.shape
    assert x.shape[-1] == cin
    slab, geo = _build_slab(x, kh, kw, stride, pad, _pick_wlane(kw, stride, cin))
    active = [(i, j) for i in range(kh) for j in range(kw)]
    return _conv_call(slab, geo, w, bn, relu, residual, active)


def maxpool2d(x, ksize=3, stride=2, pad=1):
    N, _, _, C = x.shape
    # wlane=1: plain phase-decomposed bf16 slab; max over kh*kw shifted slices.
    slab, geo = _build_slab(x, ksize, ksize, stride, pad, wlane=1,
                            pad_value=float("-inf"))
    plan = _plan_taps(geo, [(i, j) for i in range(ksize) for j in range(ksize)])
    taps = tuple(off for off, _ in plan)
    out = pl.pallas_call(
        functools.partial(_maxpool_kernel, taps=taps, mout=geo.mout),
        out_shape=jax.ShapeDtypeStruct((N, geo.mout, C), jnp.bfloat16),
        grid=(N,),
        in_specs=[pl.BlockSpec((1, geo.rows, C), lambda n: (n, 0, 0))],
        out_specs=pl.BlockSpec((1, geo.mout, C), lambda n: (n, 0, 0)),
        compiler_params=pltpu.CompilerParams(dimension_semantics=("parallel",)),
    )(slab)
    return out.reshape(N, geo.Ho, geo.Whp, C)[:, :, :geo.Wo, :]


def avgpool_fc(x, fc_w, fc_b):
    """Fused global average pool + fully-connected head.  x: (N, H, W, C) bf16."""
    N, H, W, C = x.shape
    hw = H * W
    ncls = fc_w.shape[0]
    ncp = 128                                   # lane-dense head output
    wp = jnp.zeros((C, ncp), jnp.float32).at[:, :ncls].set(fc_w.T).astype(jnp.bfloat16)
    bp = jnp.zeros((1, ncp), jnp.float32).at[:, :ncls].set(fc_b)
    out = pl.pallas_call(
        functools.partial(_head_kernel, inv_hw=1.0 / hw),
        out_shape=jax.ShapeDtypeStruct((N, 1, ncp), jnp.float32),
        grid=(N,),
        in_specs=[pl.BlockSpec((1, hw, C), lambda n: (n, 0, 0)),
                  pl.BlockSpec((C, ncp), lambda n: (0, 0)),
                  pl.BlockSpec((1, ncp), lambda n: (0, 0))],
        out_specs=pl.BlockSpec((1, 1, ncp), lambda n: (n, 0, 0)),
        compiler_params=pltpu.CompilerParams(dimension_semantics=("parallel",)),
    )(x.reshape(N, hw, C), wp, bp)
    return out[:, 0, :ncls]


# ---------------------------------------------------------------------------
# Model (parameters + forward)
# ---------------------------------------------------------------------------

def _conv_init(key, cout, cin, kh, kw):
    std = math.sqrt(2.0 / (cin * kh * kw))
    return std * jax.random.normal(key, (cout, cin, kh, kw), jnp.float32)


def _bn_init(key, c):
    k1, k2, k3 = jax.random.split(key, 3)
    return dict(
        gamma=1.0 + 0.1 * jax.random.normal(k1, (c,), jnp.float32),
        beta=0.1 * jax.random.normal(k2, (c,), jnp.float32),
        mean=0.1 * jax.random.normal(k3, (c,), jnp.float32),
        var=jnp.ones((c,), jnp.float32),
    )


def init_params(key):
    keys = iter(jax.random.split(key, 256))
    nk = lambda: next(keys)
    params = {
        "conv1": _conv_init(nk(), BASE, 3, 7, 7),
        "bn1": _bn_init(nk(), BASE),
    }
    inplanes = BASE
    layers = []
    stage_planes = (BASE, BASE * 2, BASE * 4, BASE * 8)
    for li, (planes, blocks) in enumerate(zip(stage_planes, LAYERS)):
        stage_stride = 1 if li == 0 else 2
        blocks_p = []
        for bi in range(blocks):
            s = stage_stride if bi == 0 else 1
            bp = {
                "stride": s,
                "w1": _conv_init(nk(), planes, inplanes, 3, 3),
                "bn1": _bn_init(nk(), planes),
                "w2": _conv_init(nk(), planes, planes, 3, 3),
                "bn2": _bn_init(nk(), planes),
            }
            if s != 1 or inplanes != planes:
                bp["wd"] = _conv_init(nk(), planes, inplanes, 1, 1)
                bp["bnd"] = _bn_init(nk(), planes)
            blocks_p.append(bp)
            inplanes = planes
        layers.append(blocks_p)
    params["layers"] = layers
    params["fc_w"] = 0.05 * jax.random.normal(nk(), (NUM_CLASSES, inplanes), jnp.float32)
    params["fc_b"] = 0.05 * jax.random.normal(nk(), (NUM_CLASSES,), jnp.float32)
    return params


def basic_block(x, p):
    s = p["stride"]
    cin = x.shape[-1]
    planes = p["w1"].shape[0]
    slab, geo = _build_slab(x, 3, 3, s, 1, _pick_wlane(3, s, cin))
    all_taps = [(i, j) for i in range(3) for j in range(3)]
    out = _conv_call(slab, geo, p["w1"], p["bn1"], relu=True, residual=None,
                     active=all_taps)
    if "wd" in p:
        # 1x1/stride-s downsample reads x[s*ho, s*wo, :] == x_pad1[s*ho+1, s*wo+1, :],
        # i.e. kernel position (1,1) of the 3x3/pad-1 geometry -> reuse the same slab.
        wd3 = jnp.zeros((planes, cin, 3, 3), p["wd"].dtype)
        wd3 = wd3.at[:, :, 1, 1].set(p["wd"][:, :, 0, 0])
        identity = _conv_call(slab, geo, wd3, p["bnd"], relu=False, residual=None,
                              active=[(1, 1)])
    else:
        identity = x
    # relu(bn2(conv2(out)) + identity), fused in one Pallas kernel
    return conv_bn_act(out, p["w2"], p["bn2"], stride=1, pad=1, relu=True,
                       residual=identity)


def resnet_forward(params, x_nchw):
    x = jnp.transpose(x_nchw, (0, 2, 3, 1)).astype(jnp.bfloat16)   # NCHW -> NHWC
    x = conv_bn_act(x, params["conv1"], params["bn1"], stride=2, pad=3, relu=True)
    x = maxpool2d(x, ksize=3, stride=2, pad=1)
    for blocks in params["layers"]:
        for bp in blocks:
            x = basic_block(x, bp)
    return avgpool_fc(x, params["fc_w"], params["fc_b"])


# ---------------------------------------------------------------------------
# Pure-JAX reference (lax.conv / reduce_window), used only for verification
# ---------------------------------------------------------------------------

def _conv_ref(x, w, stride, pad):
    return lax.conv_general_dilated(
        x, w, (stride, stride), [(pad, pad), (pad, pad)],
        dimension_numbers=("NHWC", "OIHW", "NHWC"),
        precision=lax.Precision.HIGHEST)


def _bn_ref(x, bn):
    return (x - bn["mean"]) / jnp.sqrt(bn["var"] + BN_EPS) * bn["gamma"] + bn["beta"]


def resnet_reference(params, x_nchw):
    x = jnp.transpose(x_nchw, (0, 2, 3, 1)).astype(jnp.float32)
    x = jax.nn.relu(_bn_ref(_conv_ref(x, params["conv1"], 2, 3), params["bn1"]))
    x = lax.reduce_window(x, -jnp.inf, lax.max, (1, 3, 3, 1), (1, 2, 2, 1),
                          [(0, 0), (1, 1), (1, 1), (0, 0)])
    for blocks in params["layers"]:
        for p in blocks:
            s = p["stride"]
            out = jax.nn.relu(_bn_ref(_conv_ref(x, p["w1"], s, 1), p["bn1"]))
            out = _bn_ref(_conv_ref(out, p["w2"], 1, 1), p["bn2"])
            identity = x
            if "wd" in p:
                identity = _bn_ref(_conv_ref(x, p["wd"], s, 0), p["bnd"])
            x = jax.nn.relu(out + identity)
    feat = jnp.mean(x, axis=(1, 2))
    return feat @ params["fc_w"].T + params["fc_b"]


if __name__ == "__main__":
    key = jax.random.PRNGKey(0)
    pkey, xkey = jax.random.split(key)
    params = init_params(pkey)
    x = jax.random.normal(xkey, (2, 3, 16, 16), jnp.float32)   # NCHW, like PyTorch

    # params are closed over so the per-block Python strides stay static under jit
    fwd = jax.jit(lambda inp: resnet_forward(params, inp))
    logits = jax.block_until_ready(fwd(x))
    assert logits.shape == (2, NUM_CLASSES)

    ref = resnet_reference(params, x)
    # Tolerance accounts for bf16 weights + bf16 activation storage through ~18
    # conv layers (f32 accumulation / f32 BN-residual epilogue) versus the
    # all-f32 HIGHEST-precision reference.
    np.testing.assert_allclose(np.asarray(logits), np.asarray(ref),
                               rtol=5e-2, atol=5e-2)
    print("KERNEL_OK")
</pallas_src>

<mosaic_0001>
module attributes {stable_mosaic.version = 11 : i64} {
  func.func @_conv_kernel(%arg0: i32, %arg1: memref<1x768x12xbf16, #tpu.memory_space<vmem>>, %arg2: memref<14x12x8xbf16, #tpu.memory_space<vmem>>, %arg3: memref<1x8xf32, #tpu.memory_space<vmem>>, %arg4: memref<1x8xf32, #tpu.memory_space<vmem>>, %arg5: memref<1x128x8xbf16, #tpu.memory_space<vmem>>) attributes {dimension_semantics = [#tpu.dimension_semantics<parallel>], iteration_bounds = array<i64: 2>, scalar_prefetch = 0 : i64, scratch_operands = 0 : i64, tpu.core_type = #tpu.core_type<tc>, window_params = [{transform_indices = @transform_0, window_bounds = array<i64: 1, 768, 12>}, {pipeline_mode = #tpu.pipeline_mode<synchronous>, transform_indices = @transform_1, window_bounds = array<i64: 14, 12, 8>}, {pipeline_mode = #tpu.pipeline_mode<synchronous>, transform_indices = @transform_2, window_bounds = array<i64: 1, 8>}, {pipeline_mode = #tpu.pipeline_mode<synchronous>, transform_indices = @transform_3, window_bounds = array<i64: 1, 8>}, {transform_indices = @transform_4, window_bounds = array<i64: 1, 128, 8>}]} {
    %cst = arith.constant 0.000000e+00 : f32
    %0 = vector.broadcast %cst : f32 to vector<128x8xf32>
    %c0 = arith.constant 0 : index
    %c0_0 = arith.constant 0 : index
    %c0_1 = arith.constant 0 : index
    %1 = vector.load %arg1[%c0, %c0_0, %c0_1] : memref<1x768x12xbf16, #tpu.memory_space<vmem>>, vector<1x128x12xbf16>
    %2 = vector.shape_cast %1 : vector<1x128x12xbf16> to vector<128x12xbf16>
    %c0_2 = arith.constant 0 : index
    %c0_3 = arith.constant 0 : index
    %c0_4 = arith.constant 0 : index
    %3 = vector.load %arg2[%c0_2, %c0_3, %c0_4] : memref<14x12x8xbf16, #tpu.memory_space<vmem>>, vector<1x12x8xbf16>
    %4 = vector.shape_cast %3 : vector<1x12x8xbf16> to vector<12x8xbf16>
    %cst_5 = arith.constant dense<0.000000e+00> : vector<128x8xf32>
    %5 = tpu.matmul %2, %4, %cst_5 {dimension_numbers = #tpu.dot_dimension_numbers<[1], [0], [0], [1], [0, 0, 1, 1], [], []>} : vector<128x12xbf16>, vector<12x8xbf16>, vector<128x8xf32> -> vector<128x8xf32>
    %6 = arith.addf %0, %5 : vector<128x8xf32>
    %c0_6 = arith.constant 0 : index
    %c192 = arith.constant 192 : index
    %c0_7 = arith.constant 0 : index
    %7 = vector.load %arg1[%c0_6, %c192, %c0_7] : memref<1x768x12xbf16, #tpu.memory_space<vmem>>, vector<1x128x12xbf16>
    %8 = vector.shape_cast %7 : vector<1x128x12xbf16> to vector<128x12xbf16>
    %c1 = arith.constant 1 : index
    %c0_8 = arith.constant 0 : index
    %c0_9 = arith.constant 0 : index
    %9 = vector.load %arg2[%c1, %c0_8, %c0_9] : memref<14x12x8xbf16, #tpu.memory_space<vmem>>, vector<1x12x8xbf16>
    %10 = vector.shape_cast %9 : vector<1x12x8xbf16> to vector<12x8xbf16>
    %cst_10 = arith.constant dense<0.000000e+00> : vector<128x8xf32>
    %11 = tpu.matmul %8, %10, %cst_10 {dimension_numbers = #tpu.dot_dimension_numbers<[1], [0], [0], [1], [0, 0, 1, 1], [], []>} : vector<128x12xbf16>, vector<12x8xbf16>, vector<128x8xf32> -> vector<128x8xf32>
    %12 = arith.addf %6, %11 : vector<128x8xf32>
    %c0_11 = arith.constant 0 : index
    %c384 = arith.constant 384 : index
    %c0_12 = arith.constant 0 : index
    %13 = vector.load %arg1[%c0_11, %c384, %c0_12] : memref<1x768x12xbf16, #tpu.memory_space<vmem>>, vector<1x128x12xbf16>
    %14 = vector.shape_cast %13 : vector<1x128x12xbf16> to vector<128x12xbf16>
    %c2 = arith.constant 2 : index
    %c0_13 = arith.constant 0 : index
    %c0_14 = arith.constant 0 : index
    %15 = vector.load %arg2[%c2, %c0_13, %c0_14] : memref<14x12x8xbf16, #tpu.memory_space<vmem>>, vector<1x12x8xbf16>
    %16 = vector.shape_cast %15 : vector<1x12x8xbf16> to vector<12x8xbf16>
    %cst_15 = arith.constant dense<0.000000e+00> : vector<128x8xf32>
    %17 = tpu.matmul %14, %16, %cst_15 {dimension_numbers = #tpu.dot_dimension_numbers<[1], [0], [0], [1], [0, 0, 1, 1], [], []>} : vector<128x12xbf16>, vector<12x8xbf16>, vector<128x8xf32> -> vector<128x8xf32>
    %18 = arith.addf %12, %17 : vector<128x8xf32>
    %c0_16 = arith.constant 0 : index
    %c576 = arith.constant 576 : index
    %c0_17 = arith.constant 0 : index
    %19 = vector.load %arg1[%c0_16, %c576, %c0_17] : memref<1x768x12xbf16, #tpu.memory_space<vmem>>, vector<1x128x12xbf16>
    %20 = vector.shape_cast %19 : vector<1x128x12xbf16> to vector<128x12xbf16>
    %c3 = arith.constant 3 : index
    %c0_18 = arith.constant 0 : index
    %c0_19 = arith.constant 0 : index
    %21 = vector.load %arg2[%c3, %c0_18, %c0_19] : memref<14x12x8xbf16, #tpu.memory_space<vmem>>, vector<1x12x8xbf16>
    %22 = vector.shape_cast %21 : vector<1x12x8xbf16> to vector<12x8xbf16>
    %cst_20 = arith.constant dense<0.000000e+00> : vector<128x8xf32>
    %23 = tpu.matmul %20, %22, %cst_20 {dimension_numbers = #tpu.dot_dimension_numbers<[1], [0], [0], [1], [0, 0, 1, 1], [], []>} : vector<128x12xbf16>, vector<12x8xbf16>, vector<128x8xf32> -> vector<128x8xf32>
    %24 = arith.addf %18, %23 : vector<128x8xf32>
    %c0_21 = arith.constant 0 : index
    %c16 = arith.constant 16 : index
    %c0_22 = arith.constant 0 : index
    %25 = vector.load %arg1[%c0_21, %c16, %c0_22] : memref<1x768x12xbf16, #tpu.memory_space<vmem>>, vector<1x128x12xbf16>
    %26 = vector.shape_cast %25 : vector<1x128x12xbf16> to vector<128x12xbf16>
    %c4 = arith.constant 4 : index
    %c0_23 = arith.constant 0 : index
    %c0_24 = arith.constant 0 : index
    %27 = vector.load %arg2[%c4, %c0_23, %c0_24] : memref<14x12x8xbf16, #tpu.memory_space<vmem>>, vector<1x12x8xbf16>
    %28 = vector.shape_cast %27 : vector<1x12x8xbf16> to vector<12x8xbf16>
    %cst_25 = arith.constant dense<0.000000e+00> : vector<128x8xf32>
    %29 = tpu.matmul %26, %28, %cst_25 {dimension_numbers = #tpu.dot_dimension_numbers<[1], [0], [0], [1], [0, 0, 1, 1], [], []>} : vector<128x12xbf16>, vector<12x8xbf16>, vector<128x8xf32> -> vector<128x8xf32>
    %30 = arith.addf %24, %29 : vector<128x8xf32>
    %c0_26 = arith.constant 0 : index
    %c208 = arith.constant 208 : index
    %c0_27 = arith.constant 0 : index
    %31 = vector.load %arg1[%c0_26, %c208, %c0_27] : memref<1x768x12xbf16, #tpu.memory_space<vmem>>, vector<1x128x12xbf16>
    %32 = vector.shape_cast %31 : vector<1x128x12xbf16> to vector<128x12xbf16>
    %c5 = arith.constant 5 : index
    %c0_28 = arith.constant 0 : index
    %c0_29 = arith.constant 0 : index
    %33 = vector.load %arg2[%c5, %c0_28, %c0_29] : memref<14x12x8xbf16, #tpu.memory_space<vmem>>, vector<1x12x8xbf16>
    %34 = vector.shape_cast %33 : vector<1x12x8xbf16> to vector<12x8xbf16>
    %cst_30 = arith.constant dense<0.000000e+00> : vector<128x8xf32>
    %35 = tpu.matmul %32, %34, %cst_30 {dimension_numbers = #tpu.dot_dimension_numbers<[1], [0], [0], [1], [0, 0, 1, 1], [], []>} : vector<128x12xbf16>, vector<12x8xbf16>, vector<128x8xf32> -> vector<128x8xf32>
    %36 = arith.addf %30, %35 : vector<128x8xf32>
    %c0_31 = arith.constant 0 : index
    %c400 = arith.constant 400 : index
    %c0_32 = arith.constant 0 : index
    %37 = vector.load %arg1[%c0_31, %c400, %c0_32] : memref<1x768x12xbf16, #tpu.memory_space<vmem>>, vector<1x128x12xbf16>
    %38 = vector.shape_cast %37 : vector<1x128x12xbf16> to vector<128x12xbf16>
    %c6 = arith.constant 6 : index
    %c0_33 = arith.constant 0 : index
    %c0_34 = arith.constant 0 : index
    %39 = vector.load %arg2[%c6, %c0_33, %c0_34] : memref<14x12x8xbf16, #tpu.memory_space<vmem>>, vector<1x12x8xbf16>
    %40 = vector.shape_cast %39 : vector<1x12x8xbf16> to vector<12x8xbf16>
    %cst_35 = arith.constant dense<0.000000e+00> : vector<128x8xf32>
    %41 = tpu.matmul %38, %40, %cst_35 {dimension_numbers = #tpu.dot_dimension_numbers<[1], [0], [0], [1], [0, 0, 1, 1], [], []>} : vector<128x12xbf16>, vector<12x8xbf16>, vector<128x8xf32> -> vector<128x8xf32>
    %42 = arith.addf %36, %41 : vector<128x8xf32>
    %c0_36 = arith.constant 0 : index
    %c592 = arith.constant 592 : index
    %c0_37 = arith.constant 0 : index
    %43 = vector.load %arg1[%c0_36, %c592, %c0_37] : memref<1x768x12xbf16, #tpu.memory_space<vmem>>, vector<1x128x12xbf16>
    %44 = vector.shape_cast %43 : vector<1x128x12xbf16> to vector<128x12xbf16>
    %c7 = arith.constant 7 : index
    %c0_38 = arith.constant 0 : index
    %c0_39 = arith.constant 0 : index
    %45 = vector.load %arg2[%c7, %c0_38, %c0_39] : memref<14x12x8xbf16, #tpu.memory_space<vmem>>, vector<1x12x8xbf16>
    %46 = vector.shape_cast %45 : vector<1x12x8xbf16> to vector<12x8xbf16>
    %cst_40 = arith.constant dense<0.000000e+00> : vector<128x8xf32>
    %47 = tpu.matmul %44, %46, %cst_40 {dimension_numbers = #tpu.dot_dimension_numbers<[1], [0], [0], [1], [0, 0, 1, 1], [], []>} : vector<128x12xbf16>, vector<12x8xbf16>, vector<128x8xf32> -> vector<128x8xf32>
    %48 = arith.addf %42, %47 : vector<128x8xf32>
    %c0_41 = arith.constant 0 : index
    %c32 = arith.constant 32 : index
    %c0_42 = arith.constant 0 : index
    %49 = vector.load %arg1[%c0_41, %c32, %c0_42] : memref<1x768x12xbf16, #tpu.memory_space<vmem>>, vector<1x128x12xbf16>
    %50 = vector.shape_cast %49 : vector<1x128x12xbf16> to vector<128x12xbf16>
    %c8 = arith.constant 8 : index
    %c0_43 = arith.constant 0 : index
    %c0_44 = arith.constant 0 : index
    %51 = vector.load %arg2[%c8, %c0_43, %c0_44] : memref<14x12x8xbf16, #tpu.memory_space<vmem>>, vector<1x12x8xbf16>
    %52 = vector.shape_cast %51 : vector<1x12x8xbf16> to vector<12x8xbf16>
    %cst_45 = arith.constant dense<0.000000e+00> : vector<128x8xf32>
    %53 = tpu.matmul %50, %52, %cst_45 {dimension_numbers = #tpu.dot_dimension_numbers<[1], [0], [0], [1], [0, 0, 1, 1], [], []>} : vector<128x12xbf16>, vector<12x8xbf16>, vector<128x8xf32> -> vector<128x8xf32>
    %54 = arith.addf %48, %53 : vector<128x8xf32>
    %c0_46 = arith.constant 0 : index
    %c224 = arith.constant 224 : index
    %c0_47 = arith.constant 0 : index
    %55 = vector.load %arg1[%c0_46, %c224, %c0_47] : memref<1x768x12xbf16, #tpu.memory_space<vmem>>, vector<1x128x12xbf16>
    %56 = vector.shape_cast %55 : vector<1x128x12xbf16> to vector<128x12xbf16>
    %c9 = arith.constant 9 : index
    %c0_48 = arith.constant 0 : index
    %c0_49 = arith.constant 0 : index
    %57 = vector.load %arg2[%c9, %c0_48, %c0_49] : memref<14x12x8xbf16, #tpu.memory_space<vmem>>, vector<1x12x8xbf16>
    %58 = vector.shape_cast %57 : vector<1x12x8xbf16> to vector<12x8xbf16>
    %cst_50 = arith.constant dense<0.000000e+00> : vector<128x8xf32>
    %59 = tpu.matmul %56, %58, %cst_50 {dimension_numbers = #tpu.dot_dimension_numbers<[1], [0], [0], [1], [0, 0, 1, 1], [], []>} : vector<128x12xbf16>, vector<12x8xbf16>, vector<128x8xf32> -> vector<128x8xf32>
    %60 = arith.addf %54, %59 : vector<128x8xf32>
    %c0_51 = arith.constant 0 : index
    %c416 = arith.constant 416 : index
    %c0_52 = arith.constant 0 : index
    %61 = vector.load %arg1[%c0_51, %c416, %c0_52] : memref<1x768x12xbf16, #tpu.memory_space<vmem>>, vector<1x128x12xbf16>
    %62 = vector.shape_cast %61 : vector<1x128x12xbf16> to vector<128x12xbf16>
    %c10 = arith.constant 10 : index
    %c0_53 = arith.constant 0 : index
    %c0_54 = arith.constant 0 : index
    %63 = vector.load %arg2[%c10, %c0_53, %c0_54] : memref<14x12x8xbf16, #tpu.memory_space<vmem>>, vector<1x12x8xbf16>
    %64 = vector.shape_cast %63 : vector<1x12x8xbf16> to vector<12x8xbf16>
    %cst_55 = arith.constant dense<0.000000e+00> : vector<128x8xf32>
    %65 = tpu.matmul %62, %64, %cst_55 {dimension_numbers = #tpu.dot_dimension_numbers<[1], [0], [0], [1], [0, 0, 1, 1], [], []>} : vector<128x12xbf16>, vector<12x8xbf16>, vector<128x8xf32> -> vector<128x8xf32>
    %66 = arith.addf %60, %65 : vector<128x8xf32>
    %c0_56 = arith.constant 0 : index
    %c608 = arith.constant 608 : index
    %c0_57 = arith.constant 0 : index
    %67 = vector.load %arg1[%c0_56, %c608, %c0_57] : memref<1x768x12xbf16, #tpu.memory_space<vmem>>, vector<1x128x12xbf16>
    %68 = vector.shape_cast %67 : vector<1x128x12xbf16> to vector<128x12xbf16>
    %c11 = arith.constant 11 : index
    %c0_58 = arith.constant 0 : index
    %c0_59 = arith.constant 0 : index
    %69 = vector.load %arg2[%c11, %c0_58, %c0_59] : memref<14x12x8xbf16, #tpu.memory_space<vmem>>, vector<1x12x8xbf16>
    %70 = vector.shape_cast %69 : vector<1x12x8xbf16> to vector<12x8xbf16>
    %cst_60 = arith.constant dense<0.000000e+00> : vector<128x8xf32>
    %71 = tpu.matmul %68, %70, %cst_60 {dimension_numbers = #tpu.dot_dimension_numbers<[1], [0], [0], [1], [0, 0, 1, 1], [], []>} : vector<128x12xbf16>, vector<12x8xbf16>, vector<128x8xf32> -> vector<128x8xf32>
    %72 = arith.addf %66, %71 : vector<128x8xf32>
    %c0_61 = arith.constant 0 : index
    %c48 = arith.constant 48 : index
    %c0_62 = arith.constant 0 : index
    %73 = vector.load %arg1[%c0_61, %c48, %c0_62] : memref<1x768x12xbf16, #tpu.memory_space<vmem>>, vector<1x128x12xbf16>
    %74 = vector.shape_cast %73 : vector<1x128x12xbf16> to vector<128x12xbf16>
    %c12 = arith.constant 12 : index
    %c0_63 = arith.constant 0 : index
    %c0_64 = arith.constant 0 : index
    %75 = vector.load %arg2[%c12, %c0_63, %c0_64] : memref<14x12x8xbf16, #tpu.memory_space<vmem>>, vector<1x12x8xbf16>
    %76 = vector.shape_cast %75 : vector<1x12x8xbf16> to vector<12x8xbf16>
    %cst_65 = arith.constant dense<0.000000e+00> : vector<128x8xf32>
    %77 = tpu.matmul %74, %76, %cst_65 {dimension_numbers = #tpu.dot_dimension_numbers<[1], [0], [0], [1], [0, 0, 1, 1], [], []>} : vector<128x12xbf16>, vector<12x8xbf16>, vector<128x8xf32> -> vector<128x8xf32>
    %78 = arith.addf %72, %77 : vector<128x8xf32>
    %c0_66 = arith.constant 0 : index
    %c240 = arith.constant 240 : index
    %c0_67 = arith.constant 0 : index
    %79 = vector.load %arg1[%c0_66, %c240, %c0_67] : memref<1x768x12xbf16, #tpu.memory_space<vmem>>, vector<1x128x12xbf16>
    %80 = vector.shape_cast %79 : vector<1x128x12xbf16> to vector<128x12xbf16>
    %c13 = arith.constant 13 : index
    %c0_68 = arith.constant 0 : index
    %c0_69 = arith.constant 0 : index
    %81 = vector.load %arg2[%c13, %c0_68, %c0_69] : memref<14x12x8xbf16, #tpu.memory_space<vmem>>, vector<1x12x8xbf16>
    %82 = vector.shape_cast %81 : vector<1x12x8xbf16> to vector<12x8xbf16>
    %cst_70 = arith.constant dense<0.000000e+00> : vector<128x8xf32>
    %83 = tpu.matmul %80, %82, %cst_70 {dimension_numbers = #tpu.dot_dimension_numbers<[1], [0], [0], [1], [0, 0, 1, 1], [], []>} : vector<128x12xbf16>, vector<12x8xbf16>, vector<128x8xf32> -> vector<128x8xf32>
    %84 = arith.addf %78, %83 : vector<128x8xf32>
    %c0_71 = arith.constant 0 : index
    %c0_72 = arith.constant 0 : index
    %85 = vector.load %arg3[%c0_71, %c0_72] : memref<1x8xf32, #tpu.memory_space<vmem>>, vector<1x8xf32>
    %86 = vector.broadcast %85 : vector<1x8xf32> to vector<128x8xf32>
    %87 = arith.mulf %84, %86 : vector<128x8xf32>
    %c0_73 = arith.constant 0 : index
    %c0_74 = arith.constant 0 : index
    %88 = vector.load %arg4[%c0_73, %c0_74] : memref<1x8xf32, #tpu.memory_space<vmem>>, vector<1x8xf32>
    %89 = vector.broadcast %88 : vector<1x8xf32> to vector<128x8xf32>
    %90 = arith.addf %87, %89 : vector<128x8xf32>
    %cst_75 = arith.constant 0.000000e+00 : f32
    %91 = vector.broadcast %cst_75 : f32 to vector<128x8xf32>
    %92 = arith.maximumf %90, %91 : vector<128x8xf32>
    %93 = arith.truncf %92 : vector<128x8xf32> to vector<128x8xbf16>
    %c0_76 = arith.constant 0 : index
    %c0_77 = arith.constant 0 : index
    %c0_78 = arith.constant 0 : index
    %94 = vector.load %arg5[%c0_76, %c0_77, %c0_78] : memref<1x128x8xbf16, #tpu.memory_space<vmem>>, vector<1x128x8xbf16>
    %95 = vector.shape_cast %94 : vector<1x128x8xbf16> to vector<128x8xbf16>
    %96 = vector.shape_cast %93 : vector<128x8xbf16> to vector<1x128x8xbf16>
    tpu.vector_store %arg5[%c0_76, %c0_77, %c0_78], %96 {strides = array<i32>} : memref<1x128x8xbf16, #tpu.memory_space<vmem>>, vector<1x128x8xbf16>,
    return
  }
  func.func @transform_0(%arg0: i32) -> (i32, i32, i32) {
    %c0_i32 = arith.constant 0 : i32
    %c0_i32_0 = arith.constant 0 : i32
    %c0_i32_1 = arith.constant 0 : i32
    return %arg0, %c0_i32, %c0_i32_0 : i32, i32, i32
  }
  func.func @transform_1(%arg0: i32) -> (i32, i32, i32) {
    %c0_i32 = arith.constant 0 : i32
    %c0_i32_0 = arith.constant 0 : i32
    %c0_i32_1 = arith.constant 0 : i32
    %c0_i32_2 = arith.constant 0 : i32
    return %c0_i32, %c0_i32_0, %c0_i32_1 : i32, i32, i32
  }
  func.func @transform_2(%arg0: i32) -> (i32, i32) {
    %c0_i32 = arith.constant 0 : i32
    %c0_i32_0 = arith.constant 0 : i32
    %c0_i32_1 = arith.constant 0 : i32
    return %c0_i32, %c0_i32_0 : i32, i32
  }
  func.func @transform_3(%arg0: i32) -> (i32, i32) {
    %c0_i32 = arith.constant 0 : i32
    %c0_i32_0 = arith.constant 0 : i32
    %c0_i32_1 = arith.constant 0 : i32
    return %c0_i32, %c0_i32_0 : i32, i32
  }
  func.func @transform_4(%arg0: i32) -> (i32, i32, i32) {
    %c0_i32 = arith.constant 0 : i32
    %c0_i32_0 = arith.constant 0 : i32
    %c0_i32_1 = arith.constant 0 : i32
    return %arg0, %c0_i32, %c0_i32_0 : i32, i32, i32
  }
}

module attributes {stable_mosaic.version = 11 : i64} {
  func.func @_maxpool_kernel(%arg0: i32, %arg1: memref<1x384x8xbf16, #tpu.memory_space<vmem>>, %arg2: memref<1x64x8xbf16, #tpu.memory_space<vmem>>) attributes {dimension_semantics = [#tpu.dimension_semantics<parallel>], iteration_bounds = array<i64: 2>, scalar_prefetch = 0 : i64, scratch_operands = 0 : i64, tpu.core_type = #tpu.core_type<tc>, window_params = [{transform_indices = @transform_0, window_bounds = array<i64: 1, 384, 8>}, {transform_indices = @transform_1, window_bounds = array<i64: 1, 64, 8>}]} {
    %c0 = arith.constant 0 : index
    %c0_0 = arith.constant 0 : index
    %c0_1 = arith.constant 0 : index
    %0 = vector.load %arg1[%c0, %c0_0, %c0_1] : memref<1x384x8xbf16, #tpu.memory_space<vmem>>, vector<1x64x8xbf16>
    %1 = vector.shape_cast %0 : vector<1x64x8xbf16> to vector<64x8xbf16>
    %c0_2 = arith.constant 0 : index
    %c1 = arith.constant 1 : index
    %c0_3 = arith.constant 0 : index
    %2 = vector.load %arg1[%c0_2, %c1, %c0_3] : memref<1x384x8xbf16, #tpu.memory_space<vmem>>, vector<1x64x8xbf16>
    %3 = vector.shape_cast %2 : vector<1x64x8xbf16> to vector<64x8xbf16>
    %4 = arith.maximumf %1, %3 : vector<64x8xbf16>
    %c0_4 = arith.constant 0 : index
    %c96 = arith.constant 96 : index
    %c0_5 = arith.constant 0 : index
    %5 = vector.load %arg1[%c0_4, %c96, %c0_5] : memref<1x384x8xbf16, #tpu.memory_space<vmem>>, vector<1x64x8xbf16>
    %6 = vector.shape_cast %5 : vector<1x64x8xbf16> to vector<64x8xbf16>
    %7 = arith.maximumf %4, %6 : vector<64x8xbf16>
    %c0_6 = arith.constant 0 : index
    %c192 = arith.constant 192 : index
    %c0_7 = arith.constant 0 : index
    %8 = vector.load %arg1[%c0_6, %c192, %c0_7] : memref<1x384x8xbf16, #tpu.memory_space<vmem>>, vector<1x64x8xbf16>
    %9 = vector.shape_cast %8 : vector<1x64x8xbf16> to vector<64x8xbf16>
    %10 = arith.maximumf %7, %9 : vector<64x8xbf16>
    %c0_8 = arith.constant 0 : index
    %c193 = arith.constant 193 : index
    %c0_9 = arith.constant 0 : index
    %11 = vector.load %arg1[%c0_8, %c193, %c0_9] : memref<1x384x8xbf16, #tpu.memory_space<vmem>>, vector<1x64x8xbf16>
    %12 = vector.shape_cast %11 : vector<1x64x8xbf16> to vector<64x8xbf16>
    %13 = arith.maximumf %10, %12 : vector<64x8xbf16>
    %c0_10 = arith.constant 0 : index
    %c288 = arith.constant 288 : index
    %c0_11 = arith.constant 0 : index
    %14 = vector.load %arg1[%c0_10, %c288, %c0_11] : memref<1x384x8xbf16, #tpu.memory_space<vmem>>, vector<1x64x8xbf16>
    %15 = vector.shape_cast %14 : vector<1x64x8xbf16> to vector<64x8xbf16>
    %16 = arith.maximumf %13, %15 : vector<64x8xbf16>
    %c0_12 = arith.constant 0 : index
    %c16 = arith.constant 16 : index
    %c0_13 = arith.constant 0 : index
    %17 = vector.load %arg1[%c0_12, %c16, %c0_13] : memref<1x384x8xbf16, #tpu.memory_space<vmem>>, vector<1x64x8xbf16>
    %18 = vector.shape_cast %17 : vector<1x64x8xbf16> to vector<64x8xbf16>
    %19 = arith.maximumf %16, %18 : vector<64x8xbf16>
    %c0_14 = arith.constant 0 : index
    %c17 = arith.constant 17 : index
    %c0_15 = arith.constant 0 : index
    %20 = vector.load %arg1[%c0_14, %c17, %c0_15] : memref<1x384x8xbf16, #tpu.memory_space<vmem>>, vector<1x64x8xbf16>
    %21 = vector.shape_cast %20 : vector<1x64x8xbf16> to vector<64x8xbf16>
    %22 = arith.maximumf %19, %21 : vector<64x8xbf16>
    %c0_16 = arith.constant 0 : index
    %c112 = arith.constant 112 : index
    %c0_17 = arith.constant 0 : index
    %23 = vector.load %arg1[%c0_16, %c112, %c0_17] : memref<1x384x8xbf16, #tpu.memory_space<vmem>>, vector<1x64x8xbf16>
    %24 = vector.shape_cast %23 : vector<1x64x8xbf16> to vector<64x8xbf16>
    %25 = arith.maximumf %22, %24 : vector<64x8xbf16>
    %c0_18 = arith.constant 0 : index
    %c0_19 = arith.constant 0 : index
    %c0_20 = arith.constant 0 : index
    %26 = vector.load %arg2[%c0_18, %c0_19, %c0_20] : memref<1x64x8xbf16, #tpu.memory_space<vmem>>, vector<1x64x8xbf16>
    %27 = vector.shape_cast %26 : vector<1x64x8xbf16> to vector<64x8xbf16>
    %28 = vector.shape_cast %25 : vector<64x8xbf16> to vector<1x64x8xbf16>
    tpu.vector_store %arg2[%c0_18, %c0_19, %c0_20], %28 {strides = array<i32>} : memref<1x64x8xbf16, #tpu.memory_space<vmem>>, vector<1x64x8xbf16>,
    return
  }
  func.func @transform_0(%arg0: i32) -> (i32, i32, i32) {
    %c0_i32 = arith.constant 0 : i32
    %c0_i32_0 = arith.constant 0 : i32
    %c0_i32_1 = arith.constant 0 : i32
    return %arg0, %c0_i32, %c0_i32_0 : i32, i32, i32
  }
  func.func @transform_1(%arg0: i32) -> (i32, i32, i32) {
    %c0_i32 = arith.constant 0 : i32
    %c0_i32_0 = arith.constant 0 : i32
    %c0_i32_1 = arith.constant 0 : i32
    return %arg0, %c0_i32, %c0_i32_0 : i32, i32, i32
  }
}

module attributes {stable_mosaic.version = 11 : i64} {
  func.func @_conv_kernel(%arg0: i32, %arg1: memref<1x112x24xbf16, #tpu.memory_space<vmem>>, %arg2: memref<3x24x8xbf16, #tpu.memory_space<vmem>>, %arg3: memref<1x8xf32, #tpu.memory_space<vmem>>, %arg4: memref<1x8xf32, #tpu.memory_space<vmem>>, %arg5: memref<1x64x8xbf16, #tpu.memory_space<vmem>>) attributes {dimension_semantics = [#tpu.dimension_semantics<parallel>], iteration_bounds = array<i64: 2>, scalar_prefetch = 0 : i64, scratch_operands = 0 : i64, tpu.core_type = #tpu.core_type<tc>, window_params = [{transform_indices = @transform_0, window_bounds = array<i64: 1, 112, 24>}, {pipeline_mode = #tpu.pipeline_mode<synchronous>, transform_indices = @transform_1, window_bounds = array<i64: 3, 24, 8>}, {pipeline_mode = #tpu.pipeline_mode<synchronous>, transform_indices = @transform_2, window_bounds = array<i64: 1, 8>}, {pipeline_mode = #tpu.pipeline_mode<synchronous>, transform_indices = @transform_3, window_bounds = array<i64: 1, 8>}, {transform_indices = @transform_4, window_bounds = array<i64: 1, 64, 8>}]} {
    %cst = arith.constant 0.000000e+00 : f32
    %0 = vector.broadcast %cst : f32 to vector<64x8xf32>
    %c0 = arith.constant 0 : index
    %c0_0 = arith.constant 0 : index
    %c0_1 = arith.constant 0 : index
    %1 = vector.load %arg1[%c0, %c0_0, %c0_1] : memref<1x112x24xbf16, #tpu.memory_space<vmem>>, vector<1x64x24xbf16>
    %2 = vector.shape_cast %1 : vector<1x64x24xbf16> to vector<64x24xbf16>
    %c0_2 = arith.constant 0 : index
    %c0_3 = arith.constant 0 : index
    %c0_4 = arith.constant 0 : index
    %3 = vector.load %arg2[%c0_2, %c0_3, %c0_4] : memref<3x24x8xbf16, #tpu.memory_space<vmem>>, vector<1x24x8xbf16>
    %4 = vector.shape_cast %3 : vector<1x24x8xbf16> to vector<24x8xbf16>
    %cst_5 = arith.constant dense<0.000000e+00> : vector<64x8xf32>
    %5 = tpu.matmul %2, %4, %cst_5 {dimension_numbers = #tpu.dot_dimension_numbers<[1], [0], [0], [1], [0, 0, 1, 1], [], []>} : vector<64x24xbf16>, vector<24x8xbf16>, vector<64x8xf32> -> vector<64x8xf32>
    %6 = arith.addf %0, %5 : vector<64x8xf32>
    %c0_6 = arith.constant 0 : index
    %c16 = arith.constant 16 : index
    %c0_7 = arith.constant 0 : index
    %7 = vector.load %arg1[%c0_6, %c16, %c0_7] : memref<1x112x24xbf16, #tpu.memory_space<vmem>>, vector<1x64x24xbf16>
    %8 = vector.shape_cast %7 : vector<1x64x24xbf16> to vector<64x24xbf16>
    %c1 = arith.constant 1 : index
    %c0_8 = arith.constant 0 : index
    %c0_9 = arith.constant 0 : index
    %9 = vector.load %arg2[%c1, %c0_8, %c0_9] : memref<3x24x8xbf16, #tpu.memory_space<vmem>>, vector<1x24x8xbf16>
    %10 = vector.shape_cast %9 : vector<1x24x8xbf16> to vector<24x8xbf16>
    %cst_10 = arith.constant dense<0.000000e+00> : vector<64x8xf32>
    %11 = tpu.matmul %8, %10, %cst_10 {dimension_numbers = #tpu.dot_dimension_numbers<[1], [0], [0], [1], [0, 0, 1, 1], [], []>} : vector<64x24xbf16>, vector<24x8xbf16>, vector<64x8xf32> -> vector<64x8xf32>
    %12 = arith.addf %6, %11 : vector<64x8xf32>
    %c0_11 = arith.constant 0 : index
    %c32 = arith.constant 32 : index
    %c0_12 = arith.constant 0 : index
    %13 = vector.load %arg1[%c0_11, %c32, %c0_12] : memref<1x112x24xbf16, #tpu.memory_space<vmem>>, vector<1x64x24xbf16>
    %14 = vector.shape_cast %13 : vector<1x64x24xbf16> to vector<64x24xbf16>
    %c2 = arith.constant 2 : index
    %c0_13 = arith.constant 0 : index
    %c0_14 = arith.constant 0 : index
    %15 = vector.load %arg2[%c2, %c0_13, %c0_14] : memref<3x24x8xbf16, #tpu.memory_space<vmem>>, vector<1x24x8xbf16>
    %16 = vector.shape_cast %15 : vector<1x24x8xbf16> to vector<24x8xbf16>
    %cst_15 = arith.constant dense<0.000000e+00> : vector<64x8xf32>
    %17 = tpu.matmul %14, %16, %cst_15 {dimension_numbers = #tpu.dot_dimension_numbers<[1], [0], [0], [1], [0, 0, 1, 1], [], []>} : vector<64x24xbf16>, vector<24x8xbf16>, vector<64x8xf32> -> vector<64x8xf32>
    %18 = arith.addf %12, %17 : vector<64x8xf32>
    %c0_16 = arith.constant 0 : index
    %c0_17 = arith.constant 0 : index
    %19 = vector.load %arg3[%c0_16, %c0_17] : memref<1x8xf32, #tpu.memory_space<vmem>>, vector<1x8xf32>
    %20 = vector.broadcast %19 : vector<1x8xf32> to vector<64x8xf32>
    %21 = arith.mulf %18, %20 : vector<64x8xf32>
    %c0_18 = arith.constant 0 : index
    %c0_19 = arith.constant 0 : index
    %22 = vector.load %arg4[%c0_18, %c0_19] : memref<1x8xf32, #tpu.memory_space<vmem>>, vector<1x8xf32>
    %23 = vector.broadcast %22 : vector<1x8xf32> to vector<64x8xf32>
    %24 = arith.addf %21, %23 : vector<64x8xf32>
    %cst_20 = arith.constant 0.000000e+00 : f32
    %25 = vector.broadcast %cst_20 : f32 to vector<64x8xf32>
    %26 = arith.maximumf %24, %25 : vector<64x8xf32>
    %27 = arith.truncf %26 : vector<64x8xf32> to vector<64x8xbf16>
    %c0_21 = arith.constant 0 : index
    %c0_22 = arith.constant 0 : index
    %c0_23 = arith.constant 0 : index
    %28 = vector.load %arg5[%c0_21, %c0_22, %c0_23] : memref<1x64x8xbf16, #tpu.memory_space<vmem>>, vector<1x64x8xbf16>
    %29 = vector.shape_cast %28 : vector<1x64x8xbf16> to vector<64x8xbf16>
    %30 = vector.shape_cast %27 : vector<64x8xbf16> to vector<1x64x8xbf16>
    tpu.vector_store %arg5[%c0_21, %c0_22, %c0_23], %30 {strides = array<i32>} : memref<1x64x8xbf16, #tpu.memory_space<vmem>>, vector<1x64x8xbf16>,
    return
  }
  func.func @transform_0(%arg0: i32) -> (i32, i32, i32) {
    %c0_i32 = arith.constant 0 : i32
    %c0_i32_0 = arith.constant 0 : i32
    %c0_i32_1 = arith.constant 0 : i32
    return %arg0, %c0_i32, %c0_i32_0 : i32, i32, i32
  }
  func.func @transform_1(%arg0: i32) -> (i32, i32, i32) {
    %c0_i32 = arith.constant 0 : i32
    %c0_i32_0 = arith.constant 0 : i32
    %c0_i32_1 = arith.constant 0 : i32
    %c0_i32_2 = arith.constant 0 : i32
    return %c0_i32, %c0_i32_0, %c0_i32_1 : i32, i32, i32
  }
  func.func @transform_2(%arg0: i32) -> (i32, i32) {
    %c0_i32 = arith.constant 0 : i32
    %c0_i32_0 = arith.constant 0 : i32
    %c0_i32_1 = arith.constant 0 : i32
    return %c0_i32, %c0_i32_0 : i32, i32
  }
  func.func @transform_3(%arg0: i32) -> (i32, i32) {
    %c0_i32 = arith.constant 0 : i32
    %c0_i32_0 = arith.constant 0 : i32
    %c0_i32_1 = arith.constant 0 : i32
    return %c0_i32, %c0_i32_0 : i32, i32
  }
  func.func @transform_4(%arg0: i32) -> (i32, i32, i32) {
    %c0_i32 = arith.constant 0 : i32
    %c0_i32_0 = arith.constant 0 : i32
    %c0_i32_1 = arith.constant 0 : i32
    return %arg0, %c0_i32, %c0_i32_0 : i32, i32, i32
  }
}

module attributes {stable_mosaic.version = 11 : i64} {
  func.func @_conv_kernel(%arg0: i32, %arg1: memref<1x112x24xbf16, #tpu.memory_space<vmem>>, %arg2: memref<3x24x8xbf16, #tpu.memory_space<vmem>>, %arg3: memref<1x8xf32, #tpu.memory_space<vmem>>, %arg4: memref<1x8xf32, #tpu.memory_space<vmem>>, %arg5: memref<1x64x8xbf16, #tpu.memory_space<vmem>>, %arg6: memref<1x64x8xbf16, #tpu.memory_space<vmem>>) attributes {dimension_semantics = [#tpu.dimension_semantics<parallel>], iteration_bounds = array<i64: 2>, scalar_prefetch = 0 : i64, scratch_operands = 0 : i64, tpu.core_type = #tpu.core_type<tc>, window_params = [{transform_indices = @transform_0, window_bounds = array<i64: 1, 112, 24>}, {pipeline_mode = #tpu.pipeline_mode<synchronous>, transform_indices = @transform_1, window_bounds = array<i64: 3, 24, 8>}, {pipeline_mode = #tpu.pipeline_mode<synchronous>, transform_indices = @transform_2, window_bounds = array<i64: 1, 8>}, {pipeline_mode = #tpu.pipeline_mode<synchronous>, transform_indices = @transform_3, window_bounds = array<i64: 1, 8>}, {transform_indices = @transform_4, window_bounds = array<i64: 1, 64, 8>}, {transform_indices = @transform_5, window_bounds = array<i64: 1, 64, 8>}]} {
    %cst = arith.constant 0.000000e+00 : f32
    %0 = vector.broadcast %cst : f32 to vector<64x8xf32>
    %c0 = arith.constant 0 : index
    %c0_0 = arith.constant 0 : index
    %c0_1 = arith.constant 0 : index
    %1 = vector.load %arg1[%c0, %c0_0, %c0_1] : memref<1x112x24xbf16, #tpu.memory_space<vmem>>, vector<1x64x24xbf16>
    %2 = vector.shape_cast %1 : vector<1x64x24xbf16> to vector<64x24xbf16>
    %c0_2 = arith.constant 0 : index
    %c0_3 = arith.constant 0 : index
    %c0_4 = arith.constant 0 : index
    %3 = vector.load %arg2[%c0_2, %c0_3, %c0_4] : memref<3x24x8xbf16, #tpu.memory_space<vmem>>, vector<1x24x8xbf16>
    %4 = vector.shape_cast %3 : vector<1x24x8xbf16> to vector<24x8xbf16>
    %cst_5 = arith.constant dense<0.000000e+00> : vector<64x8xf32>
    %5 = tpu.matmul %2, %4, %cst_5 {dimension_numbers = #tpu.dot_dimension_numbers<[1], [0], [0], [1], [0, 0, 1, 1], [], []>} : vector<64x24xbf16>, vector<24x8xbf16>, vector<64x8xf32> -> vector<64x8xf32>
    %6 = arith.addf %0, %5 : vector<64x8xf32>
    %c0_6 = arith.constant 0 : index
    %c16 = arith.constant 16 : index
    %c0_7 = arith.constant 0 : index
    %7 = vector.load %arg1[%c0_6, %c16, %c0_7] : memref<1x112x24xbf16, #tpu.memory_space<vmem>>, vector<1x64x24xbf16>
    %8 = vector.shape_cast %7 : vector<1x64x24xbf16> to vector<64x24xbf16>
    %c1 = arith.constant 1 : index
    %c0_8 = arith.constant 0 : index
    %c0_9 = arith.constant 0 : index
    %9 = vector.load %arg2[%c1, %c0_8, %c0_9] : memref<3x24x8xbf16, #tpu.memory_space<vmem>>, vector<1x24x8xbf16>
    %10 = vector.shape_cast %9 : vector<1x24x8xbf16> to vector<24x8xbf16>
    %cst_10 = arith.constant dense<0.000000e+00> : vector<64x8xf32>
    %11 = tpu.matmul %8, %10, %cst_10 {dimension_numbers = #tpu.dot_dimension_numbers<[1], [0], [0], [1], [0, 0, 1, 1], [], []>} : vector<64x24xbf16>, vector<24x8xbf16>, vector<64x8xf32> -> vector<64x8xf32>
    %12 = arith.addf %6, %11 : vector<64x8xf32>
    %c0_11 = arith.constant 0 : index
    %c32 = arith.constant 32 : index
    %c0_12 = arith.constant 0 : index
    %13 = vector.load %arg1[%c0_11, %c32, %c0_12] : memref<1x112x24xbf16, #tpu.memory_space<vmem>>, vector<1x64x24xbf16>
    %14 = vector.shape_cast %13 : vector<1x64x24xbf16> to vector<64x24xbf16>
    %c2 = arith.constant 2 : index
    %c0_13 = arith.constant 0 : index
    %c0_14 = arith.constant 0 : index
    %15 = vector.load %arg2[%c2, %c0_13, %c0_14] : memref<3x24x8xbf16, #tpu.memory_space<vmem>>, vector<1x24x8xbf16>
    %16 = vector.shape_cast %15 : vector<1x24x8xbf16> to vector<24x8xbf16>
    %cst_15 = arith.constant dense<0.000000e+00> : vector<64x8xf32>
    %17 = tpu.matmul %14, %16, %cst_15 {dimension_numbers = #tpu.dot_dimension_numbers<[1], [0], [0], [1], [0, 0, 1, 1], [], []>} : vector<64x24xbf16>, vector<24x8xbf16>, vector<64x8xf32> -> vector<64x8xf32>
    %18 = arith.addf %12, %17 : vector<64x8xf32>
    %c0_16 = arith.constant 0 : index
    %c0_17 = arith.constant 0 : index
    %19 = vector.load %arg3[%c0_16, %c0_17] : memref<1x8xf32, #tpu.memory_space<vmem>>, vector<1x8xf32>
    %20 = vector.broadcast %19 : vector<1x8xf32> to vector<64x8xf32>
    %21 = arith.mulf %18, %20 : vector<64x8xf32>
    %c0_18 = arith.constant 0 : index
    %c0_19 = arith.constant 0 : index
    %22 = vector.load %arg4[%c0_18, %c0_19] : memref<1x8xf32, #tpu.memory_space<vmem>>, vector<1x8xf32>
    %23 = vector.broadcast %22 : vector<1x8xf32> to vector<64x8xf32>
    %24 = arith.addf %21, %23 : vector<64x8xf32>
    %c0_20 = arith.constant 0 : index
    %c0_21 = arith.constant 0 : index
    %c0_22 = arith.constant 0 : index
    %25 = vector.load %arg5[%c0_20, %c0_21, %c0_22] : memref<1x64x8xbf16, #tpu.memory_space<vmem>>, vector<1x64x8xbf16>
    %26 = vector.shape_cast %25 : vector<1x64x8xbf16> to vector<64x8xbf16>
    %27 = arith.extf %26 : vector<64x8xbf16> to vector<64x8xf32>
    %28 = arith.addf %24, %27 : vector<64x8xf32>
    %cst_23 = arith.constant 0.000000e+00 : f32
    %29 = vector.broadcast %cst_23 : f32 to vector<64x8xf32>
    %30 = arith.maximumf %28, %29 : vector<64x8xf32>
    %31 = arith.truncf %30 : vector<64x8xf32> to vector<64x8xbf16>
    %c0_24 = arith.constant 0 : index
    %c0_25 = arith.constant 0 : index
    %c0_26 = arith.constant 0 : index
    %32 = vector.load %arg6[%c0_24, %c0_25, %c0_26] : memref<1x64x8xbf16, #tpu.memory_space<vmem>>, vector<1x64x8xbf16>
    %33 = vector.shape_cast %32 : vector<1x64x8xbf16> to vector<64x8xbf16>
    %34 = vector.shape_cast %31 : vector<64x8xbf16> to vector<1x64x8xbf16>
    tpu.vector_store %arg6[%c0_24, %c0_25, %c0_26], %34 {strides = array<i32>} : memref<1x64x8xbf16, #tpu.memory_space<vmem>>, vector<1x64x8xbf16>,
    return
  }
  func.func @transform_0(%arg0: i32) -> (i32, i32, i32) {
    %c0_i32 = arith.constant 0 : i32
    %c0_i32_0 = arith.constant 0 : i32
    %c0_i32_1 = arith.constant 0 : i32
    return %arg0, %c0_i32, %c0_i32_0 : i32, i32, i32
  }
  func.func @transform_1(%arg0: i32) -> (i32, i32, i32) {
    %c0_i32 = arith.constant 0 : i32
    %c0_i32_0 = arith.constant 0 : i32
    %c0_i32_1 = arith.constant 0 : i32
    %c0_i32_2 = arith.constant 0 : i32
    return %c0_i32, %c0_i32_0, %c0_i32_1 : i32, i32, i32
  }
  func.func @transform_2(%arg0: i32) -> (i32, i32) {
    %c0_i32 = arith.constant 0 : i32
    %c0_i32_0 = arith.constant 0 : i32
    %c0_i32_1 = arith.constant 0 : i32
    return %c0_i32, %c0_i32_0 : i32, i32
  }
  func.func @transform_3(%arg0: i32) -> (i32, i32) {
    %c0_i32 = arith.constant 0 : i32
    %c0_i32_0 = arith.constant 0 : i32
    %c0_i32_1 = arith.constant 0 : i32
    return %c0_i32, %c0_i32_0 : i32, i32
  }
  func.func @transform_4(%arg0: i32) -> (i32, i32, i32) {
    %c0_i32 = arith.constant 0 : i32
    %c0_i32_0 = arith.constant 0 : i32
    %c0_i32_1 = arith.constant 0 : i32
    return %arg0, %c0_i32, %c0_i32_0 : i32, i32, i32
  }
  func.func @transform_5(%arg0: i32) -> (i32, i32, i32) {
    %c0_i32 = arith.constant 0 : i32
    %c0_i32_0 = arith.constant 0 : i32
    %c0_i32_1 = arith.constant 0 : i32
    return %arg0, %c0_i32, %c0_i32_0 : i32, i32, i32
  }
}

module attributes {stable_mosaic.version = 11 : i64} {
  func.func @_conv_kernel(%arg0: i32, %arg1: memref<1x256x16xbf16, #tpu.memory_space<vmem>>, %arg2: memref<6x16x16xbf16, #tpu.memory_space<vmem>>, %arg3: memref<1x16xf32, #tpu.memory_space<vmem>>, %arg4: memref<1x16xf32, #tpu.memory_space<vmem>>, %arg5: memref<1x32x16xbf16, #tpu.memory_space<vmem>>) attributes {dimension_semantics = [#tpu.dimension_semantics<parallel>], iteration_bounds = array<i64: 2>, scalar_prefetch = 0 : i64, scratch_operands = 0 : i64, tpu.core_type = #tpu.core_type<tc>, window_params = [{transform_indices = @transform_0, window_bounds = array<i64: 1, 256, 16>}, {pipeline_mode = #tpu.pipeline_mode<synchronous>, transform_indices = @transform_1, window_bounds = array<i64: 6, 16, 16>}, {pipeline_mode = #tpu.pipeline_mode<synchronous>, transform_indices = @transform_2, window_bounds = array<i64: 1, 16>}, {pipeline_mode = #tpu.pipeline_mode<synchronous>, transform_indices = @transform_3, window_bounds = array<i64: 1, 16>}, {transform_indices = @transform_4, window_bounds = array<i64: 1, 32, 16>}]} {
    %cst = arith.constant 0.000000e+00 : f32
    %0 = vector.broadcast %cst : f32 to vector<32x16xf32>
    %c0 = arith.constant 0 : index
    %c0_0 = arith.constant 0 : index
    %c0_1 = arith.constant 0 : index
    %1 = vector.load %arg1[%c0, %c0_0, %c0_1] : memref<1x256x16xbf16, #tpu.memory_space<vmem>>, vector<1x32x16xbf16>
    %2 = vector.shape_cast %1 : vector<1x32x16xbf16> to vector<32x16xbf16>
    %c0_2 = arith.constant 0 : index
    %c0_3 = arith.constant 0 : index
    %c0_4 = arith.constant 0 : index
    %3 = vector.load %arg2[%c0_2, %c0_3, %c0_4] : memref<6x16x16xbf16, #tpu.memory_space<vmem>>, vector<1x16x16xbf16>
    %4 = vector.shape_cast %3 : vector<1x16x16xbf16> to vector<16x16xbf16>
    %cst_5 = arith.constant dense<0.000000e+00> : vector<32x16xf32>
    %5 = tpu.matmul %2, %4, %cst_5 {dimension_numbers = #tpu.dot_dimension_numbers<[1], [0], [0], [1], [0, 0, 1, 1], [], []>} : vector<32x16xbf16>, vector<16x16xbf16>, vector<32x16xf32> -> vector<32x16xf32>
    %6 = arith.addf %0, %5 : vector<32x16xf32>
    %c0_6 = arith.constant 0 : index
    %c64 = arith.constant 64 : index
    %c0_7 = arith.constant 0 : index
    %7 = vector.load %arg1[%c0_6, %c64, %c0_7] : memref<1x256x16xbf16, #tpu.memory_space<vmem>>, vector<1x32x16xbf16>
    %8 = vector.shape_cast %7 : vector<1x32x16xbf16> to vector<32x16xbf16>
    %c1 = arith.constant 1 : index
    %c0_8 = arith.constant 0 : index
    %c0_9 = arith.constant 0 : index
    %9 = vector.load %arg2[%c1, %c0_8, %c0_9] : memref<6x16x16xbf16, #tpu.memory_space<vmem>>, vector<1x16x16xbf16>
    %10 = vector.shape_cast %9 : vector<1x16x16xbf16> to vector<16x16xbf16>
    %cst_10 = arith.constant dense<0.000000e+00> : vector<32x16xf32>
    %11 = tpu.matmul %8, %10, %cst_10 {dimension_numbers = #tpu.dot_dimension_numbers<[1], [0], [0], [1], [0, 0, 1, 1], [], []>} : vector<32x16xbf16>, vector<16x16xbf16>, vector<32x16xf32> -> vector<32x16xf32>
    %12 = arith.addf %6, %11 : vector<32x16xf32>
    %c0_11 = arith.constant 0 : index
    %c128 = arith.constant 128 : index
    %c0_12 = arith.constant 0 : index
    %13 = vector.load %arg1[%c0_11, %c128, %c0_12] : memref<1x256x16xbf16, #tpu.memory_space<vmem>>, vector<1x32x16xbf16>
    %14 = vector.shape_cast %13 : vector<1x32x16xbf16> to vector<32x16xbf16>
    %c2 = arith.constant 2 : index
    %c0_13 = arith.constant 0 : index
    %c0_14 = arith.constant 0 : index
    %15 = vector.load %arg2[%c2, %c0_13, %c0_14] : memref<6x16x16xbf16, #tpu.memory_space<vmem>>, vector<1x16x16xbf16>
    %16 = vector.shape_cast %15 : vector<1x16x16xbf16> to vector<16x16xbf16>
    %cst_15 = arith.constant dense<0.000000e+00> : vector<32x16xf32>
    %17 = tpu.matmul %14, %16, %cst_15 {dimension_numbers = #tpu.dot_dimension_numbers<[1], [0], [0], [1], [0, 0, 1, 1], [], []>} : vector<32x16xbf16>, vector<16x16xbf16>, vector<32x16xf32> -> vector<32x16xf32>
    %18 = arith.addf %12, %17 : vector<32x16xf32>
    %c0_16 = arith.constant 0 : index
    %c192 = arith.constant 192 : index
    %c0_17 = arith.constant 0 : index
    %19 = vector.load %arg1[%c0_16, %c192, %c0_17] : memref<1x256x16xbf16, #tpu.memory_space<vmem>>, vector<1x32x16xbf16>
    %20 = vector.shape_cast %19 : vector<1x32x16xbf16> to vector<32x16xbf16>
    %c3 = arith.constant 3 : index
    %c0_18 = arith.constant 0 : index
    %c0_19 = arith.constant 0 : index
    %21 = vector.load %arg2[%c3, %c0_18, %c0_19] : memref<6x16x16xbf16, #tpu.memory_space<vmem>>, vector<1x16x16xbf16>
    %22 = vector.shape_cast %21 : vector<1x16x16xbf16> to vector<16x16xbf16>
    %cst_20 = arith.constant dense<0.000000e+00> : vector<32x16xf32>
    %23 = tpu.matmul %20, %22, %cst_20 {dimension_numbers = #tpu.dot_dimension_numbers<[1], [0], [0], [1], [0, 0, 1, 1], [], []>} : vector<32x16xbf16>, vector<16x16xbf16>, vector<32x16xf32> -> vector<32x16xf32>
    %24 = arith.addf %18, %23 : vector<32x16xf32>
    %c0_21 = arith.constant 0 : index
    %c16 = arith.constant 16 : index
    %c0_22 = arith.constant 0 : index
    %25 = vector.load %arg1[%c0_21, %c16, %c0_22] : memref<1x256x16xbf16, #tpu.memory_space<vmem>>, vector<1x32x16xbf16>
    %26 = vector.shape_cast %25 : vector<1x32x16xbf16> to vector<32x16xbf16>
    %c4 = arith.constant 4 : index
    %c0_23 = arith.constant 0 : index
    %c0_24 = arith.constant 0 : index
    %27 = vector.load %arg2[%c4, %c0_23, %c0_24] : memref<6x16x16xbf16, #tpu.memory_space<vmem>>, vector<1x16x16xbf16>
    %28 = vector.shape_cast %27 : vector<1x16x16xbf16> to vector<16x16xbf16>
    %cst_25 = arith.constant dense<0.000000e+00> : vector<32x16xf32>
    %29 = tpu.matmul %26, %28, %cst_25 {dimension_numbers = #tpu.dot_dimension_numbers<[1], [0], [0], [1], [0, 0, 1, 1], [], []>} : vector<32x16xbf16>, vector<16x16xbf16>, vector<32x16xf32> -> vector<32x16xf32>
    %30 = arith.addf %24, %29 : vector<32x16xf32>
    %c0_26 = arith.constant 0 : index
    %c80 = arith.constant 80 : index
    %c0_27 = arith.constant 0 : index
    %31 = vector.load %arg1[%c0_26, %c80, %c0_27] : memref<1x256x16xbf16, #tpu.memory_space<vmem>>, vector<1x32x16xbf16>
    %32 = vector.shape_cast %31 : vector<1x32x16xbf16> to vector<32x16xbf16>
    %c5 = arith.constant 5 : index
    %c0_28 = arith.constant 0 : index
    %c0_29 = arith.constant 0 : index
    %33 = vector.load %arg2[%c5, %c0_28, %c0_29] : memref<6x16x16xbf16, #tpu.memory_space<vmem>>, vector<1x16x16xbf16>
    %34 = vector.shape_cast %33 : vector<1x16x16xbf16> to vector<16x16xbf16>
    %cst_30 = arith.constant dense<0.000000e+00> : vector<32x16xf32>
    %35 = tpu.matmul %32, %34, %cst_30 {dimension_numbers = #tpu.dot_dimension_numbers<[1], [0], [0], [1], [0, 0, 1, 1], [], []>} : vector<32x16xbf16>, vector<16x16xbf16>, vector<32x16xf32> -> vector<32x16xf32>
    %36 = arith.addf %30, %35 : vector<32x16xf32>
    %c0_31 = arith.constant 0 : index
    %c0_32 = arith.constant 0 : index
    %37 = vector.load %arg3[%c0_31, %c0_32] : memref<1x16xf32, #tpu.memory_space<vmem>>, vector<1x16xf32>
    %38 = vector.broadcast %37 : vector<1x16xf32> to vector<32x16xf32>
    %39 = arith.mulf %36, %38 : vector<32x16xf32>
    %c0_33 = arith.constant 0 : index
    %c0_34 = arith.constant 0 : index
    %40 = vector.load %arg4[%c0_33, %c0_34] : memref<1x16xf32, #tpu.memory_space<vmem>>, vector<1x16xf32>
    %41 = vector.broadcast %40 : vector<1x16xf32> to vector<32x16xf32>
    %42 = arith.addf %39, %41 : vector<32x16xf32>
    %cst_35 = arith.constant 0.000000e+00 : f32
    %43 = vector.broadcast %cst_35 : f32 to vector<32x16xf32>
    %44 = arith.maximumf %42, %43 : vector<32x16xf32>
    %45 = arith.truncf %44 : vector<32x16xf32> to vector<32x16xbf16>
    %c0_36 = arith.constant 0 : index
    %c0_37 = arith.constant 0 : index
    %c0_38 = arith.constant 0 : index
    %46 = vector.load %arg5[%c0_36, %c0_37, %c0_38] : memref<1x32x16xbf16, #tpu.memory_space<vmem>>, vector<1x32x16xbf16>
    %47 = vector.shape_cast %46 : vector<1x32x16xbf16> to vector<32x16xbf16>
    %48 = vector.shape_cast %45 : vector<32x16xbf16> to vector<1x32x16xbf16>
    tpu.vector_store %arg5[%c0_36, %c0_37, %c0_38], %48 {strides = array<i32>} : memref<1x32x16xbf16, #tpu.memory_space<vmem>>, vector<1x32x16xbf16>,
    return
  }
  func.func @transform_0(%arg0: i32) -> (i32, i32, i32) {
    %c0_i32 = arith.constant 0 : i32
    %c0_i32_0 = arith.constant 0 : i32
    %c0_i32_1 = arith.constant 0 : i32
    return %arg0, %c0_i32, %c0_i32_0 : i32, i32, i32
  }
  func.func @transform_1(%arg0: i32) -> (i32, i32, i32) {
    %c0_i32 = arith.constant 0 : i32
    %c0_i32_0 = arith.constant 0 : i32
    %c0_i32_1 = arith.constant 0 : i32
    %c0_i32_2 = arith.constant 0 : i32
    return %c0_i32, %c0_i32_0, %c0_i32_1 : i32, i32, i32
  }
  func.func @transform_2(%arg0: i32) -> (i32, i32) {
    %c0_i32 = arith.constant 0 : i32
    %c0_i32_0 = arith.constant 0 : i32
    %c0_i32_1 = arith.constant 0 : i32
    return %c0_i32, %c0_i32_0 : i32, i32
  }
  func.func @transform_3(%arg0: i32) -> (i32, i32) {
    %c0_i32 = arith.constant 0 : i32
    %c0_i32_0 = arith.constant 0 : i32
    %c0_i32_1 = arith.constant 0 : i32
    return %c0_i32, %c0_i32_0 : i32, i32
  }
  func.func @transform_4(%arg0: i32) -> (i32, i32, i32) {
    %c0_i32 = arith.constant 0 : i32
    %c0_i32_0 = arith.constant 0 : i32
    %c0_i32_1 = arith.constant 0 : i32
    return %arg0, %c0_i32, %c0_i32_0 : i32, i32, i32
  }
}

module attributes {stable_mosaic.version = 11 : i64} {
  func.func @_conv_kernel(%arg0: i32, %arg1: memref<1x256x16xbf16, #tpu.memory_space<vmem>>, %arg2: memref<1x16x16xbf16, #tpu.memory_space<vmem>>, %arg3: memref<1x16xf32, #tpu.memory_space<vmem>>, %arg4: memref<1x16xf32, #tpu.memory_space<vmem>>, %arg5: memref<1x32x16xbf16, #tpu.memory_space<vmem>>) attributes {dimension_semantics = [#tpu.dimension_semantics<parallel>], iteration_bounds = array<i64: 2>, scalar_prefetch = 0 : i64, scratch_operands = 0 : i64, tpu.core_type = #tpu.core_type<tc>, window_params = [{transform_indices = @transform_0, window_bounds = array<i64: 1, 256, 16>}, {pipeline_mode = #tpu.pipeline_mode<synchronous>, transform_indices = @transform_1, window_bounds = array<i64: 1, 16, 16>}, {pipeline_mode = #tpu.pipeline_mode<synchronous>, transform_indices = @transform_2, window_bounds = array<i64: 1, 16>}, {pipeline_mode = #tpu.pipeline_mode<synchronous>, transform_indices = @transform_3, window_bounds = array<i64: 1, 16>}, {transform_indices = @transform_4, window_bounds = array<i64: 1, 32, 16>}]} {
    %cst = arith.constant 0.000000e+00 : f32
    %0 = vector.broadcast %cst : f32 to vector<32x16xf32>
    %c0 = arith.constant 0 : index
    %c192 = arith.constant 192 : index
    %c0_0 = arith.constant 0 : index
    %1 = vector.load %arg1[%c0, %c192, %c0_0] : memref<1x256x16xbf16, #tpu.memory_space<vmem>>, vector<1x32x16xbf16>
    %2 = vector.shape_cast %1 : vector<1x32x16xbf16> to vector<32x16xbf16>
    %c0_1 = arith.constant 0 : index
    %c0_2 = arith.constant 0 : index
    %c0_3 = arith.constant 0 : index
    %3 = vector.load %arg2[%c0_1, %c0_2, %c0_3] : memref<1x16x16xbf16, #tpu.memory_space<vmem>>, vector<1x16x16xbf16>
    %4 = vector.shape_cast %3 : vector<1x16x16xbf16> to vector<16x16xbf16>
    %cst_4 = arith.constant dense<0.000000e+00> : vector<32x16xf32>
    %5 = tpu.matmul %2, %4, %cst_4 {dimension_numbers = #tpu.dot_dimension_numbers<[1], [0], [0], [1], [0, 0, 1, 1], [], []>} : vector<32x16xbf16>, vector<16x16xbf16>, vector<32x16xf32> -> vector<32x16xf32>
    %6 = arith.addf %0, %5 : vector<32x16xf32>
    %c0_5 = arith.constant 0 : index
    %c0_6 = arith.constant 0 : index
    %7 = vector.load %arg3[%c0_5, %c0_6] : memref<1x16xf32, #tpu.memory_space<vmem>>, vector<1x16xf32>
    %8 = vector.broadcast %7 : vector<1x16xf32> to vector<32x16xf32>
    %9 = arith.mulf %6, %8 : vector<32x16xf32>
    %c0_7 = arith.constant 0 : index
    %c0_8 = arith.constant 0 : index
    %10 = vector.load %arg4[%c0_7, %c0_8] : memref<1x16xf32, #tpu.memory_space<vmem>>, vector<1x16xf32>
    %11 = vector.broadcast %10 : vector<1x16xf32> to vector<32x16xf32>
    %12 = arith.addf %9, %11 : vector<32x16xf32>
    %13 = arith.truncf %12 : vector<32x16xf32> to vector<32x16xbf16>
    %c0_9 = arith.constant 0 : index
    %c0_10 = arith.constant 0 : index
    %c0_11 = arith.constant 0 : index
    %14 = vector.load %arg5[%c0_9, %c0_10, %c0_11] : memref<1x32x16xbf16, #tpu.memory_space<vmem>>, vector<1x32x16xbf16>
    %15 = vector.shape_cast %14 : vector<1x32x16xbf16> to vector<32x16xbf16>
    %16 = vector.shape_cast %13 : vector<32x16xbf16> to vector<1x32x16xbf16>
    tpu.vector_store %arg5[%c0_9, %c0_10, %c0_11], %16 {strides = array<i32>} : memref<1x32x16xbf16, #tpu.memory_space<vmem>>, vector<1x32x16xbf16>,
    return
  }
  func.func @transform_0(%arg0: i32) -> (i32, i32, i32) {
    %c0_i32 = arith.constant 0 : i32
    %c0_i32_0 = arith.constant 0 : i32
    %c0_i32_1 = arith.constant 0 : i32
    return %arg0, %c0_i32, %c0_i32_0 : i32, i32, i32
  }
  func.func @transform_1(%arg0: i32) -> (i32, i32, i32) {
    %c0_i32 = arith.constant 0 : i32
    %c0_i32_0 = arith.constant 0 : i32
    %c0_i32_1 = arith.constant 0 : i32
    %c0_i32_2 = arith.constant 0 : i32
    return %c0_i32, %c0_i32_0, %c0_i32_1 : i32, i32, i32
  }
  func.func @transform_2(%arg0: i32) -> (i32, i32) {
    %c0_i32 = arith.constant 0 : i32
    %c0_i32_0 = arith.constant 0 : i32
    %c0_i32_1 = arith.constant 0 : i32
    return %c0_i32, %c0_i32_0 : i32, i32
  }
  func.func @transform_3(%arg0: i32) -> (i32, i32) {
    %c0_i32 = arith.constant 0 : i32
    %c0_i32_0 = arith.constant 0 : i32
    %c0_i32_1 = arith.constant 0 : i32
    return %c0_i32, %c0_i32_0 : i32, i32
  }
  func.func @transform_4(%arg0: i32) -> (i32, i32, i32) {
    %c0_i32 = arith.constant 0 : i32
    %c0_i32_0 = arith.constant 0 : i32
    %c0_i32_1 = arith.constant 0 : i32
    return %arg0, %c0_i32, %c0_i32_0 : i32, i32, i32
  }
}

module attributes {stable_mosaic.version = 11 : i64} {
  func.func @_conv_kernel(%arg0: i32, %arg1: memref<1x80x48xbf16, #tpu.memory_space<vmem>>, %arg2: memref<3x48x16xbf16, #tpu.memory_space<vmem>>, %arg3: memref<1x16xf32, #tpu.memory_space<vmem>>, %arg4: memref<1x16xf32, #tpu.memory_space<vmem>>, %arg5: memref<1x32x16xbf16, #tpu.memory_space<vmem>>, %arg6: memref<1x32x16xbf16, #tpu.memory_space<vmem>>) attributes {dimension_semantics = [#tpu.dimension_semantics<parallel>], iteration_bounds = array<i64: 2>, scalar_prefetch = 0 : i64, scratch_operands = 0 : i64, tpu.core_type = #tpu.core_type<tc>, window_params = [{transform_indices = @transform_0, window_bounds = array<i64: 1, 80, 48>}, {pipeline_mode = #tpu.pipeline_mode<synchronous>, transform_indices = @transform_1, window_bounds = array<i64: 3, 48, 16>}, {pipeline_mode = #tpu.pipeline_mode<synchronous>, transform_indices = @transform_2, window_bounds = array<i64: 1, 16>}, {pipeline_mode = #tpu.pipeline_mode<synchronous>, transform_indices = @transform_3, window_bounds = array<i64: 1, 16>}, {transform_indices = @transform_4, window_bounds = array<i64: 1, 32, 16>}, {transform_indices = @transform_5, window_bounds = array<i64: 1, 32, 16>}]} {
    %cst = arith.constant 0.000000e+00 : f32
    %0 = vector.broadcast %cst : f32 to vector<32x16xf32>
    %c0 = arith.constant 0 : index
    %c0_0 = arith.constant 0 : index
    %c0_1 = arith.constant 0 : index
    %1 = vector.load %arg1[%c0, %c0_0, %c0_1] : memref<1x80x48xbf16, #tpu.memory_space<vmem>>, vector<1x32x48xbf16>
    %2 = vector.shape_cast %1 : vector<1x32x48xbf16> to vector<32x48xbf16>
    %c0_2 = arith.constant 0 : index
    %c0_3 = arith.constant 0 : index
    %c0_4 = arith.constant 0 : index
    %3 = vector.load %arg2[%c0_2, %c0_3, %c0_4] : memref<3x48x16xbf16, #tpu.memory_space<vmem>>, vector<1x48x16xbf16>
    %4 = vector.shape_cast %3 : vector<1x48x16xbf16> to vector<48x16xbf16>
    %cst_5 = arith.constant dense<0.000000e+00> : vector<32x16xf32>
    %5 = tpu.matmul %2, %4, %cst_5 {dimension_numbers = #tpu.dot_dimension_numbers<[1], [0], [0], [1], [0, 0, 1, 1], [], []>} : vector<32x48xbf16>, vector<48x16xbf16>, vector<32x16xf32> -> vector<32x16xf32>
    %6 = arith.addf %0, %5 : vector<32x16xf32>
    %c0_6 = arith.constant 0 : index
    %c16 = arith.constant 16 : index
    %c0_7 = arith.constant 0 : index
    %7 = vector.load %arg1[%c0_6, %c16, %c0_7] : memref<1x80x48xbf16, #tpu.memory_space<vmem>>, vector<1x32x48xbf16>
    %8 = vector.shape_cast %7 : vector<1x32x48xbf16> to vector<32x48xbf16>
    %c1 = arith.constant 1 : index
    %c0_8 = arith.constant 0 : index
    %c0_9 = arith.constant 0 : index
    %9 = vector.load %arg2[%c1, %c0_8, %c0_9] : memref<3x48x16xbf16, #tpu.memory_space<vmem>>, vector<1x48x16xbf16>
    %10 = vector.shape_cast %9 : vector<1x48x16xbf16> to vector<48x16xbf16>
    %cst_10 = arith.constant dense<0.000000e+00> : vector<32x16xf32>
    %11 = tpu.matmul %8, %10, %cst_10 {dimension_numbers = #tpu.dot_dimension_numbers<[1], [0], [0], [1], [0, 0, 1, 1], [], []>} : vector<32x48xbf16>, vector<48x16xbf16>, vector<32x16xf32> -> vector<32x16xf32>
    %12 = arith.addf %6, %11 : vector<32x16xf32>
    %c0_11 = arith.constant 0 : index
    %c32 = arith.constant 32 : index
    %c0_12 = arith.constant 0 : index
    %13 = vector.load %arg1[%c0_11, %c32, %c0_12] : memref<1x80x48xbf16, #tpu.memory_space<vmem>>, vector<1x32x48xbf16>
    %14 = vector.shape_cast %13 : vector<1x32x48xbf16> to vector<32x48xbf16>
    %c2 = arith.constant 2 : index
    %c0_13 = arith.constant 0 : index
    %c0_14 = arith.constant 0 : index
    %15 = vector.load %arg2[%c2, %c0_13, %c0_14] : memref<3x48x16xbf16, #tpu.memory_space<vmem>>, vector<1x48x16xbf16>
    %16 = vector.shape_cast %15 : vector<1x48x16xbf16> to vector<48x16xbf16>
    %cst_15 = arith.constant dense<0.000000e+00> : vector<32x16xf32>
    %17 = tpu.matmul %14, %16, %cst_15 {dimension_numbers = #tpu.dot_dimension_numbers<[1], [0], [0], [1], [0, 0, 1, 1], [], []>} : vector<32x48xbf16>, vector<48x16xbf16>, vector<32x16xf32> -> vector<32x16xf32>
    %18 = arith.addf %12, %17 : vector<32x16xf32>
    %c0_16 = arith.constant 0 : index
    %c0_17 = arith.constant 0 : index
    %19 = vector.load %arg3[%c0_16, %c0_17] : memref<1x16xf32, #tpu.memory_space<vmem>>, vector<1x16xf32>
    %20 = vector.broadcast %19 : vector<1x16xf32> to vector<32x16xf32>
    %21 = arith.mulf %18, %20 : vector<32x16xf32>
    %c0_18 = arith.constant 0 : index
    %c0_19 = arith.constant 0 : index
    %22 = vector.load %arg4[%c0_18, %c0_19] : memref<1x16xf32, #tpu.memory_space<vmem>>, vector<1x16xf32>
    %23 = vector.broadcast %22 : vector<1x16xf32> to vector<32x16xf32>
    %24 = arith.addf %21, %23 : vector<32x16xf32>
    %c0_20 = arith.constant 0 : index
    %c0_21 = arith.constant 0 : index
    %c0_22 = arith.constant 0 : index
    %25 = vector.load %arg5[%c0_20, %c0_21, %c0_22] : memref<1x32x16xbf16, #tpu.memory_space<vmem>>, vector<1x32x16xbf16>
    %26 = vector.shape_cast %25 : vector<1x32x16xbf16> to vector<32x16xbf16>
    %27 = arith.extf %26 : vector<32x16xbf16> to vector<32x16xf32>
    %28 = arith.addf %24, %27 : vector<32x16xf32>
    %cst_23 = arith.constant 0.000000e+00 : f32
    %29 = vector.broadcast %cst_23 : f32 to vector<32x16xf32>
    %30 = arith.maximumf %28, %29 : vector<32x16xf32>
    %31 = arith.truncf %30 : vector<32x16xf32> to vector<32x16xbf16>
    %c0_24 = arith.constant 0 : index
    %c0_25 = arith.constant 0 : index
    %c0_26 = arith.constant 0 : index
    %32 = vector.load %arg6[%c0_24, %c0_25, %c0_26] : memref<1x32x16xbf16, #tpu.memory_space<vmem>>, vector<1x32x16xbf16>
    %33 = vector.shape_cast %32 : vector<1x32x16xbf16> to vector<32x16xbf16>
    %34 = vector.shape_cast %31 : vector<32x16xbf16> to vector<1x32x16xbf16>
    tpu.vector_store %arg6[%c0_24, %c0_25, %c0_26], %34 {strides = array<i32>} : memref<1x32x16xbf16, #tpu.memory_space<vmem>>, vector<1x32x16xbf16>,
    return
  }
  func.func @transform_0(%arg0: i32) -> (i32, i32, i32) {
    %c0_i32 = arith.constant 0 : i32
    %c0_i32_0 = arith.constant 0 : i32
    %c0_i32_1 = arith.constant 0 : i32
    return %arg0, %c0_i32, %c0_i32_0 : i32, i32, i32
  }
  func.func @transform_1(%arg0: i32) -> (i32, i32, i32) {
    %c0_i32 = arith.constant 0 : i32
    %c0_i32_0 = arith.constant 0 : i32
    %c0_i32_1 = arith.constant 0 : i32
    %c0_i32_2 = arith.constant 0 : i32
    return %c0_i32, %c0_i32_0, %c0_i32_1 : i32, i32, i32
  }
  func.func @transform_2(%arg0: i32) -> (i32, i32) {
    %c0_i32 = arith.constant 0 : i32
    %c0_i32_0 = arith.constant 0 : i32
    %c0_i32_1 = arith.constant 0 : i32
    return %c0_i32, %c0_i32_0 : i32, i32
  }
  func.func @transform_3(%arg0: i32) -> (i32, i32) {
    %c0_i32 = arith.constant 0 : i32
    %c0_i32_0 = arith.constant 0 : i32
    %c0_i32_1 = arith.constant 0 : i32
    return %c0_i32, %c0_i32_0 : i32, i32
  }
  func.func @transform_4(%arg0: i32) -> (i32, i32, i32) {
    %c0_i32 = arith.constant 0 : i32
    %c0_i32_0 = arith.constant 0 : i32
    %c0_i32_1 = arith.constant 0 : i32
    return %arg0, %c0_i32, %c0_i32_0 : i32, i32, i32
  }
  func.func @transform_5(%arg0: i32) -> (i32, i32, i32) {
    %c0_i32 = arith.constant 0 : i32
    %c0_i32_0 = arith.constant 0 : i32
    %c0_i32_1 = arith.constant 0 : i32
    return %arg0, %c0_i32, %c0_i32_0 : i32, i32, i32
  }
}

module attributes {stable_mosaic.version = 11 : i64} {
  func.func @_conv_kernel(%arg0: i32, %arg1: memref<1x80x48xbf16, #tpu.memory_space<vmem>>, %arg2: memref<3x48x16xbf16, #tpu.memory_space<vmem>>, %arg3: memref<1x16xf32, #tpu.memory_space<vmem>>, %arg4: memref<1x16xf32, #tpu.memory_space<vmem>>, %arg5: memref<1x32x16xbf16, #tpu.memory_space<vmem>>) attributes {dimension_semantics = [#tpu.dimension_semantics<parallel>], iteration_bounds = array<i64: 2>, scalar_prefetch = 0 : i64, scratch_operands = 0 : i64, tpu.core_type = #tpu.core_type<tc>, window_params = [{transform_indices = @transform_0, window_bounds = array<i64: 1, 80, 48>}, {pipeline_mode = #tpu.pipeline_mode<synchronous>, transform_indices = @transform_1, window_bounds = array<i64: 3, 48, 16>}, {pipeline_mode = #tpu.pipeline_mode<synchronous>, transform_indices = @transform_2, window_bounds = array<i64: 1, 16>}, {pipeline_mode = #tpu.pipeline_mode<synchronous>, transform_indices = @transform_3, window_bounds = array<i64: 1, 16>}, {transform_indices = @transform_4, window_bounds = array<i64: 1, 32, 16>}]} {
    %cst = arith.constant 0.000000e+00 : f32
    %0 = vector.broadcast %cst : f32 to vector<32x16xf32>
    %c0 = arith.constant 0 : index
    %c0_0 = arith.constant 0 : index
    %c0_1 = arith.constant 0 : index
    %1 = vector.load %arg1[%c0, %c0_0, %c0_1] : memref<1x80x48xbf16, #tpu.memory_space<vmem>>, vector<1x32x48xbf16>
    %2 = vector.shape_cast %1 : vector<1x32x48xbf16> to vector<32x48xbf16>
    %c0_2 = arith.constant 0 : index
    %c0_3 = arith.constant 0 : index
    %c0_4 = arith.constant 0 : index
    %3 = vector.load %arg2[%c0_2, %c0_3, %c0_4] : memref<3x48x16xbf16, #tpu.memory_space<vmem>>, vector<1x48x16xbf16>
    %4 = vector.shape_cast %3 : vector<1x48x16xbf16> to vector<48x16xbf16>
    %cst_5 = arith.constant dense<0.000000e+00> : vector<32x16xf32>
    %5 = tpu.matmul %2, %4, %cst_5 {dimension_numbers = #tpu.dot_dimension_numbers<[1], [0], [0], [1], [0, 0, 1, 1], [], []>} : vector<32x48xbf16>, vector<48x16xbf16>, vector<32x16xf32> -> vector<32x16xf32>
    %6 = arith.addf %0, %5 : vector<32x16xf32>
    %c0_6 = arith.constant 0 : index
    %c16 = arith.constant 16 : index
    %c0_7 = arith.constant 0 : index
    %7 = vector.load %arg1[%c0_6, %c16, %c0_7] : memref<1x80x48xbf16, #tpu.memory_space<vmem>>, vector<1x32x48xbf16>
    %8 = vector.shape_cast %7 : vector<1x32x48xbf16> to vector<32x48xbf16>
    %c1 = arith.constant 1 : index
    %c0_8 = arith.constant 0 : index
    %c0_9 = arith.constant 0 : index
    %9 = vector.load %arg2[%c1, %c0_8, %c0_9] : memref<3x48x16xbf16, #tpu.memory_space<vmem>>, vector<1x48x16xbf16>
    %10 = vector.shape_cast %9 : vector<1x48x16xbf16> to vector<48x16xbf16>
    %cst_10 = arith.constant dense<0.000000e+00> : vector<32x16xf32>
    %11 = tpu.matmul %8, %10, %cst_10 {dimension_numbers = #tpu.dot_dimension_numbers<[1], [0], [0], [1], [0, 0, 1, 1], [], []>} : vector<32x48xbf16>, vector<48x16xbf16>, vector<32x16xf32> -> vector<32x16xf32>
    %12 = arith.addf %6, %11 : vector<32x16xf32>
    %c0_11 = arith.constant 0 : index
    %c32 = arith.constant 32 : index
    %c0_12 = arith.constant 0 : index
    %13 = vector.load %arg1[%c0_11, %c32, %c0_12] : memref<1x80x48xbf16, #tpu.memory_space<vmem>>, vector<1x32x48xbf16>
    %14 = vector.shape_cast %13 : vector<1x32x48xbf16> to vector<32x48xbf16>
    %c2 = arith.constant 2 : index
    %c0_13 = arith.constant 0 : index
    %c0_14 = arith.constant 0 : index
    %15 = vector.load %arg2[%c2, %c0_13, %c0_14] : memref<3x48x16xbf16, #tpu.memory_space<vmem>>, vector<1x48x16xbf16>
    %16 = vector.shape_cast %15 : vector<1x48x16xbf16> to vector<48x16xbf16>
    %cst_15 = arith.constant dense<0.000000e+00> : vector<32x16xf32>
    %17 = tpu.matmul %14, %16, %cst_15 {dimension_numbers = #tpu.dot_dimension_numbers<[1], [0], [0], [1], [0, 0, 1, 1], [], []>} : vector<32x48xbf16>, vector<48x16xbf16>, vector<32x16xf32> -> vector<32x16xf32>
    %18 = arith.addf %12, %17 : vector<32x16xf32>
    %c0_16 = arith.constant 0 : index
    %c0_17 = arith.constant 0 : index
    %19 = vector.load %arg3[%c0_16, %c0_17] : memref<1x16xf32, #tpu.memory_space<vmem>>, vector<1x16xf32>
    %20 = vector.broadcast %19 : vector<1x16xf32> to vector<32x16xf32>
    %21 = arith.mulf %18, %20 : vector<32x16xf32>
    %c0_18 = arith.constant 0 : index
    %c0_19 = arith.constant 0 : index
    %22 = vector.load %arg4[%c0_18, %c0_19] : memref<1x16xf32, #tpu.memory_space<vmem>>, vector<1x16xf32>
    %23 = vector.broadcast %22 : vector<1x16xf32> to vector<32x16xf32>
    %24 = arith.addf %21, %23 : vector<32x16xf32>
    %cst_20 = arith.constant 0.000000e+00 : f32
    %25 = vector.broadcast %cst_20 : f32 to vector<32x16xf32>
    %26 = arith.maximumf %24, %25 : vector<32x16xf32>
    %27 = arith.truncf %26 : vector<32x16xf32> to vector<32x16xbf16>
    %c0_21 = arith.constant 0 : index
    %c0_22 = arith.constant 0 : index
    %c0_23 = arith.constant 0 : index
    %28 = vector.load %arg5[%c0_21, %c0_22, %c0_23] : memref<1x32x16xbf16, #tpu.memory_space<vmem>>, vector<1x32x16xbf16>
    %29 = vector.shape_cast %28 : vector<1x32x16xbf16> to vector<32x16xbf16>
    %30 = vector.shape_cast %27 : vector<32x16xbf16> to vector<1x32x16xbf16>
    tpu.vector_store %arg5[%c0_21, %c0_22, %c0_23], %30 {strides = array<i32>} : memref<1x32x16xbf16, #tpu.memory_space<vmem>>, vector<1x32x16xbf16>,
    return
  }
  func.func @transform_0(%arg0: i32) -> (i32, i32, i32) {
    %c0_i32 = arith.constant 0 : i32
    %c0_i32_0 = arith.constant 0 : i32
    %c0_i32_1 = arith.constant 0 : i32
    return %arg0, %c0_i32, %c0_i32_0 : i32, i32, i32
  }
  func.func @transform_1(%arg0: i32) -> (i32, i32, i32) {
    %c0_i32 = arith.constant 0 : i32
    %c0_i32_0 = arith.constant 0 : i32
    %c0_i32_1 = arith.constant 0 : i32
    %c0_i32_2 = arith.constant 0 : i32
    return %c0_i32, %c0_i32_0, %c0_i32_1 : i32, i32, i32
  }
  func.func @transform_2(%arg0: i32) -> (i32, i32) {
    %c0_i32 = arith.constant 0 : i32
    %c0_i32_0 = arith.constant 0 : i32
    %c0_i32_1 = arith.constant 0 : i32
    return %c0_i32, %c0_i32_0 : i32, i32
  }
  func.func @transform_3(%arg0: i32) -> (i32, i32) {
    %c0_i32 = arith.constant 0 : i32
    %c0_i32_0 = arith.constant 0 : i32
    %c0_i32_1 = arith.constant 0 : i32
    return %c0_i32, %c0_i32_0 : i32, i32
  }
  func.func @transform_4(%arg0: i32) -> (i32, i32, i32) {
    %c0_i32 = arith.constant 0 : i32
    %c0_i32_0 = arith.constant 0 : i32
    %c0_i32_1 = arith.constant 0 : i32
    return %arg0, %c0_i32, %c0_i32_0 : i32, i32, i32
  }
}

module attributes {stable_mosaic.version = 11 : i64} {
  func.func @_conv_kernel(%arg0: i32, %arg1: memref<1x192x32xbf16, #tpu.memory_space<vmem>>, %arg2: memref<6x32x32xbf16, #tpu.memory_space<vmem>>, %arg3: memref<1x32xf32, #tpu.memory_space<vmem>>, %arg4: memref<1x32xf32, #tpu.memory_space<vmem>>, %arg5: memref<1x16x32xbf16, #tpu.memory_space<vmem>>) attributes {dimension_semantics = [#tpu.dimension_semantics<parallel>], iteration_bounds = array<i64: 2>, scalar_prefetch = 0 : i64, scratch_operands = 0 : i64, tpu.core_type = #tpu.core_type<tc>, window_params = [{transform_indices = @transform_0, window_bounds = array<i64: 1, 192, 32>}, {pipeline_mode = #tpu.pipeline_mode<synchronous>, transform_indices = @transform_1, window_bounds = array<i64: 6, 32, 32>}, {pipeline_mode = #tpu.pipeline_mode<synchronous>, transform_indices = @transform_2, window_bounds = array<i64: 1, 32>}, {pipeline_mode = #tpu.pipeline_mode<synchronous>, transform_indices = @transform_3, window_bounds = array<i64: 1, 32>}, {transform_indices = @transform_4, window_bounds = array<i64: 1, 16, 32>}]} {
    %cst = arith.constant 0.000000e+00 : f32
    %0 = vector.broadcast %cst : f32 to vector<16x32xf32>
    %c0 = arith.constant 0 : index
    %c0_0 = arith.constant 0 : index
    %c0_1 = arith.constant 0 : index
    %1 = vector.load %arg1[%c0, %c0_0, %c0_1] : memref<1x192x32xbf16, #tpu.memory_space<vmem>>, vector<1x16x32xbf16>
    %2 = vector.shape_cast %1 : vector<1x16x32xbf16> to vector<16x32xbf16>
    %c0_2 = arith.constant 0 : index
    %c0_3 = arith.constant 0 : index
    %c0_4 = arith.constant 0 : index
    %3 = vector.load %arg2[%c0_2, %c0_3, %c0_4] : memref<6x32x32xbf16, #tpu.memory_space<vmem>>, vector<1x32x32xbf16>
    %4 = vector.shape_cast %3 : vector<1x32x32xbf16> to vector<32x32xbf16>
    %cst_5 = arith.constant dense<0.000000e+00> : vector<16x32xf32>
    %5 = tpu.matmul %2, %4, %cst_5 {dimension_numbers = #tpu.dot_dimension_numbers<[1], [0], [0], [1], [0, 0, 1, 1], [], []>} : vector<16x32xbf16>, vector<32x32xbf16>, vector<16x32xf32> -> vector<16x32xf32>
    %6 = arith.addf %0, %5 : vector<16x32xf32>
    %c0_6 = arith.constant 0 : index
    %c48 = arith.constant 48 : index
    %c0_7 = arith.constant 0 : index
    %7 = vector.load %arg1[%c0_6, %c48, %c0_7] : memref<1x192x32xbf16, #tpu.memory_space<vmem>>, vector<1x16x32xbf16>
    %8 = vector.shape_cast %7 : vector<1x16x32xbf16> to vector<16x32xbf16>
    %c1 = arith.constant 1 : index
    %c0_8 = arith.constant 0 : index
    %c0_9 = arith.constant 0 : index
    %9 = vector.load %arg2[%c1, %c0_8, %c0_9] : memref<6x32x32xbf16, #tpu.memory_space<vmem>>, vector<1x32x32xbf16>
    %10 = vector.shape_cast %9 : vector<1x32x32xbf16> to vector<32x32xbf16>
    %cst_10 = arith.constant dense<0.000000e+00> : vector<16x32xf32>
    %11 = tpu.matmul %8, %10, %cst_10 {dimension_numbers = #tpu.dot_dimension_numbers<[1], [0], [0], [1], [0, 0, 1, 1], [], []>} : vector<16x32xbf16>, vector<32x32xbf16>, vector<16x32xf32> -> vector<16x32xf32>
    %12 = arith.addf %6, %11 : vector<16x32xf32>
    %c0_11 = arith.constant 0 : index
    %c96 = arith.constant 96 : index
    %c0_12 = arith.constant 0 : index
    %13 = vector.load %arg1[%c0_11, %c96, %c0_12] : memref<1x192x32xbf16, #tpu.memory_space<vmem>>, vector<1x16x32xbf16>
    %14 = vector.shape_cast %13 : vector<1x16x32xbf16> to vector<16x32xbf16>
    %c2 = arith.constant 2 : index
    %c0_13 = arith.constant 0 : index
    %c0_14 = arith.constant 0 : index
    %15 = vector.load %arg2[%c2, %c0_13, %c0_14] : memref<6x32x32xbf16, #tpu.memory_space<vmem>>, vector<1x32x32xbf16>
    %16 = vector.shape_cast %15 : vector<1x32x32xbf16> to vector<32x32xbf16>
    %cst_15 = arith.constant dense<0.000000e+00> : vector<16x32xf32>
    %17 = tpu.matmul %14, %16, %cst_15 {dimension_numbers = #tpu.dot_dimension_numbers<[1], [0], [0], [1], [0, 0, 1, 1], [], []>} : vector<16x32xbf16>, vector<32x32xbf16>, vector<16x32xf32> -> vector<16x32xf32>
    %18 = arith.addf %12, %17 : vector<16x32xf32>
    %c0_16 = arith.constant 0 : index
    %c144 = arith.constant 144 : index
    %c0_17 = arith.constant 0 : index
    %19 = vector.load %arg1[%c0_16, %c144, %c0_17] : memref<1x192x32xbf16, #tpu.memory_space<vmem>>, vector<1x16x32xbf16>
    %20 = vector.shape_cast %19 : vector<1x16x32xbf16> to vector<16x32xbf16>
    %c3 = arith.constant 3 : index
    %c0_18 = arith.constant 0 : index
    %c0_19 = arith.constant 0 : index
    %21 = vector.load %arg2[%c3, %c0_18, %c0_19] : memref<6x32x32xbf16, #tpu.memory_space<vmem>>, vector<1x32x32xbf16>
    %22 = vector.shape_cast %21 : vector<1x32x32xbf16> to vector<32x32xbf16>
    %cst_20 = arith.constant dense<0.000000e+00> : vector<16x32xf32>
    %23 = tpu.matmul %20, %22, %cst_20 {dimension_numbers = #tpu.dot_dimension_numbers<[1], [0], [0], [1], [0, 0, 1, 1], [], []>} : vector<16x32xbf16>, vector<32x32xbf16>, vector<16x32xf32> -> vector<16x32xf32>
    %24 = arith.addf %18, %23 : vector<16x32xf32>
    %c0_21 = arith.constant 0 : index
    %c16 = arith.constant 16 : index
    %c0_22 = arith.constant 0 : index
    %25 = vector.load %arg1[%c0_21, %c16, %c0_22] : memref<1x192x32xbf16, #tpu.memory_space<vmem>>, vector<1x16x32xbf16>
    %26 = vector.shape_cast %25 : vector<1x16x32xbf16> to vector<16x32xbf16>
    %c4 = arith.constant 4 : index
    %c0_23 = arith.constant 0 : index
    %c0_24 = arith.constant 0 : index
    %27 = vector.load %arg2[%c4, %c0_23, %c0_24] : memref<6x32x32xbf16, #tpu.memory_space<vmem>>, vector<1x32x32xbf16>
    %28 = vector.shape_cast %27 : vector<1x32x32xbf16> to vector<32x32xbf16>
    %cst_25 = arith.constant dense<0.000000e+00> : vector<16x32xf32>
    %29 = tpu.matmul %26, %28, %cst_25 {dimension_numbers = #tpu.dot_dimension_numbers<[1], [0], [0], [1], [0, 0, 1, 1], [], []>} : vector<16x32xbf16>, vector<32x32xbf16>, vector<16x32xf32> -> vector<16x32xf32>
    %30 = arith.addf %24, %29 : vector<16x32xf32>
    %c0_26 = arith.constant 0 : index
    %c64 = arith.constant 64 : index
    %c0_27 = arith.constant 0 : index
    %31 = vector.load %arg1[%c0_26, %c64, %c0_27] : memref<1x192x32xbf16, #tpu.memory_space<vmem>>, vector<1x16x32xbf16>
    %32 = vector.shape_cast %31 : vector<1x16x32xbf16> to vector<16x32xbf16>
    %c5 = arith.constant 5 : index
    %c0_28 = arith.constant 0 : index
    %c0_29 = arith.constant 0 : index
    %33 = vector.load %arg2[%c5, %c0_28, %c0_29] : memref<6x32x32xbf16, #tpu.memory_space<vmem>>, vector<1x32x32xbf16>
    %34 = vector.shape_cast %33 : vector<1x32x32xbf16> to vector<32x32xbf16>
    %cst_30 = arith.constant dense<0.000000e+00> : vector<16x32xf32>
    %35 = tpu.matmul %32, %34, %cst_30 {dimension_numbers = #tpu.dot_dimension_numbers<[1], [0], [0], [1], [0, 0, 1, 1], [], []>} : vector<16x32xbf16>, vector<32x32xbf16>, vector<16x32xf32> -> vector<16x32xf32>
    %36 = arith.addf %30, %35 : vector<16x32xf32>
    %c0_31 = arith.constant 0 : index
    %c0_32 = arith.constant 0 : index
    %37 = vector.load %arg3[%c0_31, %c0_32] : memref<1x32xf32, #tpu.memory_space<vmem>>, vector<1x32xf32>
    %38 = vector.broadcast %37 : vector<1x32xf32> to vector<16x32xf32>
    %39 = arith.mulf %36, %38 : vector<16x32xf32>
    %c0_33 = arith.constant 0 : index
    %c0_34 = arith.constant 0 : index
    %40 = vector.load %arg4[%c0_33, %c0_34] : memref<1x32xf32, #tpu.memory_space<vmem>>, vector<1x32xf32>
    %41 = vector.broadcast %40 : vector<1x32xf32> to vector<16x32xf32>
    %42 = arith.addf %39, %41 : vector<16x32xf32>
    %cst_35 = arith.constant 0.000000e+00 : f32
    %43 = vector.broadcast %cst_35 : f32 to vector<16x32xf32>
    %44 = arith.maximumf %42, %43 : vector<16x32xf32>
    %45 = arith.truncf %44 : vector<16x32xf32> to vector<16x32xbf16>
    %c0_36 = arith.constant 0 : index
    %c0_37 = arith.constant 0 : index
    %c0_38 = arith.constant 0 : index
    %46 = vector.load %arg5[%c0_36, %c0_37, %c0_38] : memref<1x16x32xbf16, #tpu.memory_space<vmem>>, vector<1x16x32xbf16>
    %47 = vector.shape_cast %46 : vector<1x16x32xbf16> to vector<16x32xbf16>
    %48 = vector.shape_cast %45 : vector<16x32xbf16> to vector<1x16x32xbf16>
    tpu.vector_store %arg5[%c0_36, %c0_37, %c0_38], %48 {strides = array<i32>} : memref<1x16x32xbf16, #tpu.memory_space<vmem>>, vector<1x16x32xbf16>,
    return
  }
  func.func @transform_0(%arg0: i32) -> (i32, i32, i32) {
    %c0_i32 = arith.constant 0 : i32
    %c0_i32_0 = arith.constant 0 : i32
    %c0_i32_1 = arith.constant 0 : i32
    return %arg0, %c0_i32, %c0_i32_0 : i32, i32, i32
  }
  func.func @transform_1(%arg0: i32) -> (i32, i32, i32) {
    %c0_i32 = arith.constant 0 : i32
    %c0_i32_0 = arith.constant 0 : i32
    %c0_i32_1 = arith.constant 0 : i32
    %c0_i32_2 = arith.constant 0 : i32
    return %c0_i32, %c0_i32_0, %c0_i32_1 : i32, i32, i32
  }
  func.func @transform_2(%arg0: i32) -> (i32, i32) {
    %c0_i32 = arith.constant 0 : i32
    %c0_i32_0 = arith.constant 0 : i32
    %c0_i32_1 = arith.constant 0 : i32
    return %c0_i32, %c0_i32_0 : i32, i32
  }
  func.func @transform_3(%arg0: i32) -> (i32, i32) {
    %c0_i32 = arith.constant 0 : i32
    %c0_i32_0 = arith.constant 0 : i32
    %c0_i32_1 = arith.constant 0 : i32
    return %c0_i32, %c0_i32_0 : i32, i32
  }
  func.func @transform_4(%arg0: i32) -> (i32, i32, i32) {
    %c0_i32 = arith.constant 0 : i32
    %c0_i32_0 = arith.constant 0 : i32
    %c0_i32_1 = arith.constant 0 : i32
    return %arg0, %c0_i32, %c0_i32_0 : i32, i32, i32
  }
}

module attributes {stable_mosaic.version = 11 : i64} {
  func.func @_conv_kernel(%arg0: i32, %arg1: memref<1x64x96xbf16, #tpu.memory_space<vmem>>, %arg2: memref<3x96x32xbf16, #tpu.memory_space<vmem>>, %arg3: memref<1x32xf32, #tpu.memory_space<vmem>>, %arg4: memref<1x32xf32, #tpu.memory_space<vmem>>, %arg5: memref<1x16x32xbf16, #tpu.memory_space<vmem>>, %arg6: memref<1x16x32xbf16, #tpu.memory_space<vmem>>) attributes {dimension_semantics = [#tpu.dimension_semantics<parallel>], iteration_bounds = array<i64: 2>, scalar_prefetch = 0 : i64, scratch_operands = 0 : i64, tpu.core_type = #tpu.core_type<tc>, window_params = [{transform_indices = @transform_0, window_bounds = array<i64: 1, 64, 96>}, {pipeline_mode = #tpu.pipeline_mode<synchronous>, transform_indices = @transform_1, window_bounds = array<i64: 3, 96, 32>}, {pipeline_mode = #tpu.pipeline_mode<synchronous>, transform_indices = @transform_2, window_bounds = array<i64: 1, 32>}, {pipeline_mode = #tpu.pipeline_mode<synchronous>, transform_indices = @transform_3, window_bounds = array<i64: 1, 32>}, {transform_indices = @transform_4, window_bounds = array<i64: 1, 16, 32>}, {transform_indices = @transform_5, window_bounds = array<i64: 1, 16, 32>}]} {
    %cst = arith.constant 0.000000e+00 : f32
    %0 = vector.broadcast %cst : f32 to vector<16x32xf32>
    %c0 = arith.constant 0 : index
    %c0_0 = arith.constant 0 : index
    %c0_1 = arith.constant 0 : index
    %1 = vector.load %arg1[%c0, %c0_0, %c0_1] : memref<1x64x96xbf16, #tpu.memory_space<vmem>>, vector<1x16x96xbf16>
    %2 = vector.shape_cast %1 : vector<1x16x96xbf16> to vector<16x96xbf16>
    %c0_2 = arith.constant 0 : index
    %c0_3 = arith.constant 0 : index
    %c0_4 = arith.constant 0 : index
    %3 = vector.load %arg2[%c0_2, %c0_3, %c0_4] : memref<3x96x32xbf16, #tpu.memory_space<vmem>>, vector<1x96x32xbf16>
    %4 = vector.shape_cast %3 : vector<1x96x32xbf16> to vector<96x32xbf16>
    %cst_5 = arith.constant dense<0.000000e+00> : vector<16x32xf32>
    %5 = tpu.matmul %2, %4, %cst_5 {dimension_numbers = #tpu.dot_dimension_numbers<[1], [0], [0], [1], [0, 0, 1, 1], [], []>} : vector<16x96xbf16>, vector<96x32xbf16>, vector<16x32xf32> -> vector<16x32xf32>
    %6 = arith.addf %0, %5 : vector<16x32xf32>
    %c0_6 = arith.constant 0 : index
    %c16 = arith.constant 16 : index
    %c0_7 = arith.constant 0 : index
    %7 = vector.load %arg1[%c0_6, %c16, %c0_7] : memref<1x64x96xbf16, #tpu.memory_space<vmem>>, vector<1x16x96xbf16>
    %8 = vector.shape_cast %7 : vector<1x16x96xbf16> to vector<16x96xbf16>
    %c1 = arith.constant 1 : index
    %c0_8 = arith.constant 0 : index
    %c0_9 = arith.constant 0 : index
    %9 = vector.load %arg2[%c1, %c0_8, %c0_9] : memref<3x96x32xbf16, #tpu.memory_space<vmem>>, vector<1x96x32xbf16>
    %10 = vector.shape_cast %9 : vector<1x96x32xbf16> to vector<96x32xbf16>
    %cst_10 = arith.constant dense<0.000000e+00> : vector<16x32xf32>
    %11 = tpu.matmul %8, %10, %cst_10 {dimension_numbers = #tpu.dot_dimension_numbers<[1], [0], [0], [1], [0, 0, 1, 1], [], []>} : vector<16x96xbf16>, vector<96x32xbf16>, vector<16x32xf32> -> vector<16x32xf32>
    %12 = arith.addf %6, %11 : vector<16x32xf32>
    %c0_11 = arith.constant 0 : index
    %c32 = arith.constant 32 : index
    %c0_12 = arith.constant 0 : index
    %13 = vector.load %arg1[%c0_11, %c32, %c0_12] : memref<1x64x96xbf16, #tpu.memory_space<vmem>>, vector<1x16x96xbf16>
    %14 = vector.shape_cast %13 : vector<1x16x96xbf16> to vector<16x96xbf16>
    %c2 = arith.constant 2 : index
    %c0_13 = arith.constant 0 : index
    %c0_14 = arith.constant 0 : index
    %15 = vector.load %arg2[%c2, %c0_13, %c0_14] : memref<3x96x32xbf16, #tpu.memory_space<vmem>>, vector<1x96x32xbf16>
    %16 = vector.shape_cast %15 : vector<1x96x32xbf16> to vector<96x32xbf16>
    %cst_15 = arith.constant dense<0.000000e+00> : vector<16x32xf32>
    %17 = tpu.matmul %14, %16, %cst_15 {dimension_numbers = #tpu.dot_dimension_numbers<[1], [0], [0], [1], [0, 0, 1, 1], [], []>} : vector<16x96xbf16>, vector<96x32xbf16>, vector<16x32xf32> -> vector<16x32xf32>
    %18 = arith.addf %12, %17 : vector<16x32xf32>
    %c0_16 = arith.constant 0 : index
    %c0_17 = arith.constant 0 : index
    %19 = vector.load %arg3[%c0_16, %c0_17] : memref<1x32xf32, #tpu.memory_space<vmem>>, vector<1x32xf32>
    %20 = vector.broadcast %19 : vector<1x32xf32> to vector<16x32xf32>
    %21 = arith.mulf %18, %20 : vector<16x32xf32>
    %c0_18 = arith.constant 0 : index
    %c0_19 = arith.constant 0 : index
    %22 = vector.load %arg4[%c0_18, %c0_19] : memref<1x32xf32, #tpu.memory_space<vmem>>, vector<1x32xf32>
    %23 = vector.broadcast %22 : vector<1x32xf32> to vector<16x32xf32>
    %24 = arith.addf %21, %23 : vector<16x32xf32>
    %c0_20 = arith.constant 0 : index
    %c0_21 = arith.constant 0 : index
    %c0_22 = arith.constant 0 : index
    %25 = vector.load %arg5[%c0_20, %c0_21, %c0_22] : memref<1x16x32xbf16, #tpu.memory_space<vmem>>, vector<1x16x32xbf16>
    %26 = vector.shape_cast %25 : vector<1x16x32xbf16> to vector<16x32xbf16>
    %27 = arith.extf %26 : vector<16x32xbf16> to vector<16x32xf32>
    %28 = arith.addf %24, %27 : vector<16x32xf32>
    %cst_23 = arith.constant 0.000000e+00 : f32
    %29 = vector.broadcast %cst_23 : f32 to vector<16x32xf32>
    %30 = arith.maximumf %28, %29 : vector<16x32xf32>
    %31 = arith.truncf %30 : vector<16x32xf32> to vector<16x32xbf16>
    %c0_24 = arith.constant 0 : index
    %c0_25 = arith.constant 0 : index
    %c0_26 = arith.constant 0 : index
    %32 = vector.load %arg6[%c0_24, %c0_25, %c0_26] : memref<1x16x32xbf16, #tpu.memory_space<vmem>>, vector<1x16x32xbf16>
    %33 = vector.shape_cast %32 : vector<1x16x32xbf16> to vector<16x32xbf16>
    %34 = vector.shape_cast %31 : vector<16x32xbf16> to vector<1x16x32xbf16>
    tpu.vector_store %arg6[%c0_24, %c0_25, %c0_26], %34 {strides = array<i32>} : memref<1x16x32xbf16, #tpu.memory_space<vmem>>, vector<1x16x32xbf16>,
    return
  }
  func.func @transform_0(%arg0: i32) -> (i32, i32, i32) {
    %c0_i32 = arith.constant 0 : i32
    %c0_i32_0 = arith.constant 0 : i32
    %c0_i32_1 = arith.constant 0 : i32
    return %arg0, %c0_i32, %c0_i32_0 : i32, i32, i32
  }
  func.func @transform_1(%arg0: i32) -> (i32, i32, i32) {
    %c0_i32 = arith.constant 0 : i32
    %c0_i32_0 = arith.constant 0 : i32
    %c0_i32_1 = arith.constant 0 : i32
    %c0_i32_2 = arith.constant 0 : i32
    return %c0_i32, %c0_i32_0, %c0_i32_1 : i32, i32, i32
  }
  func.func @transform_2(%arg0: i32) -> (i32, i32) {
    %c0_i32 = arith.constant 0 : i32
    %c0_i32_0 = arith.constant 0 : i32
    %c0_i32_1 = arith.constant 0 : i32
    return %c0_i32, %c0_i32_0 : i32, i32
  }
  func.func @transform_3(%arg0: i32) -> (i32, i32) {
    %c0_i32 = arith.constant 0 : i32
    %c0_i32_0 = arith.constant 0 : i32
    %c0_i32_1 = arith.constant 0 : i32
    return %c0_i32, %c0_i32_0 : i32, i32
  }
  func.func @transform_4(%arg0: i32) -> (i32, i32, i32) {
    %c0_i32 = arith.constant 0 : i32
    %c0_i32_0 = arith.constant 0 : i32
    %c0_i32_1 = arith.constant 0 : i32
    return %arg0, %c0_i32, %c0_i32_0 : i32, i32, i32
  }
  func.func @transform_5(%arg0: i32) -> (i32, i32, i32) {
    %c0_i32 = arith.constant 0 : i32
    %c0_i32_0 = arith.constant 0 : i32
    %c0_i32_1 = arith.constant 0 : i32
    return %arg0, %c0_i32, %c0_i32_0 : i32, i32, i32
  }
}

module attributes {stable_mosaic.version = 11 : i64} {
  func.func @_conv_kernel(%arg0: i32, %arg1: memref<1x192x32xbf16, #tpu.memory_space<vmem>>, %arg2: memref<1x32x32xbf16, #tpu.memory_space<vmem>>, %arg3: memref<1x32xf32, #tpu.memory_space<vmem>>, %arg4: memref<1x32xf32, #tpu.memory_space<vmem>>, %arg5: memref<1x16x32xbf16, #tpu.memory_space<vmem>>) attributes {dimension_semantics = [#tpu.dimension_semantics<parallel>], iteration_bounds = array<i64: 2>, scalar_prefetch = 0 : i64, scratch_operands = 0 : i64, tpu.core_type = #tpu.core_type<tc>, window_params = [{transform_indices = @transform_0, window_bounds = array<i64: 1, 192, 32>}, {pipeline_mode = #tpu.pipeline_mode<synchronous>, transform_indices = @transform_1, window_bounds = array<i64: 1, 32, 32>}, {pipeline_mode = #tpu.pipeline_mode<synchronous>, transform_indices = @transform_2, window_bounds = array<i64: 1, 32>}, {pipeline_mode = #tpu.pipeline_mode<synchronous>, transform_indices = @transform_3, window_bounds = array<i64: 1, 32>}, {transform_indices = @transform_4, window_bounds = array<i64: 1, 16, 32>}]} {
    %cst = arith.constant 0.000000e+00 : f32
    %0 = vector.broadcast %cst : f32 to vector<16x32xf32>
    %c0 = arith.constant 0 : index
    %c144 = arith.constant 144 : index
    %c0_0 = arith.constant 0 : index
    %1 = vector.load %arg1[%c0, %c144, %c0_0] : memref<1x192x32xbf16, #tpu.memory_space<vmem>>, vector<1x16x32xbf16>
    %2 = vector.shape_cast %1 : vector<1x16x32xbf16> to vector<16x32xbf16>
    %c0_1 = arith.constant 0 : index
    %c0_2 = arith.constant 0 : index
    %c0_3 = arith.constant 0 : index
    %3 = vector.load %arg2[%c0_1, %c0_2, %c0_3] : memref<1x32x32xbf16, #tpu.memory_space<vmem>>, vector<1x32x32xbf16>
    %4 = vector.shape_cast %3 : vector<1x32x32xbf16> to vector<32x32xbf16>
    %cst_4 = arith.constant dense<0.000000e+00> : vector<16x32xf32>
    %5 = tpu.matmul %2, %4, %cst_4 {dimension_numbers = #tpu.dot_dimension_numbers<[1], [0], [0], [1], [0, 0, 1, 1], [], []>} : vector<16x32xbf16>, vector<32x32xbf16>, vector<16x32xf32> -> vector<16x32xf32>
    %6 = arith.addf %0, %5 : vector<16x32xf32>
    %c0_5 = arith.constant 0 : index
    %c0_6 = arith.constant 0 : index
    %7 = vector.load %arg3[%c0_5, %c0_6] : memref<1x32xf32, #tpu.memory_space<vmem>>, vector<1x32xf32>
    %8 = vector.broadcast %7 : vector<1x32xf32> to vector<16x32xf32>
    %9 = arith.mulf %6, %8 : vector<16x32xf32>
    %c0_7 = arith.constant 0 : index
    %c0_8 = arith.constant 0 : index
    %10 = vector.load %arg4[%c0_7, %c0_8] : memref<1x32xf32, #tpu.memory_space<vmem>>, vector<1x32xf32>
    %11 = vector.broadcast %10 : vector<1x32xf32> to vector<16x32xf32>
    %12 = arith.addf %9, %11 : vector<16x32xf32>
    %13 = arith.truncf %12 : vector<16x32xf32> to vector<16x32xbf16>
    %c0_9 = arith.constant 0 : index
    %c0_10 = arith.constant 0 : index
    %c0_11 = arith.constant 0 : index
    %14 = vector.load %arg5[%c0_9, %c0_10, %c0_11] : memref<1x16x32xbf16, #tpu.memory_space<vmem>>, vector<1x16x32xbf16>
    %15 = vector.shape_cast %14 : vector<1x16x32xbf16> to vector<16x32xbf16>
    %16 = vector.shape_cast %13 : vector<16x32xbf16> to vector<1x16x32xbf16>
    tpu.vector_store %arg5[%c0_9, %c0_10, %c0_11], %16 {strides = array<i32>} : memref<1x16x32xbf16, #tpu.memory_space<vmem>>, vector<1x16x32xbf16>,
    return
  }
  func.func @transform_0(%arg0: i32) -> (i32, i32, i32) {
    %c0_i32 = arith.constant 0 : i32
    %c0_i32_0 = arith.constant 0 : i32
    %c0_i32_1 = arith.constant 0 : i32
    return %arg0, %c0_i32, %c0_i32_0 : i32, i32, i32
  }
  func.func @transform_1(%arg0: i32) -> (i32, i32, i32) {
    %c0_i32 = arith.constant 0 : i32
    %c0_i32_0 = arith.constant 0 : i32
    %c0_i32_1 = arith.constant 0 : i32
    %c0_i32_2 = arith.constant 0 : i32
    return %c0_i32, %c0_i32_0, %c0_i32_1 : i32, i32, i32
  }
  func.func @transform_2(%arg0: i32) -> (i32, i32) {
    %c0_i32 = arith.constant 0 : i32
    %c0_i32_0 = arith.constant 0 : i32
    %c0_i32_1 = arith.constant 0 : i32
    return %c0_i32, %c0_i32_0 : i32, i32
  }
  func.func @transform_3(%arg0: i32) -> (i32, i32) {
    %c0_i32 = arith.constant 0 : i32
    %c0_i32_0 = arith.constant 0 : i32
    %c0_i32_1 = arith.constant 0 : i32
    return %c0_i32, %c0_i32_0 : i32, i32
  }
  func.func @transform_4(%arg0: i32) -> (i32, i32, i32) {
    %c0_i32 = arith.constant 0 : i32
    %c0_i32_0 = arith.constant 0 : i32
    %c0_i32_1 = arith.constant 0 : i32
    return %arg0, %c0_i32, %c0_i32_0 : i32, i32, i32
  }
}

module attributes {stable_mosaic.version = 11 : i64} {
  func.func @_conv_kernel(%arg0: i32, %arg1: memref<1x64x96xbf16, #tpu.memory_space<vmem>>, %arg2: memref<3x96x32xbf16, #tpu.memory_space<vmem>>, %arg3: memref<1x32xf32, #tpu.memory_space<vmem>>, %arg4: memref<1x32xf32, #tpu.memory_space<vmem>>, %arg5: memref<1x16x32xbf16, #tpu.memory_space<vmem>>) attributes {dimension_semantics = [#tpu.dimension_semantics<parallel>], iteration_bounds = array<i64: 2>, scalar_prefetch = 0 : i64, scratch_operands = 0 : i64, tpu.core_type = #tpu.core_type<tc>, window_params = [{transform_indices = @transform_0, window_bounds = array<i64: 1, 64, 96>}, {pipeline_mode = #tpu.pipeline_mode<synchronous>, transform_indices = @transform_1, window_bounds = array<i64: 3, 96, 32>}, {pipeline_mode = #tpu.pipeline_mode<synchronous>, transform_indices = @transform_2, window_bounds = array<i64: 1, 32>}, {pipeline_mode = #tpu.pipeline_mode<synchronous>, transform_indices = @transform_3, window_bounds = array<i64: 1, 32>}, {transform_indices = @transform_4, window_bounds = array<i64: 1, 16, 32>}]} {
    %cst = arith.constant 0.000000e+00 : f32
    %0 = vector.broadcast %cst : f32 to vector<16x32xf32>
    %c0 = arith.constant 0 : index
    %c0_0 = arith.constant 0 : index
    %c0_1 = arith.constant 0 : index
    %1 = vector.load %arg1[%c0, %c0_0, %c0_1] : memref<1x64x96xbf16, #tpu.memory_space<vmem>>, vector<1x16x96xbf16>
    %2 = vector.shape_cast %1 : vector<1x16x96xbf16> to vector<16x96xbf16>
    %c0_2 = arith.constant 0 : index
    %c0_3 = arith.constant 0 : index
    %c0_4 = arith.constant 0 : index
    %3 = vector.load %arg2[%c0_2, %c0_3, %c0_4] : memref<3x96x32xbf16, #tpu.memory_space<vmem>>, vector<1x96x32xbf16>
    %4 = vector.shape_cast %3 : vector<1x96x32xbf16> to vector<96x32xbf16>
    %cst_5 = arith.constant dense<0.000000e+00> : vector<16x32xf32>
    %5 = tpu.matmul %2, %4, %cst_5 {dimension_numbers = #tpu.dot_dimension_numbers<[1], [0], [0], [1], [0, 0, 1, 1], [], []>} : vector<16x96xbf16>, vector<96x32xbf16>, vector<16x32xf32> -> vector<16x32xf32>
    %6 = arith.addf %0, %5 : vector<16x32xf32>
    %c0_6 = arith.constant 0 : index
    %c16 = arith.constant 16 : index
    %c0_7 = arith.constant 0 : index
    %7 = vector.load %arg1[%c0_6, %c16, %c0_7] : memref<1x64x96xbf16, #tpu.memory_space<vmem>>, vector<1x16x96xbf16>
    %8 = vector.shape_cast %7 : vector<1x16x96xbf16> to vector<16x96xbf16>
    %c1 = arith.constant 1 : index
    %c0_8 = arith.constant 0 : index
    %c0_9 = arith.constant 0 : index
    %9 = vector.load %arg2[%c1, %c0_8, %c0_9] : memref<3x96x32xbf16, #tpu.memory_space<vmem>>, vector<1x96x32xbf16>
    %10 = vector.shape_cast %9 : vector<1x96x32xbf16> to vector<96x32xbf16>
    %cst_10 = arith.constant dense<0.000000e+00> : vector<16x32xf32>
    %11 = tpu.matmul %8, %10, %cst_10 {dimension_numbers = #tpu.dot_dimension_numbers<[1], [0], [0], [1], [0, 0, 1, 1], [], []>} : vector<16x96xbf16>, vector<96x32xbf16>, vector<16x32xf32> -> vector<16x32xf32>
    %12 = arith.addf %6, %11 : vector<16x32xf32>
    %c0_11 = arith.constant 0 : index
    %c32 = arith.constant 32 : index
    %c0_12 = arith.constant 0 : index
    %13 = vector.load %arg1[%c0_11, %c32, %c0_12] : memref<1x64x96xbf16, #tpu.memory_space<vmem>>, vector<1x16x96xbf16>
    %14 = vector.shape_cast %13 : vector<1x16x96xbf16> to vector<16x96xbf16>
    %c2 = arith.constant 2 : index
    %c0_13 = arith.constant 0 : index
    %c0_14 = arith.constant 0 : index
    %15 = vector.load %arg2[%c2, %c0_13, %c0_14] : memref<3x96x32xbf16, #tpu.memory_space<vmem>>, vector<1x96x32xbf16>
    %16 = vector.shape_cast %15 : vector<1x96x32xbf16> to vector<96x32xbf16>
    %cst_15 = arith.constant dense<0.000000e+00> : vector<16x32xf32>
    %17 = tpu.matmul %14, %16, %cst_15 {dimension_numbers = #tpu.dot_dimension_numbers<[1], [0], [0], [1], [0, 0, 1, 1], [], []>} : vector<16x96xbf16>, vector<96x32xbf16>, vector<16x32xf32> -> vector<16x32xf32>
    %18 = arith.addf %12, %17 : vector<16x32xf32>
    %c0_16 = arith.constant 0 : index
    %c0_17 = arith.constant 0 : index
    %19 = vector.load %arg3[%c0_16, %c0_17] : memref<1x32xf32, #tpu.memory_space<vmem>>, vector<1x32xf32>
    %20 = vector.broadcast %19 : vector<1x32xf32> to vector<16x32xf32>
    %21 = arith.mulf %18, %20 : vector<16x32xf32>
    %c0_18 = arith.constant 0 : index
    %c0_19 = arith.constant 0 : index
    %22 = vector.load %arg4[%c0_18, %c0_19] : memref<1x32xf32, #tpu.memory_space<vmem>>, vector<1x32xf32>
    %23 = vector.broadcast %22 : vector<1x32xf32> to vector<16x32xf32>
    %24 = arith.addf %21, %23 : vector<16x32xf32>
    %cst_20 = arith.constant 0.000000e+00 : f32
    %25 = vector.broadcast %cst_20 : f32 to vector<16x32xf32>
    %26 = arith.maximumf %24, %25 : vector<16x32xf32>
    %27 = arith.truncf %26 : vector<16x32xf32> to vector<16x32xbf16>
    %c0_21 = arith.constant 0 : index
    %c0_22 = arith.constant 0 : index
    %c0_23 = arith.constant 0 : index
    %28 = vector.load %arg5[%c0_21, %c0_22, %c0_23] : memref<1x16x32xbf16, #tpu.memory_space<vmem>>, vector<1x16x32xbf16>
    %29 = vector.shape_cast %28 : vector<1x16x32xbf16> to vector<16x32xbf16>
    %30 = vector.shape_cast %27 : vector<16x32xbf16> to vector<1x16x32xbf16>
    tpu.vector_store %arg5[%c0_21, %c0_22, %c0_23], %30 {strides = array<i32>} : memref<1x16x32xbf16, #tpu.memory_space<vmem>>, vector<1x16x32xbf16>,
    return
  }
  func.func @transform_0(%arg0: i32) -> (i32, i32, i32) {
    %c0_i32 = arith.constant 0 : i32
    %c0_i32_0 = arith.constant 0 : i32
    %c0_i32_1 = arith.constant 0 : i32
    return %arg0, %c0_i32, %c0_i32_0 : i32, i32, i32
  }
  func.func @transform_1(%arg0: i32) -> (i32, i32, i32) {
    %c0_i32 = arith.constant 0 : i32
    %c0_i32_0 = arith.constant 0 : i32
    %c0_i32_1 = arith.constant 0 : i32
    %c0_i32_2 = arith.constant 0 : i32
    return %c0_i32, %c0_i32_0, %c0_i32_1 : i32, i32, i32
  }
  func.func @transform_2(%arg0: i32) -> (i32, i32) {
    %c0_i32 = arith.constant 0 : i32
    %c0_i32_0 = arith.constant 0 : i32
    %c0_i32_1 = arith.constant 0 : i32
    return %c0_i32, %c0_i32_0 : i32, i32
  }
  func.func @transform_3(%arg0: i32) -> (i32, i32) {
    %c0_i32 = arith.constant 0 : i32
    %c0_i32_0 = arith.constant 0 : i32
    %c0_i32_1 = arith.constant 0 : i32
    return %c0_i32, %c0_i32_0 : i32, i32
  }
  func.func @transform_4(%arg0: i32) -> (i32, i32, i32) {
    %c0_i32 = arith.constant 0 : i32
    %c0_i32_0 = arith.constant 0 : i32
    %c0_i32_1 = arith.constant 0 : i32
    return %arg0, %c0_i32, %c0_i32_0 : i32, i32, i32
  }
}

module attributes {stable_mosaic.version = 11 : i64} {
  func.func @_conv_kernel(%arg0: i32, %arg1: memref<1x192x64xbf16, #tpu.memory_space<vmem>>, %arg2: memref<6x64x64xbf16, #tpu.memory_space<vmem>>, %arg3: memref<1x64xf32, #tpu.memory_space<vmem>>, %arg4: memref<1x64xf32, #tpu.memory_space<vmem>>, %arg5: memref<1x16x64xbf16, #tpu.memory_space<vmem>>) attributes {dimension_semantics = [#tpu.dimension_semantics<parallel>], iteration_bounds = array<i64: 2>, scalar_prefetch = 0 : i64, scratch_operands = 0 : i64, tpu.core_type = #tpu.core_type<tc>, window_params = [{transform_indices = @transform_0, window_bounds = array<i64: 1, 192, 64>}, {pipeline_mode = #tpu.pipeline_mode<synchronous>, transform_indices = @transform_1, window_bounds = array<i64: 6, 64, 64>}, {pipeline_mode = #tpu.pipeline_mode<synchronous>, transform_indices = @transform_2, window_bounds = array<i64: 1, 64>}, {pipeline_mode = #tpu.pipeline_mode<synchronous>, transform_indices = @transform_3, window_bounds = array<i64: 1, 64>}, {transform_indices = @transform_4, window_bounds = array<i64: 1, 16, 64>}]} {
    %cst = arith.constant 0.000000e+00 : f32
    %0 = vector.broadcast %cst : f32 to vector<16x64xf32>
    %c0 = arith.constant 0 : index
    %c0_0 = arith.constant 0 : index
    %c0_1 = arith.constant 0 : index
    %1 = vector.load %arg1[%c0, %c0_0, %c0_1] : memref<1x192x64xbf16, #tpu.memory_space<vmem>>, vector<1x16x64xbf16>
    %2 = vector.shape_cast %1 : vector<1x16x64xbf16> to vector<16x64xbf16>
    %c0_2 = arith.constant 0 : index
    %c0_3 = arith.constant 0 : index
    %c0_4 = arith.constant 0 : index
    %3 = vector.load %arg2[%c0_2, %c0_3, %c0_4] : memref<6x64x64xbf16, #tpu.memory_space<vmem>>, vector<1x64x64xbf16>
    %4 = vector.shape_cast %3 : vector<1x64x64xbf16> to vector<64x64xbf16>
    %cst_5 = arith.constant dense<0.000000e+00> : vector<16x64xf32>
    %5 = tpu.matmul %2, %4, %cst_5 {dimension_numbers = #tpu.dot_dimension_numbers<[1], [0], [0], [1], [0, 0, 1, 1], [], []>} : vector<16x64xbf16>, vector<64x64xbf16>, vector<16x64xf32> -> vector<16x64xf32>
    %6 = arith.addf %0, %5 : vector<16x64xf32>
    %c0_6 = arith.constant 0 : index
    %c48 = arith.constant 48 : index
    %c0_7 = arith.constant 0 : index
    %7 = vector.load %arg1[%c0_6, %c48, %c0_7] : memref<1x192x64xbf16, #tpu.memory_space<vmem>>, vector<1x16x64xbf16>
    %8 = vector.shape_cast %7 : vector<1x16x64xbf16> to vector<16x64xbf16>
    %c1 = arith.constant 1 : index
    %c0_8 = arith.constant 0 : index
    %c0_9 = arith.constant 0 : index
    %9 = vector.load %arg2[%c1, %c0_8, %c0_9] : memref<6x64x64xbf16, #tpu.memory_space<vmem>>, vector<1x64x64xbf16>
    %10 = vector.shape_cast %9 : vector<1x64x64xbf16> to vector<64x64xbf16>
    %cst_10 = arith.constant dense<0.000000e+00> : vector<16x64xf32>
    %11 = tpu.matmul %8, %10, %cst_10 {dimension_numbers = #tpu.dot_dimension_numbers<[1], [0], [0], [1], [0, 0, 1, 1], [], []>} : vector<16x64xbf16>, vector<64x64xbf16>, vector<16x64xf32> -> vector<16x64xf32>
    %12 = arith.addf %6, %11 : vector<16x64xf32>
    %c0_11 = arith.constant 0 : index
    %c96 = arith.constant 96 : index
    %c0_12 = arith.constant 0 : index
    %13 = vector.load %arg1[%c0_11, %c96, %c0_12] : memref<1x192x64xbf16, #tpu.memory_space<vmem>>, vector<1x16x64xbf16>
    %14 = vector.shape_cast %13 : vector<1x16x64xbf16> to vector<16x64xbf16>
    %c2 = arith.constant 2 : index
    %c0_13 = arith.constant 0 : index
    %c0_14 = arith.constant 0 : index
    %15 = vector.load %arg2[%c2, %c0_13, %c0_14] : memref<6x64x64xbf16, #tpu.memory_space<vmem>>, vector<1x64x64xbf16>
    %16 = vector.shape_cast %15 : vector<1x64x64xbf16> to vector<64x64xbf16>
    %cst_15 = arith.constant dense<0.000000e+00> : vector<16x64xf32>
    %17 = tpu.matmul %14, %16, %cst_15 {dimension_numbers = #tpu.dot_dimension_numbers<[1], [0], [0], [1], [0, 0, 1, 1], [], []>} : vector<16x64xbf16>, vector<64x64xbf16>, vector<16x64xf32> -> vector<16x64xf32>
    %18 = arith.addf %12, %17 : vector<16x64xf32>
    %c0_16 = arith.constant 0 : index
    %c144 = arith.constant 144 : index
    %c0_17 = arith.constant 0 : index
    %19 = vector.load %arg1[%c0_16, %c144, %c0_17] : memref<1x192x64xbf16, #tpu.memory_space<vmem>>, vector<1x16x64xbf16>
    %20 = vector.shape_cast %19 : vector<1x16x64xbf16> to vector<16x64xbf16>
    %c3 = arith.constant 3 : index
    %c0_18 = arith.constant 0 : index
    %c0_19 = arith.constant 0 : index
    %21 = vector.load %arg2[%c3, %c0_18, %c0_19] : memref<6x64x64xbf16, #tpu.memory_space<vmem>>, vector<1x64x64xbf16>
    %22 = vector.shape_cast %21 : vector<1x64x64xbf16> to vector<64x64xbf16>
    %cst_20 = arith.constant dense<0.000000e+00> : vector<16x64xf32>
    %23 = tpu.matmul %20, %22, %cst_20 {dimension_numbers = #tpu.dot_dimension_numbers<[1], [0], [0], [1], [0, 0, 1, 1], [], []>} : vector<16x64xbf16>, vector<64x64xbf16>, vector<16x64xf32> -> vector<16x64xf32>
    %24 = arith.addf %18, %23 : vector<16x64xf32>
    %c0_21 = arith.constant 0 : index
    %c16 = arith.constant 16 : index
    %c0_22 = arith.constant 0 : index
    %25 = vector.load %arg1[%c0_21, %c16, %c0_22] : memref<1x192x64xbf16, #tpu.memory_space<vmem>>, vector<1x16x64xbf16>
    %26 = vector.shape_cast %25 : vector<1x16x64xbf16> to vector<16x64xbf16>
    %c4 = arith.constant 4 : index
    %c0_23 = arith.constant 0 : index
    %c0_24 = arith.constant 0 : index
    %27 = vector.load %arg2[%c4, %c0_23, %c0_24] : memref<6x64x64xbf16, #tpu.memory_space<vmem>>, vector<1x64x64xbf16>
    %28 = vector.shape_cast %27 : vector<1x64x64xbf16> to vector<64x64xbf16>
    %cst_25 = arith.constant dense<0.000000e+00> : vector<16x64xf32>
    %29 = tpu.matmul %26, %28, %cst_25 {dimension_numbers = #tpu.dot_dimension_numbers<[1], [0], [0], [1], [0, 0, 1, 1], [], []>} : vector<16x64xbf16>, vector<64x64xbf16>, vector<16x64xf32> -> vector<16x64xf32>
    %30 = arith.addf %24, %29 : vector<16x64xf32>
    %c0_26 = arith.constant 0 : index
    %c64 = arith.constant 64 : index
    %c0_27 = arith.constant 0 : index
    %31 = vector.load %arg1[%c0_26, %c64, %c0_27] : memref<1x192x64xbf16, #tpu.memory_space<vmem>>, vector<1x16x64xbf16>
    %32 = vector.shape_cast %31 : vector<1x16x64xbf16> to vector<16x64xbf16>
    %c5 = arith.constant 5 : index
    %c0_28 = arith.constant 0 : index
    %c0_29 = arith.constant 0 : index
    %33 = vector.load %arg2[%c5, %c0_28, %c0_29] : memref<6x64x64xbf16, #tpu.memory_space<vmem>>, vector<1x64x64xbf16>
    %34 = vector.shape_cast %33 : vector<1x64x64xbf16> to vector<64x64xbf16>
    %cst_30 = arith.constant dense<0.000000e+00> : vector<16x64xf32>
    %35 = tpu.matmul %32, %34, %cst_30 {dimension_numbers = #tpu.dot_dimension_numbers<[1], [0], [0], [1], [0, 0, 1, 1], [], []>} : vector<16x64xbf16>, vector<64x64xbf16>, vector<16x64xf32> -> vector<16x64xf32>
    %36 = arith.addf %30, %35 : vector<16x64xf32>
    %c0_31 = arith.constant 0 : index
    %c0_32 = arith.constant 0 : index
    %37 = vector.load %arg3[%c0_31, %c0_32] : memref<1x64xf32, #tpu.memory_space<vmem>>, vector<1x64xf32>
    %38 = vector.broadcast %37 : vector<1x64xf32> to vector<16x64xf32>
    %39 = arith.mulf %36, %38 : vector<16x64xf32>
    %c0_33 = arith.constant 0 : index
    %c0_34 = arith.constant 0 : index
    %40 = vector.load %arg4[%c0_33, %c0_34] : memref<1x64xf32, #tpu.memory_space<vmem>>, vector<1x64xf32>
    %41 = vector.broadcast %40 : vector<1x64xf32> to vector<16x64xf32>
    %42 = arith.addf %39, %41 : vector<16x64xf32>
    %cst_35 = arith.constant 0.000000e+00 : f32
    %43 = vector.broadcast %cst_35 : f32 to vector<16x64xf32>
    %44 = arith.maximumf %42, %43 : vector<16x64xf32>
    %45 = arith.truncf %44 : vector<16x64xf32> to vector<16x64xbf16>
    %c0_36 = arith.constant 0 : index
    %c0_37 = arith.constant 0 : index
    %c0_38 = arith.constant 0 : index
    %46 = vector.load %arg5[%c0_36, %c0_37, %c0_38] : memref<1x16x64xbf16, #tpu.memory_space<vmem>>, vector<1x16x64xbf16>
    %47 = vector.shape_cast %46 : vector<1x16x64xbf16> to vector<16x64xbf16>
    %48 = vector.shape_cast %45 : vector<16x64xbf16> to vector<1x16x64xbf16>
    tpu.vector_store %arg5[%c0_36, %c0_37, %c0_38], %48 {strides = array<i32>} : memref<1x16x64xbf16, #tpu.memory_space<vmem>>, vector<1x16x64xbf16>,
    return
  }
  func.func @transform_0(%arg0: i32) -> (i32, i32, i32) {
    %c0_i32 = arith.constant 0 : i32
    %c0_i32_0 = arith.constant 0 : i32
    %c0_i32_1 = arith.constant 0 : i32
    return %arg0, %c0_i32, %c0_i32_0 : i32, i32, i32
  }
  func.func @transform_1(%arg0: i32) -> (i32, i32, i32) {
    %c0_i32 = arith.constant 0 : i32
    %c0_i32_0 = arith.constant 0 : i32
    %c0_i32_1 = arith.constant 0 : i32
    %c0_i32_2 = arith.constant 0 : i32
    return %c0_i32, %c0_i32_0, %c0_i32_1 : i32, i32, i32
  }
  func.func @transform_2(%arg0: i32) -> (i32, i32) {
    %c0_i32 = arith.constant 0 : i32
    %c0_i32_0 = arith.constant 0 : i32
    %c0_i32_1 = arith.constant 0 : i32
    return %c0_i32, %c0_i32_0 : i32, i32
  }
  func.func @transform_3(%arg0: i32) -> (i32, i32) {
    %c0_i32 = arith.constant 0 : i32
    %c0_i32_0 = arith.constant 0 : i32
    %c0_i32_1 = arith.constant 0 : i32
    return %c0_i32, %c0_i32_0 : i32, i32
  }
  func.func @transform_4(%arg0: i32) -> (i32, i32, i32) {
    %c0_i32 = arith.constant 0 : i32
    %c0_i32_0 = arith.constant 0 : i32
    %c0_i32_1 = arith.constant 0 : i32
    return %arg0, %c0_i32, %c0_i32_0 : i32, i32, i32
  }
}

module attributes {stable_mosaic.version = 11 : i64} {
  func.func @_conv_kernel(%arg0: i32, %arg1: memref<1x64x128xbf16, #tpu.memory_space<vmem>>, %arg2: memref<6x128x64xbf16, #tpu.memory_space<vmem>>, %arg3: memref<1x64xf32, #tpu.memory_space<vmem>>, %arg4: memref<1x64xf32, #tpu.memory_space<vmem>>, %arg5: memref<1x16x64xbf16, #tpu.memory_space<vmem>>, %arg6: memref<1x16x64xbf16, #tpu.memory_space<vmem>>) attributes {dimension_semantics = [#tpu.dimension_semantics<parallel>], iteration_bounds = array<i64: 2>, scalar_prefetch = 0 : i64, scratch_operands = 0 : i64, tpu.core_type = #tpu.core_type<tc>, window_params = [{transform_indices = @transform_0, window_bounds = array<i64: 1, 64, 128>}, {pipeline_mode = #tpu.pipeline_mode<synchronous>, transform_indices = @transform_1, window_bounds = array<i64: 6, 128, 64>}, {pipeline_mode = #tpu.pipeline_mode<synchronous>, transform_indices = @transform_2, window_bounds = array<i64: 1, 64>}, {pipeline_mode = #tpu.pipeline_mode<synchronous>, transform_indices = @transform_3, window_bounds = array<i64: 1, 64>}, {transform_indices = @transform_4, window_bounds = array<i64: 1, 16, 64>}, {transform_indices = @transform_5, window_bounds = array<i64: 1, 16, 64>}]} {
    %cst = arith.constant 0.000000e+00 : f32
    %0 = vector.broadcast %cst : f32 to vector<16x64xf32>
    %c0 = arith.constant 0 : index
    %c0_0 = arith.constant 0 : index
    %c0_1 = arith.constant 0 : index
    %1 = vector.load %arg1[%c0, %c0_0, %c0_1] : memref<1x64x128xbf16, #tpu.memory_space<vmem>>, vector<1x16x128xbf16>
    %2 = vector.shape_cast %1 : vector<1x16x128xbf16> to vector<16x128xbf16>
    %c0_2 = arith.constant 0 : index
    %c0_3 = arith.constant 0 : index
    %c0_4 = arith.constant 0 : index
    %3 = vector.load %arg2[%c0_2, %c0_3, %c0_4] : memref<6x128x64xbf16, #tpu.memory_space<vmem>>, vector<1x128x64xbf16>
    %4 = vector.shape_cast %3 : vector<1x128x64xbf16> to vector<128x64xbf16>
    %cst_5 = arith.constant dense<0.000000e+00> : vector<16x64xf32>
    %5 = tpu.matmul %2, %4, %cst_5 {dimension_numbers = #tpu.dot_dimension_numbers<[1], [0], [0], [1], [0, 0, 1, 1], [], []>} : vector<16x128xbf16>, vector<128x64xbf16>, vector<16x64xf32> -> vector<16x64xf32>
    %6 = arith.addf %0, %5 : vector<16x64xf32>
    %c0_6 = arith.constant 0 : index
    %c2 = arith.constant 2 : index
    %c0_7 = arith.constant 0 : index
    %7 = vector.load %arg1[%c0_6, %c2, %c0_7] : memref<1x64x128xbf16, #tpu.memory_space<vmem>>, vector<1x16x128xbf16>
    %8 = vector.shape_cast %7 : vector<1x16x128xbf16> to vector<16x128xbf16>
    %c1 = arith.constant 1 : index
    %c0_8 = arith.constant 0 : index
    %c0_9 = arith.constant 0 : index
    %9 = vector.load %arg2[%c1, %c0_8, %c0_9] : memref<6x128x64xbf16, #tpu.memory_space<vmem>>, vector<1x128x64xbf16>
    %10 = vector.shape_cast %9 : vector<1x128x64xbf16> to vector<128x64xbf16>
    %cst_10 = arith.constant dense<0.000000e+00> : vector<16x64xf32>
    %11 = tpu.matmul %8, %10, %cst_10 {dimension_numbers = #tpu.dot_dimension_numbers<[1], [0], [0], [1], [0, 0, 1, 1], [], []>} : vector<16x128xbf16>, vector<128x64xbf16>, vector<16x64xf32> -> vector<16x64xf32>
    %12 = arith.addf %6, %11 : vector<16x64xf32>
    %c0_11 = arith.constant 0 : index
    %c16 = arith.constant 16 : index
    %c0_12 = arith.constant 0 : index
    %13 = vector.load %arg1[%c0_11, %c16, %c0_12] : memref<1x64x128xbf16, #tpu.memory_space<vmem>>, vector<1x16x128xbf16>
    %14 = vector.shape_cast %13 : vector<1x16x128xbf16> to vector<16x128xbf16>
    %c2_13 = arith.constant 2 : index
    %c0_14 = arith.constant 0 : index
    %c0_15 = arith.constant 0 : index
    %15 = vector.load %arg2[%c2_13, %c0_14, %c0_15] : memref<6x128x64xbf16, #tpu.memory_space<vmem>>, vector<1x128x64xbf16>
    %16 = vector.shape_cast %15 : vector<1x128x64xbf16> to vector<128x64xbf16>
    %cst_16 = arith.constant dense<0.000000e+00> : vector<16x64xf32>
    %17 = tpu.matmul %14, %16, %cst_16 {dimension_numbers = #tpu.dot_dimension_numbers<[1], [0], [0], [1], [0, 0, 1, 1], [], []>} : vector<16x128xbf16>, vector<128x64xbf16>, vector<16x64xf32> -> vector<16x64xf32>
    %18 = arith.addf %12, %17 : vector<16x64xf32>
    %c0_17 = arith.constant 0 : index
    %c18 = arith.constant 18 : index
    %c0_18 = arith.constant 0 : index
    %19 = vector.load %arg1[%c0_17, %c18, %c0_18] : memref<1x64x128xbf16, #tpu.memory_space<vmem>>, vector<1x16x128xbf16>
    %20 = vector.shape_cast %19 : vector<1x16x128xbf16> to vector<16x128xbf16>
    %c3 = arith.constant 3 : index
    %c0_19 = arith.constant 0 : index
    %c0_20 = arith.constant 0 : index
    %21 = vector.load %arg2[%c3, %c0_19, %c0_20] : memref<6x128x64xbf16, #tpu.memory_space<vmem>>, vector<1x128x64xbf16>
    %22 = vector.shape_cast %21 : vector<1x128x64xbf16> to vector<128x64xbf16>
    %cst_21 = arith.constant dense<0.000000e+00> : vector<16x64xf32>
    %23 = tpu.matmul %20, %22, %cst_21 {dimension_numbers = #tpu.dot_dimension_numbers<[1], [0], [0], [1], [0, 0, 1, 1], [], []>} : vector<16x128xbf16>, vector<128x64xbf16>, vector<16x64xf32> -> vector<16x64xf32>
    %24 = arith.addf %18, %23 : vector<16x64xf32>
    %c0_22 = arith.constant 0 : index
    %c32 = arith.constant 32 : index
    %c0_23 = arith.constant 0 : index
    %25 = vector.load %arg1[%c0_22, %c32, %c0_23] : memref<1x64x128xbf16, #tpu.memory_space<vmem>>, vector<1x16x128xbf16>
    %26 = vector.shape_cast %25 : vector<1x16x128xbf16> to vector<16x128xbf16>
    %c4 = arith.constant 4 : index
    %c0_24 = arith.constant 0 : index
    %c0_25 = arith.constant 0 : index
    %27 = vector.load %arg2[%c4, %c0_24, %c0_25] : memref<6x128x64xbf16, #tpu.memory_space<vmem>>, vector<1x128x64xbf16>
    %28 = vector.shape_cast %27 : vector<1x128x64xbf16> to vector<128x64xbf16>
    %cst_26 = arith.constant dense<0.000000e+00> : vector<16x64xf32>
    %29 = tpu.matmul %26, %28, %cst_26 {dimension_numbers = #tpu.dot_dimension_numbers<[1], [0], [0], [1], [0, 0, 1, 1], [], []>} : vector<16x128xbf16>, vector<128x64xbf16>, vector<16x64xf32> -> vector<16x64xf32>
    %30 = arith.addf %24, %29 : vector<16x64xf32>
    %c0_27 = arith.constant 0 : index
    %c34 = arith.constant 34 : index
    %c0_28 = arith.constant 0 : index
    %31 = vector.load %arg1[%c0_27, %c34, %c0_28] : memref<1x64x128xbf16, #tpu.memory_space<vmem>>, vector<1x16x128xbf16>
    %32 = vector.shape_cast %31 : vector<1x16x128xbf16> to vector<16x128xbf16>
    %c5 = arith.constant 5 : index
    %c0_29 = arith.constant 0 : index
    %c0_30 = arith.constant 0 : index
    %33 = vector.load %arg2[%c5, %c0_29, %c0_30] : memref<6x128x64xbf16, #tpu.memory_space<vmem>>, vector<1x128x64xbf16>
    %34 = vector.shape_cast %33 : vector<1x128x64xbf16> to vector<128x64xbf16>
    %cst_31 = arith.constant dense<0.000000e+00> : vector<16x64xf32>
    %35 = tpu.matmul %32, %34, %cst_31 {dimension_numbers = #tpu.dot_dimension_numbers<[1], [0], [0], [1], [0, 0, 1, 1], [], []>} : vector<16x128xbf16>, vector<128x64xbf16>, vector<16x64xf32> -> vector<16x64xf32>
    %36 = arith.addf %30, %35 : vector<16x64xf32>
    %c0_32 = arith.constant 0 : index
    %c0_33 = arith.constant 0 : index
    %37 = vector.load %arg3[%c0_32, %c0_33] : memref<1x64xf32, #tpu.memory_space<vmem>>, vector<1x64xf32>
    %38 = vector.broadcast %37 : vector<1x64xf32> to vector<16x64xf32>
    %39 = arith.mulf %36, %38 : vector<16x64xf32>
    %c0_34 = arith.constant 0 : index
    %c0_35 = arith.constant 0 : index
    %40 = vector.load %arg4[%c0_34, %c0_35] : memref<1x64xf32, #tpu.memory_space<vmem>>, vector<1x64xf32>
    %41 = vector.broadcast %40 : vector<1x64xf32> to vector<16x64xf32>
    %42 = arith.addf %39, %41 : vector<16x64xf32>
    %c0_36 = arith.constant 0 : index
    %c0_37 = arith.constant 0 : index
    %c0_38 = arith.constant 0 : index
    %43 = vector.load %arg5[%c0_36, %c0_37, %c0_38] : memref<1x16x64xbf16, #tpu.memory_space<vmem>>, vector<1x16x64xbf16>
    %44 = vector.shape_cast %43 : vector<1x16x64xbf16> to vector<16x64xbf16>
    %45 = arith.extf %44 : vector<16x64xbf16> to vector<16x64xf32>
    %46 = arith.addf %42, %45 : vector<16x64xf32>
    %cst_39 = arith.constant 0.000000e+00 : f32
    %47 = vector.broadcast %cst_39 : f32 to vector<16x64xf32>
    %48 = arith.maximumf %46, %47 : vector<16x64xf32>
    %49 = arith.truncf %48 : vector<16x64xf32> to vector<16x64xbf16>
    %c0_40 = arith.constant 0 : index
    %c0_41 = arith.constant 0 : index
    %c0_42 = arith.constant 0 : index
    %50 = vector.load %arg6[%c0_40, %c0_41, %c0_42] : memref<1x16x64xbf16, #tpu.memory_space<vmem>>, vector<1x16x64xbf16>
    %51 = vector.shape_cast %50 : vector<1x16x64xbf16> to vector<16x64xbf16>
    %52 = vector.shape_cast %49 : vector<16x64xbf16> to vector<1x16x64xbf16>
    tpu.vector_store %arg6[%c0_40, %c0_41, %c0_42], %52 {strides = array<i32>} : memref<1x16x64xbf16, #tpu.memory_space<vmem>>, vector<1x16x64xbf16>,
    return
  }
  func.func @transform_0(%arg0: i32) -> (i32, i32, i32) {
    %c0_i32 = arith.constant 0 : i32
    %c0_i32_0 = arith.constant 0 : i32
    %c0_i32_1 = arith.constant 0 : i32
    return %arg0, %c0_i32, %c0_i32_0 : i32, i32, i32
  }
  func.func @transform_1(%arg0: i32) -> (i32, i32, i32) {
    %c0_i32 = arith.constant 0 : i32
    %c0_i32_0 = arith.constant 0 : i32
    %c0_i32_1 = arith.constant 0 : i32
    %c0_i32_2 = arith.constant 0 : i32
    return %c0_i32, %c0_i32_0, %c0_i32_1 : i32, i32, i32
  }
  func.func @transform_2(%arg0: i32) -> (i32, i32) {
    %c0_i32 = arith.constant 0 : i32
    %c0_i32_0 = arith.constant 0 : i32
    %c0_i32_1 = arith.constant 0 : i32
    return %c0_i32, %c0_i32_0 : i32, i32
  }
  func.func @transform_3(%arg0: i32) -> (i32, i32) {
    %c0_i32 = arith.constant 0 : i32
    %c0_i32_0 = arith.constant 0 : i32
    %c0_i32_1 = arith.constant 0 : i32
    return %c0_i32, %c0_i32_0 : i32, i32
  }
  func.func @transform_4(%arg0: i32) -> (i32, i32, i32) {
    %c0_i32 = arith.constant 0 : i32
    %c0_i32_0 = arith.constant 0 : i32
    %c0_i32_1 = arith.constant 0 : i32
    return %arg0, %c0_i32, %c0_i32_0 : i32, i32, i32
  }
  func.func @transform_5(%arg0: i32) -> (i32, i32, i32) {
    %c0_i32 = arith.constant 0 : i32
    %c0_i32_0 = arith.constant 0 : i32
    %c0_i32_1 = arith.constant 0 : i32
    return %arg0, %c0_i32, %c0_i32_0 : i32, i32, i32
  }
}

module attributes {stable_mosaic.version = 11 : i64} {
  func.func @_conv_kernel(%arg0: i32, %arg1: memref<1x192x64xbf16, #tpu.memory_space<vmem>>, %arg2: memref<1x64x64xbf16, #tpu.memory_space<vmem>>, %arg3: memref<1x64xf32, #tpu.memory_space<vmem>>, %arg4: memref<1x64xf32, #tpu.memory_space<vmem>>, %arg5: memref<1x16x64xbf16, #tpu.memory_space<vmem>>) attributes {dimension_semantics = [#tpu.dimension_semantics<parallel>], iteration_bounds = array<i64: 2>, scalar_prefetch = 0 : i64, scratch_operands = 0 : i64, tpu.core_type = #tpu.core_type<tc>, window_params = [{transform_indices = @transform_0, window_bounds = array<i64: 1, 192, 64>}, {pipeline_mode = #tpu.pipeline_mode<synchronous>, transform_indices = @transform_1, window_bounds = array<i64: 1, 64, 64>}, {pipeline_mode = #tpu.pipeline_mode<synchronous>, transform_indices = @transform_2, window_bounds = array<i64: 1, 64>}, {pipeline_mode = #tpu.pipeline_mode<synchronous>, transform_indices = @transform_3, window_bounds = array<i64: 1, 64>}, {transform_indices = @transform_4, window_bounds = array<i64: 1, 16, 64>}]} {
    %cst = arith.constant 0.000000e+00 : f32
    %0 = vector.broadcast %cst : f32 to vector<16x64xf32>
    %c0 = arith.constant 0 : index
    %c144 = arith.constant 144 : index
    %c0_0 = arith.constant 0 : index
    %1 = vector.load %arg1[%c0, %c144, %c0_0] : memref<1x192x64xbf16, #tpu.memory_space<vmem>>, vector<1x16x64xbf16>
    %2 = vector.shape_cast %1 : vector<1x16x64xbf16> to vector<16x64xbf16>
    %c0_1 = arith.constant 0 : index
    %c0_2 = arith.constant 0 : index
    %c0_3 = arith.constant 0 : index
    %3 = vector.load %arg2[%c0_1, %c0_2, %c0_3] : memref<1x64x64xbf16, #tpu.memory_space<vmem>>, vector<1x64x64xbf16>
    %4 = vector.shape_cast %3 : vector<1x64x64xbf16> to vector<64x64xbf16>
    %cst_4 = arith.constant dense<0.000000e+00> : vector<16x64xf32>
    %5 = tpu.matmul %2, %4, %cst_4 {dimension_numbers = #tpu.dot_dimension_numbers<[1], [0], [0], [1], [0, 0, 1, 1], [], []>} : vector<16x64xbf16>, vector<64x64xbf16>, vector<16x64xf32> -> vector<16x64xf32>
    %6 = arith.addf %0, %5 : vector<16x64xf32>
    %c0_5 = arith.constant 0 : index
    %c0_6 = arith.constant 0 : index
    %7 = vector.load %arg3[%c0_5, %c0_6] : memref<1x64xf32, #tpu.memory_space<vmem>>, vector<1x64xf32>
    %8 = vector.broadcast %7 : vector<1x64xf32> to vector<16x64xf32>
    %9 = arith.mulf %6, %8 : vector<16x64xf32>
    %c0_7 = arith.constant 0 : index
    %c0_8 = arith.constant 0 : index
    %10 = vector.load %arg4[%c0_7, %c0_8] : memref<1x64xf32, #tpu.memory_space<vmem>>, vector<1x64xf32>
    %11 = vector.broadcast %10 : vector<1x64xf32> to vector<16x64xf32>
    %12 = arith.addf %9, %11 : vector<16x64xf32>
    %13 = arith.truncf %12 : vector<16x64xf32> to vector<16x64xbf16>
    %c0_9 = arith.constant 0 : index
    %c0_10 = arith.constant 0 : index
    %c0_11 = arith.constant 0 : index
    %14 = vector.load %arg5[%c0_9, %c0_10, %c0_11] : memref<1x16x64xbf16, #tpu.memory_space<vmem>>, vector<1x16x64xbf16>
    %15 = vector.shape_cast %14 : vector<1x16x64xbf16> to vector<16x64xbf16>
    %16 = vector.shape_cast %13 : vector<16x64xbf16> to vector<1x16x64xbf16>
    tpu.vector_store %arg5[%c0_9, %c0_10, %c0_11], %16 {strides = array<i32>} : memref<1x16x64xbf16, #tpu.memory_space<vmem>>, vector<1x16x64xbf16>,
    return
  }
  func.func @transform_0(%arg0: i32) -> (i32, i32, i32) {
    %c0_i32 = arith.constant 0 : i32
    %c0_i32_0 = arith.constant 0 : i32
    %c0_i32_1 = arith.constant 0 : i32
    return %arg0, %c0_i32, %c0_i32_0 : i32, i32, i32
  }
  func.func @transform_1(%arg0: i32) -> (i32, i32, i32) {
    %c0_i32 = arith.constant 0 : i32
    %c0_i32_0 = arith.constant 0 : i32
    %c0_i32_1 = arith.constant 0 : i32
    %c0_i32_2 = arith.constant 0 : i32
    return %c0_i32, %c0_i32_0, %c0_i32_1 : i32, i32, i32
  }
  func.func @transform_2(%arg0: i32) -> (i32, i32) {
    %c0_i32 = arith.constant 0 : i32
    %c0_i32_0 = arith.constant 0 : i32
    %c0_i32_1 = arith.constant 0 : i32
    return %c0_i32, %c0_i32_0 : i32, i32
  }
  func.func @transform_3(%arg0: i32) -> (i32, i32) {
    %c0_i32 = arith.constant 0 : i32
    %c0_i32_0 = arith.constant 0 : i32
    %c0_i32_1 = arith.constant 0 : i32
    return %c0_i32, %c0_i32_0 : i32, i32
  }
  func.func @transform_4(%arg0: i32) -> (i32, i32, i32) {
    %c0_i32 = arith.constant 0 : i32
    %c0_i32_0 = arith.constant 0 : i32
    %c0_i32_1 = arith.constant 0 : i32
    return %arg0, %c0_i32, %c0_i32_0 : i32, i32, i32
  }
}

module attributes {stable_mosaic.version = 11 : i64} {
  func.func @_conv_kernel(%arg0: i32, %arg1: memref<1x64x128xbf16, #tpu.memory_space<vmem>>, %arg2: memref<6x128x64xbf16, #tpu.memory_space<vmem>>, %arg3: memref<1x64xf32, #tpu.memory_space<vmem>>, %arg4: memref<1x64xf32, #tpu.memory_space<vmem>>, %arg5: memref<1x16x64xbf16, #tpu.memory_space<vmem>>) attributes {dimension_semantics = [#tpu.dimension_semantics<parallel>], iteration_bounds = array<i64: 2>, scalar_prefetch = 0 : i64, scratch_operands = 0 : i64, tpu.core_type = #tpu.core_type<tc>, window_params = [{transform_indices = @transform_0, window_bounds = array<i64: 1, 64, 128>}, {pipeline_mode = #tpu.pipeline_mode<synchronous>, transform_indices = @transform_1, window_bounds = array<i64: 6, 128, 64>}, {pipeline_mode = #tpu.pipeline_mode<synchronous>, transform_indices = @transform_2, window_bounds = array<i64: 1, 64>}, {pipeline_mode = #tpu.pipeline_mode<synchronous>, transform_indices = @transform_3, window_bounds = array<i64: 1, 64>}, {transform_indices = @transform_4, window_bounds = array<i64: 1, 16, 64>}]} {
    %cst = arith.constant 0.000000e+00 : f32
    %0 = vector.broadcast %cst : f32 to vector<16x64xf32>
    %c0 = arith.constant 0 : index
    %c0_0 = arith.constant 0 : index
    %c0_1 = arith.constant 0 : index
    %1 = vector.load %arg1[%c0, %c0_0, %c0_1] : memref<1x64x128xbf16, #tpu.memory_space<vmem>>, vector<1x16x128xbf16>
    %2 = vector.shape_cast %1 : vector<1x16x128xbf16> to vector<16x128xbf16>
    %c0_2 = arith.constant 0 : index
    %c0_3 = arith.constant 0 : index
    %c0_4 = arith.constant 0 : index
    %3 = vector.load %arg2[%c0_2, %c0_3, %c0_4] : memref<6x128x64xbf16, #tpu.memory_space<vmem>>, vector<1x128x64xbf16>
    %4 = vector.shape_cast %3 : vector<1x128x64xbf16> to vector<128x64xbf16>
    %cst_5 = arith.constant dense<0.000000e+00> : vector<16x64xf32>
    %5 = tpu.matmul %2, %4, %cst_5 {dimension_numbers = #tpu.dot_dimension_numbers<[1], [0], [0], [1], [0, 0, 1, 1], [], []>} : vector<16x128xbf16>, vector<128x64xbf16>, vector<16x64xf32> -> vector<16x64xf32>
    %6 = arith.addf %0, %5 : vector<16x64xf32>
    %c0_6 = arith.constant 0 : index
    %c2 = arith.constant 2 : index
    %c0_7 = arith.constant 0 : index
    %7 = vector.load %arg1[%c0_6, %c2, %c0_7] : memref<1x64x128xbf16, #tpu.memory_space<vmem>>, vector<1x16x128xbf16>
    %8 = vector.shape_cast %7 : vector<1x16x128xbf16> to vector<16x128xbf16>
    %c1 = arith.constant 1 : index
    %c0_8 = arith.constant 0 : index
    %c0_9 = arith.constant 0 : index
    %9 = vector.load %arg2[%c1, %c0_8, %c0_9] : memref<6x128x64xbf16, #tpu.memory_space<vmem>>, vector<1x128x64xbf16>
    %10 = vector.shape_cast %9 : vector<1x128x64xbf16> to vector<128x64xbf16>
    %cst_10 = arith.constant dense<0.000000e+00> : vector<16x64xf32>
    %11 = tpu.matmul %8, %10, %cst_10 {dimension_numbers = #tpu.dot_dimension_numbers<[1], [0], [0], [1], [0, 0, 1, 1], [], []>} : vector<16x128xbf16>, vector<128x64xbf16>, vector<16x64xf32> -> vector<16x64xf32>
    %12 = arith.addf %6, %11 : vector<16x64xf32>
    %c0_11 = arith.constant 0 : index
    %c16 = arith.constant 16 : index
    %c0_12 = arith.constant 0 : index
    %13 = vector.load %arg1[%c0_11, %c16, %c0_12] : memref<1x64x128xbf16, #tpu.memory_space<vmem>>, vector<1x16x128xbf16>
    %14 = vector.shape_cast %13 : vector<1x16x128xbf16> to vector<16x128xbf16>
    %c2_13 = arith.constant 2 : index
    %c0_14 = arith.constant 0 : index
    %c0_15 = arith.constant 0 : index
    %15 = vector.load %arg2[%c2_13, %c0_14, %c0_15] : memref<6x128x64xbf16, #tpu.memory_space<vmem>>, vector<1x128x64xbf16>
    %16 = vector.shape_cast %15 : vector<1x128x64xbf16> to vector<128x64xbf16>
    %cst_16 = arith.constant dense<0.000000e+00> : vector<16x64xf32>
    %17 = tpu.matmul %14, %16, %cst_16 {dimension_numbers = #tpu.dot_dimension_numbers<[1], [0], [0], [1], [0, 0, 1, 1], [], []>} : vector<16x128xbf16>, vector<128x64xbf16>, vector<16x64xf32> -> vector<16x64xf32>
    %18 = arith.addf %12, %17 : vector<16x64xf32>
    %c0_17 = arith.constant 0 : index
    %c18 = arith.constant 18 : index
    %c0_18 = arith.constant 0 : index
    %19 = vector.load %arg1[%c0_17, %c18, %c0_18] : memref<1x64x128xbf16, #tpu.memory_space<vmem>>, vector<1x16x128xbf16>
    %20 = vector.shape_cast %19 : vector<1x16x128xbf16> to vector<16x128xbf16>
    %c3 = arith.constant 3 : index
    %c0_19 = arith.constant 0 : index
    %c0_20 = arith.constant 0 : index
    %21 = vector.load %arg2[%c3, %c0_19, %c0_20] : memref<6x128x64xbf16, #tpu.memory_space<vmem>>, vector<1x128x64xbf16>
    %22 = vector.shape_cast %21 : vector<1x128x64xbf16> to vector<128x64xbf16>
    %cst_21 = arith.constant dense<0.000000e+00> : vector<16x64xf32>
    %23 = tpu.matmul %20, %22, %cst_21 {dimension_numbers = #tpu.dot_dimension_numbers<[1], [0], [0], [1], [0, 0, 1, 1], [], []>} : vector<16x128xbf16>, vector<128x64xbf16>, vector<16x64xf32> -> vector<16x64xf32>
    %24 = arith.addf %18, %23 : vector<16x64xf32>
    %c0_22 = arith.constant 0 : index
    %c32 = arith.constant 32 : index
    %c0_23 = arith.constant 0 : index
    %25 = vector.load %arg1[%c0_22, %c32, %c0_23] : memref<1x64x128xbf16, #tpu.memory_space<vmem>>, vector<1x16x128xbf16>
    %26 = vector.shape_cast %25 : vector<1x16x128xbf16> to vector<16x128xbf16>
    %c4 = arith.constant 4 : index
    %c0_24 = arith.constant 0 : index
    %c0_25 = arith.constant 0 : index
    %27 = vector.load %arg2[%c4, %c0_24, %c0_25] : memref<6x128x64xbf16, #tpu.memory_space<vmem>>, vector<1x128x64xbf16>
    %28 = vector.shape_cast %27 : vector<1x128x64xbf16> to vector<128x64xbf16>
    %cst_26 = arith.constant dense<0.000000e+00> : vector<16x64xf32>
    %29 = tpu.matmul %26, %28, %cst_26 {dimension_numbers = #tpu.dot_dimension_numbers<[1], [0], [0], [1], [0, 0, 1, 1], [], []>} : vector<16x128xbf16>, vector<128x64xbf16>, vector<16x64xf32> -> vector<16x64xf32>
    %30 = arith.addf %24, %29 : vector<16x64xf32>
    %c0_27 = arith.constant 0 : index
    %c34 = arith.constant 34 : index
    %c0_28 = arith.constant 0 : index
    %31 = vector.load %arg1[%c0_27, %c34, %c0_28] : memref<1x64x128xbf16, #tpu.memory_space<vmem>>, vector<1x16x128xbf16>
    %32 = vector.shape_cast %31 : vector<1x16x128xbf16> to vector<16x128xbf16>
    %c5 = arith.constant 5 : index
    %c0_29 = arith.constant 0 : index
    %c0_30 = arith.constant 0 : index
    %33 = vector.load %arg2[%c5, %c0_29, %c0_30] : memref<6x128x64xbf16, #tpu.memory_space<vmem>>, vector<1x128x64xbf16>
    %34 = vector.shape_cast %33 : vector<1x128x64xbf16> to vector<128x64xbf16>
    %cst_31 = arith.constant dense<0.000000e+00> : vector<16x64xf32>
    %35 = tpu.matmul %32, %34, %cst_31 {dimension_numbers = #tpu.dot_dimension_numbers<[1], [0], [0], [1], [0, 0, 1, 1], [], []>} : vector<16x128xbf16>, vector<128x64xbf16>, vector<16x64xf32> -> vector<16x64xf32>
    %36 = arith.addf %30, %35 : vector<16x64xf32>
    %c0_32 = arith.constant 0 : index
    %c0_33 = arith.constant 0 : index
    %37 = vector.load %arg3[%c0_32, %c0_33] : memref<1x64xf32, #tpu.memory_space<vmem>>, vector<1x64xf32>
    %38 = vector.broadcast %37 : vector<1x64xf32> to vector<16x64xf32>
    %39 = arith.mulf %36, %38 : vector<16x64xf32>
    %c0_34 = arith.constant 0 : index
    %c0_35 = arith.constant 0 : index
    %40 = vector.load %arg4[%c0_34, %c0_35] : memref<1x64xf32, #tpu.memory_space<vmem>>, vector<1x64xf32>
    %41 = vector.broadcast %40 : vector<1x64xf32> to vector<16x64xf32>
    %42 = arith.addf %39, %41 : vector<16x64xf32>
    %cst_36 = arith.constant 0.000000e+00 : f32
    %43 = vector.broadcast %cst_36 : f32 to vector<16x64xf32>
    %44 = arith.maximumf %42, %43 : vector<16x64xf32>
    %45 = arith.truncf %44 : vector<16x64xf32> to vector<16x64xbf16>
    %c0_37 = arith.constant 0 : index
    %c0_38 = arith.constant 0 : index
    %c0_39 = arith.constant 0 : index
    %46 = vector.load %arg5[%c0_37, %c0_38, %c0_39] : memref<1x16x64xbf16, #tpu.memory_space<vmem>>, vector<1x16x64xbf16>
    %47 = vector.shape_cast %46 : vector<1x16x64xbf16> to vector<16x64xbf16>
    %48 = vector.shape_cast %45 : vector<16x64xbf16> to vector<1x16x64xbf16>
    tpu.vector_store %arg5[%c0_37, %c0_38, %c0_39], %48 {strides = array<i32>} : memref<1x16x64xbf16, #tpu.memory_space<vmem>>, vector<1x16x64xbf16>,
    return
  }
  func.func @transform_0(%arg0: i32) -> (i32, i32, i32) {
    %c0_i32 = arith.constant 0 : i32
    %c0_i32_0 = arith.constant 0 : i32
    %c0_i32_1 = arith.constant 0 : i32
    return %arg0, %c0_i32, %c0_i32_0 : i32, i32, i32
  }
  func.func @transform_1(%arg0: i32) -> (i32, i32, i32) {
    %c0_i32 = arith.constant 0 : i32
    %c0_i32_0 = arith.constant 0 : i32
    %c0_i32_1 = arith.constant 0 : i32
    %c0_i32_2 = arith.constant 0 : i32
    return %c0_i32, %c0_i32_0, %c0_i32_1 : i32, i32, i32
  }
  func.func @transform_2(%arg0: i32) -> (i32, i32) {
    %c0_i32 = arith.constant 0 : i32
    %c0_i32_0 = arith.constant 0 : i32
    %c0_i32_1 = arith.constant 0 : i32
    return %c0_i32, %c0_i32_0 : i32, i32
  }
  func.func @transform_3(%arg0: i32) -> (i32, i32) {
    %c0_i32 = arith.constant 0 : i32
    %c0_i32_0 = arith.constant 0 : i32
    %c0_i32_1 = arith.constant 0 : i32
    return %c0_i32, %c0_i32_0 : i32, i32
  }
  func.func @transform_4(%arg0: i32) -> (i32, i32, i32) {
    %c0_i32 = arith.constant 0 : i32
    %c0_i32_0 = arith.constant 0 : i32
    %c0_i32_1 = arith.constant 0 : i32
    return %arg0, %c0_i32, %c0_i32_0 : i32, i32, i32
  }
}

module attributes {stable_mosaic.version = 11 : i64} {
  func.func @_head_kernel(%arg0: i32, %arg1: memref<1x1x64xbf16, #tpu.memory_space<vmem>>, %arg2: memref<64x128xbf16, #tpu.memory_space<vmem>>, %arg3: memref<1x128xf32, #tpu.memory_space<vmem>>, %arg4: memref<1x1x128xf32, #tpu.memory_space<vmem>>) attributes {dimension_semantics = [#tpu.dimension_semantics<parallel>], iteration_bounds = array<i64: 2>, scalar_prefetch = 0 : i64, scratch_operands = 0 : i64, tpu.core_type = #tpu.core_type<tc>, window_params = [{transform_indices = @transform_0, window_bounds = array<i64: 1, 1, 64>}, {pipeline_mode = #tpu.pipeline_mode<synchronous>, transform_indices = @transform_1, window_bounds = array<i64: 64, 128>}, {pipeline_mode = #tpu.pipeline_mode<synchronous>, transform_indices = @transform_2, window_bounds = array<i64: 1, 128>}, {transform_indices = @transform_3, window_bounds = array<i64: 1, 1, 128>}]} {
    %c0 = arith.constant 0 : index
    %c0_0 = arith.constant 0 : index
    %c0_1 = arith.constant 0 : index
    %0 = vector.load %arg1[%c0, %c0_0, %c0_1] : memref<1x1x64xbf16, #tpu.memory_space<vmem>>, vector<1x1x64xbf16>
    %1 = vector.shape_cast %0 : vector<1x1x64xbf16> to vector<1x64xbf16>
    %2 = arith.extf %1 : vector<1x64xbf16> to vector<1x64xf32>
    %cst = arith.constant dense<0.000000e+00> : vector<64xf32>
    %3 = vector.multi_reduction <add>, %2, %cst [0] : vector<1x64xf32> to vector<64xf32>
    %4 = vector.shape_cast %3 : vector<64xf32> to vector<1x64xf32>
    %cst_2 = arith.constant 1.000000e+00 : f32
    %5 = vector.broadcast %cst_2 : f32 to vector<1x64xf32>
    %6 = arith.mulf %4, %5 : vector<1x64xf32>
    %7 = arith.truncf %6 : vector<1x64xf32> to vector<1x64xbf16>
    %c0_3 = arith.constant 0 : index
    %c0_4 = arith.constant 0 : index
    %8 = vector.load %arg2[%c0_3, %c0_4] : memref<64x128xbf16, #tpu.memory_space<vmem>>, vector<64x128xbf16>
    %cst_5 = arith.constant dense<0.000000e+00> : vector<1x128xf32>
    %9 = tpu.matmul %7, %8, %cst_5 {dimension_numbers = #tpu.dot_dimension_numbers<[1], [0], [0], [1], [0, 0, 1, 1], [], []>} : vector<1x64xbf16>, vector<64x128xbf16>, vector<1x128xf32> -> vector<1x128xf32>
    %c0_6 = arith.constant 0 : index
    %c0_7 = arith.constant 0 : index
    %10 = vector.load %arg3[%c0_6, %c0_7] : memref<1x128xf32, #tpu.memory_space<vmem>>, vector<1x128xf32>
    %11 = arith.addf %9, %10 : vector<1x128xf32>
    %c0_8 = arith.constant 0 : index
    %c0_9 = arith.constant 0 : index
    %c0_10 = arith.constant 0 : index
    %12 = vector.load %arg4[%c0_8, %c0_9, %c0_10] : memref<1x1x128xf32, #tpu.memory_space<vmem>>, vector<1x1x128xf32>
    %13 = vector.shape_cast %12 : vector<1x1x128xf32> to vector<1x128xf32>
    %14 = vector.shape_cast %11 : vector<1x128xf32> to vector<1x1x128xf32>
    tpu.vector_store %arg4[%c0_8, %c0_9, %c0_10], %14 {strides = array<i32>} : memref<1x1x128xf32, #tpu.memory_space<vmem>>, vector<1x1x128xf32>,
    return
  }
  func.func @transform_0(%arg0: i32) -> (i32, i32, i32) {
    %c0_i32 = arith.constant 0 : i32
    %c0_i32_0 = arith.constant 0 : i32
    %c0_i32_1 = arith.constant 0 : i32
    return %arg0, %c0_i32, %c0_i32_0 : i32, i32, i32
  }
  func.func @transform_1(%arg0: i32) -> (i32, i32) {
    %c0_i32 = arith.constant 0 : i32
    %c0_i32_0 = arith.constant 0 : i32
    %c0_i32_1 = arith.constant 0 : i32
    return %c0_i32, %c0_i32_0 : i32, i32
  }
  func.func @transform_2(%arg0: i32) -> (i32, i32) {
    %c0_i32 = arith.constant 0 : i32
    %c0_i32_0 = arith.constant 0 : i32
    %c0_i32_1 = arith.constant 0 : i32
    return %c0_i32, %c0_i32_0 : i32, i32
  }
  func.func @transform_3(%arg0: i32) -> (i32, i32, i32) {
    %c0_i32 = arith.constant 0 : i32
    %c0_i32_0 = arith.constant 0 : i32
    %c0_i32_1 = arith.constant 0 : i32
    return %arg0, %c0_i32, %c0_i32_0 : i32, i32, i32
  }
}

</mosaic_0001>

<bundles_post_ra>
// kernel: _lambda_.23
= control target key start
LH: loop header
LB: loop body
LE: loop exit
PB: predicated region body
PF: predicated region fallthrough
CT: control target
= control target key end

     0   :  { %s537_s6 = smov 0   ;;  %s742_s0 = inlined_call_operand.vmem [shape: bf16[2,384,8], index: 0, kind: input, shape index: {}]   ;;  %s743_s1 = inlined_call_operand.vmem [shape: bf16[2,64,8], index: 1, kind: output, shape index: {}]  }
   0x1 LB: > { %s499_s7 = sadd.s32 4294967295, %s525_s6   ;;  %p503_p0 = scmp.ge.s32.totalorder %s525_s6, 1  ;;  %s525_s6 = sphi %s537_s6, %s11_s6  }
   0x2   : > { %p87_p1 = scmp.lt.s32.totalorder %s525_s6, 3 }
   0x4   : > { %p88_p2 = pnand %p503_p0, %p87_p1 }
   0x5   : > { %p107_p3 = scmp.lt.s32.totalorder (!%p88_p2), %s499_s7, 1  ;;  %vm126_vm0 = vsmask.f32 (!%p88_p2), 3328  ;;  %vm127_vm1 = vsmask.f32 (!%p88_p2), 7440  ;;  %vm435_vm3 = vcmask (!%p88_p2), 60416  }
   0x6   : > { %91 = sbr.rel (%p88_p2) target bundleno = 77 (0x4d), region = 24  ;;  %vm570_vm2 = vmor (!%p88_p2), %vm126_vm0, %vm127_vm1 }
   0xd   : > { %s747_s7 = smov (!%p107_p3, %s499_s7), 1 }
   0xe   : > { %s510_s8 = smul.u32 192, %s747_s7  ;;  %s509_s12 = sshll.u32 %s747_s7, 5 }
   0xf   : > { %s644_s15 = scalar_lea.vmem %s743_s1, %s509_s12 }
  0x10   : > { %s551_s11 = scalar_lea.vmem %s742_s0, %s510_s8 }
  0x11   : > { %v117_v0 = vld [vmem:[%s551_s11] sm:$0xf]  ;;  %v118_v1 = vld [vmem:[%s551_s11 + $0x4] sm:$0xf]  ;;  %v556_v2 = vld [vmem:[%s551_s11 + $0x8] sm:$0xf] }
  0x12   : > { %v559_v3 = vld [vmem:[%s551_s11 + $0xc] sm:$0xf]  ;;  %v130_v4 = vshrl.u32 %v117_v0, 16  ;;  %v133_v5 = vshll.u32 %v117_v0, 16  ;;  %v139_v6 = vshll.u32 %v118_v1, 16  ;;  %v143_v7 = vshrl.u32 %v118_v1, 16 }
  0x13   : > { %v149_v8 = vshll.u32 %v556_v2, 16  ;;  %v153_v9 = vshrl.u32 %v556_v2, 16  ;;  %v159_v10 = vshll.u32 %v559_v3, 16  ;;  %v163_v11 = vshrl.u32 %v559_v3, 16  ;;  %v245_v18 = vld [vmem:[%s551_s11 + $0x60] sm:$0xf] }
  0x14   : > { %v132_v12 = vrot.slane %v130_v4, 4  ;;  %v135_v13 = vrot.slane %v133_v5, 5  ;;  %v141_v14 = vrot.slane %v139_v6, 5  ;;  %v145_v15 = vrot.slane %v143_v7, 4  ;;  %v246_v22 = vld [vmem:[%s551_s11 + $0x64] sm:$0xf] }
  0x15   : > { %v151_v16 = vrot.slane %v149_v8, 5  ;;  %v155_v17 = vrot.slane %v153_v9, 4  ;;  %v161_v21 = vrot.slane %v159_v10, 5  ;;  %v247_v23 = vld [vmem:[%s551_s11 + $0x68] sm:$0xf]  ;;  %v165_v24 = vrot.slane %v163_v11, 4 }
  0x16   : > { %v136_v19 = vor.u32 %v135_v13, %v132_v12  ;;  %v146_v20 = vor.u32 %v145_v15, %v141_v14  ;;  %v263_v27 = vshrl.u32 %v245_v18, 16  ;;  %v266_v28 = vshll.u32 %v245_v18, 16  ;;  %v575_v32 = vld [vmem:[%s551_s11 + $0x6c] sm:$0xf]  ;;  %v578_v39 = vld [vmem:[%s551_s11 + $0x10] sm:$0xf] }
  0x17   : > { %v156_v26 = vor.u32 %v155_v17, %v151_v16  ;;  %v272_v29 = vshll.u32 %v246_v22, 16  ;;  %v282_v33 = vshll.u32 %v247_v23, 16  ;;  %v286_v34 = vshrl.u32 %v247_v23, 16  ;;  %v229_v42 = vld [vmem:[%s551_s11 + $0x30] sm:$0xf] }
  0x18   : > { %v137_v30 = vrot.slane %v136_v19, 4  ;;  %v147_v31 = vrot.slane %v146_v20, 4  ;;  %v265_v36 = vrot.slane %v263_v27, 4  ;;  %v268_v37 = vrot.slane %v266_v28, 5  ;;  %v592_v47 = vld [vmem:[%s551_s11 + $0x38] sm:$0xf] }
  0x19   : > { %v157_v35 = vrot.slane %v156_v26, 4  ;;  %v274_v38 = vrot.slane %v272_v29, 5  ;;  %v585_v43 = vrot.slane %v282_v33, 5  ;;  %v288_v44 = vrot.slane %v286_v34, 4  ;;  %v230_v54 = vld [vmem:[%s551_s11 + $0x34] sm:$0xf] }
  0x1a   : > { %v142_v40 = vsel %vm570_vm2, %v137_v30, %v141_v14  ;;  %v152_v41 = vsel %vm570_vm2, %v147_v31, %v151_v16  ;;  %v269_v48 = vor.u32 %v268_v37, %v265_v36  ;;  %v292_v49 = vshll.u32 %v575_v32, 16  ;;  %v362_v4 = vld [vmem:[%s551_s11 + $0x90] sm:$0xf]  ;;  %v614_v10 = vld [vmem:[%s551_s11 + $0x3c] sm:$0xf] }
  0x1b   : > { %v589_v45 = vsel %vm570_vm2, %v157_v35, %v161_v21  ;;  %v221_v46 = vmax.bf16 %v142_v40, %v117_v0  ;;  %v289_v51 = vor.u32 %v288_v44, %v585_v43  ;;  %v166_v52 = vor.u32 %v165_v24, %v161_v21  ;;  %v605_v6 = vld [vmem:[%s551_s11 + $0x70] sm:$0xf]  ;;  %v618_v12 = vld [vmem:[%s551_s11 + $0x14] sm:$0xf]  ;;  %v364_v31 = vld [vmem:[%s551_s11 + $0x98] sm:$0xf] }
  0x1c   : > { %v223_v50 = vmax.bf16 %v589_v45, %v556_v2  ;;  %v169_v53 = vshll.u32 %v578_v39, 16  ;;  %v270_v56 = vrot.slane %v269_v48, 4  ;;  %v294_v57 = vrot.slane %v292_v49, 5  ;;  %v627_v27 = vld [vmem:[%s551_s11 + $0x74] sm:$0xf] }
  0x1d   : > { %v237_v55 = vmax.bf16 %v229_v42, %v221_v46  ;;  %v222_v58 = vmax.bf16 %v152_v41, %v118_v1  ;;  %v290_v60 = vrot.slane %v289_v51, 4  ;;  %v167_v61 = vrot.slane %v166_v52, 4  ;;  %v363_v46 = vld [vmem:[%s551_s11 + $0x94] sm:$0xf]  ;;  %v649_v51 = vld [vmem:[%s551_s11 + $0x18] sm:$0xf] }
  0x1e   : > { %v239_v59 = vmax.bf16 %v592_v47, %v223_v50  ;;  %v171_v62 = vrot.slane %v169_v53, 5  ;;  %v275_v0 = vsel %vm570_vm2, %v270_v56, %v274_v38  ;;  %v276_v7 = vshrl.u32 %v246_v22, 16 }
  0x1f   : > { %v253_v63 = vmax.bf16 %v245_v18, %v237_v55  ;;  %v238_v5 = vmax.bf16 %v230_v54, %v222_v58  ;;  %v295_v9 = vsel %vm570_vm2, %v290_v60, %v294_v57  ;;  %v296_v11 = vshrl.u32 %v575_v32, 16  ;;  %v654_v55 = vld [vmem:[%s551_s11 + $0x78] sm:$0xf]  ;;  %v233_v58 = vld [vmem:[%s551_s11 + $0x40] sm:$0xf] }
  0x20   : > { %v255_v8 = vmax.bf16 %v247_v23, %v239_v59  ;;  %v611_v1 = vsel %vm570_vm2, %v167_v61, %v171_v62  ;;  %v278_v16 = vrot.slane %v276_v7, 4  ;;  %v302_v19 = vshll.u32 %v605_v6, 16 }
  0x21   : > { %v354_v13 = vmax.bf16 %v275_v0, %v253_v63  ;;  %v224_v14 = vmax.bf16 %v611_v1, %v559_v3  ;;  %v254_v15 = vmax.bf16 %v246_v22, %v238_v5  ;;  %v298_v18 = vrot.slane %v296_v11, 4  ;;  %v365_v0 = vld [vmem:[%s551_s11 + $0x9c] sm:$0xf] }
  0x22   : > { %v356_v17 = vmax.bf16 %v295_v9, %v255_v8  ;;  %v173_v20 = vshrl.u32 %v578_v39, 16  ;;  %v279_v24 = vor.u32 %v278_v16, %v274_v38  ;;  %v179_v26 = vshll.u32 %v618_v12, 16  ;;  %v670_v9 = vld [vmem:[%s551_s11 + $0x1c] sm:$0xf] }
  0x23   : > { %v370_v21 = vmax.bf16 %v362_v4, %v354_v13  ;;  %v240_v23 = vmax.bf16 %v614_v10, %v224_v14  ;;  %v299_v28 = vor.u32 %v298_v18, %v294_v57  ;;  %v304_v29 = vrot.slane %v302_v19, 5 }
  0x24   : > { %v175_v22 = vrot.slane %v173_v20, 4  ;;  %v306_v30 = vshrl.u32 %v605_v6, 16  ;;  %v280_v35 = vrot.slane %v279_v24, 4  ;;  %v181_v36 = vrot.slane %v179_v26, 5  ;;  %v234_v26 = vld [vmem:[%s551_s11 + $0x44] sm:$0xf] }
  0x25   : > { %v380_v33 = vmax.bf16 %v370_v21, %v556_v2  ;;  %v256_v34 = vmax.bf16 %v575_v32, %v240_v23  ;;  %v300_v37 = vrot.slane %v299_v28, 4  ;;  %v312_v41 = vshll.u32 %v627_v27, 16  ;;  %v679_v23 = vld [vmem:[%s551_s11 + $0x7c] sm:$0xf] }
  0x26   : > { %v176_v38 = vor.u32 %v175_v22, %v171_v62  ;;  %v308_v40 = vrot.slane %v306_v30, 4  ;;  %v285_v44 = vsel %vm570_vm2, %v280_v35, %v585_v43  ;;  %v372_v2 = vmax.bf16 %v364_v31, %v356_v17 }
  0x27   : > { %v417_v42 = vmax.bf16 %v380_v33, %v589_v45  ;;  %v183_v32 = vshrl.u32 %v618_v12, 16  ;;  %v305_v48 = vsel %vm570_vm2, %v300_v37, %v304_v29  ;;  %v355_v49 = vmax.bf16 %v285_v44, %v254_v15  ;;  %v125_v37 = vld [vmem:[%s551_s11 + $0x20] sm:$0x1] }
  0x28   : > { %v177_v45 = vrot.slane %v176_v38, 4  ;;  %v309_v50 = vor.u32 %v308_v40, %v304_v29  ;;  %v357_v52 = vmax.bf16 %v305_v48, %v256_v34  ;;  %v314_v53 = vrot.slane %v312_v41, 5  ;;  %v366_v29 = vld [vmem:[%s551_s11 + $0xa0] sm:$0xf] }
  0x29   : > { %v427_v43 = vmax.bf16 %v417_v42, %v592_v47  ;;  %v382_v54 = vmax.bf16 %v372_v2, %v578_v39  ;;  %v371_v56 = vmax.bf16 %v363_v46, %v355_v49  ;;  %v185_v60 = vrot.slane %v183_v32, 4  ;;  %v378_v48 = vld [vmem:[%s551_s11 + $0x20] sm:$0xf] }
  0x2a   : > { %v182_v57 = vsel %vm570_vm2, %v177_v45, %v181_v36  ;;  %v310_v59 = vrot.slane %v309_v50, 4  ;;  %v189_v47 = vshll.u32 %v649_v51, 16  ;;  %v316_v63 = vshrl.u32 %v627_v27, 16 }
  0x2b   : > { %436 = vst.msk [vmem:[%s644_s15] sm:$0xf] %vm435_vm3, %v427_v43  ;;  %v225_v61 = vmax.bf16 %v182_v57, %v578_v39  ;;  %v419_v62 = vmax.bf16 %v382_v54, %v182_v57  ;;  %v381_v4 = vmax.bf16 %v371_v56, %v559_v3  ;;  %v186_v7 = vor.u32 %v185_v60, %v181_v36  ;;  %v367_v57 = vld [vmem:[%s551_s11 + $0xa4] sm:$0xf]  ;;  %v235_v60 = vld [vmem:[%s551_s11 + $0x48] sm:$0xf] }
  0x2c   : > { %v315_v5 = vsel %vm570_vm2, %v310_v59, %v314_v53  ;;  %v322_v8 = vshll.u32 %v654_v55, 16  ;;  %v191_v13 = vrot.slane %v189_v47, 5  ;;  %v318_v14 = vrot.slane %v316_v63, 4 }
  0x2d   : > { %v241_v11 = vmax.bf16 %v233_v58, %v225_v61  ;;  %v429_v39 = vmax.bf16 %v419_v62, %v233_v58  ;;  %v418_v15 = vmax.bf16 %v381_v4, %v611_v1  ;;  %v187_v16 = vrot.slane %v186_v7, 4  ;;  %v379_v4 = vld [vmem:[%s551_s11 + $0x24] sm:$0xf] }
  0x2e   : > { %v324_v17 = vrot.slane %v322_v8, 5  ;;  %v373_v3 = vmax.bf16 %v365_v0, %v357_v52  ;;  %v319_v19 = vor.u32 %v318_v14, %v314_v53  ;;  %v193_v20 = vshrl.u32 %v649_v51, 16 }
  0x2f   : > { %v257_v18 = vmax.bf16 %v605_v6, %v241_v11  ;;  %438 = vst.msk [vmem:[%s644_s15 + $0x8] sm:$0xf] %vm435_vm3, %v429_v39  ;;  %v199_v21 = vshll.u32 %v670_v9, 16  ;;  %v428_v24 = vmax.bf16 %v418_v15, %v614_v10  ;;  %v192_v1 = vsel %vm570_vm2, %v187_v16, %v191_v13 }
  0x30   : > { %v383_v28 = vmax.bf16 %v373_v3, %v618_v12  ;;  %v326_v6 = vshrl.u32 %v654_v55, 16  ;;  %v226_v30 = vmax.bf16 %v192_v1, %v618_v12  ;;  %v320_v31 = vrot.slane %v319_v19, 4  ;;  %v261_v12 = vld [vmem:[%s551_s11 + $0x80] sm:$0x1]  ;;  %v388_v3 = vld [vmem:[%s551_s11 + $0x28] sm:$0x1] }
  0x31   : > { %v358_v22 = vmax.bf16 %v315_v5, %v257_v18  ;;  %v195_v33 = vrot.slane %v193_v20, 4  ;;  %437 = vst.msk [vmem:[%s644_s15 + $0x4] sm:$0xf] %vm435_vm3, %v428_v24  ;;  %v201_v10 = vrot.slane %v199_v21, 5  ;;  %v332_v36 = vshll.u32 %v679_v23, 16 }
  0x32   : > { %v420_v34 = vmax.bf16 %v383_v28, %v192_v1  ;;  %v328_v35 = vrot.slane %v326_v6, 4  ;;  %v242_v38 = vmax.bf16 %v234_v26, %v226_v30  ;;  %v325_v40 = vsel %vm570_vm2, %v320_v31, %v324_v17  ;;  %v236_v21 = vld [vmem:[%s551_s11 + $0x4c] sm:$0xf] }
  0x33   : > { %v196_v41 = vor.u32 %v195_v33, %v191_v13  ;;  %v374_v42 = vmax.bf16 %v366_v29, %v358_v22  ;;  %v334_v2 = vrot.slane %v332_v36, 5  ;;  %v203_v32 = vshrl.u32 %v670_v9, 16  ;;  %v368_v29 = vld [vmem:[%s551_s11 + $0xa8] sm:$0xf] }
  0x34   : > { %v430_v44 = vmax.bf16 %v420_v34, %v234_v26  ;;  %v329_v46 = vor.u32 %v328_v35, %v324_v17  ;;  %v258_v49 = vmax.bf16 %v627_v27, %v242_v38  ;;  %v209_v43 = vshll.u32 %v125_v37, 16 }
  0x35   : > { %v197_v45 = vrot.slane %v196_v41, 4  ;;  %v384_v50 = vmax.bf16 %v374_v42, %v649_v51  ;;  %v205_v53 = vrot.slane %v203_v32, 4  ;;  %v336_v54 = vshrl.u32 %v679_v23, 16  ;;  %v369_v42 = vld [vmem:[%s551_s11 + $0xac] sm:$0xf] }
  0x36   : > { %439 = vst.msk [vmem:[%s644_s15 + $0xc] sm:$0xf] %vm435_vm3, %v430_v44  ;;  %v330_v52 = vrot.slane %v329_v46, 4  ;;  %v342_v56 = vshll.u32 %v261_v12, 16  ;;  %v359_v58 = vmax.bf16 %v325_v40, %v258_v49  ;;  %v211_v61 = vrot.slane %v209_v43, 5 }
  0x37   : > { %v202_v59 = vsel %vm570_vm2, %v197_v45, %v201_v10  ;;  %v390_v27 = vshll.u32 %v378_v48, 16  ;;  %v206_v0 = vor.u32 %v205_v53, %v201_v10  ;;  %v338_v5 = vrot.slane %v336_v54, 4 }
  0x38   : > { %v227_v62 = vmax.bf16 %v202_v59, %v649_v51  ;;  %v335_v47 = vsel %vm570_vm2, %v330_v52, %v334_v2  ;;  %v421_v63 = vmax.bf16 %v384_v50, %v202_v59  ;;  %v344_v7 = vrot.slane %v342_v56, 5 }
  0x39   : > { %v375_v8 = vmax.bf16 %v367_v57, %v359_v58  ;;  %v392_v11 = vrot.slane %v390_v27, 5  ;;  %v207_v14 = vrot.slane %v206_v0, 4  ;;  %v394_v15 = vshrl.u32 %v378_v48, 16 }
  0x3a   : > { %v243_v39 = vmax.bf16 %v235_v60, %v227_v62  ;;  %v431_v13 = vmax.bf16 %v421_v63, %v235_v60  ;;  %v339_v16 = vor.u32 %v338_v5, %v334_v2  ;;  %v400_v17 = vshll.u32 %v379_v4, 16  ;;  %v425_v2 = vld [vmem:[%s551_s11 + $0x50] sm:$0xf] }
  0x3b   : > { %v385_v51 = vmax.bf16 %v375_v8, %v670_v9  ;;  %v404_v18 = vshrl.u32 %v379_v4, 16  ;;  %v212_v20 = vsel %vm570_vm2, %v207_v14, %v211_v61  ;;  %v393_v24 = vsel %vm570_vm2, %v207_v14, %v392_v11 }
  0x3c   : > { %v259_v19 = vmax.bf16 %v654_v55, %v243_v39  ;;  %440 = vst.msk [vmem:[%s644_s15 + $0x10] sm:$0xf] %vm435_vm3, %v431_v13  ;;  %v396_v1 = vrot.slane %v394_v15, 4  ;;  %v228_v26 = vmax.bf16 %v212_v20, %v670_v9  ;;  %v340_v28 = vrot.slane %v339_v16, 4 }
  0x3d   : > { %v422_v6 = vmax.bf16 %v393_v24, %v385_v51  ;;  %v402_v22 = vrot.slane %v400_v17, 5  ;;  %v406_v31 = vrot.slane %v404_v18, 4  ;;  %v410_v33 = vshll.u32 %v388_v3, 16 }
  0x3e   : > { %v360_v30 = vmax.bf16 %v335_v47, %v259_v19  ;;  %v397_v55 = vor.u32 %v396_v1, %v392_v11  ;;  %v244_v34 = vmax.bf16 %v236_v21, %v228_v26  ;;  %v345_v35 = vsel %vm570_vm2, %v340_v28, %v344_v7 }
  0x3f   : > { %v432_v10 = vmax.bf16 %v422_v6, %v236_v21  ;;  %v407_v9 = vor.u32 %v406_v31, %v402_v22  ;;  %v412_v44 = vrot.slane %v410_v33, 5 }
  0x40   : > { %v376_v36 = vmax.bf16 %v368_v29, %v360_v30  ;;  %v398_v37 = vrot.slane %v397_v55, 4  ;;  %v260_v38 = vmax.bf16 %v679_v23, %v244_v34  ;;  %v426_v23 = vld [vmem:[%s551_s11 + $0x54] sm:$0xf] }
  0x41   : > { %441 = vst.msk [vmem:[%s644_s15 + $0x14] sm:$0xf] %vm435_vm3, %v432_v10  ;;  %v408_v12 = vrot.slane %v407_v9, 4 }
  0x42   : > { %v386_v40 = vmax.bf16 %v378_v48, %v376_v36  ;;  %v403_v41 = vsel %vm570_vm2, %v398_v37, %v402_v22  ;;  %v361_v46 = vmax.bf16 %v345_v35, %v260_v38 }
  0x43   : > { %v413_v50 = vsel %vm570_vm2, %v408_v12, %v412_v44 }
  0x44   : > { %v423_v32 = vmax.bf16 %v403_v41, %v386_v40  ;;  %v377_v49 = vmax.bf16 %v369_v42, %v361_v46 }
  0x46   : > { %v433_v45 = vmax.bf16 %v425_v2, %v423_v32  ;;  %v387_v43 = vmax.bf16 %v379_v4, %v377_v49 }
  0x48   : > { %442 = vst.msk [vmem:[%s644_s15 + $0x18] sm:$0xf] %vm435_vm3, %v433_v45  ;;  %v424_v48 = vmax.bf16 %v413_v50, %v387_v43 }
  0x4a   : > { %v434_v52 = vmax.bf16 %v426_v23, %v424_v48 }
  0x4c   : > { %443 = vst.msk [vmem:[%s644_s15 + $0x1c] sm:$0xf] %vm435_vm3, %v434_v52 }
  0x4d PF: > { %s11_s6 = sadd.s32 1, %s525_s6  }
  0x4e   : > { %p8_p4 = scmp.ge.s32.totalorder %s11_s6, 4  }
  0x50   :  { %10 = sbr.rel (!%p8_p4) target bundleno = 1 (0x1), region = 54 }

// kernel: _lambda_.24
= control target key start
LH: loop header
LB: loop body
LE: loop exit
PB: predicated region body
PF: predicated region fallthrough
CT: control target
= control target key end

     0   :  { %s872_s15 = smov 0   ;;  %s965_s0 = inlined_call_operand.vmem [shape: bf16[2,112,24], index: 0, kind: input, shape index: {}]   ;;  %s966_s1 = inlined_call_operand.vmem [shape: bf16[3,24,8], index: 1, kind: input, shape index: {}]   ;;  %s967_s2 = inlined_call_operand.vmem [shape: f32[1,8], index: 2, kind: input, shape index: {}]   ;;  %s968_s3 = inlined_call_operand.vmem [shape: f32[1,8], index: 3, kind: input, shape index: {}]   ;;  %s969_s4 = inlined_call_operand.vmem [shape: bf16[2,64,8], index: 4, kind: output, shape index: {}]  }
   0x1 LB: > { %s675_s16 = sadd.s32 4294967295, %s845_s15   ;;  %p679_p0 = scmp.ge.s32.totalorder %s845_s15, 1  ;;  %s845_s15 = sphi %s872_s15, %s14_s15  }
   0x2   : > { %p162_p1 = scmp.lt.s32.totalorder %s845_s15, 3 }
   0x4   : > { %p163_p2 = pnand %p679_p0, %p162_p1 }
   0x5   : > { %v824_v0 = vld [vmem:[%s966_s1 + $0xc] sm:$0xff] (!%p163_p2)   ;;  %vm258_vm0 = vcmask (!%p163_p2), 1043456   ;;  %v825_v1 = vld [vmem:[%s966_s1] sm:$0xff] (!%p163_p2)   ;;  %p188_p3 = scmp.lt.s32.totalorder (!%p163_p2), %s675_s16, 1  ;;  %v826_v2 = vld [vmem:[%s966_s1 + $0x14] ss:$0 sps:$4 sm:$0xff] (!%p163_p2)  }
   0x6   : > { %166 = sbr.rel (%p163_p2) target bundleno = 265 (0x109), region = 36  ;;  %755 = vmatprep.subr.bf16.mxu1 (!%p163_p2), %v824_v0  ;;  %767 = vmatprep.subr.bf16.mxu0 (!%p163_p2), %v825_v1  ;;  %v827_v3 = vld [vmem:[%s966_s1 + $0x8] ss:$0 sps:$4 sm:$0xff] (!%p163_p2)   ;;  %v260_v4 = vsel (!%p163_p2), %vm258_vm0, %v826_v2, 0  ;;  %v831_v6 = vld [vmem:[%s966_s1 + $0x18] sm:$0xff] (!%p163_p2)   ;;  %vm245_vm1 = vcmask (!%p163_p2), 195584  }
   0x7   : > { %756 = vmatpush3.bf16.msra.mxu1 (!%p163_p2), %v824_v0  ;;  %768 = vmatpush3.bf16.msra.mxu0 (!%p163_p2), %v825_v1  ;;  %v345_v5 = vsel (!%p163_p2), %vm258_vm0, %v827_v3, 0  ;;  %v832_v8 = vld [vmem:[%s966_s1 + $0x20] ss:$0 sps:$4 sm:$0xff] (!%p163_p2)   ;;  %vm611_vm2 = vcmask (!%p163_p2), 60416  }
   0x8   : > { %811 = vmatprep.subr.msk.bf16.mxu1 (!%p163_p2), %vm258_vm0, %v826_v2  ;;  %812 = vmatprep.subr.msk.bf16.mxu0 (!%p163_p2), %vm258_vm0, %v827_v3  ;;  %v466_v13 = vsel (!%p163_p2), %vm258_vm0, %v832_v8, 0  ;;  %v716_v23 = vld [vmem:[%s967_s2] ss:$0 sm:$0xff] (!%p163_p2) }
   0x9   : > { %v717_v26 = vld [vmem:[%s968_s3] ss:$0 sm:$0xff] (!%p163_p2) }
   0xb   : > { %758 = vmatpush3.bf16.msra.mxu1 (!%p163_p2), %v260_v4  ;;  %770 = vmatpush3.bf16.msra.mxu0 (!%p163_p2), %v345_v5 }
   0xc   : > { %791 = vmatprep.subr.bf16.mxu1 (!%p163_p2), %v825_v1  ;;  %779 = vmatprep.subr.bf16.mxu0 (!%p163_p2), %v831_v6 }
   0xd   : > { %s971_s16 = smov (!%p188_p3, %s675_s16), 1 }
   0xe   : > { %s815_s25 = smul.u32 56, %s971_s16  ;;  %s728_s11 = sshll.u32 %s971_s16, 5 }
   0xf   : > { %s944_s14 = scalar_lea.vmem %s969_s4, %s728_s11 }
  0x10   : > { %s905_s30 = scalar_lea.vmem %s965_s0, %s815_s25 }
  0x11   : > { %v828_v7 = vld [vmem:[%s905_s30 + $0x8] sm:$0xff]   ;;  %v829_v9 = vld [vmem:[%s905_s30] sm:$0xff]   ;;  %v830_v10 = vld [vmem:[%s905_s30 + $0x10] sm:$0xff]  }
  0x12   : > { %759 = vmatprep.mubr.msk.bf16.mxu1 %vm245_vm1, %v828_v7  ;;  %771 = vmatprep.mubr.msk.bf16.mxu0 %vm245_vm1, %v829_v9  ;;  %v833_v11 = vld [vmem:[%s905_s30 + $0x18] sm:$0xff]   ;;  %v835_v12 = vld [vmem:[%s905_s30 + $0x10] sm:$0xff]   ;;  %v834_v14 = vld [vmem:[%s905_s30 + $0x20] sm:$0xff]  }
  0x13   : > { %760 = vmatmul.mubr.msk.bf16.vlgmr.msra.gmra.mrb[0].mxu1 %vm245_vm1, %v830_v10  ;;  %772 = vmatmul.mubr.msk.bf16.vlgmr.msra.gmra.mrb[0].mxu0 %vm245_vm1, %v828_v7  ;;  %v836_v15 = vld [vmem:[%s905_s30 + $0x18] sm:$0xff]   ;;  %v837_v16 = vld [vmem:[%s905_s30 + $0x20] sm:$0xff]   ;;  %v838_v17 = vld [vmem:[%s905_s30 + $0x28] sm:$0xff]  }
  0x14   : > { %793 = vmatpush3.bf16.msra.mxu1 %v825_v1  ;;  %780 = vmatpush3.bf16.msra.mxu0 %v831_v6 }
  0x15   : > { %814 = vmatprep.subr.msk.bf16.mxu0 %vm258_vm0, %v832_v8  ;;  %763 = vmatprep.mubr.msk.bf16.mxu1 %vm245_vm1, %v833_v11 }
  0x16   : > { %813 = vmatprep.subr.msk.bf16.mxu1 %vm258_vm0, %v827_v3  ;;  %783 = vmatprep.mubr.msk.bf16.mxu0 %vm245_vm1, %v835_v12 }
  0x18   : > { %782 = vmatpush3.bf16.msra.mxu0 %v466_v13  ;;  %794 = vmatpush3.bf16.msra.mxu1 %v345_v5 }
  0x1b   : > { %764 = vmatmul.mubr.msk.bf16.gmra.mrb[4].mxu1 %vm245_vm1, %v834_v14 }
  0x1c   : > { %775 = vmatprep.mubr.msk.bf16.mxu1 %vm245_vm1, %v830_v10 }
  0x1f   : > { %784 = vmatmul.mubr.msk.bf16.vlgmr.msra.gmra.mrb[0].mxu0 %vm245_vm1, %v836_v15 }
  0x20   : > { %787 = vmatprep.mubr.msk.bf16.mxu0 %vm245_vm1, %v837_v16 }
  0x27   : > { %776 = vmatmul.mubr.msk.bf16.vlgmr.msra.gmra.mrb[4].mxu1 %vm245_vm1, %v833_v11  ;;  %788 = vmatmul.mubr.msk.bf16.gmra.mrb[4].mxu0 %vm245_vm1, %v838_v17 }
  0xe6   : > { %v761_v18 = vpop.f32.mrb[0].mxu1 }
  0xe7   : > { %v296_v19 = vpop.f32.mrb[1].mxu1 }
  0xe8   : > { %v762_v20 = vpop.f32.mrb[2].mxu1 }
  0xe9   : > { %v299_v21 = vpop.f32.mrb[3].mxu1 }
  0xf2   : > { %v785_v22 = vpop.f32.mrb[0].mxu0 }
  0xf3   : > { %v795_v24 = vadd.f32 %v785_v22, %v761_v18  ;;  %v502_v25 = vpop.f32.mrb[1].mxu0 }
  0xf4   : > { %v796_v27 = vadd.f32 %v502_v25, %v296_v19  ;;  %v786_v28 = vpop.f32.mrb[2].mxu0 }
  0xf5   : > { %v550_v29 = vmul.f32 %v795_v24, %v716_v23  ;;  %v797_v30 = vadd.f32 %v786_v28, %v762_v20  ;;  %v505_v31 = vpop.f32.mrb[3].mxu0 }
  0xf6   : > { %v548_v32 = vmul.f32 %v796_v27, %v716_v23  ;;  %v798_v33 = vadd.f32 %v505_v31, %v299_v21 }
  0xf7   : > { %v565_v34 = vadd.f32 %v717_v26, %v550_v29  ;;  %v551_v35 = vmul.f32 %v797_v30, %v716_v23 }
  0xf8   : > { %v563_v36 = vadd.f32 %v717_v26, %v548_v32  ;;  %v549_v37 = vmul.f32 %v798_v33, %v716_v23 }
  0xf9   : > { %v573_v38 = vmax.f32 %v565_v34, 0.0  ;;  %v566_v39 = vadd.f32 %v717_v26, %v551_v35 }
  0xfa   : > { %v571_v40 = vmax.f32 %v563_v36, 0.0  ;;  %v564_v41 = vadd.f32 %v717_v26, %v549_v37  ;;  %v777_v42 = vpop.f32.mrb[4].mxu1  ;;  %v789_v43 = vpop.f32.mrb[4].mxu0 }
  0xfb   : > { %v731_v44 = vpack.c.bf16 %v573_v38, %v573_v38  ;;  %v574_v45 = vmax.f32 %v566_v39, 0.0  ;;  %v799_v46 = vadd.f32 %v789_v43, %v777_v42  ;;  %v397_v47 = vpop.f32.mrb[5].mxu1  ;;  %v518_v48 = vpop.f32.mrb[5].mxu0 }
  0xfc   : > { %v729_v49 = vpack.c.bf16 %v571_v40, %v571_v40  ;;  %v572_v50 = vmax.f32 %v564_v41, 0.0  ;;  %v800_v51 = vadd.f32 %v518_v48, %v397_v47  ;;  %v778_v52 = vpop.f32.mrb[6].mxu1  ;;  %v790_v53 = vpop.f32.mrb[6].mxu0 }
  0xfd   : > { %614 = vst.msk [vmem:[%s944_s14 + $0x8] sm:$0xf] %vm611_vm2, %v731_v44  ;;  %v732_v54 = vpack.c.bf16 %v574_v45, %v574_v45  ;;  %v554_v55 = vmul.f32 %v799_v46, %v716_v23  ;;  %v801_v56 = vadd.f32 %v790_v53, %v778_v52  ;;  %v400_v57 = vpop.f32.mrb[7].mxu1  ;;  %v521_v58 = vpop.f32.mrb[7].mxu0 }
  0xfe   : > { %612 = vst.msk [vmem:[%s944_s14] sm:$0xf] %vm611_vm2, %v729_v49  ;;  %v730_v59 = vpack.c.bf16 %v572_v50, %v572_v50  ;;  %v552_v60 = vmul.f32 %v800_v51, %v716_v23  ;;  %v802_v61 = vadd.f32 %v521_v58, %v400_v57 }
  0xff   : > { %615 = vst.msk [vmem:[%s944_s14 + $0xc] sm:$0xf] %vm611_vm2, %v732_v54  ;;  %v569_v62 = vadd.f32 %v717_v26, %v554_v55  ;;  %v555_v63 = vmul.f32 %v801_v56, %v716_v23 }
 0x100   : > { %613 = vst.msk [vmem:[%s944_s14 + $0x4] sm:$0xf] %vm611_vm2, %v730_v59  ;;  %v567_v0 = vadd.f32 %v717_v26, %v552_v60  ;;  %v553_v1 = vmul.f32 %v802_v61, %v716_v23 }
 0x101   : > { %v577_v2 = vmax.f32 %v569_v62, 0.0  ;;  %v570_v3 = vadd.f32 %v717_v26, %v555_v63 }
 0x102   : > { %v575_v4 = vmax.f32 %v567_v0, 0.0  ;;  %v568_v5 = vadd.f32 %v717_v26, %v553_v1 }
 0x103   : > { %v735_v6 = vpack.c.bf16 %v577_v2, %v577_v2  ;;  %v578_v7 = vmax.f32 %v570_v3, 0.0 }
 0x104   : > { %v733_v8 = vpack.c.bf16 %v575_v4, %v575_v4  ;;  %v576_v9 = vmax.f32 %v568_v5, 0.0 }
 0x105   : > { %618 = vst.msk [vmem:[%s944_s14 + $0x18] sm:$0xf] %vm611_vm2, %v735_v6  ;;  %v736_v10 = vpack.c.bf16 %v578_v7, %v578_v7 }
 0x106   : > { %616 = vst.msk [vmem:[%s944_s14 + $0x10] sm:$0xf] %vm611_vm2, %v733_v8  ;;  %v734_v11 = vpack.c.bf16 %v576_v9, %v576_v9 }
 0x107   : > { %619 = vst.msk [vmem:[%s944_s14 + $0x1c] sm:$0xf] %vm611_vm2, %v736_v10 }
 0x108   : > { %617 = vst.msk [vmem:[%s944_s14 + $0x14] sm:$0xf] %vm611_vm2, %v734_v11 }
 0x109 PF: > { %s14_s15 = sadd.s32 1, %s845_s15  }
 0x10a   : > { %p11_p4 = scmp.ge.s32.totalorder %s14_s15, 4  }
 0x10c   :  { %13 = sbr.rel (!%p11_p4) target bundleno = 1 (0x1), region = 68 }

// kernel: _lambda_.22
= control target key start
LH: loop header
LB: loop body
LE: loop exit
PB: predicated region body
PF: predicated region fallthrough
CT: control target
= control target key end

     0   :  { %s4299_s15 = smov 0   ;;  %s4692_s0 = inlined_call_operand.vmem [shape: bf16[2,768,12], index: 0, kind: input, shape index: {}]   ;;  %s4693_s1 = inlined_call_operand.vmem [shape: bf16[14,12,8], index: 1, kind: input, shape index: {}]   ;;  %s4694_s2 = inlined_call_operand.vmem [shape: f32[1,8], index: 2, kind: input, shape index: {}]   ;;  %s4695_s3 = inlined_call_operand.vmem [shape: f32[1,8], index: 3, kind: input, shape index: {}]   ;;  %s4696_s4 = inlined_call_operand.vmem [shape: bf16[2,128,8], index: 4, kind: output, shape index: {}]  }
   0x1 LB: > { %s3222_s16 = sadd.s32 4294967295, %s4272_s15   ;;  %p3226_p0 = scmp.ge.s32.totalorder %s4272_s15, 1  ;;  %s4272_s15 = sphi %s4299_s15, %s14_s15  }
   0x2   : > { %p162_p1 = scmp.lt.s32.totalorder %s4272_s15, 3 }
   0x4   : > { %p163_p2 = pnand %p3226_p0, %p162_p1 }
   0x5   : > { %v4140_v0 = vld [vmem:[%s4693_s1 + $0x8] sm:$0x3f] (!%p163_p2)   ;;  %vm306_vm0 = vcmask (!%p163_p2), 1045504   ;;  %p188_p3 = scmp.lt.s32.totalorder (!%p163_p2), %s3222_s16, 1  ;;  %v4141_v1 = vld [vmem:[%s4693_s1 + $0x38] sm:$0x3f] (!%p163_p2)  }
   0x6   : > { %166 = sbr.rel (%p163_p2) target bundleno = 461 (0x1cd), region = 36  ;;  %4117 = vmatprep.subr.msk.bf16.mxu1 (!%p163_p2), %vm306_vm0, %v4140_v0  ;;  %v308_v2 = vsel (!%p163_p2), %vm306_vm0, %v4140_v0, 0  ;;  %v4143_v3 = vld [vmem:[%s4693_s1] sm:$0x3f] (!%p163_p2)   ;;  %4124 = vmatprep.subr.msk.bf16.mxu0 (!%p163_p2), %vm306_vm0, %v4141_v1  ;;  %v1685_v4 = vsel (!%p163_p2), %vm306_vm0, %v4141_v1, 0  ;;  %vm281_vm1 = vcmask (!%p163_p2), 97280  }
   0x7   : > { %3658 = vmatpush3.bf16.msra.mxu1 (!%p163_p2), %v308_v2  ;;  %3784 = vmatpush3.bf16.msra.mxu0 (!%p163_p2), %v1685_v4  ;;  %v4145_v5 = vld [vmem:[%s4693_s1 + $0x40] sm:$0x3f] (!%p163_p2)   ;;  %v4161_v8 = vld [vmem:[%s4693_s1 + $0x10] sm:$0x3f] (!%p163_p2)   ;;  %v477_v10 = vsel (!%p163_p2), %vm306_vm0, %v4143_v3, 0  ;;  %vm3150_vm2 = vcmask (!%p163_p2), 60416  }
   0x8   : > { %4118 = vmatprep.subr.msk.bf16.mxu1 (!%p163_p2), %vm306_vm0, %v4143_v3  ;;  %4125 = vmatprep.subr.msk.bf16.mxu0 (!%p163_p2), %vm306_vm0, %v4145_v5  ;;  %v4163_v11 = vld [vmem:[%s4693_s1 + $0x48] sm:$0x3f] (!%p163_p2)   ;;  %v1889_v13 = vsel (!%p163_p2), %vm306_vm0, %v4145_v5, 0  ;;  %v665_v30 = vsel (!%p163_p2), %vm306_vm0, %v4161_v8, 0  ;;  %v4179_v34 = vld [vmem:[%s4693_s1 + $0x18] sm:$0x3f] (!%p163_p2)  }
   0x9   : > { %v2093_v32 = vsel (!%p163_p2), %vm306_vm0, %v4163_v11, 0  ;;  %v4181_v35 = vld [vmem:[%s4693_s1 + $0x50] sm:$0x3f] (!%p163_p2)   ;;  %v869_v50 = vsel (!%p163_p2), %vm306_vm0, %v4179_v34, 0  ;;  %v4197_v54 = vld [vmem:[%s4693_s1 + $0x20] sm:$0x3f] (!%p163_p2)  }
   0xa   : > { %v2297_v52 = vsel (!%p163_p2), %vm306_vm0, %v4181_v35, 0  ;;  %v4199_v55 = vld [vmem:[%s4693_s1 + $0x58] sm:$0x3f] (!%p163_p2)  }
   0xd   : > { %s4698_s16 = smov (!%p188_p3, %s3222_s16), 1 }
   0xe   : > { %s4131_s23 = smul.u32 384, %s4698_s16 }
  0x10   : > { %s4330_s28 = scalar_lea.vmem %s4692_s0, %s4131_s23 }
  0x11   : > { %v4142_v6 = vld [vmem:[%s4330_s28 + $0x60] sm:$0xff]   ;;  %v4144_v7 = vld [vmem:[%s4330_s28 + $0x128] sm:$0xff]   ;;  %v4147_v12 = vld [vmem:[%s4330_s28 + $0x130] sm:$0xff]  }
  0x12   : > { %3659 = vmatprep.mubr.msk.bf16.mxu1 %vm281_vm1, %v4142_v6  ;;  %v4146_v9 = vld [vmem:[%s4330_s28 + $0x68] sm:$0xff]   ;;  %3785 = vmatprep.mubr.msk.bf16.mxu0 %vm281_vm1, %v4144_v7  ;;  %v4148_v14 = vld [vmem:[%s4330_s28 + $0x70] sm:$0xff]   ;;  %v4149_v15 = vld [vmem:[%s4330_s28 + $0x138] sm:$0xff]   ;;  %v1073_v6 = vsel %vm306_vm0, %v4197_v54, 0 }
  0x13   : > { %3660 = vmatmul.mubr.msk.bf16.vlgmr.msra.gmra.mrb[0].mxu1 %vm281_vm1, %v4146_v9  ;;  %3786 = vmatmul.mubr.msk.bf16.vlgmr.msra.gmra.mrb[0].mxu0 %vm281_vm1, %v4147_v12  ;;  %v4150_v16 = vld [vmem:[%s4330_s28 + $0x78] sm:$0xff]   ;;  %v4151_v17 = vld [vmem:[%s4330_s28 + $0x140] sm:$0xff]   ;;  %v4153_v19 = vld [vmem:[%s4330_s28 + $0x148] sm:$0xff]  }
  0x14   : > { %3676 = vmatpush3.bf16.msra.mxu1 %v477_v10  ;;  %3802 = vmatpush3.bf16.msra.mxu0 %v1889_v13  ;;  %v4152_v18 = vld [vmem:[%s4330_s28 + $0x80] sm:$0xff]   ;;  %v4154_v20 = vld [vmem:[%s4330_s28 + $0x88] sm:$0xff]   ;;  %v4155_v21 = vld [vmem:[%s4330_s28 + $0x150] sm:$0xff]  }
  0x15   : > { %3663 = vmatprep.mubr.msk.bf16.mxu1 %vm281_vm1, %v4148_v14  ;;  %3789 = vmatprep.mubr.msk.bf16.mxu0 %vm281_vm1, %v4149_v15  ;;  %v4156_v22 = vld [vmem:[%s4330_s28 + $0x90] sm:$0xff]   ;;  %v4157_v23 = vld [vmem:[%s4330_s28 + $0x158] sm:$0xff]   ;;  %v4159_v25 = vld [vmem:[%s4330_s28 + $0x160] sm:$0xff]  }
  0x16   : > { %4119 = vmatprep.subr.msk.bf16.mxu1 %vm306_vm0, %v4161_v8  ;;  %4126 = vmatprep.subr.msk.bf16.mxu0 %vm306_vm0, %v4163_v11  ;;  %v4158_v24 = vld [vmem:[%s4330_s28 + $0x98] sm:$0xff]   ;;  %v4160_v26 = vld [vmem:[%s4330_s28] sm:$0xff]   ;;  %v4162_v27 = vld [vmem:[%s4330_s28 + $0x10] sm:$0xff]   ;;  %v2501_v8 = vsel %vm306_vm0, %v4199_v55, 0 }
  0x17   : > { %v4164_v28 = vld [vmem:[%s4330_s28 + $0x8] sm:$0xff]   ;;  %v4165_v29 = vld [vmem:[%s4330_s28 + $0x18] sm:$0xff]   ;;  %v4166_v31 = vld [vmem:[%s4330_s28 + $0x10] sm:$0xff]  }
  0x18   : > { %v4167_v33 = vld [vmem:[%s4330_s28 + $0x20] sm:$0xff]   ;;  %v4168_v36 = vld [vmem:[%s4330_s28 + $0x18] sm:$0xff]   ;;  %v4169_v37 = vld [vmem:[%s4330_s28 + $0x28] sm:$0xff]  }
  0x19   : > { %v4170_v38 = vld [vmem:[%s4330_s28 + $0x20] sm:$0xff]   ;;  %v4171_v39 = vld [vmem:[%s4330_s28 + $0x30] sm:$0xff]   ;;  %v4172_v40 = vld [vmem:[%s4330_s28 + $0x28] sm:$0xff]  }
  0x1a   : > { %v4173_v41 = vld [vmem:[%s4330_s28 + $0x38] sm:$0xff]   ;;  %v4174_v42 = vld [vmem:[%s4330_s28 + $0x30] sm:$0xff]   ;;  %v4175_v43 = vld [vmem:[%s4330_s28 + $0x40] sm:$0xff]  }
  0x1b   : > { %3664 = vmatmul.mubr.msk.bf16.gmra.mrb[4].mxu1 %vm281_vm1, %v4150_v16  ;;  %3790 = vmatmul.mubr.msk.bf16.gmra.mrb[4].mxu0 %vm281_vm1, %v4151_v17  ;;  %v4176_v44 = vld [vmem:[%s4330_s28 + $0x38] sm:$0xff]   ;;  %v4177_v45 = vld [vmem:[%s4330_s28 + $0x48] sm:$0xff]   ;;  %v4178_v46 = vld [vmem:[%s4330_s28 + $0xc0] sm:$0xff]  }
  0x1c   : > { %3667 = vmatprep.mubr.msk.bf16.mxu1 %vm281_vm1, %v4152_v18  ;;  %3793 = vmatprep.mubr.msk.bf16.mxu0 %vm281_vm1, %v4153_v19  ;;  %v4180_v47 = vld [vmem:[%s4330_s28 + $0x70] sm:$0xff]   ;;  %v4182_v48 = vld [vmem:[%s4330_s28 + $0xc8] sm:$0xff]   ;;  %v4183_v49 = vld [vmem:[%s4330_s28 + $0x78] sm:$0xff]  }
  0x1d   : > { %v4184_v51 = vld [vmem:[%s4330_s28 + $0xd0] sm:$0xff]   ;;  %v4185_v53 = vld [vmem:[%s4330_s28 + $0x80] sm:$0xff]   ;;  %v4186_v56 = vld [vmem:[%s4330_s28 + $0xd8] sm:$0xff]  }
  0x1e   : > { %v4187_v57 = vld [vmem:[%s4330_s28 + $0x88] sm:$0xff]   ;;  %v4188_v58 = vld [vmem:[%s4330_s28 + $0xe0] sm:$0xff]   ;;  %v4189_v59 = vld [vmem:[%s4330_s28 + $0x90] sm:$0xff]  }
  0x1f   : > { %v4190_v60 = vld [vmem:[%s4330_s28 + $0xe8] sm:$0xff]   ;;  %v4191_v61 = vld [vmem:[%s4330_s28 + $0x98] sm:$0xff]   ;;  %v4192_v62 = vld [vmem:[%s4330_s28 + $0xf0] sm:$0xff]  }
  0x20   : > { %v4193_v63 = vld [vmem:[%s4330_s28 + $0xa0] sm:$0xff]   ;;  %v4194_v0 = vld [vmem:[%s4330_s28 + $0xf8] sm:$0xff]   ;;  %v4195_v1 = vld [vmem:[%s4330_s28 + $0xa8] sm:$0xff]  }
  0x21   : > { %v4196_v2 = vld [vmem:[%s4330_s28 + $0x120] sm:$0xff]   ;;  %v4198_v3 = vld [vmem:[%s4330_s28 + $0xd0] sm:$0xff]   ;;  %v4200_v4 = vld [vmem:[%s4330_s28 + $0x128] sm:$0xff]  }
  0x22   : > { %v4201_v5 = vld [vmem:[%s4330_s28 + $0xd8] sm:$0xff]   ;;  %v4202_v7 = vld [vmem:[%s4330_s28 + $0x130] sm:$0xff]   ;;  %v4203_v9 = vld [vmem:[%s4330_s28 + $0xe0] sm:$0xff]  }
  0x23   : > { %3668 = vmatmul.mubr.msk.bf16.gmra.mrb[8].mxu1 %vm281_vm1, %v4154_v20  ;;  %3794 = vmatmul.mubr.msk.bf16.gmra.mrb[8].mxu0 %vm281_vm1, %v4155_v21  ;;  %v4215_v10 = vld [vmem:[%s4693_s1 + $0x28] sm:$0x3f]   ;;  %v4217_v11 = vld [vmem:[%s4693_s1 + $0x60] sm:$0x3f]   ;;  %v4204_v12 = vld [vmem:[%s4330_s28 + $0x138] sm:$0xff]  }
  0x24   : > { %3671 = vmatprep.mubr.msk.bf16.mxu1 %vm281_vm1, %v4156_v22  ;;  %3797 = vmatprep.mubr.msk.bf16.mxu0 %vm281_vm1, %v4157_v23  ;;  %v4205_v13 = vld [vmem:[%s4330_s28 + $0xe8] sm:$0xff]   ;;  %v4206_v14 = vld [vmem:[%s4330_s28 + $0x140] sm:$0xff]   ;;  %v4207_v15 = vld [vmem:[%s4330_s28 + $0xf0] sm:$0xff]  }
  0x25   : > { %v4208_v16 = vld [vmem:[%s4330_s28 + $0x148] sm:$0xff]   ;;  %v4209_v17 = vld [vmem:[%s4330_s28 + $0xf8] sm:$0xff]   ;;  %v4210_v18 = vld [vmem:[%s4330_s28 + $0x150] sm:$0xff]  }
  0x26   : > { %v4211_v19 = vld [vmem:[%s4330_s28 + $0x100] sm:$0xff]   ;;  %v4212_v20 = vld [vmem:[%s4330_s28 + $0x158] sm:$0xff]   ;;  %v4213_v21 = vld [vmem:[%s4330_s28 + $0x108] sm:$0xff]  }
  0x27   : > { %v4214_v22 = vld [vmem:[%s4330_s28 + $0x8] sm:$0xff]   ;;  %v4216_v23 = vld [vmem:[%s4330_s28 + $0x130] sm:$0xff]  }
  0x2b   : > { %3672 = vmatmul.mubr.msk.bf16.gmra.mrb[12].mxu1 %vm281_vm1, %v4158_v24  ;;  %3798 = vmatmul.mubr.msk.bf16.gmra.mrb[12].mxu0 %vm281_vm1, %v4159_v25  ;;  %v4218_v24 = vld [vmem:[%s4330_s28 + $0x10] sm:$0xff]   ;;  %v4219_v25 = vld [vmem:[%s4330_s28 + $0x138] sm:$0xff]  }
  0x2c   : > { %3677 = vmatprep.mubr.msk.bf16.mxu1 %vm281_vm1, %v4160_v26  ;;  %3803 = vmatprep.mubr.msk.bf16.mxu0 %vm281_vm1, %v4162_v27  ;;  %v1277_v26 = vsel %vm306_vm0, %v4215_v10, 0  ;;  %v4220_v27 = vld [vmem:[%s4330_s28 + $0x18] sm:$0xff]  }
  0x33   : > { %3678 = vmatmul.mubr.msk.bf16.vlgmr.msra.gmra.mrb[0].mxu1 %vm281_vm1, %v4164_v28  ;;  %3804 = vmatmul.mubr.msk.bf16.vlgmr.msra.gmra.mrb[0].mxu0 %vm281_vm1, %v4165_v29  ;;  %v2705_v28 = vsel %vm306_vm0, %v4217_v11, 0  ;;  %v4221_v29 = vld [vmem:[%s4330_s28 + $0x140] sm:$0xff]  }
  0x34   : > { %3694 = vmatpush3.bf16.msra.mxu1 %v665_v30  ;;  %3820 = vmatpush3.bf16.msra.mxu0 %v2093_v32  ;;  %v4233_v30 = vld [vmem:[%s4693_s1 + $0x30] sm:$0x3f]   ;;  %v4222_v32 = vld [vmem:[%s4330_s28 + $0x20] sm:$0xff]  }
  0x35   : > { %3681 = vmatprep.mubr.msk.bf16.mxu1 %vm281_vm1, %v4166_v31  ;;  %3807 = vmatprep.mubr.msk.bf16.mxu0 %vm281_vm1, %v4167_v33  ;;  %v4235_v31 = vld [vmem:[%s4693_s1 + $0x68] sm:$0x3f]  }
  0x36   : > { %4120 = vmatprep.subr.msk.bf16.mxu1 %vm306_vm0, %v4179_v34  ;;  %4127 = vmatprep.subr.msk.bf16.mxu0 %vm306_vm0, %v4181_v35  ;;  %v4223_v33 = vld [vmem:[%s4330_s28 + $0x148] sm:$0xff]   ;;  %v4225_v35 = vld [vmem:[%s4330_s28 + $0x150] sm:$0xff]  }
  0x37   : > { %v4224_v34 = vld [vmem:[%s4330_s28 + $0x28] sm:$0xff]  }
  0x3b   : > { %3682 = vmatmul.mubr.msk.bf16.gmra.mrb[4].mxu1 %vm281_vm1, %v4168_v36  ;;  %3808 = vmatmul.mubr.msk.bf16.gmra.mrb[4].mxu0 %vm281_vm1, %v4169_v37  ;;  %v4226_v36 = vld [vmem:[%s4330_s28 + $0x30] sm:$0xff]   ;;  %v4227_v37 = vld [vmem:[%s4330_s28 + $0x158] sm:$0xff]  }
  0x3c   : > { %3685 = vmatprep.mubr.msk.bf16.mxu1 %vm281_vm1, %v4170_v38  ;;  %3811 = vmatprep.mubr.msk.bf16.mxu0 %vm281_vm1, %v4171_v39  ;;  %v4228_v38 = vld [vmem:[%s4330_s28 + $0x38] sm:$0xff]   ;;  %v4229_v39 = vld [vmem:[%s4330_s28 + $0x160] sm:$0xff]  }
  0x43   : > { %3686 = vmatmul.mubr.msk.bf16.gmra.mrb[8].mxu1 %vm281_vm1, %v4172_v40  ;;  %3812 = vmatmul.mubr.msk.bf16.gmra.mrb[8].mxu0 %vm281_vm1, %v4173_v41  ;;  %v4230_v40 = vld [vmem:[%s4330_s28 + $0x40] sm:$0xff]   ;;  %v4231_v41 = vld [vmem:[%s4330_s28 + $0x168] sm:$0xff]  }
  0x44   : > { %3689 = vmatprep.mubr.msk.bf16.mxu1 %vm281_vm1, %v4174_v42  ;;  %3815 = vmatprep.mubr.msk.bf16.mxu0 %vm281_vm1, %v4175_v43  ;;  %v4232_v42 = vld [vmem:[%s4330_s28 + $0x68] sm:$0xff]   ;;  %v4234_v43 = vld [vmem:[%s4330_s28 + $0x18] sm:$0xff]  }
  0x4b   : > { %3690 = vmatmul.mubr.msk.bf16.gmra.mrb[12].mxu1 %vm281_vm1, %v4176_v44  ;;  %3816 = vmatmul.mubr.msk.bf16.gmra.mrb[12].mxu0 %vm281_vm1, %v4177_v45  ;;  %v4236_v44 = vld [vmem:[%s4330_s28 + $0x70] sm:$0xff]   ;;  %v4237_v45 = vld [vmem:[%s4330_s28 + $0x20] sm:$0xff]  }
  0x4c   : > { %3695 = vmatprep.mubr.msk.bf16.mxu1 %vm281_vm1, %v4178_v46  ;;  %3821 = vmatprep.mubr.msk.bf16.mxu0 %vm281_vm1, %v4180_v47  ;;  %v1481_v46 = vsel %vm306_vm0, %v4233_v30, 0  ;;  %v4238_v47 = vld [vmem:[%s4330_s28 + $0x78] sm:$0xff]  }
  0x53   : > { %3696 = vmatmul.mubr.msk.bf16.vlgmr.msra.gmra.mrb[0].mxu1 %vm281_vm1, %v4182_v48  ;;  %3822 = vmatmul.mubr.msk.bf16.vlgmr.msra.gmra.mrb[0].mxu0 %vm281_vm1, %v4183_v49  ;;  %v2909_v48 = vsel %vm306_vm0, %v4235_v31, 0  ;;  %v4239_v49 = vld [vmem:[%s4330_s28 + $0x28] sm:$0xff]  }
  0x54   : > { %3712 = vmatpush3.bf16.msra.mxu1 %v869_v50  ;;  %3838 = vmatpush3.bf16.msra.mxu0 %v2297_v52  ;;  %v4240_v50 = vld [vmem:[%s4330_s28 + $0x80] sm:$0xff]   ;;  %v4242_v52 = vld [vmem:[%s4330_s28 + $0x88] sm:$0xff]  }
  0x55   : > { %3699 = vmatprep.mubr.msk.bf16.mxu1 %vm281_vm1, %v4184_v51  ;;  %3825 = vmatprep.mubr.msk.bf16.mxu0 %vm281_vm1, %v4185_v53  ;;  %v4241_v51 = vld [vmem:[%s4330_s28 + $0x30] sm:$0xff]   ;;  %v4243_v53 = vld [vmem:[%s4330_s28 + $0x38] sm:$0xff]  }
  0x56   : > { %4121 = vmatprep.subr.msk.bf16.mxu1 %vm306_vm0, %v4197_v54  ;;  %4128 = vmatprep.subr.msk.bf16.mxu0 %vm306_vm0, %v4199_v55  ;;  %v4244_v54 = vld [vmem:[%s4330_s28 + $0x90] sm:$0xff]   ;;  %v4245_v55 = vld [vmem:[%s4330_s28 + $0x40] sm:$0xff]  }
  0x5b   : > { %3700 = vmatmul.mubr.msk.bf16.gmra.mrb[4].mxu1 %vm281_vm1, %v4186_v56  ;;  %3826 = vmatmul.mubr.msk.bf16.gmra.mrb[4].mxu0 %vm281_vm1, %v4187_v57  ;;  %v4246_v56 = vld [vmem:[%s4330_s28 + $0x98] sm:$0xff]   ;;  %v4247_v57 = vld [vmem:[%s4330_s28 + $0x48] sm:$0xff]  }
  0x5c   : > { %3703 = vmatprep.mubr.msk.bf16.mxu1 %vm281_vm1, %v4188_v58  ;;  %3829 = vmatprep.mubr.msk.bf16.mxu0 %vm281_vm1, %v4189_v59  ;;  %v4248_v58 = vld [vmem:[%s4330_s28 + $0xa0] sm:$0xff]   ;;  %v4249_v59 = vld [vmem:[%s4330_s28 + $0x50] sm:$0xff]  }
  0x63   : > { %3704 = vmatmul.mubr.msk.bf16.gmra.mrb[8].mxu1 %vm281_vm1, %v4190_v60  ;;  %3830 = vmatmul.mubr.msk.bf16.gmra.mrb[8].mxu0 %vm281_vm1, %v4191_v61  ;;  %v4250_v60 = vld [vmem:[%s4330_s28 + $0xc8] sm:$0xff]   ;;  %v4251_v61 = vld [vmem:[%s4330_s28 + $0x78] sm:$0xff]  }
  0x64   : > { %3707 = vmatprep.mubr.msk.bf16.mxu1 %vm281_vm1, %v4192_v62  ;;  %3833 = vmatprep.mubr.msk.bf16.mxu0 %vm281_vm1, %v4193_v63  ;;  %v4252_v62 = vld [vmem:[%s4330_s28 + $0xd0] sm:$0xff]   ;;  %v4253_v63 = vld [vmem:[%s4330_s28 + $0x80] sm:$0xff]  }
  0x6b   : > { %3708 = vmatmul.mubr.msk.bf16.gmra.mrb[12].mxu1 %vm281_vm1, %v4194_v0  ;;  %3834 = vmatmul.mubr.msk.bf16.gmra.mrb[12].mxu0 %vm281_vm1, %v4195_v1  ;;  %v4254_v0 = vld [vmem:[%s4330_s28 + $0xd8] sm:$0xff]   ;;  %v4255_v1 = vld [vmem:[%s4330_s28 + $0x88] sm:$0xff]  }
  0x6c   : > { %3713 = vmatprep.mubr.msk.bf16.mxu1 %vm281_vm1, %v4196_v2  ;;  %3839 = vmatprep.mubr.msk.bf16.mxu0 %vm281_vm1, %v4198_v3  ;;  %v4256_v2 = vld [vmem:[%s4330_s28 + $0xe0] sm:$0xff]   ;;  %v4257_v3 = vld [vmem:[%s4330_s28 + $0x90] sm:$0xff]  }
  0x73   : > { %3714 = vmatmul.mubr.msk.bf16.vlgmr.msra.gmra.mrb[0].mxu1 %vm281_vm1, %v4200_v4  ;;  %3840 = vmatmul.mubr.msk.bf16.vlgmr.msra.gmra.mrb[0].mxu0 %vm281_vm1, %v4201_v5  ;;  %v4258_v4 = vld [vmem:[%s4330_s28 + $0xe8] sm:$0xff]   ;;  %v4259_v5 = vld [vmem:[%s4330_s28 + $0x98] sm:$0xff]  }
  0x74   : > { %3730 = vmatpush3.bf16.msra.mxu1 %v1073_v6  ;;  %3856 = vmatpush3.bf16.msra.mxu0 %v2501_v8  ;;  %v4260_v6 = vld [vmem:[%s4330_s28 + $0xf0] sm:$0xff]   ;;  %v4262_v8 = vld [vmem:[%s4330_s28 + $0xf8] sm:$0xff]  }
  0x75   : > { %3717 = vmatprep.mubr.msk.bf16.mxu1 %vm281_vm1, %v4202_v7  ;;  %3843 = vmatprep.mubr.msk.bf16.mxu0 %vm281_vm1, %v4203_v9  ;;  %v4261_v7 = vld [vmem:[%s4330_s28 + $0xa0] sm:$0xff]   ;;  %v4263_v9 = vld [vmem:[%s4330_s28 + $0xa8] sm:$0xff]  }
  0x76   : > { %4122 = vmatprep.subr.msk.bf16.mxu1 %vm306_vm0, %v4215_v10  ;;  %4129 = vmatprep.subr.msk.bf16.mxu0 %vm306_vm0, %v4217_v11  ;;  %v4264_v10 = vld [vmem:[%s4330_s28 + $0x100] sm:$0xff]   ;;  %v4265_v11 = vld [vmem:[%s4330_s28 + $0xb0] sm:$0xff]   ;;  %s3514_s28 = sshll.u32 %s4698_s16, 6 }
  0x77   : > { %s4630_s6 = scalar_lea.vmem %s4696_s4, %s3514_s28 }
  0x7b   : > { %3718 = vmatmul.mubr.msk.bf16.gmra.mrb[4].mxu1 %vm281_vm1, %v4204_v12  ;;  %3844 = vmatmul.mubr.msk.bf16.gmra.mrb[4].mxu0 %vm281_vm1, %v4205_v13 }
  0x7c   : > { %3721 = vmatprep.mubr.msk.bf16.mxu1 %vm281_vm1, %v4206_v14  ;;  %3847 = vmatprep.mubr.msk.bf16.mxu0 %vm281_vm1, %v4207_v15  ;;  %v4612_v14 = vld [vmem:[%s4694_s2] ss:$0 sm:$0xff] }
  0x83   : > { %3722 = vmatmul.mubr.msk.bf16.gmra.mrb[8].mxu1 %vm281_vm1, %v4208_v16  ;;  %3848 = vmatmul.mubr.msk.bf16.gmra.mrb[8].mxu0 %vm281_vm1, %v4209_v17 }
  0x84   : > { %3725 = vmatprep.mubr.msk.bf16.mxu1 %vm281_vm1, %v4210_v18  ;;  %3851 = vmatprep.mubr.msk.bf16.mxu0 %vm281_vm1, %v4211_v19  ;;  %v4617_v19 = vld [vmem:[%s4695_s3] ss:$0 sm:$0xff] }
  0x8b   : > { %3726 = vmatmul.mubr.msk.bf16.gmra.mrb[12].mxu1 %vm281_vm1, %v4212_v20  ;;  %3852 = vmatmul.mubr.msk.bf16.gmra.mrb[12].mxu0 %vm281_vm1, %v4213_v21 }
  0x8c   : > { %3731 = vmatprep.mubr.msk.bf16.mxu1 %vm281_vm1, %v4214_v22  ;;  %3857 = vmatprep.mubr.msk.bf16.mxu0 %vm281_vm1, %v4216_v23 }
  0x93   : > { %3732 = vmatmul.mubr.msk.bf16.vlgmr.msra.gmra.mrb[0].mxu1 %vm281_vm1, %v4218_v24  ;;  %3858 = vmatmul.mubr.msk.bf16.vlgmr.msra.gmra.mrb[0].mxu0 %vm281_vm1, %v4219_v25 }
  0x94   : > { %3748 = vmatpush3.bf16.msra.mxu1 %v1277_v26  ;;  %3874 = vmatpush3.bf16.msra.mxu0 %v2705_v28 }
  0x95   : > { %3735 = vmatprep.mubr.msk.bf16.mxu1 %vm281_vm1, %v4220_v27  ;;  %3861 = vmatprep.mubr.msk.bf16.mxu0 %vm281_vm1, %v4221_v29 }
  0x96   : > { %4123 = vmatprep.subr.msk.bf16.mxu1 %vm306_vm0, %v4233_v30  ;;  %4130 = vmatprep.subr.msk.bf16.mxu0 %vm306_vm0, %v4235_v31 }
  0x9b   : > { %3736 = vmatmul.mubr.msk.bf16.gmra.mrb[4].mxu1 %vm281_vm1, %v4222_v32  ;;  %3862 = vmatmul.mubr.msk.bf16.gmra.mrb[4].mxu0 %vm281_vm1, %v4223_v33 }
  0x9c   : > { %3739 = vmatprep.mubr.msk.bf16.mxu1 %vm281_vm1, %v4224_v34  ;;  %3865 = vmatprep.mubr.msk.bf16.mxu0 %vm281_vm1, %v4225_v35 }
  0xa3   : > { %3740 = vmatmul.mubr.msk.bf16.gmra.mrb[8].mxu1 %vm281_vm1, %v4226_v36  ;;  %3866 = vmatmul.mubr.msk.bf16.gmra.mrb[8].mxu0 %vm281_vm1, %v4227_v37 }
  0xa4   : > { %3743 = vmatprep.mubr.msk.bf16.mxu1 %vm281_vm1, %v4228_v38  ;;  %3869 = vmatprep.mubr.msk.bf16.mxu0 %vm281_vm1, %v4229_v39 }
  0xab   : > { %3744 = vmatmul.mubr.msk.bf16.gmra.mrb[12].mxu1 %vm281_vm1, %v4230_v40  ;;  %3870 = vmatmul.mubr.msk.bf16.gmra.mrb[12].mxu0 %vm281_vm1, %v4231_v41 }
  0xac   : > { %3749 = vmatprep.mubr.msk.bf16.mxu1 %vm281_vm1, %v4232_v42  ;;  %3875 = vmatprep.mubr.msk.bf16.mxu0 %vm281_vm1, %v4234_v43 }
  0xb3   : > { %3750 = vmatmul.mubr.msk.bf16.vlgmr.msra.gmra.mrb[0].mxu1 %vm281_vm1, %v4236_v44  ;;  %3876 = vmatmul.mubr.msk.bf16.vlgmr.msra.gmra.mrb[0].mxu0 %vm281_vm1, %v4237_v45 }
  0xb4   : > { %3766 = vmatpush3.bf16.msra.mxu1 %v1481_v46  ;;  %3892 = vmatpush3.bf16.msra.mxu0 %v2909_v48 }
  0xb5   : > { %3753 = vmatprep.mubr.msk.bf16.mxu1 %vm281_vm1, %v4238_v47  ;;  %3879 = vmatprep.mubr.msk.bf16.mxu0 %vm281_vm1, %v4239_v49 }
  0xbb   : > { %3754 = vmatmul.mubr.msk.bf16.gmra.mrb[4].mxu1 %vm281_vm1, %v4240_v50  ;;  %3880 = vmatmul.mubr.msk.bf16.gmra.mrb[4].mxu0 %vm281_vm1, %v4241_v51 }
  0xbc   : > { %3757 = vmatprep.mubr.msk.bf16.mxu1 %vm281_vm1, %v4242_v52  ;;  %3883 = vmatprep.mubr.msk.bf16.mxu0 %vm281_vm1, %v4243_v53 }
  0xc3   : > { %3758 = vmatmul.mubr.msk.bf16.gmra.mrb[8].mxu1 %vm281_vm1, %v4244_v54  ;;  %3884 = vmatmul.mubr.msk.bf16.gmra.mrb[8].mxu0 %vm281_vm1, %v4245_v55 }
  0xc4   : > { %3761 = vmatprep.mubr.msk.bf16.mxu1 %vm281_vm1, %v4246_v56  ;;  %3887 = vmatprep.mubr.msk.bf16.mxu0 %vm281_vm1, %v4247_v57 }
  0xcb   : > { %3762 = vmatmul.mubr.msk.bf16.gmra.mrb[12].mxu1 %vm281_vm1, %v4248_v58  ;;  %3888 = vmatmul.mubr.msk.bf16.gmra.mrb[12].mxu0 %vm281_vm1, %v4249_v59 }
  0xcc   : > { %3767 = vmatprep.mubr.msk.bf16.mxu1 %vm281_vm1, %v4250_v60  ;;  %3893 = vmatprep.mubr.msk.bf16.mxu0 %vm281_vm1, %v4251_v61 }
  0xd3   : > { %3768 = vmatmul.mubr.msk.bf16.vlgmr.msra.gmra.mrb[0].mxu1 %vm281_vm1, %v4252_v62  ;;  %3894 = vmatmul.mubr.msk.bf16.vlgmr.msra.gmra.mrb[0].mxu0 %vm281_vm1, %v4253_v63 }
  0xd4   : > { %3771 = vmatprep.mubr.msk.bf16.mxu1 %vm281_vm1, %v4254_v0  ;;  %3897 = vmatprep.mubr.msk.bf16.mxu0 %vm281_vm1, %v4255_v1 }
  0xdb   : > { %3772 = vmatmul.mubr.msk.bf16.gmra.mrb[4].mxu1 %vm281_vm1, %v4256_v2  ;;  %3898 = vmatmul.mubr.msk.bf16.gmra.mrb[4].mxu0 %vm281_vm1, %v4257_v3 }
  0xdc   : > { %3775 = vmatprep.mubr.msk.bf16.mxu1 %vm281_vm1, %v4258_v4  ;;  %3901 = vmatprep.mubr.msk.bf16.mxu0 %vm281_vm1, %v4259_v5 }
  0xe3   : > { %3776 = vmatmul.mubr.msk.bf16.gmra.mrb[8].mxu1 %vm281_vm1, %v4260_v6  ;;  %3902 = vmatmul.mubr.msk.bf16.gmra.mrb[8].mxu0 %vm281_vm1, %v4261_v7 }
  0xe4   : > { %3779 = vmatprep.mubr.msk.bf16.mxu1 %vm281_vm1, %v4262_v8  ;;  %3905 = vmatprep.mubr.msk.bf16.mxu0 %vm281_vm1, %v4263_v9 }
  0xeb   : > { %3780 = vmatmul.mubr.msk.bf16.gmra.mrb[12].mxu1 %vm281_vm1, %v4264_v10  ;;  %3906 = vmatmul.mubr.msk.bf16.gmra.mrb[12].mxu0 %vm281_vm1, %v4265_v11 }
 0x1a6   : > { %v3769_v12 = vpop.f32.mrb[0].mxu1  ;;  %v3895_v13 = vpop.f32.mrb[0].mxu0 }
 0x1a7   : > { %v1517_v15 = vpop.f32.mrb[1].mxu1  ;;  %v3909_v16 = vadd.f32 %v3895_v13, %v3769_v12  ;;  %v2945_v17 = vpop.f32.mrb[1].mxu0 }
 0x1a8   : > { %v3770_v18 = vpop.f32.mrb[2].mxu1  ;;  %v3910_v20 = vadd.f32 %v2945_v17, %v1517_v15  ;;  %v3896_v21 = vpop.f32.mrb[2].mxu0 }
 0x1a9   : > { %v1520_v22 = vpop.f32.mrb[3].mxu1  ;;  %v3033_v23 = vmul.f32 %v3909_v16, %v4612_v14  ;;  %v3911_v24 = vadd.f32 %v3896_v21, %v3770_v18  ;;  %v2948_v25 = vpop.f32.mrb[3].mxu0 }
 0x1aa   : > { %v3031_v26 = vmul.f32 %v3910_v20, %v4612_v14  ;;  %v3912_v27 = vadd.f32 %v2948_v25, %v1520_v22 }
 0x1ab   : > { %v3056_v28 = vadd.f32 %v4617_v19, %v3033_v23  ;;  %v3034_v29 = vmul.f32 %v3911_v24, %v4612_v14 }
 0x1ac   : > { %v3054_v30 = vadd.f32 %v4617_v19, %v3031_v26  ;;  %v3032_v31 = vmul.f32 %v3912_v27, %v4612_v14 }
 0x1ad   : > { %v3072_v32 = vmax.f32 %v3056_v28, 0.0  ;;  %v3057_v33 = vadd.f32 %v4617_v19, %v3034_v29 }
 0x1ae   : > { %v3773_v34 = vpop.f32.mrb[4].mxu1  ;;  %v3070_v35 = vmax.f32 %v3054_v30, 0.0  ;;  %v3055_v36 = vadd.f32 %v4617_v19, %v3032_v31  ;;  %v3899_v37 = vpop.f32.mrb[4].mxu0 }
 0x1af   : > { %v1533_v38 = vpop.f32.mrb[5].mxu1  ;;  %v3517_v39 = vpack.c.bf16 %v3072_v32, %v3072_v32  ;;  %v3073_v40 = vmax.f32 %v3057_v33, 0.0  ;;  %v3913_v41 = vadd.f32 %v3899_v37, %v3773_v34  ;;  %v2961_v42 = vpop.f32.mrb[5].mxu0 }
 0x1b0   : > { %v3774_v43 = vpop.f32.mrb[6].mxu1  ;;  %v3515_v44 = vpack.c.bf16 %v3070_v35, %v3070_v35  ;;  %v3071_v45 = vmax.f32 %v3055_v36, 0.0  ;;  %v3914_v46 = vadd.f32 %v2961_v42, %v1533_v38  ;;  %v3900_v47 = vpop.f32.mrb[6].mxu0 }
 0x1b1   : > { %v1536_v48 = vpop.f32.mrb[7].mxu1  ;;  %3153 = vst.msk [vmem:[%s4630_s6 + $0x8] sm:$0xf] %vm3150_vm2, %v3517_v39  ;;  %v3518_v49 = vpack.c.bf16 %v3073_v40, %v3073_v40  ;;  %v3037_v50 = vmul.f32 %v3913_v41, %v4612_v14  ;;  %v3915_v51 = vadd.f32 %v3900_v47, %v3774_v43  ;;  %v2964_v52 = vpop.f32.mrb[7].mxu0 }
 0x1b2   : > { %3151 = vst.msk [vmem:[%s4630_s6] sm:$0xf] %vm3150_vm2, %v3515_v44  ;;  %v3516_v53 = vpack.c.bf16 %v3071_v45, %v3071_v45  ;;  %v3035_v54 = vmul.f32 %v3914_v46, %v4612_v14  ;;  %v3916_v55 = vadd.f32 %v2964_v52, %v1536_v48 }
 0x1b3   : > { %3154 = vst.msk [vmem:[%s4630_s6 + $0xc] sm:$0xf] %vm3150_vm2, %v3518_v49  ;;  %v3060_v56 = vadd.f32 %v4617_v19, %v3037_v50  ;;  %v3038_v57 = vmul.f32 %v3915_v51, %v4612_v14 }
 0x1b4   : > { %3152 = vst.msk [vmem:[%s4630_s6 + $0x4] sm:$0xf] %vm3150_vm2, %v3516_v53  ;;  %v3058_v58 = vadd.f32 %v4617_v19, %v3035_v54  ;;  %v3036_v59 = vmul.f32 %v3916_v55, %v4612_v14 }
 0x1b5   : > { %v3076_v60 = vmax.f32 %v3060_v56, 0.0  ;;  %v3061_v61 = vadd.f32 %v4617_v19, %v3038_v57 }
 0x1b6   : > { %v3777_v62 = vpop.f32.mrb[8].mxu1  ;;  %v3074_v63 = vmax.f32 %v3058_v58, 0.0  ;;  %v3059_v0 = vadd.f32 %v4617_v19, %v3036_v59  ;;  %v3903_v1 = vpop.f32.mrb[8].mxu0 }
 0x1b7   : > { %v1549_v2 = vpop.f32.mrb[9].mxu1  ;;  %v3521_v3 = vpack.c.bf16 %v3076_v60, %v3076_v60  ;;  %v3077_v4 = vmax.f32 %v3061_v61, 0.0  ;;  %v3917_v5 = vadd.f32 %v3903_v1, %v3777_v62  ;;  %v2977_v6 = vpop.f32.mrb[9].mxu0 }
 0x1b8   : > { %v3778_v7 = vpop.f32.mrb[10].mxu1  ;;  %v3519_v8 = vpack.c.bf16 %v3074_v63, %v3074_v63  ;;  %v3075_v9 = vmax.f32 %v3059_v0, 0.0  ;;  %v3918_v10 = vadd.f32 %v2977_v6, %v1549_v2  ;;  %v3904_v11 = vpop.f32.mrb[10].mxu0 }
 0x1b9   : > { %v1552_v12 = vpop.f32.mrb[11].mxu1  ;;  %3157 = vst.msk [vmem:[%s4630_s6 + $0x18] sm:$0xf] %vm3150_vm2, %v3521_v3  ;;  %v3522_v13 = vpack.c.bf16 %v3077_v4, %v3077_v4  ;;  %v3041_v15 = vmul.f32 %v3917_v5, %v4612_v14  ;;  %v3919_v16 = vadd.f32 %v3904_v11, %v3778_v7  ;;  %v2980_v17 = vpop.f32.mrb[11].mxu0 }
 0x1ba   : > { %3155 = vst.msk [vmem:[%s4630_s6 + $0x10] sm:$0xf] %vm3150_vm2, %v3519_v8  ;;  %v3520_v18 = vpack.c.bf16 %v3075_v9, %v3075_v9  ;;  %v3039_v20 = vmul.f32 %v3918_v10, %v4612_v14  ;;  %v3920_v21 = vadd.f32 %v2980_v17, %v1552_v12 }
 0x1bb   : > { %3158 = vst.msk [vmem:[%s4630_s6 + $0x1c] sm:$0xf] %vm3150_vm2, %v3522_v13  ;;  %v3064_v22 = vadd.f32 %v4617_v19, %v3041_v15  ;;  %v3042_v23 = vmul.f32 %v3919_v16, %v4612_v14 }
 0x1bc   : > { %3156 = vst.msk [vmem:[%s4630_s6 + $0x14] sm:$0xf] %vm3150_vm2, %v3520_v18  ;;  %v3062_v24 = vadd.f32 %v4617_v19, %v3039_v20  ;;  %v3040_v25 = vmul.f32 %v3920_v21, %v4612_v14 }
 0x1bd   : > { %v3080_v26 = vmax.f32 %v3064_v22, 0.0  ;;  %v3065_v27 = vadd.f32 %v4617_v19, %v3042_v23 }
 0x1be   : > { %v3781_v28 = vpop.f32.mrb[12].mxu1  ;;  %v3078_v29 = vmax.f32 %v3062_v24, 0.0  ;;  %v3063_v30 = vadd.f32 %v4617_v19, %v3040_v25  ;;  %v3907_v31 = vpop.f32.mrb[12].mxu0 }
 0x1bf   : > { %v1565_v32 = vpop.f32.mrb[13].mxu1  ;;  %v3525_v33 = vpack.c.bf16 %v3080_v26, %v3080_v26  ;;  %v3081_v34 = vmax.f32 %v3065_v27, 0.0  ;;  %v3921_v35 = vadd.f32 %v3907_v31, %v3781_v28  ;;  %v2993_v36 = vpop.f32.mrb[13].mxu0 }
 0x1c0   : > { %v3782_v37 = vpop.f32.mrb[14].mxu1  ;;  %v3523_v38 = vpack.c.bf16 %v3078_v29, %v3078_v29  ;;  %v3079_v39 = vmax.f32 %v3063_v30, 0.0  ;;  %v3922_v40 = vadd.f32 %v2993_v36, %v1565_v32  ;;  %v3908_v41 = vpop.f32.mrb[14].mxu0 }
 0x1c1   : > { %v1568_v42 = vpop.f32.mrb[15].mxu1  ;;  %3161 = vst.msk [vmem:[%s4630_s6 + $0x28] sm:$0xf] %vm3150_vm2, %v3525_v33  ;;  %v3526_v43 = vpack.c.bf16 %v3081_v34, %v3081_v34  ;;  %v3045_v44 = vmul.f32 %v3921_v35, %v4612_v14  ;;  %v3923_v45 = vadd.f32 %v3908_v41, %v3782_v37  ;;  %v2996_v46 = vpop.f32.mrb[15].mxu0 }
 0x1c2   : > { %3159 = vst.msk [vmem:[%s4630_s6 + $0x20] sm:$0xf] %vm3150_vm2, %v3523_v38  ;;  %v3524_v47 = vpack.c.bf16 %v3079_v39, %v3079_v39  ;;  %v3043_v48 = vmul.f32 %v3922_v40, %v4612_v14  ;;  %v3924_v49 = vadd.f32 %v2996_v46, %v1568_v42 }
 0x1c3   : > { %3162 = vst.msk [vmem:[%s4630_s6 + $0x2c] sm:$0xf] %vm3150_vm2, %v3526_v43  ;;  %v3068_v50 = vadd.f32 %v4617_v19, %v3045_v44  ;;  %v3046_v51 = vmul.f32 %v3923_v45, %v4612_v14 }
 0x1c4   : > { %3160 = vst.msk [vmem:[%s4630_s6 + $0x24] sm:$0xf] %vm3150_vm2, %v3524_v47  ;;  %v3066_v52 = vadd.f32 %v4617_v19, %v3043_v48  ;;  %v3044_v53 = vmul.f32 %v3924_v49, %v4612_v14 }
 0x1c5   : > { %v3084_v54 = vmax.f32 %v3068_v50, 0.0  ;;  %v3069_v55 = vadd.f32 %v4617_v19, %v3046_v51 }
 0x1c6   : > { %v3082_v56 = vmax.f32 %v3066_v52, 0.0  ;;  %v3067_v57 = vadd.f32 %v4617_v19, %v3044_v53 }
 0x1c7   : > { %v3529_v58 = vpack.c.bf16 %v3084_v54, %v3084_v54  ;;  %v3085_v59 = vmax.f32 %v3069_v55, 0.0 }
 0x1c8   : > { %v3527_v60 = vpack.c.bf16 %v3082_v56, %v3082_v56  ;;  %v3083_v61 = vmax.f32 %v3067_v57, 0.0 }
 0x1c9   : > { %3165 = vst.msk [vmem:[%s4630_s6 + $0x38] sm:$0xf] %vm3150_vm2, %v3529_v58  ;;  %v3530_v62 = vpack.c.bf16 %v3085_v59, %v3085_v59 }
 0x1ca   : > { %3163 = vst.msk [vmem:[%s4630_s6 + $0x30] sm:$0xf] %vm3150_vm2, %v3527_v60  ;;  %v3528_v63 = vpack.c.bf16 %v3083_v61, %v3083_v61 }
 0x1cb   : > { %3166 = vst.msk [vmem:[%s4630_s6 + $0x3c] sm:$0xf] %vm3150_vm2, %v3530_v62 }
 0x1cc   : > { %3164 = vst.msk [vmem:[%s4630_s6 + $0x34] sm:$0xf] %vm3150_vm2, %v3528_v63 }
 0x1cd PF: > { %s14_s15 = sadd.s32 1, %s4272_s15  }
 0x1ce   : > { %p11_p4 = scmp.ge.s32.totalorder %s14_s15, 4  }
 0x1d0   :  { %13 = sbr.rel (!%p11_p4) target bundleno = 1 (0x1), region = 79 }

// kernel: _lambda_.25
= control target key start
LH: loop header
LB: loop body
LE: loop exit
PB: predicated region body
PF: predicated region fallthrough
CT: control target
= control target key end

     0   :  { %s982_s18 = smov 0   ;;  %s1092_s0 = inlined_call_operand.vmem [shape: bf16[2,112,24], index: 0, kind: input, shape index: {}]   ;;  %s1093_s1 = inlined_call_operand.vmem [shape: bf16[3,24,8], index: 1, kind: input, shape index: {}]   ;;  %s1094_s2 = inlined_call_operand.vmem [shape: f32[1,8], index: 2, kind: input, shape index: {}]   ;;  %s1095_s3 = inlined_call_operand.vmem [shape: f32[1,8], index: 3, kind: input, shape index: {}]   ;;  %s1096_s4 = inlined_call_operand.vmem [shape: bf16[2,64,8], index: 4, kind: input, shape index: {}]   ;;  %s1097_s5 = inlined_call_operand.vmem [shape: bf16[2,64,8], index: 5, kind: output, shape index: {}]  }
   0x1 LB: > { %s758_s19 = sadd.s32 4294967295, %s950_s18   ;;  %p762_p0 = scmp.ge.s32.totalorder %s950_s18, 1  ;;  %s950_s18 = sphi %s982_s18, %s15_s18  }
   0x2   : > { %p197_p1 = scmp.lt.s32.totalorder %s950_s18, 3 }
   0x4   : > { %p198_p2 = pnand %p762_p0, %p197_p1 }
   0x5   : > { %v929_v0 = vld [vmem:[%s1093_s1 + $0xc] sm:$0xff] (!%p198_p2)   ;;  %vm305_vm0 = vcmask (!%p198_p2), 1043456   ;;  %v930_v1 = vld [vmem:[%s1093_s1] sm:$0xff] (!%p198_p2)   ;;  %p230_p3 = scmp.lt.s32.totalorder (!%p198_p2), %s758_s19, 1  ;;  %v931_v2 = vld [vmem:[%s1093_s1 + $0x14] ss:$0 sps:$4 sm:$0xff] (!%p198_p2)  }
   0x6   : > { %201 = sbr.rel (%p198_p2) target bundleno = 267 (0x10b), region = 40  ;;  %860 = vmatprep.subr.bf16.mxu1 (!%p198_p2), %v929_v0  ;;  %872 = vmatprep.subr.bf16.mxu0 (!%p198_p2), %v930_v1  ;;  %v932_v3 = vld [vmem:[%s1093_s1 + $0x8] ss:$0 sps:$4 sm:$0xff] (!%p198_p2)   ;;  %v307_v4 = vsel (!%p198_p2), %vm305_vm0, %v931_v2, 0  ;;  %v936_v6 = vld [vmem:[%s1093_s1 + $0x18] sm:$0xff] (!%p198_p2)   ;;  %vm292_vm1 = vcmask (!%p198_p2), 195584  }
   0x7   : > { %861 = vmatpush3.bf16.msra.mxu1 (!%p198_p2), %v929_v0  ;;  %873 = vmatpush3.bf16.msra.mxu0 (!%p198_p2), %v930_v1  ;;  %v392_v5 = vsel (!%p198_p2), %vm305_vm0, %v932_v3, 0  ;;  %v937_v8 = vld [vmem:[%s1093_s1 + $0x20] ss:$0 sps:$4 sm:$0xff] (!%p198_p2)   ;;  %vm682_vm2 = vcmask (!%p198_p2), 60416  }
   0x8   : > { %916 = vmatprep.subr.msk.bf16.mxu1 (!%p198_p2), %vm305_vm0, %v931_v2  ;;  %917 = vmatprep.subr.msk.bf16.mxu0 (!%p198_p2), %vm305_vm0, %v932_v3  ;;  %v513_v13 = vsel (!%p198_p2), %vm305_vm0, %v937_v8, 0  ;;  %v801_v23 = vld [vmem:[%s1094_s2] ss:$0 sm:$0xff] (!%p198_p2) }
   0x9   : > { %v1056_v28 = vld [vmem:[%s1095_s3] ss:$0 sm:$0xff] (!%p198_p2) }
   0xb   : > { %863 = vmatpush3.bf16.msra.mxu1 (!%p198_p2), %v307_v4  ;;  %875 = vmatpush3.bf16.msra.mxu0 (!%p198_p2), %v392_v5 }
   0xc   : > { %896 = vmatprep.subr.bf16.mxu1 (!%p198_p2), %v930_v1  ;;  %884 = vmatprep.subr.bf16.mxu0 (!%p198_p2), %v936_v6 }
   0xd   : > { %s1099_s19 = smov (!%p230_p3, %s758_s19), 1 }
   0xe   : > { %s920_s28 = smul.u32 56, %s1099_s19  ;;  %s813_s11 = sshll.u32 %s1099_s19, 5 }
   0xf   : > { %s239_s14 = scalar_lea.vmem %s1096_s4, %s813_s11  ;;  %s1067_s23 = scalar_lea.vmem %s1097_s5, %s813_s11 }
  0x10   : > { %s1015_s8 = scalar_lea.vmem %s1092_s0, %s920_s28  ;;  %v839_v24 = vld [vmem:[%s239_s14 + $0x8] sm:$0xff]   ;;  %v824_v27 = vld [vmem:[%s239_s14] sm:$0xff]   ;;  %v841_v44 = vld [vmem:[%s239_s14 + $0x18] sm:$0xff]  }
  0x11   : > { %v933_v7 = vld [vmem:[%s1015_s8 + $0x8] sm:$0xff]   ;;  %v934_v9 = vld [vmem:[%s1015_s8] sm:$0xff]   ;;  %v935_v10 = vld [vmem:[%s1015_s8 + $0x10] sm:$0xff]   ;;  %v829_v32 = vunpack.c.l.bf16 %v839_v24  ;;  %v825_v36 = vunpack.c.l.bf16 %v824_v27  ;;  %v830_v40 = vunpack.c.h.bf16 %v839_v24  ;;  %v826_v43 = vunpack.c.h.bf16 %v824_v27 }
  0x12   : > { %864 = vmatprep.mubr.msk.bf16.mxu1 %vm292_vm1, %v933_v7  ;;  %876 = vmatprep.mubr.msk.bf16.mxu0 %vm292_vm1, %v934_v9  ;;  %v938_v11 = vld [vmem:[%s1015_s8 + $0x18] sm:$0xff]   ;;  %v940_v12 = vld [vmem:[%s1015_s8 + $0x10] sm:$0xff]   ;;  %v939_v14 = vld [vmem:[%s1015_s8 + $0x20] sm:$0xff]   ;;  %v837_v55 = vunpack.c.l.bf16 %v841_v44 }
  0x13   : > { %865 = vmatmul.mubr.msk.bf16.vlgmr.msra.gmra.mrb[0].mxu1 %vm292_vm1, %v935_v10  ;;  %877 = vmatmul.mubr.msk.bf16.vlgmr.msra.gmra.mrb[0].mxu0 %vm292_vm1, %v933_v7  ;;  %v941_v15 = vld [vmem:[%s1015_s8 + $0x18] sm:$0xff]   ;;  %v942_v16 = vld [vmem:[%s1015_s8 + $0x20] sm:$0xff]   ;;  %v943_v17 = vld [vmem:[%s1015_s8 + $0x28] sm:$0xff]  }
  0x14   : > { %898 = vmatpush3.bf16.msra.mxu1 %v930_v1  ;;  %885 = vmatpush3.bf16.msra.mxu0 %v936_v6  ;;  %v840_v47 = vld [vmem:[%s239_s14 + $0x10] sm:$0xff]  }
  0x15   : > { %919 = vmatprep.subr.msk.bf16.mxu0 %vm305_vm0, %v937_v8  ;;  %868 = vmatprep.mubr.msk.bf16.mxu1 %vm292_vm1, %v938_v11  ;;  %v833_v61 = vunpack.c.l.bf16 %v840_v47 }
  0x16   : > { %918 = vmatprep.subr.msk.bf16.mxu1 %vm305_vm0, %v932_v3  ;;  %888 = vmatprep.mubr.msk.bf16.mxu0 %vm292_vm1, %v940_v12 }
  0x18   : > { %887 = vmatpush3.bf16.msra.mxu0 %v513_v13  ;;  %899 = vmatpush3.bf16.msra.mxu1 %v392_v5  ;;  %v838_v13 = vunpack.c.h.bf16 %v841_v44 }
  0x1b   : > { %869 = vmatmul.mubr.msk.bf16.gmra.mrb[4].mxu1 %vm292_vm1, %v939_v14 }
  0x1c   : > { %880 = vmatprep.mubr.msk.bf16.mxu1 %vm292_vm1, %v935_v10 }
  0x1f   : > { %889 = vmatmul.mubr.msk.bf16.vlgmr.msra.gmra.mrb[0].mxu0 %vm292_vm1, %v941_v15 }
  0x20   : > { %892 = vmatprep.mubr.msk.bf16.mxu0 %vm292_vm1, %v942_v16 }
  0x27   : > { %881 = vmatmul.mubr.msk.bf16.vlgmr.msra.gmra.mrb[4].mxu1 %vm292_vm1, %v938_v11  ;;  %893 = vmatmul.mubr.msk.bf16.gmra.mrb[4].mxu0 %vm292_vm1, %v943_v17  ;;  %v834_v17 = vunpack.c.h.bf16 %v840_v47 }
  0xe6   : > { %v866_v18 = vpop.f32.mrb[0].mxu1 }
  0xe7   : > { %v343_v19 = vpop.f32.mrb[1].mxu1 }
  0xe8   : > { %v867_v20 = vpop.f32.mrb[2].mxu1 }
  0xe9   : > { %v346_v21 = vpop.f32.mrb[3].mxu1 }
  0xf2   : > { %v890_v22 = vpop.f32.mrb[0].mxu0 }
  0xf3   : > { %v900_v25 = vadd.f32 %v890_v22, %v866_v18  ;;  %v549_v26 = vpop.f32.mrb[1].mxu0 }
  0xf4   : > { %v901_v29 = vadd.f32 %v549_v26, %v343_v19  ;;  %v891_v30 = vpop.f32.mrb[2].mxu0 }
  0xf5   : > { %v597_v31 = vmul.f32 %v900_v25, %v801_v23  ;;  %v902_v33 = vadd.f32 %v891_v30, %v867_v20  ;;  %v552_v34 = vpop.f32.mrb[3].mxu0 }
  0xf6   : > { %v595_v35 = vmul.f32 %v901_v29, %v801_v23  ;;  %v903_v37 = vadd.f32 %v552_v34, %v346_v21 }
  0xf7   : > { %v612_v38 = vadd.f32 %v1056_v28, %v597_v31  ;;  %v598_v39 = vmul.f32 %v902_v33, %v801_v23 }
  0xf8   : > { %v610_v41 = vadd.f32 %v1056_v28, %v595_v35  ;;  %v596_v42 = vmul.f32 %v903_v37, %v801_v23 }
  0xf9   : > { %v636_v45 = vadd.f32 %v829_v32, %v612_v38  ;;  %v613_v46 = vadd.f32 %v1056_v28, %v598_v39 }
  0xfa   : > { %v634_v48 = vadd.f32 %v825_v36, %v610_v41  ;;  %v611_v49 = vadd.f32 %v1056_v28, %v596_v42  ;;  %v882_v50 = vpop.f32.mrb[4].mxu1  ;;  %v894_v51 = vpop.f32.mrb[4].mxu0 }
  0xfb   : > { %v644_v52 = vmax.f32 %v636_v45, 0.0  ;;  %v637_v53 = vadd.f32 %v830_v40, %v613_v46  ;;  %v904_v54 = vadd.f32 %v894_v51, %v882_v50  ;;  %v444_v56 = vpop.f32.mrb[5].mxu1  ;;  %v565_v57 = vpop.f32.mrb[5].mxu0 }
  0xfc   : > { %v642_v58 = vmax.f32 %v634_v48, 0.0  ;;  %v635_v59 = vadd.f32 %v826_v43, %v611_v49  ;;  %v905_v60 = vadd.f32 %v565_v57, %v444_v56  ;;  %v883_v62 = vpop.f32.mrb[6].mxu1  ;;  %v895_v63 = vpop.f32.mrb[6].mxu0 }
  0xfd   : > { %v817_v0 = vpack.c.bf16 %v644_v52, %v644_v52  ;;  %v645_v1 = vmax.f32 %v637_v53, 0.0  ;;  %v601_v2 = vmul.f32 %v904_v54, %v801_v23  ;;  %v906_v3 = vadd.f32 %v895_v63, %v883_v62  ;;  %v447_v4 = vpop.f32.mrb[7].mxu1  ;;  %v568_v5 = vpop.f32.mrb[7].mxu0 }
  0xfe   : > { %v815_v6 = vpack.c.bf16 %v642_v58, %v642_v58  ;;  %v643_v7 = vmax.f32 %v635_v59, 0.0  ;;  %v599_v8 = vmul.f32 %v905_v60, %v801_v23  ;;  %v907_v9 = vadd.f32 %v568_v5, %v447_v4 }
  0xff   : > { %685 = vst.msk [vmem:[%s1067_s23 + $0x8] sm:$0xf] %vm682_vm2, %v817_v0  ;;  %v818_v10 = vpack.c.bf16 %v645_v1, %v645_v1  ;;  %v616_v11 = vadd.f32 %v1056_v28, %v601_v2  ;;  %v602_v12 = vmul.f32 %v906_v3, %v801_v23 }
 0x100   : > { %683 = vst.msk [vmem:[%s1067_s23] sm:$0xf] %vm682_vm2, %v815_v6  ;;  %v816_v14 = vpack.c.bf16 %v643_v7, %v643_v7  ;;  %v614_v15 = vadd.f32 %v1056_v28, %v599_v8  ;;  %v600_v16 = vmul.f32 %v907_v9, %v801_v23 }
 0x101   : > { %686 = vst.msk [vmem:[%s1067_s23 + $0xc] sm:$0xf] %vm682_vm2, %v818_v10  ;;  %v640_v18 = vadd.f32 %v837_v55, %v616_v11  ;;  %v617_v19 = vadd.f32 %v1056_v28, %v602_v12 }
 0x102   : > { %684 = vst.msk [vmem:[%s1067_s23 + $0x4] sm:$0xf] %vm682_vm2, %v816_v14  ;;  %v638_v20 = vadd.f32 %v833_v61, %v614_v15  ;;  %v615_v21 = vadd.f32 %v1056_v28, %v600_v16 }
 0x103   : > { %v648_v22 = vmax.f32 %v640_v18, 0.0  ;;  %v641_v24 = vadd.f32 %v838_v13, %v617_v19 }
 0x104   : > { %v646_v25 = vmax.f32 %v638_v20, 0.0  ;;  %v639_v26 = vadd.f32 %v834_v17, %v615_v21 }
 0x105   : > { %v821_v23 = vpack.c.bf16 %v648_v22, %v648_v22  ;;  %v649_v27 = vmax.f32 %v641_v24, 0.0 }
 0x106   : > { %v819_v29 = vpack.c.bf16 %v646_v25, %v646_v25  ;;  %v647_v30 = vmax.f32 %v639_v26, 0.0 }
 0x107   : > { %689 = vst.msk [vmem:[%s1067_s23 + $0x18] sm:$0xf] %vm682_vm2, %v821_v23  ;;  %v822_v31 = vpack.c.bf16 %v649_v27, %v649_v27 }
 0x108   : > { %687 = vst.msk [vmem:[%s1067_s23 + $0x10] sm:$0xf] %vm682_vm2, %v819_v29  ;;  %v820_v32 = vpack.c.bf16 %v647_v30, %v647_v30 }
 0x109   : > { %690 = vst.msk [vmem:[%s1067_s23 + $0x1c] sm:$0xf] %vm682_vm2, %v822_v31 }
 0x10a   : > { %688 = vst.msk [vmem:[%s1067_s23 + $0x14] sm:$0xf] %vm682_vm2, %v820_v32 }
 0x10b PF: > { %s15_s18 = sadd.s32 1, %s950_s18  }
 0x10c   : > { %p12_p4 = scmp.ge.s32.totalorder %s15_s18, 4  }
 0x10e   :  { %14 = sbr.rel (!%p12_p4) target bundleno = 1 (0x1), region = 75 }

// kernel: _lambda_.29
= control target key start
LH: loop header
LB: loop body
LE: loop exit
PB: predicated region body
PF: predicated region fallthrough
CT: control target
= control target key end

     0   :  { %s456_s15 = smov 0   ;;  %s482_s0 = inlined_call_operand.vmem [shape: bf16[2,256,16], index: 0, kind: input, shape index: {}]   ;;  %s483_s1 = inlined_call_operand.vmem [shape: bf16[1,16,16], index: 1, kind: input, shape index: {}]   ;;  %s484_s2 = inlined_call_operand.vmem [shape: f32[1,16], index: 2, kind: input, shape index: {}]   ;;  %s485_s3 = inlined_call_operand.vmem [shape: f32[1,16], index: 3, kind: input, shape index: {}]   ;;  %s486_s4 = inlined_call_operand.vmem [shape: bf16[2,32,16], index: 4, kind: output, shape index: {}]  }
   0x1 LB: > { %s375_s16 = sadd.s32 4294967295, %s429_s15   ;;  %p379_p0 = scmp.ge.s32.totalorder %s429_s15, 1  ;;  %s429_s15 = sphi %s456_s15, %s14_s15  }
   0x2   : > { %p162_p1 = scmp.lt.s32.totalorder %s429_s15, 3 }
   0x4   : > { %p163_p2 = pnand %p379_p0, %p162_p1 }
   0x5   : > { %v420_v0 = vld [vmem:[%s483_s1] sm:$0xff] (!%p163_p2)   ;;  %p188_p3 = scmp.lt.s32.totalorder (!%p163_p2), %s375_s16, 1  ;;  %vm221_vm0 = vcmask (!%p163_p2), 130048   ;;  %vm315_vm1 = vcmask (!%p163_p2), 125952  }
   0x6   : > { %166 = sbr.rel (%p163_p2) target bundleno = 240 (0xf0), region = 36  ;;  %406 = vmatprep.subr.bf16.mxu0 (!%p163_p2), %v420_v0  ;;  %v389_v3 = vld [vmem:[%s484_s2] ss:$0 sm:$0xff] (!%p163_p2) }
   0x7   : > { %407 = vmatpush3.bf16.msra.mxu0 (!%p163_p2), %v420_v0  ;;  %v390_v5 = vld [vmem:[%s485_s3] ss:$0 sm:$0xff] (!%p163_p2) }
   0xd   : > { %s488_s16 = smov (!%p188_p3, %s375_s16), 1 }
   0xe   : > { %s397_s19 = sshll.u32 %s488_s16, 7  ;;  %s398_s27 = sshll.u32 %s488_s16, 4 }
   0xf   : > { %s192_s22 = scalar_lea.vmem %s482_s0, %s397_s19  ;;  %s197_s30 = scalar_lea.vmem %s486_s4, %s398_s27 }
  0x10   : > { %v421_v1 = vld [vmem:[%s192_s22 + $0x60] sm:$0xff]   ;;  %v422_v2 = vld [vmem:[%s192_s22 + $0x68] sm:$0xff]  }
  0x11   : > { %408 = vmatprep.mubr.msk.bf16.mxu0 %vm221_vm0, %v421_v1 }
  0x12   : > { %409 = vmatmul.mubr.msk.bf16.vlgmr.msra.gmra.mrb[0].mxu0 %vm221_vm0, %v422_v2 }
  0xe5   : > { %v410_v4 = vpop.f32.mrb[0].mxu0 }
  0xe6   : > { %v286_v6 = vmul.f32 %v410_v4, %v389_v3  ;;  %v262_v7 = vpop.f32.mrb[1].mxu0 }
  0xe7   : > { %v284_v8 = vmul.f32 %v389_v3, %v262_v7  ;;  %v411_v9 = vpop.f32.mrb[2].mxu0 }
  0xe8   : > { %v297_v10 = vadd.f32 %v390_v5, %v286_v6  ;;  %v287_v11 = vmul.f32 %v411_v9, %v389_v3  ;;  %v265_v12 = vpop.f32.mrb[3].mxu0 }
  0xe9   : > { %v295_v13 = vadd.f32 %v390_v5, %v284_v8  ;;  %v285_v14 = vmul.f32 %v389_v3, %v265_v12 }
  0xea   : > { %v401_v15 = vpack.c.bf16 %v297_v10, %v297_v10  ;;  %v298_v16 = vadd.f32 %v390_v5, %v287_v11 }
  0xeb   : > { %v399_v17 = vpack.c.bf16 %v295_v13, %v295_v13  ;;  %v296_v18 = vadd.f32 %v390_v5, %v285_v14 }
  0xec   : > { %318 = vst.msk [vmem:[%s197_s30 + $0x8] sm:$0xf] %vm315_vm1, %v401_v15  ;;  %v402_v19 = vpack.c.bf16 %v298_v16, %v298_v16 }
  0xed   : > { %316 = vst.msk [vmem:[%s197_s30] sm:$0xf] %vm315_vm1, %v399_v17  ;;  %v400_v20 = vpack.c.bf16 %v296_v18, %v296_v18 }
  0xee   : > { %319 = vst.msk [vmem:[%s197_s30 + $0xc] sm:$0xf] %vm315_vm1, %v402_v19 }
  0xef   : > { %317 = vst.msk [vmem:[%s197_s30 + $0x4] sm:$0xf] %vm315_vm1, %v400_v20 }
  0xf0 PF: > { %s14_s15 = sadd.s32 1, %s429_s15  }
  0xf1   : > { %p11_p4 = scmp.ge.s32.totalorder %s14_s15, 4  }
  0xf3   :  { %13 = sbr.rel (!%p11_p4) target bundleno = 1 (0x1), region = 66 }

// kernel: _lambda_.30
= control target key start
LH: loop header
LB: loop body
LE: loop exit
PB: predicated region body
PF: predicated region fallthrough
CT: control target
= control target key end

     0   :  { %s827_s18 = smov 0   ;;  %s894_s0 = inlined_call_operand.vmem [shape: bf16[2,80,48], index: 0, kind: input, shape index: {}]   ;;  %s895_s1 = inlined_call_operand.vmem [shape: bf16[3,48,16], index: 1, kind: input, shape index: {}]   ;;  %s896_s2 = inlined_call_operand.vmem [shape: f32[1,16], index: 2, kind: input, shape index: {}]   ;;  %s897_s3 = inlined_call_operand.vmem [shape: f32[1,16], index: 3, kind: input, shape index: {}]   ;;  %s898_s4 = inlined_call_operand.vmem [shape: bf16[2,32,16], index: 4, kind: input, shape index: {}]   ;;  %s899_s5 = inlined_call_operand.vmem [shape: bf16[2,32,16], index: 5, kind: output, shape index: {}]  }
   0x1 LB: > { %s648_s19 = sadd.s32 4294967295, %s795_s18   ;;  %p652_p0 = scmp.ge.s32.totalorder %s795_s18, 1  ;;  %s795_s18 = sphi %s827_s18, %s15_s18  }
   0x2   : > { %p197_p1 = scmp.lt.s32.totalorder %s795_s18, 3 }
   0x4   : > { %p198_p2 = pnand %p652_p0, %p197_p1 }
   0x5   : > { %v775_v0 = vld [vmem:[%s895_s1] sm:$0xff] (!%p198_p2)   ;;  %p230_p3 = scmp.lt.s32.totalorder (!%p198_p2), %s648_s19, 1  ;;  %v776_v1 = vld [vmem:[%s895_s1 + $0x8] sm:$0xff] (!%p198_p2)   ;;  %v778_v2 = vld [vmem:[%s895_s1 + $0x18] sm:$0xff] (!%p198_p2)   ;;  %vm293_vm0 = vcmask (!%p198_p2), 392192   ;;  %vm576_vm1 = vcmask (!%p198_p2), 125952  }
   0x6   : > { %201 = sbr.rel (%p198_p2) target bundleno = 259 (0x103), region = 40  ;;  %738 = vmatprep.subr.bf16.mxu0 (!%p198_p2), %v775_v0  ;;  %v777_v3 = vld [vmem:[%s895_s1 + $0x10] sm:$0xff] (!%p198_p2)   ;;  %728 = vmatprep.subr.bf16.mxu1 (!%p198_p2), %v778_v2  ;;  %v782_v4 = vld [vmem:[%s895_s1 + $0x20] sm:$0xff] (!%p198_p2)   ;;  %v784_v8 = vld [vmem:[%s895_s1 + $0x28] sm:$0xff] (!%p198_p2)  }
   0x7   : > { %739 = vmatpush3.bf16.msra.mxu0 (!%p198_p2), %v775_v0  ;;  %729 = vmatpush3.bf16.msra.mxu1 (!%p198_p2), %v778_v2  ;;  %v781_v5 = vld [vmem:[%s895_s1 + $0x30] sm:$0xff] (!%p198_p2)   ;;  %v783_v9 = vld [vmem:[%s895_s1 + $0x38] sm:$0xff] (!%p198_p2)   ;;  %v785_v12 = vld [vmem:[%s895_s1 + $0x40] sm:$0xff] (!%p198_p2)  }
   0x8   : > { %740 = vmatprep.subr.bf16.mxu0 (!%p198_p2), %v776_v1  ;;  %730 = vmatprep.subr.bf16.mxu1 (!%p198_p2), %v782_v4  ;;  %v690_v19 = vld [vmem:[%s896_s2] ss:$0 sm:$0xff] (!%p198_p2) }
   0x9   : > { %v691_v24 = vld [vmem:[%s897_s3] ss:$0 sm:$0xff] (!%p198_p2) }
   0xb   : > { %741 = vmatpush3.bf16.msra.mxu0 (!%p198_p2), %v776_v1  ;;  %731 = vmatpush3.bf16.msra.mxu1 (!%p198_p2), %v782_v4 }
   0xc   : > { %742 = vmatprep.subr.bf16.mxu0 (!%p198_p2), %v777_v3  ;;  %732 = vmatprep.subr.bf16.mxu1 (!%p198_p2), %v784_v8 }
   0xd   : > { %s901_s19 = smov (!%p230_p3, %s648_s19), 1 }
   0xe   : > { %s766_s28 = smul.u32 40, %s901_s19  ;;  %s698_s17 = sshll.u32 %s901_s19, 4 }
   0xf   : > { %743 = vmatpush3.bf16.msra.mxu0 %v777_v3  ;;  %733 = vmatpush3.bf16.msra.mxu1 %v784_v8  ;;  %s239_s22 = scalar_lea.vmem %s898_s4, %s698_s17  ;;  %s244_s29 = scalar_lea.vmem %s899_s5, %s698_s17 }
  0x10   : > { %s234_s8 = scalar_lea.vmem %s894_s0, %s766_s28  ;;  %748 = vmatprep.subr.bf16.mxu0 %v781_v5  ;;  %v712_v20 = vld [vmem:[%s239_s22 + $0x8] sm:$0xff]   ;;  %v705_v23 = vld [vmem:[%s239_s22] sm:$0xff]  }
  0x11   : > { %v779_v6 = vld [vmem:[%s234_s8] sm:$0xff]   ;;  %v780_v7 = vld [vmem:[%s234_s8 + $0x8] sm:$0xff]   ;;  %v787_v10 = vld [vmem:[%s234_s8 + $0x10] sm:$0xff]   ;;  %v710_v28 = vunpack.c.l.bf16 %v712_v20  ;;  %v706_v32 = vunpack.c.l.bf16 %v705_v23  ;;  %v711_v36 = vunpack.c.h.bf16 %v712_v20  ;;  %v707_v39 = vunpack.c.h.bf16 %v705_v23 }
  0x12   : > { %744 = vmatprep.mubr.msk.bf16.mxu0 %vm293_vm0, %v779_v6  ;;  %734 = vmatprep.mubr.msk.bf16.mxu1 %vm293_vm0, %v780_v7  ;;  %v786_v11 = vld [vmem:[%s234_s8 + $0x10] sm:$0xff]   ;;  %v788_v13 = vld [vmem:[%s234_s8 + $0x18] sm:$0xff]  }
  0x13   : > { %745 = vmatmul.mubr.msk.bf16.vlgmr.msra.gmra.mrb[0].mxu0 %vm293_vm0, %v780_v7  ;;  %735 = vmatmul.mubr.msk.bf16.vlgmr.msra.gmra.mrb[0].mxu1 %vm293_vm0, %v786_v11 }
  0x14   : > { %749 = vmatpush3.bf16.msra.mxu0 %v781_v5  ;;  %754 = vmatprep.mubr.msk.bf16.mxu0 %vm293_vm0, %v787_v10 }
  0x15   : > { %750 = vmatprep.subr.bf16.mxu0 %v783_v9 }
  0x18   : > { %751 = vmatpush3.bf16.msra.mxu0 %v783_v9 }
  0x19   : > { %752 = vmatprep.subr.bf16.mxu0 %v785_v12 }
  0x1c   : > { %753 = vmatpush3.bf16.msra.mxu0 %v785_v12 }
  0x1f   : > { %755 = vmatmul.mubr.msk.bf16.vlgmr.msra.gmra.mrb[0].mxu0 %vm293_vm0, %v788_v13 }
  0xe6   : > { %v736_v14 = vpop.f32.mrb[0].mxu1 }
  0xe7   : > { %v334_v15 = vpop.f32.mrb[1].mxu1 }
  0xe8   : > { %v737_v16 = vpop.f32.mrb[2].mxu1 }
  0xe9   : > { %v337_v17 = vpop.f32.mrb[3].mxu1 }
  0xf2   : > { %v756_v18 = vpop.f32.mrb[0].mxu0 }
  0xf3   : > { %v758_v21 = vadd.f32 %v756_v18, %v736_v14  ;;  %v503_v22 = vpop.f32.mrb[1].mxu0 }
  0xf4   : > { %v759_v25 = vadd.f32 %v503_v22, %v334_v15  ;;  %v757_v26 = vpop.f32.mrb[2].mxu0 }
  0xf5   : > { %v531_v27 = vmul.f32 %v758_v21, %v690_v19  ;;  %v760_v29 = vadd.f32 %v757_v26, %v737_v16  ;;  %v506_v30 = vpop.f32.mrb[3].mxu0 }
  0xf6   : > { %v529_v31 = vmul.f32 %v759_v25, %v690_v19  ;;  %v761_v33 = vadd.f32 %v506_v30, %v337_v17 }
  0xf7   : > { %v542_v34 = vadd.f32 %v691_v24, %v531_v27  ;;  %v532_v35 = vmul.f32 %v760_v29, %v690_v19 }
  0xf8   : > { %v540_v37 = vadd.f32 %v691_v24, %v529_v31  ;;  %v530_v38 = vmul.f32 %v761_v33, %v690_v19 }
  0xf9   : > { %v554_v40 = vadd.f32 %v710_v28, %v542_v34  ;;  %v543_v41 = vadd.f32 %v691_v24, %v532_v35 }
  0xfa   : > { %v552_v42 = vadd.f32 %v706_v32, %v540_v37  ;;  %v541_v43 = vadd.f32 %v691_v24, %v530_v38 }
  0xfb   : > { %v558_v44 = vmax.f32 %v554_v40, 0.0  ;;  %v555_v45 = vadd.f32 %v711_v36, %v543_v41 }
  0xfc   : > { %v556_v46 = vmax.f32 %v552_v42, 0.0  ;;  %v553_v47 = vadd.f32 %v707_v39, %v541_v43 }
  0xfd   : > { %v702_v48 = vpack.c.bf16 %v558_v44, %v558_v44  ;;  %v559_v49 = vmax.f32 %v555_v45, 0.0 }
  0xfe   : > { %v700_v50 = vpack.c.bf16 %v556_v46, %v556_v46  ;;  %v557_v51 = vmax.f32 %v553_v47, 0.0 }
  0xff   : > { %579 = vst.msk [vmem:[%s244_s29 + $0x8] sm:$0xf] %vm576_vm1, %v702_v48  ;;  %v703_v52 = vpack.c.bf16 %v559_v49, %v559_v49 }
 0x100   : > { %577 = vst.msk [vmem:[%s244_s29] sm:$0xf] %vm576_vm1, %v700_v50  ;;  %v701_v53 = vpack.c.bf16 %v557_v51, %v557_v51 }
 0x101   : > { %580 = vst.msk [vmem:[%s244_s29 + $0xc] sm:$0xf] %vm576_vm1, %v703_v52 }
 0x102   : > { %578 = vst.msk [vmem:[%s244_s29 + $0x4] sm:$0xf] %vm576_vm1, %v701_v53 }
 0x103 PF: > { %s15_s18 = sadd.s32 1, %s795_s18  }
 0x104   : > { %p12_p4 = scmp.ge.s32.totalorder %s15_s18, 4  }
 0x106   :  { %14 = sbr.rel (!%p12_p4) target bundleno = 1 (0x1), region = 75 }

// kernel: _lambda_.28
= control target key start
LH: loop header
LB: loop body
LE: loop exit
PB: predicated region body
PF: predicated region fallthrough
CT: control target
= control target key end

     0   :  { %s981_s15 = smov 0   ;;  %s1052_s0 = inlined_call_operand.vmem [shape: bf16[2,256,16], index: 0, kind: input, shape index: {}]   ;;  %s1053_s1 = inlined_call_operand.vmem [shape: bf16[6,16,16], index: 1, kind: input, shape index: {}]   ;;  %s1054_s2 = inlined_call_operand.vmem [shape: f32[1,16], index: 2, kind: input, shape index: {}]   ;;  %s1055_s3 = inlined_call_operand.vmem [shape: f32[1,16], index: 3, kind: input, shape index: {}]   ;;  %s1056_s4 = inlined_call_operand.vmem [shape: bf16[2,32,16], index: 4, kind: output, shape index: {}]  }
   0x1 LB: > { %s785_s16 = sadd.s32 4294967295, %s954_s15   ;;  %p789_p0 = scmp.ge.s32.totalorder %s954_s15, 1  ;;  %s954_s15 = sphi %s981_s15, %s14_s15  }
   0x2   : > { %p162_p1 = scmp.lt.s32.totalorder %s954_s15, 3 }
   0x4   : > { %p163_p2 = pnand %p789_p0, %p162_p1 }
   0x5   : > { %v930_v0 = vld [vmem:[%s1053_s1 + $0x8] sm:$0xff] (!%p163_p2)   ;;  %p188_p3 = scmp.lt.s32.totalorder (!%p163_p2), %s785_s16, 1  ;;  %v931_v1 = vld [vmem:[%s1053_s1 + $0x18] sm:$0xff] (!%p163_p2)   ;;  %v933_v2 = vld [vmem:[%s1053_s1] sm:$0xff] (!%p163_p2)   ;;  %vm228_vm0 = vcmask (!%p163_p2), 130048   ;;  %vm725_vm1 = vcmask (!%p163_p2), 125952  }
   0x6   : > { %166 = sbr.rel (%p163_p2) target bundleno = 269 (0x10d), region = 36  ;;  %866 = vmatprep.subr.bf16.mxu1 (!%p163_p2), %v930_v0  ;;  %884 = vmatprep.subr.bf16.mxu0 (!%p163_p2), %v931_v1  ;;  %v935_v3 = vld [vmem:[%s1053_s1 + $0x20] sm:$0xff] (!%p163_p2)   ;;  %v939_v6 = vld [vmem:[%s1053_s1 + $0x10] sm:$0xff] (!%p163_p2)   ;;  %v941_v8 = vld [vmem:[%s1053_s1 + $0x28] sm:$0xff] (!%p163_p2)  }
   0x7   : > { %867 = vmatpush3.bf16.msra.mxu1 (!%p163_p2), %v930_v0  ;;  %885 = vmatpush3.bf16.msra.mxu0 (!%p163_p2), %v931_v1  ;;  %v834_v20 = vld [vmem:[%s1054_s2] ss:$0 sm:$0xff] (!%p163_p2) }
   0x8   : > { %872 = vmatprep.subr.bf16.mxu1 (!%p163_p2), %v933_v2  ;;  %890 = vmatprep.subr.bf16.mxu0 (!%p163_p2), %v935_v3  ;;  %v835_v25 = vld [vmem:[%s1055_s3] ss:$0 sm:$0xff] (!%p163_p2) }
   0xd   : > { %s1058_s16 = smov (!%p188_p3, %s785_s16), 1 }
   0xe   : > { %s842_s25 = sshll.u32 %s1058_s16, 7  ;;  %s843_s11 = sshll.u32 %s1058_s16, 4 }
   0xf   : > { %s1007_s28 = scalar_lea.vmem %s1052_s0, %s842_s25  ;;  %s197_s14 = scalar_lea.vmem %s1056_s4, %s843_s11 }
  0x10   : > { %v932_v4 = vld [vmem:[%s1007_s28 + $0x20] sm:$0xff]   ;;  %v936_v7 = vld [vmem:[%s1007_s28 + $0x28] sm:$0xff]   ;;  %v943_v13 = vld [vmem:[%s1007_s28 + $0x10] sm:$0xff]  }
  0x11   : > { %v934_v5 = vld [vmem:[%s1007_s28 + $0x60] sm:$0xff]   ;;  %868 = vmatprep.mubr.msk.bf16.mxu1 %vm228_vm0, %v932_v4  ;;  %v937_v9 = vld [vmem:[%s1007_s28 + $0x68] sm:$0xff]   ;;  %v947_v17 = vld [vmem:[%s1007_s28 + $0x30] sm:$0xff]  }
  0x12   : > { %886 = vmatprep.mubr.msk.bf16.mxu0 %vm228_vm0, %v934_v5  ;;  %869 = vmatmul.mubr.msk.bf16.vlgmr.msra.gmra.mrb[0].mxu1 %vm228_vm0, %v936_v7  ;;  %v938_v10 = vld [vmem:[%s1007_s28] sm:$0xff]   ;;  %v940_v11 = vld [vmem:[%s1007_s28 + $0x8] sm:$0xff]  }
  0x13   : > { %873 = vmatpush3.bf16.msra.mxu1 %v933_v2  ;;  %887 = vmatmul.mubr.msk.bf16.vlgmr.msra.gmra.mrb[0].mxu0 %vm228_vm0, %v937_v9  ;;  %v942_v12 = vld [vmem:[%s1007_s28 + $0x8] sm:$0xff]   ;;  %v944_v14 = vld [vmem:[%s1007_s28 + $0x40] sm:$0xff]  }
  0x14   : > { %891 = vmatpush3.bf16.msra.mxu0 %v935_v3  ;;  %874 = vmatprep.mubr.msk.bf16.mxu1 %vm228_vm0, %v938_v10  ;;  %v945_v15 = vld [vmem:[%s1007_s28 + $0x28] sm:$0xff]  }
  0x15   : > { %878 = vmatprep.subr.bf16.mxu1 %v939_v6  ;;  %892 = vmatprep.mubr.msk.bf16.mxu0 %vm228_vm0, %v940_v11  ;;  %v946_v16 = vld [vmem:[%s1007_s28 + $0x48] sm:$0xff]  }
  0x16   : > { %896 = vmatprep.subr.bf16.mxu0 %v941_v8 }
  0x1e   : > { %875 = vmatmul.mubr.msk.bf16.vlgmr.msra.gmra.mrb[0].mxu1 %vm228_vm0, %v942_v12 }
  0x1f   : > { %879 = vmatpush3.bf16.msra.mxu1 %v939_v6  ;;  %893 = vmatmul.mubr.msk.bf16.vlgmr.msra.gmra.mrb[0].mxu0 %vm228_vm0, %v943_v13 }
  0x20   : > { %897 = vmatpush3.bf16.msra.mxu0 %v941_v8  ;;  %880 = vmatprep.mubr.msk.bf16.mxu1 %vm228_vm0, %v944_v14 }
  0x21   : > { %898 = vmatprep.mubr.msk.bf16.mxu0 %vm228_vm0, %v945_v15 }
  0x2a   : > { %881 = vmatmul.mubr.msk.bf16.vlgmr.msra.gmra.mrb[0].mxu1 %vm228_vm0, %v946_v16 }
  0x2b   : > { %899 = vmatmul.mubr.msk.bf16.vlgmr.msra.gmra.mrb[0].mxu0 %vm228_vm0, %v947_v17 }
  0xfd   : > { %v882_v18 = vpop.f32.mrb[0].mxu1 }
  0xfe   : > { %v900_v19 = vpop.f32.mrb[0].mxu0  ;;  %v418_v21 = vpop.f32.mrb[1].mxu1 }
  0xff   : > { %v902_v22 = vadd.f32 %v900_v19, %v882_v18  ;;  %v664_v23 = vpop.f32.mrb[1].mxu0  ;;  %v883_v24 = vpop.f32.mrb[2].mxu1 }
 0x100   : > { %v903_v26 = vadd.f32 %v664_v23, %v418_v21  ;;  %v901_v27 = vpop.f32.mrb[2].mxu0  ;;  %v421_v28 = vpop.f32.mrb[3].mxu1 }
 0x101   : > { %v692_v29 = vmul.f32 %v902_v22, %v834_v20  ;;  %v904_v30 = vadd.f32 %v901_v27, %v883_v24  ;;  %v667_v31 = vpop.f32.mrb[3].mxu0 }
 0x102   : > { %v690_v32 = vmul.f32 %v903_v26, %v834_v20  ;;  %v905_v33 = vadd.f32 %v667_v31, %v421_v28 }
 0x103   : > { %v703_v34 = vadd.f32 %v835_v25, %v692_v29  ;;  %v693_v35 = vmul.f32 %v904_v30, %v834_v20 }
 0x104   : > { %v701_v36 = vadd.f32 %v835_v25, %v690_v32  ;;  %v691_v37 = vmul.f32 %v905_v33, %v834_v20 }
 0x105   : > { %v707_v38 = vmax.f32 %v703_v34, 0.0  ;;  %v704_v39 = vadd.f32 %v835_v25, %v693_v35 }
 0x106   : > { %v705_v40 = vmax.f32 %v701_v36, 0.0  ;;  %v702_v41 = vadd.f32 %v835_v25, %v691_v37 }
 0x107   : > { %v846_v42 = vpack.c.bf16 %v707_v38, %v707_v38  ;;  %v708_v43 = vmax.f32 %v704_v39, 0.0 }
 0x108   : > { %v844_v44 = vpack.c.bf16 %v705_v40, %v705_v40  ;;  %v706_v45 = vmax.f32 %v702_v41, 0.0 }
 0x109   : > { %728 = vst.msk [vmem:[%s197_s14 + $0x8] sm:$0xf] %vm725_vm1, %v846_v42  ;;  %v847_v46 = vpack.c.bf16 %v708_v43, %v708_v43 }
 0x10a   : > { %726 = vst.msk [vmem:[%s197_s14] sm:$0xf] %vm725_vm1, %v844_v44  ;;  %v845_v47 = vpack.c.bf16 %v706_v45, %v706_v45 }
 0x10b   : > { %729 = vst.msk [vmem:[%s197_s14 + $0xc] sm:$0xf] %vm725_vm1, %v847_v46 }
 0x10c   : > { %727 = vst.msk [vmem:[%s197_s14 + $0x4] sm:$0xf] %vm725_vm1, %v845_v47 }
 0x10d PF: > { %s14_s15 = sadd.s32 1, %s954_s15  }
 0x10e   : > { %p11_p4 = scmp.ge.s32.totalorder %s14_s15, 4  }
 0x110   :  { %13 = sbr.rel (!%p11_p4) target bundleno = 1 (0x1), region = 71 }

// kernel: _lambda_.31
= control target key start
LH: loop header
LB: loop body
LE: loop exit
PB: predicated region body
PF: predicated region fallthrough
CT: control target
= control target key end

     0   :  { %s739_s15 = smov 0   ;;  %s799_s0 = inlined_call_operand.vmem [shape: bf16[2,80,48], index: 0, kind: input, shape index: {}]   ;;  %s800_s1 = inlined_call_operand.vmem [shape: bf16[3,48,16], index: 1, kind: input, shape index: {}]   ;;  %s801_s2 = inlined_call_operand.vmem [shape: f32[1,16], index: 2, kind: input, shape index: {}]   ;;  %s802_s3 = inlined_call_operand.vmem [shape: f32[1,16], index: 3, kind: input, shape index: {}]   ;;  %s803_s4 = inlined_call_operand.vmem [shape: bf16[2,32,16], index: 4, kind: output, shape index: {}]  }
   0x1 LB: > { %s577_s16 = sadd.s32 4294967295, %s712_s15   ;;  %p581_p0 = scmp.ge.s32.totalorder %s712_s15, 1  ;;  %s712_s15 = sphi %s739_s15, %s14_s15  }
   0x2   : > { %p162_p1 = scmp.lt.s32.totalorder %s712_s15, 3 }
   0x4   : > { %p163_p2 = pnand %p581_p0, %p162_p1 }
   0x5   : > { %v692_v0 = vld [vmem:[%s800_s1] sm:$0xff] (!%p163_p2)   ;;  %p188_p3 = scmp.lt.s32.totalorder (!%p163_p2), %s577_s16, 1  ;;  %v693_v1 = vld [vmem:[%s800_s1 + $0x8] sm:$0xff] (!%p163_p2)   ;;  %v695_v2 = vld [vmem:[%s800_s1 + $0x18] sm:$0xff] (!%p163_p2)   ;;  %vm246_vm0 = vcmask (!%p163_p2), 392192   ;;  %vm517_vm1 = vcmask (!%p163_p2), 125952  }
   0x6   : > { %166 = sbr.rel (%p163_p2) target bundleno = 257 (0x101), region = 36  ;;  %655 = vmatprep.subr.bf16.mxu0 (!%p163_p2), %v692_v0  ;;  %v694_v3 = vld [vmem:[%s800_s1 + $0x10] sm:$0xff] (!%p163_p2)   ;;  %645 = vmatprep.subr.bf16.mxu1 (!%p163_p2), %v695_v2  ;;  %v699_v4 = vld [vmem:[%s800_s1 + $0x20] sm:$0xff] (!%p163_p2)   ;;  %v701_v8 = vld [vmem:[%s800_s1 + $0x28] sm:$0xff] (!%p163_p2)  }
   0x7   : > { %656 = vmatpush3.bf16.msra.mxu0 (!%p163_p2), %v692_v0  ;;  %646 = vmatpush3.bf16.msra.mxu1 (!%p163_p2), %v695_v2  ;;  %v698_v5 = vld [vmem:[%s800_s1 + $0x30] sm:$0xff] (!%p163_p2)   ;;  %v700_v9 = vld [vmem:[%s800_s1 + $0x38] sm:$0xff] (!%p163_p2)   ;;  %v702_v12 = vld [vmem:[%s800_s1 + $0x40] sm:$0xff] (!%p163_p2)  }
   0x8   : > { %657 = vmatprep.subr.bf16.mxu0 (!%p163_p2), %v693_v1  ;;  %647 = vmatprep.subr.bf16.mxu1 (!%p163_p2), %v699_v4  ;;  %v617_v19 = vld [vmem:[%s801_s2] ss:$0 sm:$0xff] (!%p163_p2) }
   0x9   : > { %v618_v22 = vld [vmem:[%s802_s3] ss:$0 sm:$0xff] (!%p163_p2) }
   0xb   : > { %658 = vmatpush3.bf16.msra.mxu0 (!%p163_p2), %v693_v1  ;;  %648 = vmatpush3.bf16.msra.mxu1 (!%p163_p2), %v699_v4 }
   0xc   : > { %659 = vmatprep.subr.bf16.mxu0 (!%p163_p2), %v694_v3  ;;  %649 = vmatprep.subr.bf16.mxu1 (!%p163_p2), %v701_v8 }
   0xd   : > { %s805_s16 = smov (!%p188_p3, %s577_s16), 1 }
   0xe   : > { %s683_s25 = smul.u32 40, %s805_s16  ;;  %s625_s19 = sshll.u32 %s805_s16, 4 }
   0xf   : > { %660 = vmatpush3.bf16.msra.mxu0 %v694_v3  ;;  %650 = vmatpush3.bf16.msra.mxu1 %v701_v8  ;;  %s197_s22 = scalar_lea.vmem %s803_s4, %s625_s19 }
  0x10   : > { %s192_s30 = scalar_lea.vmem %s799_s0, %s683_s25  ;;  %665 = vmatprep.subr.bf16.mxu0 %v698_v5 }
  0x11   : > { %v696_v6 = vld [vmem:[%s192_s30] sm:$0xff]   ;;  %v697_v7 = vld [vmem:[%s192_s30 + $0x8] sm:$0xff]   ;;  %v704_v10 = vld [vmem:[%s192_s30 + $0x10] sm:$0xff]  }
  0x12   : > { %661 = vmatprep.mubr.msk.bf16.mxu0 %vm246_vm0, %v696_v6  ;;  %651 = vmatprep.mubr.msk.bf16.mxu1 %vm246_vm0, %v697_v7  ;;  %v703_v11 = vld [vmem:[%s192_s30 + $0x10] sm:$0xff]   ;;  %v705_v13 = vld [vmem:[%s192_s30 + $0x18] sm:$0xff]  }
  0x13   : > { %662 = vmatmul.mubr.msk.bf16.vlgmr.msra.gmra.mrb[0].mxu0 %vm246_vm0, %v697_v7  ;;  %652 = vmatmul.mubr.msk.bf16.vlgmr.msra.gmra.mrb[0].mxu1 %vm246_vm0, %v703_v11 }
  0x14   : > { %666 = vmatpush3.bf16.msra.mxu0 %v698_v5  ;;  %671 = vmatprep.mubr.msk.bf16.mxu0 %vm246_vm0, %v704_v10 }
  0x15   : > { %667 = vmatprep.subr.bf16.mxu0 %v700_v9 }
  0x18   : > { %668 = vmatpush3.bf16.msra.mxu0 %v700_v9 }
  0x19   : > { %669 = vmatprep.subr.bf16.mxu0 %v702_v12 }
  0x1c   : > { %670 = vmatpush3.bf16.msra.mxu0 %v702_v12 }
  0x1f   : > { %672 = vmatmul.mubr.msk.bf16.vlgmr.msra.gmra.mrb[0].mxu0 %vm246_vm0, %v705_v13 }
  0xe6   : > { %v653_v14 = vpop.f32.mrb[0].mxu1 }
  0xe7   : > { %v287_v15 = vpop.f32.mrb[1].mxu1 }
  0xe8   : > { %v654_v16 = vpop.f32.mrb[2].mxu1 }
  0xe9   : > { %v290_v17 = vpop.f32.mrb[3].mxu1 }
  0xf2   : > { %v673_v18 = vpop.f32.mrb[0].mxu0 }
  0xf3   : > { %v675_v20 = vadd.f32 %v673_v18, %v653_v14  ;;  %v456_v21 = vpop.f32.mrb[1].mxu0 }
  0xf4   : > { %v676_v23 = vadd.f32 %v456_v21, %v287_v15  ;;  %v674_v24 = vpop.f32.mrb[2].mxu0 }
  0xf5   : > { %v484_v25 = vmul.f32 %v675_v20, %v617_v19  ;;  %v677_v26 = vadd.f32 %v674_v24, %v654_v16  ;;  %v459_v27 = vpop.f32.mrb[3].mxu0 }
  0xf6   : > { %v482_v28 = vmul.f32 %v676_v23, %v617_v19  ;;  %v678_v29 = vadd.f32 %v459_v27, %v290_v17 }
  0xf7   : > { %v495_v30 = vadd.f32 %v618_v22, %v484_v25  ;;  %v485_v31 = vmul.f32 %v677_v26, %v617_v19 }
  0xf8   : > { %v493_v32 = vadd.f32 %v618_v22, %v482_v28  ;;  %v483_v33 = vmul.f32 %v678_v29, %v617_v19 }
  0xf9   : > { %v499_v34 = vmax.f32 %v495_v30, 0.0  ;;  %v496_v35 = vadd.f32 %v618_v22, %v485_v31 }
  0xfa   : > { %v497_v36 = vmax.f32 %v493_v32, 0.0  ;;  %v494_v37 = vadd.f32 %v618_v22, %v483_v33 }
  0xfb   : > { %v628_v38 = vpack.c.bf16 %v499_v34, %v499_v34  ;;  %v500_v39 = vmax.f32 %v496_v35, 0.0 }
  0xfc   : > { %v626_v40 = vpack.c.bf16 %v497_v36, %v497_v36  ;;  %v498_v41 = vmax.f32 %v494_v37, 0.0 }
  0xfd   : > { %520 = vst.msk [vmem:[%s197_s22 + $0x8] sm:$0xf] %vm517_vm1, %v628_v38  ;;  %v629_v42 = vpack.c.bf16 %v500_v39, %v500_v39 }
  0xfe   : > { %518 = vst.msk [vmem:[%s197_s22] sm:$0xf] %vm517_vm1, %v626_v40  ;;  %v627_v43 = vpack.c.bf16 %v498_v41, %v498_v41 }
  0xff   : > { %521 = vst.msk [vmem:[%s197_s22 + $0xc] sm:$0xf] %vm517_vm1, %v629_v42 }
 0x100   : > { %519 = vst.msk [vmem:[%s197_s22 + $0x4] sm:$0xf] %vm517_vm1, %v627_v43 }
 0x101 PF: > { %s14_s15 = sadd.s32 1, %s712_s15  }
 0x102   : > { %p11_p4 = scmp.ge.s32.totalorder %s14_s15, 4  }
 0x104   :  { %13 = sbr.rel (!%p11_p4) target bundleno = 1 (0x1), region = 68 }

// kernel: _lambda_.34
= control target key start
LH: loop header
LB: loop body
LE: loop exit
PB: predicated region body
PF: predicated region fallthrough
CT: control target
= control target key end

     0   :  { %s432_s15 = smov 0   ;;  %s461_s0 = inlined_call_operand.vmem [shape: bf16[2,192,32], index: 0, kind: input, shape index: {}]   ;;  %s462_s1 = inlined_call_operand.vmem [shape: bf16[1,32,32], index: 1, kind: input, shape index: {}]   ;;  %s463_s2 = inlined_call_operand.vmem [shape: f32[1,32], index: 2, kind: input, shape index: {}]   ;;  %s464_s3 = inlined_call_operand.vmem [shape: f32[1,32], index: 3, kind: input, shape index: {}]   ;;  %s465_s4 = inlined_call_operand.vmem [shape: bf16[2,16,32], index: 4, kind: output, shape index: {}]  }
   0x1 LB: > { %s351_s16 = sadd.s32 4294967295, %s403_s15   ;;  %p355_p0 = scmp.ge.s32.totalorder %s403_s15, 1  ;;  %s403_s15 = sphi %s432_s15, %s14_s15  }
   0x2   : > { %p162_p1 = scmp.lt.s32.totalorder %s403_s15, 3 }
   0x4   : > { %p163_p2 = pnand %p355_p0, %p162_p1 }
   0x5   : > { %v394_v0 = vld [vmem:[%s462_s1] sm:$0xff] (!%p163_p2)   ;;  %v405_v1 = vmov (!%p163_p2), 0.0   ;;  %v395_v2 = vld [vmem:[%s462_s1 + $0x8] sm:$0xff] (!%p163_p2)   ;;  %vm406_vm0 = vmmov (!%p163_p2), 0   ;;  %p188_p3 = scmp.lt.s32.totalorder (!%p163_p2), %s351_s16, 1  ;;  %vm222_vm1 = vcmask (!%p163_p2), 261120  }
   0x6   : > { %166 = sbr.rel (%p163_p2) target bundleno = 239 (0xef), region = 36  ;;  %375 = vmatprep.subr.bf16.mxu0 (!%p163_p2), %v405_v1  ;;  %379 = vmatprep.mubr.msk.bf16.mxu0 (!%p163_p2), %vm406_vm0, %v405_v1  ;;  %v363_v4 = vld [vmem:[%s463_s2] ss:$0 sm:$0xff] (!%p163_p2)  ;;  %vm293_vm2 = vcmask (!%p163_p2), 257024  }
   0x7   : > { %376 = vmatpush3.bf16.msra.mxu0 (!%p163_p2), %v394_v0  ;;  %v364_v6 = vld [vmem:[%s464_s3] ss:$0 sm:$0xff] (!%p163_p2) }
   0x8   : > { %377 = vmatprep.subr.bf16.mxu0 (!%p163_p2), %v405_v1 }
   0xb   : > { %378 = vmatpush3.bf16.msra.mxu0 (!%p163_p2), %v395_v2 }
   0xd   : > { %s467_s16 = smov (!%p188_p3, %s351_s16), 1 }
   0xe   : > { %s383_s21 = smul.u32 96, %s467_s16  ;;  %s369_s29 = sshll.u32 %s467_s16, 3 }
   0xf   : > { %s197_s6 = scalar_lea.vmem %s465_s4, %s369_s29 }
  0x10   : > { %s192_s24 = scalar_lea.vmem %s461_s0, %s383_s21 }
  0x11   : > { %v396_v3 = vld [vmem:[%s192_s24 + $0x48] sm:$0xff]  }
  0x12   : > { %380 = vmatmul.mubr.msk.bf16.vlgmr.msra.gmra.mrb[0].mxu0 %vm222_vm1, %v396_v3 }
  0xe5   : > { %v260_v5 = vpop.f32.mrb[0].mxu0 }
  0xe6   : > { %v274_v7 = vmul.f32 %v363_v4, %v260_v5  ;;  %v381_v8 = vpop.f32.mrb[1].mxu0 }
  0xe7   : > { %v263_v9 = vpop.f32.mrb[2].mxu0 }
  0xe8   : > { %v283_v10 = vadd.f32 %v364_v6, %v274_v7  ;;  %v275_v11 = vmul.f32 %v363_v4, %v263_v9  ;;  %v382_v12 = vpop.f32.mrb[3].mxu0 }
  0xea   : > { %v370_v13 = vpack.c.bf16 %v283_v10, %v283_v10  ;;  %v284_v14 = vadd.f32 %v364_v6, %v275_v11 }
  0xec   : > { %294 = vst.msk [vmem:[%s197_s6] sm:$0xf] %vm293_vm2, %v370_v13  ;;  %v371_v15 = vpack.c.bf16 %v284_v14, %v284_v14 }
  0xee   : > { %295 = vst.msk [vmem:[%s197_s6 + $0x4] sm:$0xf] %vm293_vm2, %v371_v15 }
  0xef PF: > { %s14_s15 = sadd.s32 1, %s403_s15  }
  0xf0   : > { %p11_p4 = scmp.ge.s32.totalorder %s14_s15, 4  }
  0xf2   :  { %13 = sbr.rel (!%p11_p4) target bundleno = 1 (0x1), region = 66 }

// kernel: _lambda_.33
= control target key start
LH: loop header
LB: loop body
LE: loop exit
PB: predicated region body
PF: predicated region fallthrough
CT: control target
= control target key end

     0   :  { %s910_s15 = smov 0   ;;  %s993_s0 = inlined_call_operand.vmem [shape: bf16[2,192,32], index: 0, kind: input, shape index: {}]   ;;  %s994_s1 = inlined_call_operand.vmem [shape: bf16[6,32,32], index: 1, kind: input, shape index: {}]   ;;  %s995_s2 = inlined_call_operand.vmem [shape: f32[1,32], index: 2, kind: input, shape index: {}]   ;;  %s996_s3 = inlined_call_operand.vmem [shape: f32[1,32], index: 3, kind: input, shape index: {}]   ;;  %s997_s4 = inlined_call_operand.vmem [shape: bf16[2,16,32], index: 4, kind: output, shape index: {}]  }
   0x1 LB: > { %s701_s16 = sadd.s32 4294967295, %s881_s15   ;;  %p705_p0 = scmp.ge.s32.totalorder %s881_s15, 1  ;;  %s881_s15 = sphi %s910_s15, %s14_s15  }
   0x2   : > { %p162_p1 = scmp.lt.s32.totalorder %s881_s15, 3 }
   0x4   : > { %p163_p2 = pnand %p705_p0, %p162_p1 }
   0x5   : > { %v857_v0 = vld [vmem:[%s994_s1 + $0x10] sm:$0xff] (!%p163_p2)   ;;  %v883_v1 = vmov (!%p163_p2), 0.0   ;;  %v859_v3 = vld [vmem:[%s994_s1 + $0x18] sm:$0xff] (!%p163_p2)   ;;  %vm884_vm0 = vmmov (!%p163_p2), 0   ;;  %p188_p3 = scmp.lt.s32.totalorder (!%p163_p2), %s701_s16, 1  ;;  %v863_v5 = vld [vmem:[%s994_s1] sm:$0xff] (!%p163_p2)  }
   0x6   : > { %166 = sbr.rel (%p163_p2) target bundleno = 267 (0x10b), region = 36  ;;  %780 = vmatprep.subr.bf16.mxu1 (!%p163_p2), %v883_v1  ;;  %804 = vmatprep.subr.bf16.mxu0 (!%p163_p2), %v883_v1  ;;  %v858_v2 = vld [vmem:[%s994_s1 + $0x30] sm:$0xff] (!%p163_p2)   ;;  %v860_v4 = vld [vmem:[%s994_s1 + $0x38] sm:$0xff] (!%p163_p2)   ;;  %vm229_vm1 = vcmask (!%p163_p2), 261120   ;;  %v864_v6 = vld [vmem:[%s994_s1 + $0x40] sm:$0xff] (!%p163_p2)   ;;  %vm643_vm2 = vcmask (!%p163_p2), 257024  }
   0x7   : > { %781 = vmatpush3.bf16.msra.mxu1 (!%p163_p2), %v857_v0  ;;  %784 = vmatprep.mubr.msk.bf16.mxu1 (!%p163_p2), %vm884_vm0, %v883_v1  ;;  %v865_v9 = vld [vmem:[%s994_s1 + $0x8] sm:$0xff] (!%p163_p2)   ;;  %v869_v13 = vld [vmem:[%s994_s1 + $0x20] sm:$0xff] (!%p163_p2)   ;;  %v870_v14 = vld [vmem:[%s994_s1 + $0x50] sm:$0xff] (!%p163_p2)  }
   0x8   : > { %805 = vmatpush3.bf16.msra.mxu0 (!%p163_p2), %v858_v2  ;;  %782 = vmatprep.subr.bf16.mxu1 (!%p163_p2), %v883_v1  ;;  %v866_v10 = vld [vmem:[%s994_s1 + $0x48] sm:$0xff] (!%p163_p2)   ;;  %v872_v16 = vld [vmem:[%s994_s1 + $0x58] sm:$0xff] (!%p163_p2)   ;;  %v753_v21 = vld [vmem:[%s995_s2] ss:$0 sm:$0xff] (!%p163_p2) }
   0x9   : > { %806 = vmatprep.subr.bf16.mxu0 (!%p163_p2), %v883_v1  ;;  %808 = vmatprep.mubr.msk.bf16.mxu0 (!%p163_p2), %vm884_vm0, %v883_v1  ;;  %v871_v15 = vld [vmem:[%s994_s1 + $0x28] sm:$0xff] (!%p163_p2)   ;;  %v754_v26 = vld [vmem:[%s996_s3] ss:$0 sm:$0xff] (!%p163_p2) }
   0xb   : > { %783 = vmatpush3.bf16.msra.mxu1 (!%p163_p2), %v859_v3 }
   0xc   : > { %807 = vmatpush3.bf16.msra.mxu0 (!%p163_p2), %v860_v4  ;;  %788 = vmatprep.subr.bf16.mxu1 (!%p163_p2), %v883_v1 }
   0xd   : > { %s999_s16 = smov (!%p188_p3, %s701_s16), 1  ;;  %812 = vmatprep.subr.bf16.mxu0 %v883_v1 }
   0xe   : > { %s846_s25 = smul.u32 96, %s999_s16 }
  0x10   : > { %s941_s30 = scalar_lea.vmem %s993_s0, %s846_s25  ;;  %s759_s25 = sshll.u32 %s999_s16, 3 }
  0x11   : > { %v861_v7 = vld [vmem:[%s941_s30 + $0x18] sm:$0xff]   ;;  %v862_v8 = vld [vmem:[%s941_s30 + $0x48] sm:$0xff]   ;;  %v867_v11 = vld [vmem:[%s941_s30] sm:$0xff]   ;;  %s197_s28 = scalar_lea.vmem %s997_s4, %s759_s25 }
  0x12   : > { %785 = vmatmul.mubr.msk.bf16.vlgmr.msra.gmra.mrb[0].mxu1 %vm229_vm1, %v861_v7  ;;  %809 = vmatmul.mubr.msk.bf16.vlgmr.msra.gmra.mrb[0].mxu0 %vm229_vm1, %v862_v8  ;;  %v868_v12 = vld [vmem:[%s941_s30 + $0x8] sm:$0xff]   ;;  %v873_v17 = vld [vmem:[%s941_s30 + $0x30] sm:$0xff]   ;;  %v874_v18 = vld [vmem:[%s941_s30 + $0x20] sm:$0xff]  }
  0x13   : > { %789 = vmatpush3.bf16.msra.mxu1 %v863_v5  ;;  %813 = vmatpush3.bf16.msra.mxu0 %v864_v6 }
  0x14   : > { %790 = vmatprep.subr.bf16.mxu1 %v883_v1  ;;  %814 = vmatprep.subr.bf16.mxu0 %v883_v1 }
  0x15   : > { %792 = vmatprep.mubr.msk.bf16.mxu1 %vm884_vm0, %v883_v1  ;;  %816 = vmatprep.mubr.msk.bf16.mxu0 %vm884_vm0, %v883_v1 }
  0x17   : > { %791 = vmatpush3.bf16.msra.mxu1 %v865_v9  ;;  %815 = vmatpush3.bf16.msra.mxu0 %v866_v10 }
  0x18   : > { %796 = vmatprep.subr.bf16.mxu1 %v883_v1  ;;  %820 = vmatprep.subr.bf16.mxu0 %v883_v1 }
  0x1e   : > { %793 = vmatmul.mubr.msk.bf16.vlgmr.msra.gmra.mrb[0].mxu1 %vm229_vm1, %v867_v11  ;;  %817 = vmatmul.mubr.msk.bf16.vlgmr.msra.gmra.mrb[0].mxu0 %vm229_vm1, %v868_v12 }
  0x1f   : > { %797 = vmatpush3.bf16.msra.mxu1 %v869_v13  ;;  %821 = vmatpush3.bf16.msra.mxu0 %v870_v14 }
  0x20   : > { %798 = vmatprep.subr.bf16.mxu1 %v883_v1  ;;  %822 = vmatprep.subr.bf16.mxu0 %v883_v1 }
  0x21   : > { %800 = vmatprep.mubr.msk.bf16.mxu1 %vm884_vm0, %v883_v1  ;;  %824 = vmatprep.mubr.msk.bf16.mxu0 %vm884_vm0, %v883_v1 }
  0x23   : > { %799 = vmatpush3.bf16.msra.mxu1 %v871_v15  ;;  %823 = vmatpush3.bf16.msra.mxu0 %v872_v16 }
  0x2a   : > { %801 = vmatmul.mubr.msk.bf16.vlgmr.msra.gmra.mrb[0].mxu1 %vm229_vm1, %v873_v17  ;;  %825 = vmatmul.mubr.msk.bf16.vlgmr.msra.gmra.mrb[0].mxu0 %vm229_vm1, %v874_v18 }
  0xfd   : > { %v396_v19 = vpop.f32.mrb[0].mxu1  ;;  %v606_v20 = vpop.f32.mrb[0].mxu0 }
  0xfe   : > { %v802_v22 = vpop.f32.mrb[1].mxu1  ;;  %v828_v23 = vadd.f32 %v606_v20, %v396_v19  ;;  %v826_v24 = vpop.f32.mrb[1].mxu0 }
  0xff   : > { %v399_v25 = vpop.f32.mrb[2].mxu1  ;;  %v609_v27 = vpop.f32.mrb[2].mxu0 }
 0x100   : > { %v803_v28 = vpop.f32.mrb[3].mxu1  ;;  %v622_v29 = vmul.f32 %v828_v23, %v753_v21  ;;  %v829_v30 = vadd.f32 %v609_v27, %v399_v25  ;;  %v827_v31 = vpop.f32.mrb[3].mxu0 }
 0x102   : > { %v631_v32 = vadd.f32 %v754_v26, %v622_v29  ;;  %v623_v33 = vmul.f32 %v829_v30, %v753_v21 }
 0x104   : > { %v633_v34 = vmax.f32 %v631_v32, 0.0  ;;  %v632_v35 = vadd.f32 %v754_v26, %v623_v33 }
 0x106   : > { %v760_v36 = vpack.c.bf16 %v633_v34, %v633_v34  ;;  %v634_v37 = vmax.f32 %v632_v35, 0.0 }
 0x108   : > { %644 = vst.msk [vmem:[%s197_s28] sm:$0xf] %vm643_vm2, %v760_v36  ;;  %v761_v38 = vpack.c.bf16 %v634_v37, %v634_v37 }
 0x10a   : > { %645 = vst.msk [vmem:[%s197_s28 + $0x4] sm:$0xf] %vm643_vm2, %v761_v38 }
 0x10b PF: > { %s14_s15 = sadd.s32 1, %s881_s15  }
 0x10c   : > { %p11_p4 = scmp.ge.s32.totalorder %s14_s15, 4  }
 0x10e   :  { %13 = sbr.rel (!%p11_p4) target bundleno = 1 (0x1), region = 71 }

// kernel: _lambda_.36
= control target key start
LH: loop header
LB: loop body
LE: loop exit
PB: predicated region body
PF: predicated region fallthrough
CT: control target
= control target key end

     0   :  { %s795_s15 = smov 0   ;;  %s908_s0 = inlined_call_operand.vmem [shape: bf16[2,64,96], index: 0, kind: input, shape index: {}]   ;;  %s909_s1 = inlined_call_operand.vmem [shape: bf16[3,96,32], index: 1, kind: input, shape index: {}]   ;;  %s910_s2 = inlined_call_operand.vmem [shape: f32[1,32], index: 2, kind: input, shape index: {}]   ;;  %s911_s3 = inlined_call_operand.vmem [shape: f32[1,32], index: 3, kind: input, shape index: {}]   ;;  %s912_s4 = inlined_call_operand.vmem [shape: bf16[2,16,32], index: 4, kind: output, shape index: {}]  }
   0x1 LB: > { %s587_s16 = sadd.s32 4294967295, %s766_s15   ;;  %p591_p0 = scmp.ge.s32.totalorder %s766_s15, 1  ;;  %s766_s15 = sphi %s795_s15, %s14_s15  }
   0x2   : > { %p162_p1 = scmp.lt.s32.totalorder %s766_s15, 3 }
   0x4   : > { %p163_p2 = pnand %p591_p0, %p162_p1 }
   0x5   : > { %v739_v0 = vld [vmem:[%s909_s1] sm:$0xff] (!%p163_p2)   ;;  %v768_v1 = vmov (!%p163_p2), 0.0   ;;  %v740_v2 = vld [vmem:[%s909_s1 + $0x8] sm:$0xff] (!%p163_p2)   ;;  %vm769_vm0 = vmmov (!%p163_p2), 0   ;;  %p188_p3 = scmp.lt.s32.totalorder (!%p163_p2), %s587_s16, 1  ;;  %v741_v3 = vld [vmem:[%s909_s1 + $0x10] sm:$0xff] (!%p163_p2)  }
   0x6   : > { %166 = sbr.rel (%p163_p2) target bundleno = 279 (0x117), region = 36  ;;  %691 = vmatprep.subr.bf16.mxu0 (!%p163_p2), %v768_v1  ;;  %675 = vmatprep.subr.bf16.mxu1 (!%p163_p2), %v768_v1  ;;  %v745_v4 = vld [vmem:[%s909_s1 + $0x30] sm:$0xff] (!%p163_p2)   ;;  %v748_v5 = vld [vmem:[%s909_s1 + $0x38] sm:$0xff] (!%p163_p2)   ;;  %v750_v7 = vld [vmem:[%s909_s1 + $0x40] sm:$0xff] (!%p163_p2)   ;;  %vm269_vm1 = vcmask (!%p163_p2), 785408   ;;  %vm529_vm2 = vcmask (!%p163_p2), 257024  }
   0x7   : > { %692 = vmatpush3.bf16.msra.mxu0 (!%p163_p2), %v739_v0  ;;  %703 = vmatprep.mubr.msk.bf16.mxu0 (!%p163_p2), %vm769_vm0, %v768_v1  ;;  %v742_v6 = vld [vmem:[%s909_s1 + $0x18] sm:$0xff] (!%p163_p2)   ;;  %v743_v8 = vld [vmem:[%s909_s1 + $0x20] sm:$0xff] (!%p163_p2)   ;;  %v752_v9 = vld [vmem:[%s909_s1 + $0x48] sm:$0xff] (!%p163_p2)  }
   0x8   : > { %693 = vmatprep.subr.bf16.mxu0 (!%p163_p2), %v768_v1  ;;  %687 = vmatprep.mubr.msk.bf16.mxu1 (!%p163_p2), %vm769_vm0, %v768_v1  ;;  %v744_v10 = vld [vmem:[%s909_s1 + $0x28] sm:$0xff] (!%p163_p2)   ;;  %v754_v11 = vld [vmem:[%s909_s1 + $0x50] sm:$0xff] (!%p163_p2)   ;;  %v747_v13 = vld [vmem:[%s909_s1 + $0x60] sm:$0xff] (!%p163_p2)  }
   0x9   : > { %676 = vmatpush3.bf16.msra.mxu1 (!%p163_p2), %v745_v4  ;;  %v756_v14 = vld [vmem:[%s909_s1 + $0x58] sm:$0xff] (!%p163_p2)   ;;  %v749_v15 = vld [vmem:[%s909_s1 + $0x68] sm:$0xff] (!%p163_p2)   ;;  %v751_v17 = vld [vmem:[%s909_s1 + $0x70] sm:$0xff] (!%p163_p2)  }
   0xa   : > { %677 = vmatprep.subr.bf16.mxu1 (!%p163_p2), %v768_v1  ;;  %v753_v18 = vld [vmem:[%s909_s1 + $0x78] sm:$0xff] (!%p163_p2)   ;;  %v755_v19 = vld [vmem:[%s909_s1 + $0x80] sm:$0xff] (!%p163_p2)   ;;  %v758_v20 = vld [vmem:[%s909_s1 + $0x88] sm:$0xff] (!%p163_p2)  }
   0xb   : > { %694 = vmatpush3.bf16.msra.mxu0 (!%p163_p2), %v740_v2  ;;  %v644_v27 = vld [vmem:[%s910_s2] ss:$0 sm:$0xff] (!%p163_p2) }
   0xc   : > { %695 = vmatprep.subr.bf16.mxu0 (!%p163_p2), %v768_v1  ;;  %v645_v30 = vld [vmem:[%s911_s3] ss:$0 sm:$0xff] (!%p163_p2) }
   0xd   : > { %s914_s16 = smov (!%p188_p3, %s587_s16), 1  ;;  %678 = vmatpush3.bf16.msra.mxu1 %v748_v5 }
   0xe   : > { %s650_s25 = sshll.u32 %s914_s16, 5  ;;  %679 = vmatprep.subr.bf16.mxu1 %v768_v1 }
   0xf   : > { %s829_s28 = scalar_lea.vmem %s908_s0, %s650_s25  ;;  %696 = vmatpush3.bf16.msra.mxu0 %v741_v3 }
  0x10   : > { %697 = vmatprep.subr.bf16.mxu0 %v768_v1  ;;  %v746_v12 = vld [vmem:[%s829_s28] sm:$0xff]   ;;  %v757_v16 = vld [vmem:[%s829_s28 + $0x8] sm:$0xff]   ;;  %v759_v21 = vld [vmem:[%s829_s28 + $0x10] sm:$0xff]   ;;  %s651_s28 = sshll.u32 %s914_s16, 3 }
  0x11   : > { %680 = vmatpush3.bf16.msra.mxu1 %v750_v7  ;;  %s197_s14 = scalar_lea.vmem %s912_s4, %s651_s28 }
  0x12   : > { %681 = vmatprep.subr.bf16.mxu1 %v768_v1 }
  0x13   : > { %698 = vmatpush3.bf16.msra.mxu0 %v742_v6 }
  0x14   : > { %699 = vmatprep.subr.bf16.mxu0 %v768_v1 }
  0x15   : > { %682 = vmatpush3.bf16.msra.mxu1 %v752_v9 }
  0x16   : > { %683 = vmatprep.subr.bf16.mxu1 %v768_v1 }
  0x17   : > { %700 = vmatpush3.bf16.msra.mxu0 %v743_v8 }
  0x18   : > { %701 = vmatprep.subr.bf16.mxu0 %v768_v1 }
  0x19   : > { %684 = vmatpush3.bf16.msra.mxu1 %v754_v11 }
  0x1a   : > { %685 = vmatprep.subr.bf16.mxu1 %v768_v1 }
  0x1b   : > { %702 = vmatpush3.bf16.msra.mxu0 %v744_v10 }
  0x1c   : > { %707 = vmatprep.subr.bf16.mxu0 %v768_v1 }
  0x1d   : > { %686 = vmatpush3.bf16.msra.mxu1 %v756_v14 }
  0x1e   : > { %704 = vmatmul.mubr.msk.bf16.vlgmr.msra.gmra.mrb[0].mxu0 %vm269_vm1, %v746_v12 }
  0x1f   : > { %708 = vmatpush3.bf16.msra.mxu0 %v747_v13  ;;  %719 = vmatprep.mubr.msk.bf16.mxu0 %vm769_vm0, %v768_v1 }
  0x20   : > { %709 = vmatprep.subr.bf16.mxu0 %v768_v1  ;;  %688 = vmatmul.mubr.msk.bf16.vlgmr.msra.gmra.mrb[0].mxu1 %vm269_vm1, %v757_v16 }
  0x23   : > { %710 = vmatpush3.bf16.msra.mxu0 %v749_v15 }
  0x24   : > { %711 = vmatprep.subr.bf16.mxu0 %v768_v1 }
  0x27   : > { %712 = vmatpush3.bf16.msra.mxu0 %v751_v17 }
  0x28   : > { %713 = vmatprep.subr.bf16.mxu0 %v768_v1 }
  0x2b   : > { %714 = vmatpush3.bf16.msra.mxu0 %v753_v18 }
  0x2c   : > { %715 = vmatprep.subr.bf16.mxu0 %v768_v1 }
  0x2f   : > { %716 = vmatpush3.bf16.msra.mxu0 %v755_v19 }
  0x30   : > { %717 = vmatprep.subr.bf16.mxu0 %v768_v1 }
  0x33   : > { %718 = vmatpush3.bf16.msra.mxu0 %v758_v20 }
  0x36   : > { %720 = vmatmul.mubr.msk.bf16.vlgmr.msra.gmra.mrb[0].mxu0 %vm269_vm1, %v759_v21 }
  0xf3   : > { %v307_v22 = vpop.f32.mrb[0].mxu1 }
  0xf4   : > { %v689_v23 = vpop.f32.mrb[1].mxu1 }
  0xf5   : > { %v310_v24 = vpop.f32.mrb[2].mxu1 }
  0xf6   : > { %v690_v25 = vpop.f32.mrb[3].mxu1 }
 0x109   : > { %v492_v26 = vpop.f32.mrb[0].mxu0 }
 0x10a   : > { %v723_v28 = vadd.f32 %v492_v26, %v307_v22  ;;  %v721_v29 = vpop.f32.mrb[1].mxu0 }
 0x10b   : > { %v495_v31 = vpop.f32.mrb[2].mxu0 }
 0x10c   : > { %v508_v32 = vmul.f32 %v723_v28, %v644_v27  ;;  %v724_v33 = vadd.f32 %v495_v31, %v310_v24  ;;  %v722_v34 = vpop.f32.mrb[3].mxu0 }
 0x10e   : > { %v517_v35 = vadd.f32 %v645_v30, %v508_v32  ;;  %v509_v36 = vmul.f32 %v724_v33, %v644_v27 }
 0x110   : > { %v519_v37 = vmax.f32 %v517_v35, 0.0  ;;  %v518_v38 = vadd.f32 %v645_v30, %v509_v36 }
 0x112   : > { %v652_v39 = vpack.c.bf16 %v519_v37, %v519_v37  ;;  %v520_v40 = vmax.f32 %v518_v38, 0.0 }
 0x114   : > { %530 = vst.msk [vmem:[%s197_s14] sm:$0xf] %vm529_vm2, %v652_v39  ;;  %v653_v41 = vpack.c.bf16 %v520_v40, %v520_v40 }
 0x116   : > { %531 = vst.msk [vmem:[%s197_s14 + $0x4] sm:$0xf] %vm529_vm2, %v653_v41 }
 0x117 PF: > { %s14_s15 = sadd.s32 1, %s766_s15  }
 0x118   : > { %p11_p4 = scmp.ge.s32.totalorder %s14_s15, 4  }
 0x11a   :  { %13 = sbr.rel (!%p11_p4) target bundleno = 1 (0x1), region = 68 }

// kernel: _lambda_.35
= control target key start
LH: loop header
LB: loop body
LE: loop exit
PB: predicated region body
PF: predicated region fallthrough
CT: control target
= control target key end

     0   :  { %s872_s18 = smov 0   ;;  %s988_s0 = inlined_call_operand.vmem [shape: bf16[2,64,96], index: 0, kind: input, shape index: {}]   ;;  %s989_s1 = inlined_call_operand.vmem [shape: bf16[3,96,32], index: 1, kind: input, shape index: {}]   ;;  %s990_s2 = inlined_call_operand.vmem [shape: f32[1,32], index: 2, kind: input, shape index: {}]   ;;  %s991_s3 = inlined_call_operand.vmem [shape: f32[1,32], index: 3, kind: input, shape index: {}]   ;;  %s992_s4 = inlined_call_operand.vmem [shape: bf16[2,16,32], index: 4, kind: input, shape index: {}]   ;;  %s993_s5 = inlined_call_operand.vmem [shape: bf16[2,16,32], index: 5, kind: output, shape index: {}]  }
   0x1 LB: > { %s652_s19 = sadd.s32 4294967295, %s838_s18   ;;  %p656_p0 = scmp.ge.s32.totalorder %s838_s18, 1  ;;  %s838_s18 = sphi %s872_s18, %s15_s18  }
   0x2   : > { %p197_p1 = scmp.lt.s32.totalorder %s838_s18, 3 }
   0x4   : > { %p198_p2 = pnand %p656_p0, %p197_p1 }
   0x5   : > { %v811_v0 = vld [vmem:[%s989_s1] sm:$0xff] (!%p198_p2)   ;;  %v840_v1 = vmov (!%p198_p2), 0.0   ;;  %v812_v2 = vld [vmem:[%s989_s1 + $0x8] sm:$0xff] (!%p198_p2)   ;;  %vm841_vm0 = vmmov (!%p198_p2), 0   ;;  %p230_p3 = scmp.lt.s32.totalorder (!%p198_p2), %s652_s19, 1  ;;  %v813_v3 = vld [vmem:[%s989_s1 + $0x10] sm:$0xff] (!%p198_p2)  }
   0x6   : > { %201 = sbr.rel (%p198_p2) target bundleno = 281 (0x119), region = 40  ;;  %763 = vmatprep.subr.bf16.mxu0 (!%p198_p2), %v840_v1  ;;  %747 = vmatprep.subr.bf16.mxu1 (!%p198_p2), %v840_v1  ;;  %v817_v4 = vld [vmem:[%s989_s1 + $0x30] sm:$0xff] (!%p198_p2)   ;;  %v820_v5 = vld [vmem:[%s989_s1 + $0x38] sm:$0xff] (!%p198_p2)   ;;  %v822_v7 = vld [vmem:[%s989_s1 + $0x40] sm:$0xff] (!%p198_p2)   ;;  %vm316_vm1 = vcmask (!%p198_p2), 785408   ;;  %vm582_vm2 = vcmask (!%p198_p2), 257024  }
   0x7   : > { %764 = vmatpush3.bf16.msra.mxu0 (!%p198_p2), %v811_v0  ;;  %775 = vmatprep.mubr.msk.bf16.mxu0 (!%p198_p2), %vm841_vm0, %v840_v1  ;;  %v814_v6 = vld [vmem:[%s989_s1 + $0x18] sm:$0xff] (!%p198_p2)   ;;  %v815_v8 = vld [vmem:[%s989_s1 + $0x20] sm:$0xff] (!%p198_p2)   ;;  %v824_v9 = vld [vmem:[%s989_s1 + $0x48] sm:$0xff] (!%p198_p2)  }
   0x8   : > { %765 = vmatprep.subr.bf16.mxu0 (!%p198_p2), %v840_v1  ;;  %759 = vmatprep.mubr.msk.bf16.mxu1 (!%p198_p2), %vm841_vm0, %v840_v1  ;;  %v816_v10 = vld [vmem:[%s989_s1 + $0x28] sm:$0xff] (!%p198_p2)   ;;  %v826_v11 = vld [vmem:[%s989_s1 + $0x50] sm:$0xff] (!%p198_p2)   ;;  %v819_v13 = vld [vmem:[%s989_s1 + $0x60] sm:$0xff] (!%p198_p2)  }
   0x9   : > { %748 = vmatpush3.bf16.msra.mxu1 (!%p198_p2), %v817_v4  ;;  %v828_v14 = vld [vmem:[%s989_s1 + $0x58] sm:$0xff] (!%p198_p2)   ;;  %v821_v15 = vld [vmem:[%s989_s1 + $0x68] sm:$0xff] (!%p198_p2)   ;;  %v823_v17 = vld [vmem:[%s989_s1 + $0x70] sm:$0xff] (!%p198_p2)  }
   0xa   : > { %749 = vmatprep.subr.bf16.mxu1 (!%p198_p2), %v840_v1  ;;  %v825_v18 = vld [vmem:[%s989_s1 + $0x78] sm:$0xff] (!%p198_p2)   ;;  %v827_v19 = vld [vmem:[%s989_s1 + $0x80] sm:$0xff] (!%p198_p2)   ;;  %v830_v20 = vld [vmem:[%s989_s1 + $0x88] sm:$0xff] (!%p198_p2)  }
   0xb   : > { %766 = vmatpush3.bf16.msra.mxu0 (!%p198_p2), %v812_v2  ;;  %v711_v27 = vld [vmem:[%s990_s2] ss:$0 sm:$0xff] (!%p198_p2) }
   0xc   : > { %767 = vmatprep.subr.bf16.mxu0 (!%p198_p2), %v840_v1  ;;  %v712_v31 = vld [vmem:[%s991_s3] ss:$0 sm:$0xff] (!%p198_p2) }
   0xd   : > { %s995_s19 = smov (!%p230_p3, %s652_s19), 1  ;;  %750 = vmatpush3.bf16.msra.mxu1 %v820_v5 }
   0xe   : > { %s717_s28 = sshll.u32 %s995_s19, 5  ;;  %751 = vmatprep.subr.bf16.mxu1 %v840_v1  ;;  %s718_s13 = sshll.u32 %s995_s19, 3 }
   0xf   : > { %s906_s6 = scalar_lea.vmem %s988_s0, %s717_s28  ;;  %768 = vmatpush3.bf16.msra.mxu0 %v813_v3  ;;  %s239_s16 = scalar_lea.vmem %s992_s4, %s718_s13 }
  0x10   : > { %769 = vmatprep.subr.bf16.mxu0 %v840_v1  ;;  %v818_v12 = vld [vmem:[%s906_s6] sm:$0xff]   ;;  %v829_v16 = vld [vmem:[%s906_s6 + $0x8] sm:$0xff]   ;;  %v831_v21 = vld [vmem:[%s906_s6 + $0x10] sm:$0xff]   ;;  %s244_s23 = scalar_lea.vmem %s993_s5, %s718_s13 }
  0x11   : > { %752 = vmatpush3.bf16.msra.mxu1 %v822_v7  ;;  %v723_v28 = vld [vmem:[%s239_s16] sm:$0xff]  }
  0x12   : > { %753 = vmatprep.subr.bf16.mxu1 %v840_v1  ;;  %v724_v34 = vunpack.c.l.bf16 %v723_v28  ;;  %v725_v39 = vunpack.c.h.bf16 %v723_v28 }
  0x13   : > { %770 = vmatpush3.bf16.msra.mxu0 %v814_v6 }
  0x14   : > { %771 = vmatprep.subr.bf16.mxu0 %v840_v1 }
  0x15   : > { %754 = vmatpush3.bf16.msra.mxu1 %v824_v9 }
  0x16   : > { %755 = vmatprep.subr.bf16.mxu1 %v840_v1 }
  0x17   : > { %772 = vmatpush3.bf16.msra.mxu0 %v815_v8 }
  0x18   : > { %773 = vmatprep.subr.bf16.mxu0 %v840_v1 }
  0x19   : > { %756 = vmatpush3.bf16.msra.mxu1 %v826_v11 }
  0x1a   : > { %757 = vmatprep.subr.bf16.mxu1 %v840_v1 }
  0x1b   : > { %774 = vmatpush3.bf16.msra.mxu0 %v816_v10 }
  0x1c   : > { %779 = vmatprep.subr.bf16.mxu0 %v840_v1 }
  0x1d   : > { %758 = vmatpush3.bf16.msra.mxu1 %v828_v14 }
  0x1e   : > { %776 = vmatmul.mubr.msk.bf16.vlgmr.msra.gmra.mrb[0].mxu0 %vm316_vm1, %v818_v12 }
  0x1f   : > { %780 = vmatpush3.bf16.msra.mxu0 %v819_v13  ;;  %791 = vmatprep.mubr.msk.bf16.mxu0 %vm841_vm0, %v840_v1 }
  0x20   : > { %781 = vmatprep.subr.bf16.mxu0 %v840_v1  ;;  %760 = vmatmul.mubr.msk.bf16.vlgmr.msra.gmra.mrb[0].mxu1 %vm316_vm1, %v829_v16 }
  0x23   : > { %782 = vmatpush3.bf16.msra.mxu0 %v821_v15 }
  0x24   : > { %783 = vmatprep.subr.bf16.mxu0 %v840_v1 }
  0x27   : > { %784 = vmatpush3.bf16.msra.mxu0 %v823_v17 }
  0x28   : > { %785 = vmatprep.subr.bf16.mxu0 %v840_v1 }
  0x2b   : > { %786 = vmatpush3.bf16.msra.mxu0 %v825_v18 }
  0x2c   : > { %787 = vmatprep.subr.bf16.mxu0 %v840_v1 }
  0x2f   : > { %788 = vmatpush3.bf16.msra.mxu0 %v827_v19 }
  0x30   : > { %789 = vmatprep.subr.bf16.mxu0 %v840_v1 }
  0x33   : > { %790 = vmatpush3.bf16.msra.mxu0 %v830_v20 }
  0x36   : > { %792 = vmatmul.mubr.msk.bf16.vlgmr.msra.gmra.mrb[0].mxu0 %vm316_vm1, %v831_v21 }
  0xf3   : > { %v354_v22 = vpop.f32.mrb[0].mxu1 }
  0xf4   : > { %v761_v23 = vpop.f32.mrb[1].mxu1 }
  0xf5   : > { %v357_v24 = vpop.f32.mrb[2].mxu1 }
  0xf6   : > { %v762_v25 = vpop.f32.mrb[3].mxu1 }
 0x109   : > { %v539_v26 = vpop.f32.mrb[0].mxu0 }
 0x10a   : > { %v795_v29 = vadd.f32 %v539_v26, %v354_v22  ;;  %v793_v30 = vpop.f32.mrb[1].mxu0 }
 0x10b   : > { %v542_v32 = vpop.f32.mrb[2].mxu0 }
 0x10c   : > { %v555_v33 = vmul.f32 %v795_v29, %v711_v27  ;;  %v796_v35 = vadd.f32 %v542_v32, %v357_v24  ;;  %v794_v36 = vpop.f32.mrb[3].mxu0 }
 0x10e   : > { %v564_v37 = vadd.f32 %v712_v31, %v555_v33  ;;  %v556_v38 = vmul.f32 %v796_v35, %v711_v27 }
 0x110   : > { %v570_v40 = vadd.f32 %v724_v34, %v564_v37  ;;  %v565_v41 = vadd.f32 %v712_v31, %v556_v38 }
 0x112   : > { %v572_v42 = vmax.f32 %v570_v40, 0.0  ;;  %v571_v43 = vadd.f32 %v725_v39, %v565_v41 }
 0x114   : > { %v720_v44 = vpack.c.bf16 %v572_v42, %v572_v42  ;;  %v573_v45 = vmax.f32 %v571_v43, 0.0 }
 0x116   : > { %583 = vst.msk [vmem:[%s244_s23] sm:$0xf] %vm582_vm2, %v720_v44  ;;  %v721_v46 = vpack.c.bf16 %v573_v45, %v573_v45 }
 0x118   : > { %584 = vst.msk [vmem:[%s244_s23 + $0x4] sm:$0xf] %vm582_vm2, %v721_v46 }
 0x119 PF: > { %s15_s18 = sadd.s32 1, %s838_s18  }
 0x11a   : > { %p12_p4 = scmp.ge.s32.totalorder %s15_s18, 4  }
 0x11c   :  { %14 = sbr.rel (!%p12_p4) target bundleno = 1 (0x1), region = 75 }

// kernel: _lambda_.39
= control target key start
LH: loop header
LB: loop body
LE: loop exit
PB: predicated region body
PF: predicated region fallthrough
CT: control target
= control target key end

     0   :  { %s458_s15 = smov 0   ;;  %s493_s0 = inlined_call_operand.vmem [shape: bf16[2,192,64], index: 0, kind: input, shape index: {}]   ;;  %s494_s1 = inlined_call_operand.vmem [shape: bf16[1,64,64], index: 1, kind: input, shape index: {}]   ;;  %s495_s2 = inlined_call_operand.vmem [shape: f32[1,64], index: 2, kind: input, shape index: {}]   ;;  %s496_s3 = inlined_call_operand.vmem [shape: f32[1,64], index: 3, kind: input, shape index: {}]   ;;  %s497_s4 = inlined_call_operand.vmem [shape: bf16[2,16,64], index: 4, kind: output, shape index: {}]  }
   0x1 LB: > { %s367_s16 = sadd.s32 4294967295, %s429_s15   ;;  %p371_p0 = scmp.ge.s32.totalorder %s429_s15, 1  ;;  %s429_s15 = sphi %s458_s15, %s14_s15  }
   0x2   : > { %p162_p1 = scmp.lt.s32.totalorder %s429_s15, 3 }
   0x4   : > { %p163_p2 = pnand %p371_p0, %p162_p1 }
   0x5   : > { %v418_v0 = vld [vmem:[%s494_s1] sm:$0xff] (!%p163_p2)   ;;  %v431_v1 = vmov (!%p163_p2), 0.0   ;;  %v419_v2 = vld [vmem:[%s494_s1 + $0x8] sm:$0xff] (!%p163_p2)   ;;  %vm432_vm0 = vmmov (!%p163_p2), 0   ;;  %p188_p3 = scmp.lt.s32.totalorder (!%p163_p2), %s367_s16, 1  ;;  %v420_v3 = vld [vmem:[%s494_s1 + $0x10] sm:$0xff] (!%p163_p2)  }
   0x6   : > { %166 = sbr.rel (%p163_p2) target bundleno = 243 (0xf3), region = 36  ;;  %395 = vmatprep.subr.bf16.mxu0 (!%p163_p2), %v431_v1  ;;  %403 = vmatprep.mubr.msk.bf16.mxu0 (!%p163_p2), %vm432_vm0, %v431_v1  ;;  %v421_v4 = vld [vmem:[%s494_s1 + $0x18] sm:$0xff] (!%p163_p2)   ;;  %vm238_vm1 = vcmask (!%p163_p2), 523264   ;;  %v381_v6 = vld [vmem:[%s495_s2] ss:$0 sm:$0xff] (!%p163_p2)  ;;  %vm309_vm2 = vcmask (!%p163_p2), 519168  }
   0x7   : > { %396 = vmatpush3.bf16.msra.mxu0 (!%p163_p2), %v418_v0  ;;  %v382_v8 = vld [vmem:[%s496_s3] ss:$0 sm:$0xff] (!%p163_p2) }
   0x8   : > { %397 = vmatprep.subr.bf16.mxu0 (!%p163_p2), %v431_v1 }
   0xb   : > { %398 = vmatpush3.bf16.msra.mxu0 (!%p163_p2), %v419_v2 }
   0xc   : > { %399 = vmatprep.subr.bf16.mxu0 (!%p163_p2), %v431_v1 }
   0xd   : > { %s499_s16 = smov (!%p188_p3, %s367_s16), 1 }
   0xe   : > { %s407_s23 = smul.u32 96, %s499_s16  ;;  %s387_s7 = sshll.u32 %s499_s16, 3 }
   0xf   : > { %400 = vmatpush3.bf16.msra.mxu0 %v420_v3  ;;  %s197_s10 = scalar_lea.vmem %s497_s4, %s387_s7 }
  0x10   : > { %s192_s26 = scalar_lea.vmem %s493_s0, %s407_s23  ;;  %401 = vmatprep.subr.bf16.mxu0 %v431_v1 }
  0x11   : > { %v422_v5 = vld [vmem:[%s192_s26 + $0x48] sm:$0xff]  }
  0x13   : > { %402 = vmatpush3.bf16.msra.mxu0 %v421_v4 }
  0x16   : > { %404 = vmatmul.mubr.msk.bf16.vlgmr.msra.gmra.mrb[0].mxu0 %vm238_vm1, %v422_v5 }
  0xe9   : > { %v276_v7 = vpop.f32.mrb[0].mxu0 }
  0xea   : > { %v290_v9 = vmul.f32 %v381_v6, %v276_v7  ;;  %v405_v10 = vpop.f32.mrb[1].mxu0 }
  0xeb   : > { %v279_v11 = vpop.f32.mrb[2].mxu0 }
  0xec   : > { %v299_v12 = vadd.f32 %v382_v8, %v290_v9  ;;  %v291_v13 = vmul.f32 %v381_v6, %v279_v11  ;;  %v406_v14 = vpop.f32.mrb[3].mxu0 }
  0xee   : > { %v388_v15 = vpack.c.bf16 %v299_v12, %v299_v12  ;;  %v300_v16 = vadd.f32 %v382_v8, %v291_v13 }
  0xf0   : > { %310 = vst.msk [vmem:[%s197_s10] sm:$0xf] %vm309_vm2, %v388_v15  ;;  %v389_v17 = vpack.c.bf16 %v300_v16, %v300_v16 }
  0xf2   : > { %311 = vst.msk [vmem:[%s197_s10 + $0x4] sm:$0xf] %vm309_vm2, %v389_v17 }
  0xf3 PF: > { %s14_s15 = sadd.s32 1, %s429_s15  }
  0xf4   : > { %p11_p4 = scmp.ge.s32.totalorder %s14_s15, 4  }
  0xf6   :  { %13 = sbr.rel (!%p11_p4) target bundleno = 1 (0x1), region = 66 }

// kernel: _lambda_.38
= control target key start
LH: loop header
LB: loop body
LE: loop exit
PB: predicated region body
PF: predicated region fallthrough
CT: control target
= control target key end

     0   :  { %s1086_s15 = smov 0   ;;  %s1235_s0 = inlined_call_operand.vmem [shape: bf16[2,192,64], index: 0, kind: input, shape index: {}]   ;;  %s1236_s1 = inlined_call_operand.vmem [shape: bf16[6,64,64], index: 1, kind: input, shape index: {}]   ;;  %s1237_s2 = inlined_call_operand.vmem [shape: f32[1,64], index: 2, kind: input, shape index: {}]   ;;  %s1238_s3 = inlined_call_operand.vmem [shape: f32[1,64], index: 3, kind: input, shape index: {}]   ;;  %s1239_s4 = inlined_call_operand.vmem [shape: bf16[2,16,64], index: 4, kind: output, shape index: {}]  }
   0x1 LB: > { %s797_s16 = sadd.s32 4294967295, %s1057_s15   ;;  %p801_p0 = scmp.ge.s32.totalorder %s1057_s15, 1  ;;  %s1057_s15 = sphi %s1086_s15, %s14_s15  }
   0x2   : > { %p162_p1 = scmp.lt.s32.totalorder %s1057_s15, 3 }
   0x4   : > { %p163_p2 = pnand %p801_p0, %p162_p1 }
   0x5   : > { %v1021_v0 = vld [vmem:[%s1236_s1 + $0x20] sm:$0xff] (!%p163_p2)   ;;  %v1059_v1 = vmov (!%p163_p2), 0.0   ;;  %v1023_v3 = vld [vmem:[%s1236_s1 + $0x28] sm:$0xff] (!%p163_p2)   ;;  %vm1060_vm0 = vmmov (!%p163_p2), 0   ;;  %p188_p3 = scmp.lt.s32.totalorder (!%p163_p2), %s797_s16, 1  ;;  %v1025_v5 = vld [vmem:[%s1236_s1 + $0x30] sm:$0xff] (!%p163_p2)  }
   0x6   : > { %166 = sbr.rel (%p163_p2) target bundleno = 280 (0x118), region = 36  ;;  %920 = vmatprep.subr.bf16.mxu1 (!%p163_p2), %v1059_v1  ;;  %956 = vmatprep.subr.bf16.mxu0 (!%p163_p2), %v1059_v1  ;;  %v1022_v2 = vld [vmem:[%s1236_s1 + $0x60] sm:$0xff] (!%p163_p2)   ;;  %v1024_v4 = vld [vmem:[%s1236_s1 + $0x68] sm:$0xff] (!%p163_p2)   ;;  %v1026_v6 = vld [vmem:[%s1236_s1 + $0x70] sm:$0xff] (!%p163_p2)   ;;  %vm249_vm1 = vcmask (!%p163_p2), 523264   ;;  %vm739_vm2 = vcmask (!%p163_p2), 519168  }
   0x7   : > { %921 = vmatpush3.bf16.msra.mxu1 (!%p163_p2), %v1021_v0  ;;  %928 = vmatprep.mubr.msk.bf16.mxu1 (!%p163_p2), %vm1060_vm0, %v1059_v1  ;;  %v1027_v7 = vld [vmem:[%s1236_s1 + $0x38] sm:$0xff] (!%p163_p2)   ;;  %v1030_v9 = vld [vmem:[%s1236_s1] sm:$0xff] (!%p163_p2)   ;;  %v1033_v13 = vld [vmem:[%s1236_s1 + $0x8] sm:$0xff] (!%p163_p2)  }
   0x8   : > { %957 = vmatpush3.bf16.msra.mxu0 (!%p163_p2), %v1022_v2  ;;  %922 = vmatprep.subr.bf16.mxu1 (!%p163_p2), %v1059_v1  ;;  %v1028_v8 = vld [vmem:[%s1236_s1 + $0x78] sm:$0xff] (!%p163_p2)   ;;  %v1032_v12 = vld [vmem:[%s1236_s1 + $0x80] sm:$0xff] (!%p163_p2)   ;;  %v1034_v14 = vld [vmem:[%s1236_s1 + $0x88] sm:$0xff] (!%p163_p2)  }
   0x9   : > { %958 = vmatprep.subr.bf16.mxu0 (!%p163_p2), %v1059_v1  ;;  %964 = vmatprep.mubr.msk.bf16.mxu0 (!%p163_p2), %vm1060_vm0, %v1059_v1  ;;  %v1035_v15 = vld [vmem:[%s1236_s1 + $0x10] sm:$0xff] (!%p163_p2)   ;;  %v1037_v17 = vld [vmem:[%s1236_s1 + $0x18] sm:$0xff] (!%p163_p2)   ;;  %v1040_v20 = vld [vmem:[%s1236_s1 + $0x40] sm:$0xff] (!%p163_p2)  }
   0xa   : > { %v1036_v16 = vld [vmem:[%s1236_s1 + $0x90] sm:$0xff] (!%p163_p2)   ;;  %v1038_v18 = vld [vmem:[%s1236_s1 + $0x98] sm:$0xff] (!%p163_p2)   ;;  %v1042_v22 = vld [vmem:[%s1236_s1 + $0xa0] sm:$0xff] (!%p163_p2)  }
   0xb   : > { %923 = vmatpush3.bf16.msra.mxu1 (!%p163_p2), %v1023_v3  ;;  %v1043_v23 = vld [vmem:[%s1236_s1 + $0x48] sm:$0xff] (!%p163_p2)   ;;  %v1045_v25 = vld [vmem:[%s1236_s1 + $0x50] sm:$0xff] (!%p163_p2)   ;;  %v1047_v27 = vld [vmem:[%s1236_s1 + $0x58] sm:$0xff] (!%p163_p2)  }
   0xc   : > { %959 = vmatpush3.bf16.msra.mxu0 (!%p163_p2), %v1024_v4  ;;  %924 = vmatprep.subr.bf16.mxu1 (!%p163_p2), %v1059_v1  ;;  %v1044_v24 = vld [vmem:[%s1236_s1 + $0xa8] sm:$0xff] (!%p163_p2)   ;;  %v1046_v26 = vld [vmem:[%s1236_s1 + $0xb0] sm:$0xff] (!%p163_p2)   ;;  %v1048_v28 = vld [vmem:[%s1236_s1 + $0xb8] sm:$0xff] (!%p163_p2)  }
   0xd   : > { %s1241_s16 = smov (!%p188_p3, %s797_s16), 1  ;;  %960 = vmatprep.subr.bf16.mxu0 %v1059_v1  ;;  %v881_v33 = vld [vmem:[%s1237_s2] ss:$0 sm:$0xff] }
   0xe   : > { %s1010_s27 = smul.u32 96, %s1241_s16  ;;  %v882_v38 = vld [vmem:[%s1238_s3] ss:$0 sm:$0xff] }
   0xf   : > { %925 = vmatpush3.bf16.msra.mxu1 %v1025_v5 }
  0x10   : > { %s1128_s6 = scalar_lea.vmem %s1235_s0, %s1010_s27  ;;  %961 = vmatpush3.bf16.msra.mxu0 %v1026_v6  ;;  %926 = vmatprep.subr.bf16.mxu1 %v1059_v1 }
  0x11   : > { %962 = vmatprep.subr.bf16.mxu0 %v1059_v1  ;;  %v1029_v10 = vld [vmem:[%s1128_s6 + $0x18] sm:$0xff]   ;;  %v1031_v11 = vld [vmem:[%s1128_s6 + $0x48] sm:$0xff]   ;;  %v1039_v19 = vld [vmem:[%s1128_s6] sm:$0xff]  }
  0x12   : > { %v1041_v21 = vld [vmem:[%s1128_s6 + $0x8] sm:$0xff]   ;;  %v1049_v29 = vld [vmem:[%s1128_s6 + $0x30] sm:$0xff]   ;;  %v1050_v30 = vld [vmem:[%s1128_s6 + $0x20] sm:$0xff]   ;;  %s887_s6 = sshll.u32 %s1241_s16, 3 }
  0x13   : > { %927 = vmatpush3.bf16.msra.mxu1 %v1027_v7  ;;  %s197_s28 = scalar_lea.vmem %s1239_s4, %s887_s6 }
  0x14   : > { %963 = vmatpush3.bf16.msra.mxu0 %v1028_v8  ;;  %932 = vmatprep.subr.bf16.mxu1 %v1059_v1 }
  0x15   : > { %968 = vmatprep.subr.bf16.mxu0 %v1059_v1 }
  0x16   : > { %929 = vmatmul.mubr.msk.bf16.vlgmr.msra.gmra.mrb[0].mxu1 %vm249_vm1, %v1029_v10 }
  0x17   : > { %933 = vmatpush3.bf16.msra.mxu1 %v1030_v9  ;;  %965 = vmatmul.mubr.msk.bf16.vlgmr.msra.gmra.mrb[0].mxu0 %vm249_vm1, %v1031_v11 }
  0x18   : > { %969 = vmatpush3.bf16.msra.mxu0 %v1032_v12  ;;  %934 = vmatprep.subr.bf16.mxu1 %v1059_v1 }
  0x19   : > { %970 = vmatprep.subr.bf16.mxu0 %v1059_v1  ;;  %940 = vmatprep.mubr.msk.bf16.mxu1 %vm1060_vm0, %v1059_v1 }
  0x1a   : > { %976 = vmatprep.mubr.msk.bf16.mxu0 %vm1060_vm0, %v1059_v1 }
  0x1b   : > { %935 = vmatpush3.bf16.msra.mxu1 %v1033_v13 }
  0x1c   : > { %971 = vmatpush3.bf16.msra.mxu0 %v1034_v14  ;;  %936 = vmatprep.subr.bf16.mxu1 %v1059_v1 }
  0x1d   : > { %972 = vmatprep.subr.bf16.mxu0 %v1059_v1 }
  0x1f   : > { %937 = vmatpush3.bf16.msra.mxu1 %v1035_v15 }
  0x20   : > { %973 = vmatpush3.bf16.msra.mxu0 %v1036_v16  ;;  %938 = vmatprep.subr.bf16.mxu1 %v1059_v1 }
  0x21   : > { %974 = vmatprep.subr.bf16.mxu0 %v1059_v1 }
  0x23   : > { %939 = vmatpush3.bf16.msra.mxu1 %v1037_v17 }
  0x24   : > { %975 = vmatpush3.bf16.msra.mxu0 %v1038_v18  ;;  %944 = vmatprep.subr.bf16.mxu1 %v1059_v1 }
  0x25   : > { %980 = vmatprep.subr.bf16.mxu0 %v1059_v1 }
  0x26   : > { %941 = vmatmul.mubr.msk.bf16.vlgmr.msra.gmra.mrb[0].mxu1 %vm249_vm1, %v1039_v19 }
  0x27   : > { %945 = vmatpush3.bf16.msra.mxu1 %v1040_v20  ;;  %977 = vmatmul.mubr.msk.bf16.vlgmr.msra.gmra.mrb[0].mxu0 %vm249_vm1, %v1041_v21 }
  0x28   : > { %981 = vmatpush3.bf16.msra.mxu0 %v1042_v22  ;;  %946 = vmatprep.subr.bf16.mxu1 %v1059_v1 }
  0x29   : > { %982 = vmatprep.subr.bf16.mxu0 %v1059_v1  ;;  %952 = vmatprep.mubr.msk.bf16.mxu1 %vm1060_vm0, %v1059_v1 }
  0x2a   : > { %988 = vmatprep.mubr.msk.bf16.mxu0 %vm1060_vm0, %v1059_v1 }
  0x2b   : > { %947 = vmatpush3.bf16.msra.mxu1 %v1043_v23 }
  0x2c   : > { %983 = vmatpush3.bf16.msra.mxu0 %v1044_v24  ;;  %948 = vmatprep.subr.bf16.mxu1 %v1059_v1 }
  0x2d   : > { %984 = vmatprep.subr.bf16.mxu0 %v1059_v1 }
  0x2f   : > { %949 = vmatpush3.bf16.msra.mxu1 %v1045_v25 }
  0x30   : > { %985 = vmatpush3.bf16.msra.mxu0 %v1046_v26  ;;  %950 = vmatprep.subr.bf16.mxu1 %v1059_v1 }
  0x31   : > { %986 = vmatprep.subr.bf16.mxu0 %v1059_v1 }
  0x33   : > { %951 = vmatpush3.bf16.msra.mxu1 %v1047_v27 }
  0x34   : > { %987 = vmatpush3.bf16.msra.mxu0 %v1048_v28 }
  0x36   : > { %953 = vmatmul.mubr.msk.bf16.vlgmr.msra.gmra.mrb[0].mxu1 %vm249_vm1, %v1049_v29 }
  0x37   : > { %989 = vmatmul.mubr.msk.bf16.vlgmr.msra.gmra.mrb[0].mxu0 %vm249_vm1, %v1050_v30 }
 0x109   : > { %v444_v31 = vpop.f32.mrb[0].mxu1 }
 0x10a   : > { %v702_v32 = vpop.f32.mrb[0].mxu0  ;;  %v954_v34 = vpop.f32.mrb[1].mxu1 }
 0x10b   : > { %v992_v35 = vadd.f32 %v702_v32, %v444_v31  ;;  %v990_v36 = vpop.f32.mrb[1].mxu0  ;;  %v447_v37 = vpop.f32.mrb[2].mxu1 }
 0x10c   : > { %v705_v39 = vpop.f32.mrb[2].mxu0  ;;  %v955_v40 = vpop.f32.mrb[3].mxu1 }
 0x10d   : > { %v718_v41 = vmul.f32 %v992_v35, %v881_v33  ;;  %v993_v42 = vadd.f32 %v705_v39, %v447_v37  ;;  %v991_v43 = vpop.f32.mrb[3].mxu0 }
 0x10f   : > { %v727_v44 = vadd.f32 %v882_v38, %v718_v41  ;;  %v719_v45 = vmul.f32 %v993_v42, %v881_v33 }
 0x111   : > { %v729_v46 = vmax.f32 %v727_v44, 0.0  ;;  %v728_v47 = vadd.f32 %v882_v38, %v719_v45 }
 0x113   : > { %v888_v48 = vpack.c.bf16 %v729_v46, %v729_v46  ;;  %v730_v49 = vmax.f32 %v728_v47, 0.0 }
 0x115   : > { %740 = vst.msk [vmem:[%s197_s28] sm:$0xf] %vm739_vm2, %v888_v48  ;;  %v889_v50 = vpack.c.bf16 %v730_v49, %v730_v49 }
 0x117   : > { %741 = vst.msk [vmem:[%s197_s28 + $0x4] sm:$0xf] %vm739_vm2, %v889_v50 }
 0x118 PF: > { %s14_s15 = sadd.s32 1, %s1057_s15  }
 0x119   : > { %p11_p4 = scmp.ge.s32.totalorder %s14_s15, 4  }
 0x11b   :  { %13 = sbr.rel (!%p11_p4) target bundleno = 1 (0x1), region = 71 }

// kernel: _lambda_.40
= control target key start
LH: loop header
LB: loop body
LE: loop exit
PB: predicated region body
PF: predicated region fallthrough
CT: control target
= control target key end

     0   :  { %s1522_s18 = smov 0   ;;  %s1775_s0 = inlined_call_operand.vmem [shape: bf16[2,64,128], index: 0, kind: input, shape index: {}]   ;;  %s1776_s1 = inlined_call_operand.vmem [shape: bf16[6,128,64], index: 1, kind: input, shape index: {}]   ;;  %s1777_s2 = inlined_call_operand.vmem [shape: f32[1,64], index: 2, kind: input, shape index: {}]   ;;  %s1778_s3 = inlined_call_operand.vmem [shape: f32[1,64], index: 3, kind: input, shape index: {}]   ;;  %s1779_s4 = inlined_call_operand.vmem [shape: bf16[2,16,64], index: 4, kind: input, shape index: {}]   ;;  %s1780_s5 = inlined_call_operand.vmem [shape: bf16[2,16,64], index: 5, kind: output, shape index: {}]  }
   0x1 LB: > { %s1060_s19 = sadd.s32 4294967295, %s1488_s18   ;;  %p1064_p0 = scmp.ge.s32.totalorder %s1488_s18, 1  ;;  %s1488_s18 = sphi %s1522_s18, %s15_s18  }
   0x2   : > { %p197_p1 = scmp.lt.s32.totalorder %s1488_s18, 3 }
   0x4   : > { %p198_p2 = pnand %p1064_p0, %p197_p1 }
   0x5   : > { %v1425_v0 = vld [vmem:[%s1776_s1 + $0x40] sm:$0xff] (!%p198_p2)   ;;  %v1490_v1 = vmov (!%p198_p2), 0.0   ;;  %v1427_v3 = vld [vmem:[%s1776_s1 + $0x48] sm:$0xff] (!%p198_p2)   ;;  %vm1491_vm0 = vmmov (!%p198_p2), 0   ;;  %p230_p3 = scmp.lt.s32.totalorder (!%p198_p2), %s1060_s19, 1  ;;  %v1429_v5 = vld [vmem:[%s1776_s1 + $0x50] sm:$0xff] (!%p198_p2)  }
   0x6   : > { %201 = sbr.rel (%p198_p2) target bundleno = 330 (0x14a), region = 40  ;;  %1277 = vmatprep.subr.bf16.mxu1 (!%p198_p2), %v1490_v1  ;;  %1337 = vmatprep.subr.bf16.mxu0 (!%p198_p2), %v1490_v1  ;;  %v1426_v2 = vld [vmem:[%s1776_s1 + $0xc0] sm:$0xff] (!%p198_p2)   ;;  %v1428_v4 = vld [vmem:[%s1776_s1 + $0xc8] sm:$0xff] (!%p198_p2)   ;;  %v1430_v6 = vld [vmem:[%s1776_s1 + $0xd0] sm:$0xff] (!%p198_p2)   ;;  %vm291_vm1 = vcmask (!%p198_p2), 1046528   ;;  %vm990_vm2 = vcmask (!%p198_p2), 519168  }
   0x7   : > { %1278 = vmatpush3.bf16.msra.mxu1 (!%p198_p2), %v1425_v0  ;;  %1293 = vmatprep.mubr.msk.bf16.mxu1 (!%p198_p2), %vm1491_vm0, %v1490_v1  ;;  %v1431_v7 = vld [vmem:[%s1776_s1 + $0x58] sm:$0xff] (!%p198_p2)   ;;  %v1433_v9 = vld [vmem:[%s1776_s1 + $0x60] sm:$0xff] (!%p198_p2)   ;;  %v1435_v11 = vld [vmem:[%s1776_s1 + $0x68] sm:$0xff] (!%p198_p2)  }
   0x8   : > { %1338 = vmatpush3.bf16.msra.mxu0 (!%p198_p2), %v1426_v2  ;;  %1279 = vmatprep.subr.bf16.mxu1 (!%p198_p2), %v1490_v1  ;;  %v1432_v8 = vld [vmem:[%s1776_s1 + $0xd8] sm:$0xff] (!%p198_p2)   ;;  %v1434_v10 = vld [vmem:[%s1776_s1 + $0xe0] sm:$0xff] (!%p198_p2)   ;;  %v1436_v12 = vld [vmem:[%s1776_s1 + $0xe8] sm:$0xff] (!%p198_p2)  }
   0x9   : > { %1339 = vmatprep.subr.bf16.mxu0 (!%p198_p2), %v1490_v1  ;;  %1353 = vmatprep.mubr.msk.bf16.mxu0 (!%p198_p2), %vm1491_vm0, %v1490_v1  ;;  %v1437_v15 = vld [vmem:[%s1776_s1 + $0x70] sm:$0xff] (!%p198_p2)   ;;  %v1439_v21 = vld [vmem:[%s1776_s1 + $0x78] sm:$0xff] (!%p198_p2)   ;;  %v1443_v28 = vld [vmem:[%s1776_s1] sm:$0xff] (!%p198_p2)  }
   0xa   : > { %v1438_v17 = vld [vmem:[%s1776_s1 + $0xf0] sm:$0xff] (!%p198_p2)   ;;  %v1440_v22 = vld [vmem:[%s1776_s1 + $0xf8] sm:$0xff] (!%p198_p2)   ;;  %v1446_v30 = vld [vmem:[%s1776_s1 + $0x100] sm:$0xff] (!%p198_p2)  }
   0xb   : > { %1280 = vmatpush3.bf16.msra.mxu1 (!%p198_p2), %v1427_v3  ;;  %v1447_v31 = vld [vmem:[%s1776_s1 + $0x8] sm:$0xff] (!%p198_p2)   ;;  %v1449_v33 = vld [vmem:[%s1776_s1 + $0x10] sm:$0xff] (!%p198_p2)   ;;  %v1451_v35 = vld [vmem:[%s1776_s1 + $0x18] sm:$0xff] (!%p198_p2)  }
   0xc   : > { %1340 = vmatpush3.bf16.msra.mxu0 (!%p198_p2), %v1428_v4  ;;  %1281 = vmatprep.subr.bf16.mxu1 (!%p198_p2), %v1490_v1  ;;  %v1448_v32 = vld [vmem:[%s1776_s1 + $0x108] sm:$0xff] (!%p198_p2)   ;;  %v1450_v34 = vld [vmem:[%s1776_s1 + $0x110] sm:$0xff] (!%p198_p2)   ;;  %v1452_v36 = vld [vmem:[%s1776_s1 + $0x118] sm:$0xff] (!%p198_p2)  }
   0xd   : > { %1341 = vmatprep.subr.bf16.mxu0 %v1490_v1  ;;  %s1782_s19 = smov (!%p230_p3, %s1060_s19), 1  ;;  %v1453_v37 = vld [vmem:[%s1776_s1 + $0x20] sm:$0xff]   ;;  %v1455_v39 = vld [vmem:[%s1776_s1 + $0x28] sm:$0xff]   ;;  %v1457_v41 = vld [vmem:[%s1776_s1 + $0x30] sm:$0xff]  }
   0xe   : > { %s1214_s11 = sshll.u32 %s1782_s19, 5  ;;  %v1454_v38 = vld [vmem:[%s1776_s1 + $0x120] sm:$0xff]   ;;  %v1456_v40 = vld [vmem:[%s1776_s1 + $0x128] sm:$0xff]   ;;  %v1458_v43 = vld [vmem:[%s1776_s1 + $0x130] sm:$0xff]   ;;  %s1215_s6 = sshll.u32 %s1782_s19, 3 }
   0xf   : > { %1282 = vmatpush3.bf16.msra.mxu1 %v1429_v5  ;;  %s1579_s20 = scalar_lea.vmem %s1775_s0, %s1214_s11  ;;  %v1459_v47 = vld [vmem:[%s1776_s1 + $0x38] sm:$0xff]   ;;  %v1462_v52 = vld [vmem:[%s1776_s1 + $0x80] sm:$0xff]   ;;  %v1465_v55 = vld [vmem:[%s1776_s1 + $0x88] sm:$0xff]   ;;  %s239_s9 = scalar_lea.vmem %s1779_s4, %s1215_s6 }
  0x10   : > { %1342 = vmatpush3.bf16.msra.mxu0 %v1430_v6  ;;  %1283 = vmatprep.subr.bf16.mxu1 %v1490_v1  ;;  %v1590_v13 = vld [vmem:[%s1579_s20 + $0x4] sm:$0xf]  ;;  %v264_v14 = vld [vmem:[%s1579_s20] sm:$0xe]  ;;  %v1444_v20 = vld [vmem:[%s1579_s20 + $0x8] sm:$0xfe]   ;;  %s244_s14 = scalar_lea.vmem %s1780_s5, %s1215_s6 }
  0x11   : > { %1343 = vmatprep.subr.bf16.mxu0 %v1490_v1  ;;  %v1442_v16 = vld [vmem:[%s1579_s20 + $0x8] ss:$0 sps:$4 sm:$0x11]   ;;  %v1445_v18 = vld [vmem:[%s1579_s20 + $0x10] ss:$0 sps:$4 sm:$0x11]   ;;  %v1087_v19 = vcombine.low %v264_v14, %v1590_v13 }
  0x12   : > { %v293_v24 = vrot.slane %v1442_v16, 1  ;;  %v622_v25 = vrot.slane %v1444_v20, 1  ;;  %v623_v26 = vrot.slane %v1445_v18, 1  ;;  %v1480_v42 = vld [vmem:[%s1579_s20 + $0x10] sm:$0xfe]   ;;  %v1460_v49 = vld [vmem:[%s1776_s1 + $0x138] sm:$0xff]  }
  0x13   : > { %1284 = vmatpush3.bf16.msra.mxu1 %v1431_v7  ;;  %v292_v23 = vrot.slane %v1087_v19, 1  ;;  %v1481_v44 = vld [vmem:[%s1579_s20 + $0x18] ss:$0 sps:$4 sm:$0x11]   ;;  %v861_v45 = vrot.slane %v1480_v42, 1  ;;  %v1463_v53 = vld [vmem:[%s1579_s20 + $0x10] sm:$0xff]  }
  0x14   : > { %1344 = vmatpush3.bf16.msra.mxu0 %v1432_v8  ;;  %1285 = vmatprep.subr.bf16.mxu1 %v1490_v1  ;;  %v624_v29 = vsel %vm291_vm1, %v622_v25, %v623_v26  ;;  %v862_v46 = vrot.slane %v1481_v44, 1  ;;  %v246_v48 = vld [vmem:[%s1579_s20] sm:$0xf]  ;;  %v1466_v56 = vld [vmem:[%s1776_s1 + $0x148] sm:$0xff]   ;;  %v1467_v57 = vld [vmem:[%s1776_s1 + $0x90] sm:$0xff]  }
  0x15   : > { %1345 = vmatprep.subr.bf16.mxu0 %v1490_v1  ;;  %v294_v27 = vsel %vm291_vm1, %v292_v23, %v293_v24  ;;  %v1097_v51 = vcombine.low %v246_v48, %v1590_v13  ;;  %v1464_v54 = vld [vmem:[%s1776_s1 + $0x140] sm:$0xff]   ;;  %v1468_v58 = vld [vmem:[%s1776_s1 + $0x150] sm:$0xff]   ;;  %v1469_v59 = vld [vmem:[%s1776_s1 + $0x98] sm:$0xff]  }
  0x16   : > { %v863_v50 = vsel %vm291_vm1, %v861_v45, %v862_v46  ;;  %v1470_v60 = vld [vmem:[%s1776_s1 + $0x158] sm:$0xff]   ;;  %v1471_v61 = vld [vmem:[%s1776_s1 + $0xa0] sm:$0xff]   ;;  %v1473_v63 = vld [vmem:[%s1776_s1 + $0xa8] sm:$0xff]  }
  0x17   : > { %1286 = vmatpush3.bf16.msra.mxu1 %v1433_v9  ;;  %v1472_v62 = vld [vmem:[%s1776_s1 + $0x160] sm:$0xff]   ;;  %v1474_v0 = vld [vmem:[%s1776_s1 + $0x168] sm:$0xff]   ;;  %v1475_v2 = vld [vmem:[%s1776_s1 + $0xb0] sm:$0xff]  }
  0x18   : > { %1346 = vmatpush3.bf16.msra.mxu0 %v1434_v10  ;;  %1287 = vmatprep.subr.bf16.mxu1 %v1490_v1  ;;  %v1476_v3 = vld [vmem:[%s1776_s1 + $0x170] sm:$0xff]   ;;  %v1477_v4 = vld [vmem:[%s1776_s1 + $0xb8] sm:$0xff]   ;;  %v1479_v6 = vld [vmem:[%s1579_s20 + $0x8] sm:$0xff]  }
  0x19   : > { %1347 = vmatprep.subr.bf16.mxu0 %v1490_v1  ;;  %v1478_v5 = vld [vmem:[%s1776_s1 + $0x178] sm:$0xff]   ;;  %v1208_v9 = vld [vmem:[%s1777_s2] ss:$0 sm:$0xff] }
  0x1a   : > { %v1220_v10 = vld [vmem:[%s239_s9] sm:$0xff]  }
  0x1b   : > { %1288 = vmatpush3.bf16.msra.mxu1 %v1435_v11  ;;  %v1209_v14 = vld [vmem:[%s1778_s3] ss:$0 sm:$0xff]  ;;  %v1221_v18 = vunpack.c.l.bf16 %v1220_v10  ;;  %v1222_v23 = vunpack.c.h.bf16 %v1220_v10 }
  0x1c   : > { %1348 = vmatpush3.bf16.msra.mxu0 %v1436_v12  ;;  %1289 = vmatprep.subr.bf16.mxu1 %v1490_v1 }
  0x1d   : > { %1349 = vmatprep.subr.bf16.mxu0 %v1490_v1 }
  0x1f   : > { %1290 = vmatpush3.bf16.msra.mxu1 %v1437_v15 }
  0x20   : > { %1350 = vmatpush3.bf16.msra.mxu0 %v1438_v17  ;;  %1291 = vmatprep.subr.bf16.mxu1 %v1490_v1 }
  0x21   : > { %1351 = vmatprep.subr.bf16.mxu0 %v1490_v1 }
  0x23   : > { %1292 = vmatpush3.bf16.msra.mxu1 %v1439_v21 }
  0x24   : > { %1352 = vmatpush3.bf16.msra.mxu0 %v1440_v22  ;;  %1297 = vmatprep.subr.bf16.mxu1 %v1490_v1 }
  0x25   : > { %1357 = vmatprep.subr.bf16.mxu0 %v1490_v1 }
  0x26   : > { %1294 = vmatmul.mubr.bf16.vlgmr.msra.gmra.mrb[0].mxu1 %v294_v27 }
  0x27   : > { %1298 = vmatpush3.bf16.msra.mxu1 %v1443_v28  ;;  %1354 = vmatmul.mubr.bf16.vlgmr.msra.gmra.mrb[0].mxu0 %v624_v29 }
  0x28   : > { %1358 = vmatpush3.bf16.msra.mxu0 %v1446_v30  ;;  %1299 = vmatprep.subr.bf16.mxu1 %v1490_v1 }
  0x29   : > { %1359 = vmatprep.subr.bf16.mxu0 %v1490_v1  ;;  %1313 = vmatprep.mubr.msk.bf16.mxu1 %vm1491_vm0, %v1490_v1 }
  0x2a   : > { %1373 = vmatprep.mubr.msk.bf16.mxu0 %vm1491_vm0, %v1490_v1 }
  0x2b   : > { %1300 = vmatpush3.bf16.msra.mxu1 %v1447_v31 }
  0x2c   : > { %1360 = vmatpush3.bf16.msra.mxu0 %v1448_v32  ;;  %1301 = vmatprep.subr.bf16.mxu1 %v1490_v1 }
  0x2d   : > { %1361 = vmatprep.subr.bf16.mxu0 %v1490_v1 }
  0x2f   : > { %1302 = vmatpush3.bf16.msra.mxu1 %v1449_v33 }
  0x30   : > { %1362 = vmatpush3.bf16.msra.mxu0 %v1450_v34  ;;  %1303 = vmatprep.subr.bf16.mxu1 %v1490_v1 }
  0x31   : > { %1363 = vmatprep.subr.bf16.mxu0 %v1490_v1 }
  0x33   : > { %1304 = vmatpush3.bf16.msra.mxu1 %v1451_v35 }
  0x34   : > { %1364 = vmatpush3.bf16.msra.mxu0 %v1452_v36  ;;  %1305 = vmatprep.subr.bf16.mxu1 %v1490_v1 }
  0x35   : > { %1365 = vmatprep.subr.bf16.mxu0 %v1490_v1 }
  0x37   : > { %1306 = vmatpush3.bf16.msra.mxu1 %v1453_v37 }
  0x38   : > { %1366 = vmatpush3.bf16.msra.mxu0 %v1454_v38  ;;  %1307 = vmatprep.subr.bf16.mxu1 %v1490_v1 }
  0x39   : > { %1367 = vmatprep.subr.bf16.mxu0 %v1490_v1 }
  0x3b   : > { %1308 = vmatpush3.bf16.msra.mxu1 %v1455_v39 }
  0x3c   : > { %1368 = vmatpush3.bf16.msra.mxu0 %v1456_v40  ;;  %1309 = vmatprep.subr.bf16.mxu1 %v1490_v1 }
  0x3d   : > { %1369 = vmatprep.subr.bf16.mxu0 %v1490_v1 }
  0x3f   : > { %1310 = vmatpush3.bf16.msra.mxu1 %v1457_v41 }
  0x40   : > { %1370 = vmatpush3.bf16.msra.mxu0 %v1458_v43  ;;  %1311 = vmatprep.subr.bf16.mxu1 %v1490_v1 }
  0x41   : > { %1371 = vmatprep.subr.bf16.mxu0 %v1490_v1 }
  0x43   : > { %1312 = vmatpush3.bf16.msra.mxu1 %v1459_v47 }
  0x44   : > { %1372 = vmatpush3.bf16.msra.mxu0 %v1460_v49  ;;  %1317 = vmatprep.subr.bf16.mxu1 %v1490_v1 }
  0x45   : > { %1377 = vmatprep.subr.bf16.mxu0 %v1490_v1 }
  0x46   : > { %1314 = vmatmul.mubr.bf16.vlgmr.msra.gmra.mrb[0].mxu1 %v1097_v51 }
  0x47   : > { %1318 = vmatpush3.bf16.msra.mxu1 %v1462_v52  ;;  %1374 = vmatmul.mubr.bf16.vlgmr.msra.gmra.mrb[0].mxu0 %v1463_v53 }
  0x48   : > { %1378 = vmatpush3.bf16.msra.mxu0 %v1464_v54  ;;  %1319 = vmatprep.subr.bf16.mxu1 %v1490_v1 }
  0x49   : > { %1379 = vmatprep.subr.bf16.mxu0 %v1490_v1  ;;  %1333 = vmatprep.mubr.msk.bf16.mxu1 %vm1491_vm0, %v1490_v1 }
  0x4a   : > { %1393 = vmatprep.mubr.msk.bf16.mxu0 %vm1491_vm0, %v1490_v1 }
  0x4b   : > { %1320 = vmatpush3.bf16.msra.mxu1 %v1465_v55 }
  0x4c   : > { %1380 = vmatpush3.bf16.msra.mxu0 %v1466_v56  ;;  %1321 = vmatprep.subr.bf16.mxu1 %v1490_v1 }
  0x4d   : > { %1381 = vmatprep.subr.bf16.mxu0 %v1490_v1 }
  0x4f   : > { %1322 = vmatpush3.bf16.msra.mxu1 %v1467_v57 }
  0x50   : > { %1382 = vmatpush3.bf16.msra.mxu0 %v1468_v58  ;;  %1323 = vmatprep.subr.bf16.mxu1 %v1490_v1 }
  0x51   : > { %1383 = vmatprep.subr.bf16.mxu0 %v1490_v1 }
  0x53   : > { %1324 = vmatpush3.bf16.msra.mxu1 %v1469_v59 }
  0x54   : > { %1384 = vmatpush3.bf16.msra.mxu0 %v1470_v60  ;;  %1325 = vmatprep.subr.bf16.mxu1 %v1490_v1 }
  0x55   : > { %1385 = vmatprep.subr.bf16.mxu0 %v1490_v1 }
  0x57   : > { %1326 = vmatpush3.bf16.msra.mxu1 %v1471_v61 }
  0x58   : > { %1386 = vmatpush3.bf16.msra.mxu0 %v1472_v62  ;;  %1327 = vmatprep.subr.bf16.mxu1 %v1490_v1 }
  0x59   : > { %1387 = vmatprep.subr.bf16.mxu0 %v1490_v1 }
  0x5b   : > { %1328 = vmatpush3.bf16.msra.mxu1 %v1473_v63 }
  0x5c   : > { %1388 = vmatpush3.bf16.msra.mxu0 %v1474_v0  ;;  %1329 = vmatprep.subr.bf16.mxu1 %v1490_v1 }
  0x5d   : > { %1389 = vmatprep.subr.bf16.mxu0 %v1490_v1 }
  0x5f   : > { %1330 = vmatpush3.bf16.msra.mxu1 %v1475_v2 }
  0x60   : > { %1390 = vmatpush3.bf16.msra.mxu0 %v1476_v3  ;;  %1331 = vmatprep.subr.bf16.mxu1 %v1490_v1 }
  0x61   : > { %1391 = vmatprep.subr.bf16.mxu0 %v1490_v1 }
  0x63   : > { %1332 = vmatpush3.bf16.msra.mxu1 %v1477_v4 }
  0x64   : > { %1392 = vmatpush3.bf16.msra.mxu0 %v1478_v5 }
  0x66   : > { %1334 = vmatmul.mubr.bf16.vlgmr.msra.gmra.mrb[0].mxu1 %v1479_v6 }
  0x67   : > { %1394 = vmatmul.mubr.bf16.vlgmr.msra.gmra.mrb[0].mxu0 %v863_v50 }
 0x139   : > { %v585_v7 = vpop.f32.mrb[0].mxu1 }
 0x13a   : > { %v947_v8 = vpop.f32.mrb[0].mxu0  ;;  %v1335_v11 = vpop.f32.mrb[1].mxu1 }
 0x13b   : > { %v1397_v12 = vadd.f32 %v947_v8, %v585_v7  ;;  %v1395_v1 = vpop.f32.mrb[1].mxu0  ;;  %v588_v13 = vpop.f32.mrb[2].mxu1 }
 0x13c   : > { %v950_v15 = vpop.f32.mrb[2].mxu0  ;;  %v1336_v16 = vpop.f32.mrb[3].mxu1 }
 0x13d   : > { %v963_v17 = vmul.f32 %v1397_v12, %v1208_v9  ;;  %v1398_v19 = vadd.f32 %v950_v15, %v588_v13  ;;  %v1396_v20 = vpop.f32.mrb[3].mxu0 }
 0x13f   : > { %v972_v21 = vadd.f32 %v1209_v14, %v963_v17  ;;  %v964_v22 = vmul.f32 %v1398_v19, %v1208_v9 }
 0x141   : > { %v978_v24 = vadd.f32 %v1221_v18, %v972_v21  ;;  %v973_v25 = vadd.f32 %v1209_v14, %v964_v22 }
 0x143   : > { %v980_v26 = vmax.f32 %v978_v24, 0.0  ;;  %v979_v27 = vadd.f32 %v1222_v23, %v973_v25 }
 0x145   : > { %v1217_v28 = vpack.c.bf16 %v980_v26, %v980_v26  ;;  %v981_v29 = vmax.f32 %v979_v27, 0.0 }
 0x147   : > { %991 = vst.msk [vmem:[%s244_s14] sm:$0xf] %vm990_vm2, %v1217_v28  ;;  %v1218_v30 = vpack.c.bf16 %v981_v29, %v981_v29 }
 0x149   : > { %992 = vst.msk [vmem:[%s244_s14 + $0x4] sm:$0xf] %vm990_vm2, %v1218_v30 }
 0x14a PF: > { %s15_s18 = sadd.s32 1, %s1488_s18  }
 0x14b   : > { %p12_p4 = scmp.ge.s32.totalorder %s15_s18, 4  }
 0x14d   :  { %14 = sbr.rel (!%p12_p4) target bundleno = 1 (0x1), region = 78 }

// kernel: _lambda_.41
= control target key start
LH: loop header
LB: loop body
LE: loop exit
PB: predicated region body
PF: predicated region fallthrough
CT: control target
= control target key end

     0   :  { %s1445_s15 = smov 0   ;;  %s1695_s0 = inlined_call_operand.vmem [shape: bf16[2,64,128], index: 0, kind: input, shape index: {}]   ;;  %s1696_s1 = inlined_call_operand.vmem [shape: bf16[6,128,64], index: 1, kind: input, shape index: {}]   ;;  %s1697_s2 = inlined_call_operand.vmem [shape: f32[1,64], index: 2, kind: input, shape index: {}]   ;;  %s1698_s3 = inlined_call_operand.vmem [shape: f32[1,64], index: 3, kind: input, shape index: {}]   ;;  %s1699_s4 = inlined_call_operand.vmem [shape: bf16[2,16,64], index: 4, kind: output, shape index: {}]  }
   0x1 LB: > { %s995_s16 = sadd.s32 4294967295, %s1416_s15   ;;  %p999_p0 = scmp.ge.s32.totalorder %s1416_s15, 1  ;;  %s1416_s15 = sphi %s1445_s15, %s14_s15  }
   0x2   : > { %p162_p1 = scmp.lt.s32.totalorder %s1416_s15, 3 }
   0x4   : > { %p163_p2 = pnand %p999_p0, %p162_p1 }
   0x5   : > { %v1353_v0 = vld [vmem:[%s1696_s1 + $0x40] sm:$0xff] (!%p163_p2)   ;;  %v1418_v1 = vmov (!%p163_p2), 0.0   ;;  %v1355_v3 = vld [vmem:[%s1696_s1 + $0x48] sm:$0xff] (!%p163_p2)   ;;  %vm1419_vm0 = vmmov (!%p163_p2), 0   ;;  %p188_p3 = scmp.lt.s32.totalorder (!%p163_p2), %s995_s16, 1  ;;  %v1357_v5 = vld [vmem:[%s1696_s1 + $0x50] sm:$0xff] (!%p163_p2)  }
   0x6   : > { %166 = sbr.rel (%p163_p2) target bundleno = 328 (0x148), region = 36  ;;  %1205 = vmatprep.subr.bf16.mxu1 (!%p163_p2), %v1418_v1  ;;  %1265 = vmatprep.subr.bf16.mxu0 (!%p163_p2), %v1418_v1  ;;  %v1354_v2 = vld [vmem:[%s1696_s1 + $0xc0] sm:$0xff] (!%p163_p2)   ;;  %v1356_v4 = vld [vmem:[%s1696_s1 + $0xc8] sm:$0xff] (!%p163_p2)   ;;  %v1358_v6 = vld [vmem:[%s1696_s1 + $0xd0] sm:$0xff] (!%p163_p2)   ;;  %vm244_vm1 = vcmask (!%p163_p2), 1046528   ;;  %vm937_vm2 = vcmask (!%p163_p2), 519168  }
   0x7   : > { %1206 = vmatpush3.bf16.msra.mxu1 (!%p163_p2), %v1353_v0  ;;  %1221 = vmatprep.mubr.msk.bf16.mxu1 (!%p163_p2), %vm1419_vm0, %v1418_v1  ;;  %v1359_v7 = vld [vmem:[%s1696_s1 + $0x58] sm:$0xff] (!%p163_p2)   ;;  %v1361_v9 = vld [vmem:[%s1696_s1 + $0x60] sm:$0xff] (!%p163_p2)   ;;  %v1363_v11 = vld [vmem:[%s1696_s1 + $0x68] sm:$0xff] (!%p163_p2)  }
   0x8   : > { %1266 = vmatpush3.bf16.msra.mxu0 (!%p163_p2), %v1354_v2  ;;  %1207 = vmatprep.subr.bf16.mxu1 (!%p163_p2), %v1418_v1  ;;  %v1360_v8 = vld [vmem:[%s1696_s1 + $0xd8] sm:$0xff] (!%p163_p2)   ;;  %v1362_v10 = vld [vmem:[%s1696_s1 + $0xe0] sm:$0xff] (!%p163_p2)   ;;  %v1364_v12 = vld [vmem:[%s1696_s1 + $0xe8] sm:$0xff] (!%p163_p2)  }
   0x9   : > { %1267 = vmatprep.subr.bf16.mxu0 (!%p163_p2), %v1418_v1  ;;  %1281 = vmatprep.mubr.msk.bf16.mxu0 (!%p163_p2), %vm1419_vm0, %v1418_v1  ;;  %v1365_v15 = vld [vmem:[%s1696_s1 + $0x70] sm:$0xff] (!%p163_p2)   ;;  %v1367_v21 = vld [vmem:[%s1696_s1 + $0x78] sm:$0xff] (!%p163_p2)   ;;  %v1371_v28 = vld [vmem:[%s1696_s1] sm:$0xff] (!%p163_p2)  }
   0xa   : > { %v1366_v17 = vld [vmem:[%s1696_s1 + $0xf0] sm:$0xff] (!%p163_p2)   ;;  %v1368_v22 = vld [vmem:[%s1696_s1 + $0xf8] sm:$0xff] (!%p163_p2)   ;;  %v1374_v30 = vld [vmem:[%s1696_s1 + $0x100] sm:$0xff] (!%p163_p2)  }
   0xb   : > { %1208 = vmatpush3.bf16.msra.mxu1 (!%p163_p2), %v1355_v3  ;;  %v1375_v31 = vld [vmem:[%s1696_s1 + $0x8] sm:$0xff] (!%p163_p2)   ;;  %v1377_v33 = vld [vmem:[%s1696_s1 + $0x10] sm:$0xff] (!%p163_p2)   ;;  %v1379_v35 = vld [vmem:[%s1696_s1 + $0x18] sm:$0xff] (!%p163_p2)  }
   0xc   : > { %1268 = vmatpush3.bf16.msra.mxu0 (!%p163_p2), %v1356_v4  ;;  %1209 = vmatprep.subr.bf16.mxu1 (!%p163_p2), %v1418_v1  ;;  %v1376_v32 = vld [vmem:[%s1696_s1 + $0x108] sm:$0xff] (!%p163_p2)   ;;  %v1378_v34 = vld [vmem:[%s1696_s1 + $0x110] sm:$0xff] (!%p163_p2)   ;;  %v1380_v36 = vld [vmem:[%s1696_s1 + $0x118] sm:$0xff] (!%p163_p2)  }
   0xd   : > { %1269 = vmatprep.subr.bf16.mxu0 %v1418_v1  ;;  %s1701_s16 = smov (!%p188_p3, %s995_s16), 1  ;;  %v1381_v37 = vld [vmem:[%s1696_s1 + $0x20] sm:$0xff]   ;;  %v1383_v39 = vld [vmem:[%s1696_s1 + $0x28] sm:$0xff]   ;;  %v1385_v41 = vld [vmem:[%s1696_s1 + $0x30] sm:$0xff]  }
   0xe   : > { %s1147_s7 = sshll.u32 %s1701_s16, 5  ;;  %v1382_v38 = vld [vmem:[%s1696_s1 + $0x120] sm:$0xff]   ;;  %v1384_v40 = vld [vmem:[%s1696_s1 + $0x128] sm:$0xff]   ;;  %v1386_v43 = vld [vmem:[%s1696_s1 + $0x130] sm:$0xff]  }
   0xf   : > { %1210 = vmatpush3.bf16.msra.mxu1 %v1357_v5  ;;  %s1502_s14 = scalar_lea.vmem %s1695_s0, %s1147_s7  ;;  %v1387_v47 = vld [vmem:[%s1696_s1 + $0x38] sm:$0xff]   ;;  %v1390_v52 = vld [vmem:[%s1696_s1 + $0x80] sm:$0xff]   ;;  %v1393_v55 = vld [vmem:[%s1696_s1 + $0x88] sm:$0xff]  }
  0x10   : > { %1270 = vmatpush3.bf16.msra.mxu0 %v1358_v6  ;;  %1211 = vmatprep.subr.bf16.mxu1 %v1418_v1  ;;  %v1513_v13 = vld [vmem:[%s1502_s14 + $0x4] sm:$0xf]  ;;  %v217_v14 = vld [vmem:[%s1502_s14] sm:$0xe]  ;;  %v1372_v20 = vld [vmem:[%s1502_s14 + $0x8] sm:$0xfe]  }
  0x11   : > { %1271 = vmatprep.subr.bf16.mxu0 %v1418_v1  ;;  %v1370_v16 = vld [vmem:[%s1502_s14 + $0x8] ss:$0 sps:$4 sm:$0x11]   ;;  %v1373_v18 = vld [vmem:[%s1502_s14 + $0x10] ss:$0 sps:$4 sm:$0x11]   ;;  %v1020_v19 = vcombine.low %v217_v14, %v1513_v13 }
  0x12   : > { %v246_v24 = vrot.slane %v1370_v16, 1  ;;  %v575_v25 = vrot.slane %v1372_v20, 1  ;;  %v576_v26 = vrot.slane %v1373_v18, 1  ;;  %v1408_v42 = vld [vmem:[%s1502_s14 + $0x10] sm:$0xfe]   ;;  %v1388_v49 = vld [vmem:[%s1696_s1 + $0x138] sm:$0xff]  }
  0x13   : > { %1212 = vmatpush3.bf16.msra.mxu1 %v1359_v7  ;;  %v245_v23 = vrot.slane %v1020_v19, 1  ;;  %v1409_v44 = vld [vmem:[%s1502_s14 + $0x18] ss:$0 sps:$4 sm:$0x11]   ;;  %v814_v45 = vrot.slane %v1408_v42, 1  ;;  %v1391_v53 = vld [vmem:[%s1502_s14 + $0x10] sm:$0xff]  }
  0x14   : > { %1272 = vmatpush3.bf16.msra.mxu0 %v1360_v8  ;;  %1213 = vmatprep.subr.bf16.mxu1 %v1418_v1  ;;  %v577_v29 = vsel %vm244_vm1, %v575_v25, %v576_v26  ;;  %v815_v46 = vrot.slane %v1409_v44, 1  ;;  %v199_v48 = vld [vmem:[%s1502_s14] sm:$0xf]  ;;  %v1394_v56 = vld [vmem:[%s1696_s1 + $0x148] sm:$0xff]   ;;  %v1395_v57 = vld [vmem:[%s1696_s1 + $0x90] sm:$0xff]  }
  0x15   : > { %1273 = vmatprep.subr.bf16.mxu0 %v1418_v1  ;;  %v247_v27 = vsel %vm244_vm1, %v245_v23, %v246_v24  ;;  %v1030_v51 = vcombine.low %v199_v48, %v1513_v13  ;;  %v1392_v54 = vld [vmem:[%s1696_s1 + $0x140] sm:$0xff]   ;;  %v1396_v58 = vld [vmem:[%s1696_s1 + $0x150] sm:$0xff]   ;;  %v1397_v59 = vld [vmem:[%s1696_s1 + $0x98] sm:$0xff]  }
  0x16   : > { %v816_v50 = vsel %vm244_vm1, %v814_v45, %v815_v46  ;;  %v1398_v60 = vld [vmem:[%s1696_s1 + $0x158] sm:$0xff]   ;;  %v1399_v61 = vld [vmem:[%s1696_s1 + $0xa0] sm:$0xff]   ;;  %v1401_v63 = vld [vmem:[%s1696_s1 + $0xa8] sm:$0xff]  }
  0x17   : > { %1214 = vmatpush3.bf16.msra.mxu1 %v1361_v9  ;;  %v1400_v62 = vld [vmem:[%s1696_s1 + $0x160] sm:$0xff]   ;;  %v1402_v0 = vld [vmem:[%s1696_s1 + $0x168] sm:$0xff]   ;;  %v1403_v2 = vld [vmem:[%s1696_s1 + $0xb0] sm:$0xff]  }
  0x18   : > { %1274 = vmatpush3.bf16.msra.mxu0 %v1362_v10  ;;  %1215 = vmatprep.subr.bf16.mxu1 %v1418_v1  ;;  %v1404_v3 = vld [vmem:[%s1696_s1 + $0x170] sm:$0xff]   ;;  %v1405_v4 = vld [vmem:[%s1696_s1 + $0xb8] sm:$0xff]   ;;  %v1407_v6 = vld [vmem:[%s1502_s14 + $0x8] sm:$0xff]   ;;  %s1148_s14 = sshll.u32 %s1701_s16, 3 }
  0x19   : > { %1275 = vmatprep.subr.bf16.mxu0 %v1418_v1  ;;  %v1406_v5 = vld [vmem:[%s1696_s1 + $0x178] sm:$0xff]   ;;  %v1141_v9 = vld [vmem:[%s1697_s2] ss:$0 sm:$0xff]  ;;  %s197_s30 = scalar_lea.vmem %s1699_s4, %s1148_s14 }
  0x1b   : > { %1216 = vmatpush3.bf16.msra.mxu1 %v1363_v11 }
  0x1c   : > { %1276 = vmatpush3.bf16.msra.mxu0 %v1364_v12  ;;  %1217 = vmatprep.subr.bf16.mxu1 %v1418_v1 }
  0x1d   : > { %1277 = vmatprep.subr.bf16.mxu0 %v1418_v1 }
  0x1f   : > { %1218 = vmatpush3.bf16.msra.mxu1 %v1365_v15 }
  0x20   : > { %1278 = vmatpush3.bf16.msra.mxu0 %v1366_v17  ;;  %1219 = vmatprep.subr.bf16.mxu1 %v1418_v1 }
  0x21   : > { %1279 = vmatprep.subr.bf16.mxu0 %v1418_v1 }
  0x23   : > { %1220 = vmatpush3.bf16.msra.mxu1 %v1367_v21 }
  0x24   : > { %1280 = vmatpush3.bf16.msra.mxu0 %v1368_v22  ;;  %1225 = vmatprep.subr.bf16.mxu1 %v1418_v1 }
  0x25   : > { %1285 = vmatprep.subr.bf16.mxu0 %v1418_v1 }
  0x26   : > { %1222 = vmatmul.mubr.bf16.vlgmr.msra.gmra.mrb[0].mxu1 %v247_v27 }
  0x27   : > { %1226 = vmatpush3.bf16.msra.mxu1 %v1371_v28  ;;  %1282 = vmatmul.mubr.bf16.vlgmr.msra.gmra.mrb[0].mxu0 %v577_v29 }
  0x28   : > { %1286 = vmatpush3.bf16.msra.mxu0 %v1374_v30  ;;  %1227 = vmatprep.subr.bf16.mxu1 %v1418_v1 }
  0x29   : > { %1287 = vmatprep.subr.bf16.mxu0 %v1418_v1  ;;  %1241 = vmatprep.mubr.msk.bf16.mxu1 %vm1419_vm0, %v1418_v1 }
  0x2a   : > { %1301 = vmatprep.mubr.msk.bf16.mxu0 %vm1419_vm0, %v1418_v1 }
  0x2b   : > { %1228 = vmatpush3.bf16.msra.mxu1 %v1375_v31 }
  0x2c   : > { %1288 = vmatpush3.bf16.msra.mxu0 %v1376_v32  ;;  %1229 = vmatprep.subr.bf16.mxu1 %v1418_v1 }
  0x2d   : > { %1289 = vmatprep.subr.bf16.mxu0 %v1418_v1 }
  0x2f   : > { %1230 = vmatpush3.bf16.msra.mxu1 %v1377_v33 }
  0x30   : > { %1290 = vmatpush3.bf16.msra.mxu0 %v1378_v34  ;;  %1231 = vmatprep.subr.bf16.mxu1 %v1418_v1 }
  0x31   : > { %1291 = vmatprep.subr.bf16.mxu0 %v1418_v1 }
  0x33   : > { %1232 = vmatpush3.bf16.msra.mxu1 %v1379_v35 }
  0x34   : > { %1292 = vmatpush3.bf16.msra.mxu0 %v1380_v36  ;;  %1233 = vmatprep.subr.bf16.mxu1 %v1418_v1 }
  0x35   : > { %1293 = vmatprep.subr.bf16.mxu0 %v1418_v1 }
  0x37   : > { %1234 = vmatpush3.bf16.msra.mxu1 %v1381_v37 }
  0x38   : > { %1294 = vmatpush3.bf16.msra.mxu0 %v1382_v38  ;;  %1235 = vmatprep.subr.bf16.mxu1 %v1418_v1 }
  0x39   : > { %1295 = vmatprep.subr.bf16.mxu0 %v1418_v1 }
  0x3b   : > { %1236 = vmatpush3.bf16.msra.mxu1 %v1383_v39 }
  0x3c   : > { %1296 = vmatpush3.bf16.msra.mxu0 %v1384_v40  ;;  %1237 = vmatprep.subr.bf16.mxu1 %v1418_v1 }
  0x3d   : > { %1297 = vmatprep.subr.bf16.mxu0 %v1418_v1 }
  0x3f   : > { %1238 = vmatpush3.bf16.msra.mxu1 %v1385_v41 }
  0x40   : > { %1298 = vmatpush3.bf16.msra.mxu0 %v1386_v43  ;;  %1239 = vmatprep.subr.bf16.mxu1 %v1418_v1 }
  0x41   : > { %1299 = vmatprep.subr.bf16.mxu0 %v1418_v1 }
  0x43   : > { %1240 = vmatpush3.bf16.msra.mxu1 %v1387_v47 }
  0x44   : > { %1300 = vmatpush3.bf16.msra.mxu0 %v1388_v49  ;;  %1245 = vmatprep.subr.bf16.mxu1 %v1418_v1 }
  0x45   : > { %1305 = vmatprep.subr.bf16.mxu0 %v1418_v1 }
  0x46   : > { %1242 = vmatmul.mubr.bf16.vlgmr.msra.gmra.mrb[0].mxu1 %v1030_v51 }
  0x47   : > { %1246 = vmatpush3.bf16.msra.mxu1 %v1390_v52  ;;  %1302 = vmatmul.mubr.bf16.vlgmr.msra.gmra.mrb[0].mxu0 %v1391_v53 }
  0x48   : > { %1306 = vmatpush3.bf16.msra.mxu0 %v1392_v54  ;;  %1247 = vmatprep.subr.bf16.mxu1 %v1418_v1 }
  0x49   : > { %1307 = vmatprep.subr.bf16.mxu0 %v1418_v1  ;;  %1261 = vmatprep.mubr.msk.bf16.mxu1 %vm1419_vm0, %v1418_v1 }
  0x4a   : > { %1321 = vmatprep.mubr.msk.bf16.mxu0 %vm1419_vm0, %v1418_v1 }
  0x4b   : > { %1248 = vmatpush3.bf16.msra.mxu1 %v1393_v55 }
  0x4c   : > { %1308 = vmatpush3.bf16.msra.mxu0 %v1394_v56  ;;  %1249 = vmatprep.subr.bf16.mxu1 %v1418_v1 }
  0x4d   : > { %1309 = vmatprep.subr.bf16.mxu0 %v1418_v1 }
  0x4f   : > { %1250 = vmatpush3.bf16.msra.mxu1 %v1395_v57 }
  0x50   : > { %1310 = vmatpush3.bf16.msra.mxu0 %v1396_v58  ;;  %1251 = vmatprep.subr.bf16.mxu1 %v1418_v1 }
  0x51   : > { %1311 = vmatprep.subr.bf16.mxu0 %v1418_v1 }
  0x53   : > { %1252 = vmatpush3.bf16.msra.mxu1 %v1397_v59 }
  0x54   : > { %1312 = vmatpush3.bf16.msra.mxu0 %v1398_v60  ;;  %1253 = vmatprep.subr.bf16.mxu1 %v1418_v1 }
  0x55   : > { %1313 = vmatprep.subr.bf16.mxu0 %v1418_v1 }
  0x57   : > { %1254 = vmatpush3.bf16.msra.mxu1 %v1399_v61 }
  0x58   : > { %1314 = vmatpush3.bf16.msra.mxu0 %v1400_v62  ;;  %1255 = vmatprep.subr.bf16.mxu1 %v1418_v1 }
  0x59   : > { %1315 = vmatprep.subr.bf16.mxu0 %v1418_v1 }
  0x5b   : > { %1256 = vmatpush3.bf16.msra.mxu1 %v1401_v63 }
  0x5c   : > { %1316 = vmatpush3.bf16.msra.mxu0 %v1402_v0  ;;  %1257 = vmatprep.subr.bf16.mxu1 %v1418_v1 }
  0x5d   : > { %1317 = vmatprep.subr.bf16.mxu0 %v1418_v1 }
  0x5f   : > { %1258 = vmatpush3.bf16.msra.mxu1 %v1403_v2 }
  0x60   : > { %1318 = vmatpush3.bf16.msra.mxu0 %v1404_v3  ;;  %1259 = vmatprep.subr.bf16.mxu1 %v1418_v1 }
  0x61   : > { %1319 = vmatprep.subr.bf16.mxu0 %v1418_v1  ;;  %v1142_v1 = vld [vmem:[%s1698_s3] ss:$0 sm:$0xff] }
  0x63   : > { %1260 = vmatpush3.bf16.msra.mxu1 %v1405_v4 }
  0x64   : > { %1320 = vmatpush3.bf16.msra.mxu0 %v1406_v5 }
  0x66   : > { %1262 = vmatmul.mubr.bf16.vlgmr.msra.gmra.mrb[0].mxu1 %v1407_v6 }
  0x67   : > { %1322 = vmatmul.mubr.bf16.vlgmr.msra.gmra.mrb[0].mxu0 %v816_v50 }
 0x139   : > { %v538_v7 = vpop.f32.mrb[0].mxu1 }
 0x13a   : > { %v900_v8 = vpop.f32.mrb[0].mxu0  ;;  %v1263_v10 = vpop.f32.mrb[1].mxu1 }
 0x13b   : > { %v1325_v11 = vadd.f32 %v900_v8, %v538_v7  ;;  %v1323_v12 = vpop.f32.mrb[1].mxu0  ;;  %v541_v13 = vpop.f32.mrb[2].mxu1 }
 0x13c   : > { %v903_v14 = vpop.f32.mrb[2].mxu0  ;;  %v1264_v15 = vpop.f32.mrb[3].mxu1 }
 0x13d   : > { %v916_v16 = vmul.f32 %v1325_v11, %v1141_v9  ;;  %v1326_v17 = vadd.f32 %v903_v14, %v541_v13  ;;  %v1324_v18 = vpop.f32.mrb[3].mxu0 }
 0x13f   : > { %v925_v19 = vadd.f32 %v1142_v1, %v916_v16  ;;  %v917_v20 = vmul.f32 %v1326_v17, %v1141_v9 }
 0x141   : > { %v927_v21 = vmax.f32 %v925_v19, 0.0  ;;  %v926_v22 = vadd.f32 %v1142_v1, %v917_v20 }
 0x143   : > { %v1149_v23 = vpack.c.bf16 %v927_v21, %v927_v21  ;;  %v928_v24 = vmax.f32 %v926_v22, 0.0 }
 0x145   : > { %938 = vst.msk [vmem:[%s197_s30] sm:$0xf] %vm937_vm2, %v1149_v23  ;;  %v1150_v25 = vpack.c.bf16 %v928_v24, %v928_v24 }
 0x147   : > { %939 = vst.msk [vmem:[%s197_s30 + $0x4] sm:$0xf] %vm937_vm2, %v1150_v25 }
 0x148 PF: > { %s14_s15 = sadd.s32 1, %s1416_s15  }
 0x149   : > { %p11_p4 = scmp.ge.s32.totalorder %s14_s15, 4  }
 0x14b   :  { %13 = sbr.rel (!%p11_p4) target bundleno = 1 (0x1), region = 71 }

// kernel: _lambda_.43
= control target key start
LH: loop header
LB: loop body
LE: loop exit
PB: predicated region body
PF: predicated region fallthrough
CT: control target
= control target key end

     0   :  { %8 = vsyncpa [#allocation3], 0  ;;  %s588_s0 = inlined_call_operand.vmem [shape: bf16[2,1,64], index: 0, kind: input, shape index: {}]   ;;  %s589_s1 = inlined_call_operand.vmem [shape: bf16[64,128], index: 1, kind: input, shape index: {}]   ;;  %s590_s2 = inlined_call_operand.vmem [shape: f32[1,128], index: 2, kind: input, shape index: {}]   ;;  %s591_s3 = inlined_call_operand.hbm [shape: f32[2,1,128], index: 3, kind: output, shape index: {}]  }
   0x1   :  { %10 = vsyncpa [#allocation3 + $0x1], 0  ;;  %s473_s12 = smov 0   ;;  %s475_s13 = smov 0  }
   0x2   :  { %s477_s14 = smov 0   ;;  %s479_s15 = smov 0  }
   0x3 LB: > { %s494_s16 = sadd.s32 4294967295, %s448_s15   ;;  %s310_s17 = sadd.s32 4294967294, %s448_s15   ;;  %s448_s15 = sphi %s479_s15, %s597_s15   ;;  %s444_s14 = sphi %s477_s14, %s596_s14   ;;  %s440_s13 = sphi %s475_s13, %s595_s13   ;;  %s436_s12 = sphi %s473_s12, %s594_s12  }
   0x4   : > { %s498_s18 = sadd.s32 1, %s448_s15   ;;  %s91_s19 = sadd.s32 1, %s444_s14 }
   0x5   : > { %s88_s20 = ssub.s32 %s448_s15, %s498_s18  ;;  %p101_p0 = scmp.ne.s32.totalorder %s444_s14, %s440_s13 }
   0x6   : > { %p89_p1 = scmp.eq.s32.totalorder %s88_s20, 0  ;;  %p102_p2 = scmp.eq.s32.totalorder %s494_s16, 1 }
   0x7   : > { %p107_p3 = scmp.ne.s32.totalorder %s440_s13, %s436_s12  ;;  %p108_p4 = scmp.eq.s32.totalorder %s310_s17, 1 }
   0x8   : > { %s509_s21 = scalar_select %p89_p1, %s444_s14, %s91_s19  }
   0x9   : > { %p511_p5 = por %p102_p2, %p101_p0  ;;  %p515_p6 = por %p108_p4, %p107_p3 }
   0xa   : > { %p313_p7 = scmp.ge.s32.totalorder %s448_s15, 1  ;;  %p138_p8 = scmp.lt.s32.totalorder %s448_s15, 3 }
   0xc   : > { %p139_p9 = pnand %p313_p7, %p138_p8 }
   0xd   : > { %v381_v0 = vld [vmem:[%s589_s1] sm:$0xff] (!%p139_p9)   ;;  %v450_v1 = vmov (!%p139_p9), 0.0   ;;  %v382_v2 = vld [vmem:[%s589_s1 + $0x8] sm:$0xff] (!%p139_p9)   ;;  %vm451_vm0 = vmmov (!%p139_p9), 0   ;;  %p159_p10 = scmp.lt.s32.totalorder (!%p139_p9), %s494_s16, 1  ;;  %v383_v3 = vld [vmem:[%s589_s1 + $0x10] sm:$0xff] (!%p139_p9)  }
   0xe   : > { %142 = sbr.rel (%p139_p9) target bundleno = 258 (0x102), region = 32  ;;  %328 = vmatprep.subr.bf16.mxu0 (!%p139_p9), %v450_v1  ;;  %336 = vmatprep.mubr.msk.bf16.mxu0 (!%p139_p9), %vm451_vm0, %v450_v1  ;;  %v384_v4 = vld [vmem:[%s589_s1 + $0x18] sm:$0xff] (!%p139_p9)   ;;  %vm200_vm1 = vcmask (!%p139_p9), 523264   ;;  %s157_s9 = sand.u32 (!%p139_p9), 1, %s440_s13   ;;  %v175_v6 = vld [vmem:[%s590_s2] sm:$0x1] (!%p139_p9) }
   0xf   : > { %329 = vmatpush3.bf16.msra.mxu0 (!%p139_p9), %v381_v0  ;;  %s320_s17 = sshll.u32 (!%p139_p9), %s494_s16, 4  ;;  %s158_s19 = scalar_lea.vmem (!%p139_p9), [#allocation2], %s157_s9 }
  0x10   : > { %330 = vmatprep.subr.bf16.mxu0 (!%p139_p9), %v450_v1  ;;  %s258_s20 = sshll.u32 (!%p139_p9), %s158_s19, 4  ;;  %s546_s26 = scalar_lea.hbm (!%p139_p9), %s591_s3, %s320_s17  ;;  %s548_s20 = int_to_ptr.vmem [resolvable:$true] %s258_s20 }
  0x11   : > { %s246_s27 = scalar_lea.sflag (!%p139_p9), [#allocation3], %s157_s9 }
  0x13   : > { %331 = vmatpush3.bf16.msra.mxu0 (!%p139_p9), %v382_v2 }
  0x14   : > { %332 = vmatprep.subr.bf16.mxu0 (!%p139_p9), %v450_v1 }
  0x15   : > { %s160_s28 = scalar_select %p159_p10, %s494_s16, 1 }
  0x16   : > { %s386_s16 = scalar_lea.vmem %s548_s20, 16 }
  0x17   : > { %s161_s6 = scalar_lea.vmem %s588_s0, %s160_s28  ;;  %333 = vmatpush3.bf16.msra.mxu0 %v383_v3  ;;  %p387_p11 = scmp.ne.s32.totalorder %s548_s20, %s386_s16 }
  0x18   : > { %334 = vmatprep.subr.bf16.mxu0 %v450_v1  ;;  %v385_v5 = vld [vmem:[%s161_s6] ss:$0 sps:$4 sm:$0x11]   ;;  %s452_s28 = smov [#allocation2]  }
  0x19   : > { %p388_p12 = pnand %p387_p11, %p511_p5  ;;  %s390_s29 = sshll.u32 %s452_s28, 4  ;;  %s391_s29 = int_to_ptr.vmem [resolvable:$false] %s390_s29 }
  0x1a   : > { %s392_s30 = scalar_lea.vmem %s391_s29, 32  ;;  %p393_p0 = scmp.lt.s32.totalorder %s548_s20, %s391_s29 }
  0x1b   : > { %335 = vmatpush3.bf16.msra.mxu0 %v384_v4  ;;  %p389_p13 = pneg %p388_p12  ;;  %p394_p1 = scmp.lt.s32.totalorder %s392_s30, %s386_s16 }
  0x1d   : > { %p395_p2 = por %p394_p1, %p393_p0 }
  0x1e   : > { %337 = vmatmul.mubr.msk.bf16.vlgmr.msra.gmra.mrb[0].mxu0 %vm200_vm1, %v385_v5 }
  0x1f   : > { %p396_p3 = pnand %p395_p2, %p389_p13 }
  0xf1   : > { %v238_v7 = vpop.f32.mrb[0].mxu0 }
  0xf2   : > { %v239_v8 = vadd.f32 %v238_v7, %v175_v6  ;;  %v338_v9 = vpop.f32.mrb[1].mxu0 }
  0xf3   : > { %v241_v10 = vpop.f32.mrb[2].mxu0 }
  0xf4   : > { %244 = vst [vmem:[%s158_s19] sm:$0x1] %v239_v8  ;;  %v339_v11 = vpop.f32.mrb[3].mxu0 }
  0xf5   : > { %399 = shalt.err (!%p396_p3)
}
  0xf6   : > { %s400_s4 = scalar_lea.hbm %s546_s26, 16  ;;  %s404_s7 = scalar_lea.hbm %s591_s3, 32 }
  0xf7   : > { %p401_p4 = scmp.ne.s32.totalorder %s546_s26, %s400_s4  ;;  %p405_p9 = scmp.lt.u32.totalorder %s546_s26, %s591_s3 }
  0xf8   : > { %p406_p10 = scmp.lt.u32.totalorder %s404_s7, %s400_s4  ;;  %p408_p12 = scmp.lt.u32.totalorder %s400_s4, %s546_s26 }
  0xf9   : > { %p402_p7 = pnand %p401_p4, %p511_p5 }
  0xfa   : > { %p407_p11 = por %p406_p10, %p405_p9 }
  0xfb   : > { %p403_p8 = pneg %p402_p7 }
  0xfc   : > { %p409_p13 = por %p408_p12, %p407_p11 }
  0xfe   : > { %p410_p0 = pnand %p409_p13, %p403_p8 }
 0x100   : > { %413 = shalt.err (!%p410_p0)
}
 0x101   : > { %340 = dma.vmem_to_hbm [thread:$0]  (%p511_p5), %s548_s20, 16, %s546_s26, %s246_s27  }
 0x102 PF: > { %p346_p1 = scmp.ge.s32.totalorder %s448_s15, 2  ;;  %s270_s10 = sand.u32 1, %s436_s12  }
 0x103   : > { %s271_s11 = scalar_lea.sflag [#allocation3], %s270_s10 }
 0x104   : > { %p343_p2 = pnand %p346_p1, %p515_p6 }
 0x106   : > { %431 = dma.done.wait (!%p343_p2), %s271_s11, 16  }
 0x107   : > { %433 = vsyncadd (!%p343_p2), %s271_s11, 4294967280  ;;  %p13_p3 = scmp.ge.s32.totalorder %s498_s18, 4   ;;  %s594_s12 = smov %s440_s13 }
 0x108   : > { %s595_s13 = smov %s444_s14  ;;  %s596_s14 = smov %s509_s21 }
 0x109   : > { %s597_s15 = smov %s498_s18  ;;  %15 = sbr.rel (!%p13_p3) target bundleno = 3 (0x3), region = 67 }
 0x110   :  { %275 = vsyncpa [#allocation3], 1 }
 0x111   :  { %277 = vsyncpa [#allocation3 + $0x1], 1 }

</bundles_post_ra>
